<compile_context>
chip_gen: v5e
topology: v5e:2x2
jax: 0.10.0
libtpu: 0.0.40
codegen_flags: <defaults>
</compile_context>

<pallas_src>
import functools

import jax
import jax.numpy as jnp
import numpy as np
from jax.experimental import pallas as pl
from jax.experimental.pallas import tpu as pltpu

CHANNELS = [16, 32, 64, 128]
STRIDES = [2, 2, 2, 2]
FC_DIMS = [256]
NUM_CLASSES = 1
IN_CHANNELS = 1
BN_EPS = 1e-5

LANES = 128      # lane-dense width of the logits output slab
OUT_ROWS = 8     # sublane-tile height of the logits output slab


# ----------------------------------------------------------------------------
# Trace-time helpers (plain JAX / numpy glue feeding the single fused kernel)
# ----------------------------------------------------------------------------
def _out_dim(n, s):
    return (n - 1) // s + 1


def _im2col_3d(x, stride):
    """x: (B, D, H, W, C), k=3, p=1 -> patches (B, Do*Ho*Wo, 27*C), (Do, Ho, Wo).

    Column ordering is tap-major / channel-minor: col = (kd*9 + kh*3 + kw)*C + c.
    Only used for the raw network input (layer 1).
    """
    B, D, H, W, C = x.shape
    s = stride
    Do, Ho, Wo = _out_dim(D, s), _out_dim(H, s), _out_dim(W, s)
    xp = jnp.pad(x, ((0, 0), (1, 1), (1, 1), (1, 1), (0, 0)))
    cols = []
    for kd in range(3):
        for kh in range(3):
            for kw in range(3):
                cols.append(xp[:,
                               kd:kd + (Do - 1) * s + 1:s,
                               kh:kh + (Ho - 1) * s + 1:s,
                               kw:kw + (Wo - 1) * s + 1:s,
                               :])
    patches = jnp.stack(cols, axis=4)                      # (B, Do, Ho, Wo, 27, C)
    return patches.reshape(B, Do * Ho * Wo, 27 * C), (Do, Ho, Wo)


@functools.lru_cache(maxsize=None)
def _layer2_gather_map(in_dhw, stride):
    """Plan for evaluating conv1 directly at every (layer-2 tap, layer-2 output) pair.

    in_dhw is the layer-1 output grid.  Returns
      row_idx (27*M2,) int32 : which layer-1 spatial position each slot needs
      mask    (M2, 27) f32   : 1 where the tap is inside the layer-1 grid, else 0
      out_dhw                : layer-2 output grid dims.
    """
    D, H, W = in_dhw
    s = stride
    Do, Ho, Wo = _out_dim(D, s), _out_dim(H, s), _out_dim(W, s)
    M2 = Do * Ho * Wo
    row_idx = np.zeros((27 * M2,), np.int32)
    mask = np.zeros((M2, 27), np.float32)
    for kd in range(3):
        for kh in range(3):
            for kw in range(3):
                t = (kd * 3 + kh) * 3 + kw
                for do in range(Do):
                    d = do * s - 1 + kd
                    for ho in range(Ho):
                        h = ho * s - 1 + kh
                        for wo in range(Wo):
                            w = wo * s - 1 + kw
                            mo = (do * Ho + ho) * Wo + wo
                            r = t * M2 + mo
                            if 0 <= d < D and 0 <= h < H and 0 <= w < W:
                                row_idx[r] = (d * H + h) * W + w
                                mask[mo, t] = 1.0
    return row_idx, mask, (Do, Ho, Wo)


@functools.lru_cache(maxsize=None)
def _selection_matrix(in_dhw, stride):
    """0/1 gather matrix for a k=3, p=1, stride-s conv over a (D, H, W) grid.

    Returns S of shape (27, Mout, Min) with S[t, mo, mi] = 1 iff flat input position
    mi is the tap-t (t = kd*9 + kh*3 + kw) neighbour of flat output position mo.
    Out-of-range (padding) taps simply have no 1 in their row -> zero padding.
    """
    D, H, W = in_dhw
    s = stride
    Do, Ho, Wo = _out_dim(D, s), _out_dim(H, s), _out_dim(W, s)
    S = np.zeros((27, Do * Ho * Wo, D * H * W), np.float32)
    for kd in range(3):
        for kh in range(3):
            for kw in range(3):
                t = (kd * 3 + kh) * 3 + kw
                for do in range(Do):
                    d = do * s - 1 + kd
                    if d < 0 or d >= D:
                        continue
                    for ho in range(Ho):
                        h = ho * s - 1 + kh
                        if h < 0 or h >= H:
                            continue
                        for wo in range(Wo):
                            w = wo * s - 1 + kw
                            if w < 0 or w >= W:
                                continue
                            S[t, (do * Ho + ho) * Wo + wo, (d * H + h) * W + w] = 1.0
    return S, (Do, Ho, Wo)


def _tile_bytes(shape, dtype):
    """VMEM footprint of one block after (8, 128) tile padding (approximate)."""
    shape = tuple(shape)
    if len(shape) < 2:
        shape = (1,) * (2 - len(shape)) + shape
    lanes = -(-shape[-1] // 128) * 128
    subl = -(-shape[-2] // 8) * 8
    lead = int(np.prod(shape[:-2], dtype=np.int64)) if len(shape) > 2 else 1
    return int(lead * subl * lanes * jnp.dtype(dtype).itemsize)


# ----------------------------------------------------------------------------
# Fused forward pass (single pallas_call)
# ----------------------------------------------------------------------------
def forward(params, x_ncdhw):
    """x_ncdhw: (B, Cin, D, H, W) -> logits (B, num_classes)."""
    x = jnp.transpose(x_ncdhw, (0, 2, 3, 4, 1)).astype(jnp.float32)   # NDHWC
    B, _, _, _, Cin = x.shape
    convs = params["convs"]
    (fc1_w, fc1_b), (fc2_w, fc2_b) = params["fcs"]
    C1, C2, C3, C4 = (int(w.shape[0]) for (w, _, _) in convs)

    # ---- layer 1 patches, evaluated at every (layer-2 tap, layer-2 output) pair ----
    p1, dhw1 = _im2col_3d(x, STRIDES[0])                    # (B, M1, 27*Cin)
    K1 = 27 * Cin
    row_idx, mask2_np, dhw2 = _layer2_gather_map(dhw1, STRIDES[1])
    M2 = int(np.prod(dhw2))                                 # layer-2 output voxels (64)
    p1g = jnp.take(p1, jnp.asarray(row_idx), axis=1).astype(jnp.bfloat16)  # (B, 27*M2, K1)
    mask2 = jnp.asarray(mask2_np, jnp.float32)              # (M2, 27)

    # conv1 (BN folded into scale/bias)
    w1 = convs[0][0]
    w1m = jnp.transpose(w1, (2, 3, 4, 1, 0)).reshape(K1, C1).astype(jnp.bfloat16)
    sc1 = convs[0][1].reshape(1, C1).astype(jnp.float32)
    bi1 = convs[0][2].reshape(1, C1).astype(jnp.float32)

    # conv2: K-concatenated weights (27*C1, C2), row = tap*C1 + cin
    w2 = convs[1][0]
    w2f = jnp.transpose(w2, (2, 3, 4, 1, 0)).reshape(27 * C1, C2).astype(jnp.bfloat16)
    sc2 = convs[1][1].reshape(1, C2).astype(jnp.float32)
    bi2 = convs[1][2].reshape(1, C2).astype(jnp.float32)

    # conv3: small 0/1 gather matrix over the layer-2 grid + K-concatenated weights
    S3, dhw3 = _selection_matrix(dhw2, STRIDES[2])
    M3 = int(np.prod(dhw3))                                 # layer-3 output voxels (8)
    sel3 = jnp.asarray(S3.reshape(27 * M3, M2), jnp.bfloat16)
    w3 = convs[2][0]
    w3f = jnp.transpose(w3, (2, 3, 4, 1, 0)).reshape(27 * C2, C3).astype(jnp.bfloat16)
    sc3 = convs[2][1].reshape(1, C3).astype(jnp.float32)
    bi3 = convs[2][2].reshape(1, C3).astype(jnp.float32)

    # conv4: single output voxel whose 8 valid taps read the whole 2^3 layer-3 grid
    # -> precomputed dense Toeplitz weight (M3*C3, C4); GAP over 1^3 is the identity.
    assert dhw3 == (2, 2, 2) and all(s == 2 for s in STRIDES), (
        "layer-4 Toeplitz path assumes the 2^3 -> 1^3 final stage "
        "(16^3 input with strides 2,2,2,2)")
    w4 = convs[3][0]
    w4t = jnp.transpose(w4, (2, 3, 4, 1, 0))                # (3,3,3,C3,C4)
    t4 = w4t[1:3, 1:3, 1:3].reshape(M3 * C3, C4).astype(jnp.bfloat16)   # (512, 128)
    sc4 = convs[3][1].reshape(1, C4).astype(jnp.float32)
    bi4 = convs[3][2].reshape(1, C4).astype(jnp.float32)

    # ---- MLP head, second Linear padded to a lane-dense 128-wide logits slab ----
    F1 = int(fc1_w.shape[0])
    NC = int(fc2_w.shape[0])
    assert NC <= LANES
    fw1 = jnp.transpose(fc1_w).astype(jnp.bfloat16)                      # (C4, F1)
    fb1 = fc1_b.reshape(1, F1).astype(jnp.float32)
    fw2 = jnp.zeros((LANES, F1), jnp.bfloat16).at[:NC].set(fc2_w.astype(jnp.bfloat16))
    fw2 = jnp.transpose(fw2)                                             # (F1, LANES)
    fb2 = jnp.zeros((1, LANES), jnp.float32).at[0, :NC].set(fc2_b.astype(jnp.float32))

    def kernel(p1_ref, m2_ref,
               w1_ref, sc1_ref, bi1_ref,
               w2_ref, sc2_ref, bi2_ref,
               sel3_ref, w3_ref, sc3_ref, bi3_ref,
               t4_ref, sc4_ref, bi4_ref,
               fw1_ref, fb1_ref, fw2_ref, fb2_ref,
               out_ref,
               p2_s, p3_s, p4_s):
        f32, bf16 = jnp.float32, jnp.bfloat16

        # conv1 + folded BN + ReLU, evaluated per layer-2 tap block and streamed
        # straight into the lane-concatenated conv2 patch scratch (K-concat layout).
        # The (M2, 1) mask column re-creates conv2's zero padding.
        for t in range(27):
            patch = p1_ref[0, t * M2:(t + 1) * M2, :]                   # (M2, K1)
            y1 = jnp.dot(patch, w1_ref[...], preferred_element_type=f32)
            y1 = jnp.maximum(y1 * sc1_ref[...] + bi1_ref[...], 0.0)
            y1 = y1 * m2_ref[:, t:t + 1]
            p2_s[:, t * C1:(t + 1) * C1] = y1.astype(bf16)

        # conv2 + BN + ReLU: one K = 27*C1 matmul.
        acc2 = jnp.dot(p2_s[...], w2_ref[...], preferred_element_type=f32)
        y2 = jnp.maximum(acc2 * sc2_ref[...] + bi2_ref[...], 0.0).astype(bf16)

        # conv3: exact 0/1 gather matmul, then one K = 27*C2 matmul.
        g3 = jnp.dot(sel3_ref[...], y2, preferred_element_type=f32)     # (27*M3, C2)
        for t in range(27):
            p3_s[:, t * C2:(t + 1) * C2] = g3[t * M3:(t + 1) * M3, :].astype(bf16)
        acc3 = jnp.dot(p3_s[...], w3_ref[...], preferred_element_type=f32)
        y3 = jnp.maximum(acc3 * sc3_ref[...] + bi3_ref[...], 0.0)       # (M3, C3) f32

        # conv4 (Toeplitz, single output voxel) + AdaptiveAvgPool3d((1,1,1)) == identity.
        # The flattened (M3*C3) patch is replicated over OUT_ROWS sublanes so all the
        # remaining matmuls run at M = OUT_ROWS.
        for m in range(M3):
            p4_s[:, m * C3:(m + 1) * C3] = jnp.broadcast_to(
                y3[m:m + 1, :], (OUT_ROWS, C3)).astype(bf16)
        acc4 = jnp.dot(p4_s[...], t4_ref[...], preferred_element_type=f32)
        pooled = jnp.maximum(acc4 * sc4_ref[...] + bi4_ref[...], 0.0)   # (OUT_ROWS, C4)

        h = jnp.dot(pooled.astype(bf16), fw1_ref[...],
                    preferred_element_type=f32) + fb1_ref[...]
        h = jnp.maximum(h, 0.0).astype(bf16)
        # TODO(synk): nn.Dropout(p=0.2) is identity in inference mode; training-mode
        # stochastic dropout (pltpu.prng_*) is intentionally not applied here.
        logits = jnp.dot(h, fw2_ref[...], preferred_element_type=f32) + fb2_ref[...]
        out_ref[...] = logits[None, :, :].astype(out_ref.dtype)         # (1, OUT_ROWS, LANES)

    inputs = (p1g, mask2,
              w1m, sc1, bi1,
              w2f, sc2, bi2,
              sel3, w3f, sc3, bi3,
              t4, sc4, bi4,
              fw1, fb1, fw2, fb2)

    def _resident_spec(a):
        # Whole array as one VMEM block; constant index_map => fetched once across the
        # batch grid (weights / gather matrices stay resident).
        n = a.ndim
        return pl.BlockSpec(a.shape, lambda b: (0,) * n)

    in_specs = [pl.BlockSpec((1, 27 * M2, K1), lambda b: (b, 0, 0))]
    in_specs += [_resident_spec(a) for a in inputs[1:]]
    out_spec = pl.BlockSpec((1, OUT_ROWS, LANES), lambda b: (b, 0, 0))

    scratch_shapes = [pltpu.VMEM((M2, 27 * C1), jnp.bfloat16),
                      pltpu.VMEM((M3, 27 * C2), jnp.bfloat16),
                      pltpu.VMEM((OUT_ROWS, M3 * C3), jnp.bfloat16)]

    # VMEM budget from tile-padded block sizes.  The pipeline still double-buffers the
    # constant-index residents, so the 2x factor is kept on every block; extra slack
    # covers in-kernel temporaries.
    blk_bytes = _tile_bytes((1, 27 * M2, K1), jnp.bfloat16)
    blk_bytes += sum(_tile_bytes(a.shape, a.dtype) for a in inputs[1:])
    blk_bytes += _tile_bytes((1, OUT_ROWS, LANES), jnp.float32)
    scr_bytes = (_tile_bytes((M2, 27 * C1), jnp.bfloat16)
                 + _tile_bytes((M3, 27 * C2), jnp.bfloat16)
                 + _tile_bytes((OUT_ROWS, M3 * C3), jnp.bfloat16))
    vmem_limit = int(2 * blk_bytes + scr_bytes + (16 << 20))

    out = pl.pallas_call(
        kernel,
        out_shape=jax.ShapeDtypeStruct((B, OUT_ROWS, LANES), jnp.float32),
        grid=(B,),
        in_specs=in_specs,
        out_specs=out_spec,
        scratch_shapes=scratch_shapes,
        compiler_params=pltpu.CompilerParams(
            dimension_semantics=("parallel",),
            vmem_limit_bytes=vmem_limit),
    )(*inputs)
    return out[:, 0, :NC]


# ----------------------------------------------------------------------------
# Deterministic parameter construction (matches Simple3DClassifier defaults)
# ----------------------------------------------------------------------------
def init_params(key):
    keys = jax.random.split(key, 32)
    ki = 0
    convs = []
    cur = IN_CHANNELS
    for ch in CHANNELS:
        w = (jax.random.normal(keys[ki], (ch, cur, 3, 3, 3), jnp.float32)
             / np.sqrt(cur * 27.0)).astype(jnp.bfloat16); ki += 1
        gamma = 1.0 + 0.1 * jax.random.normal(keys[ki], (ch,), jnp.float32); ki += 1
        beta = 0.1 * jax.random.normal(keys[ki], (ch,), jnp.float32); ki += 1
        rmean = 0.05 * jax.random.normal(keys[ki], (ch,), jnp.float32); ki += 1
        rvar = jnp.abs(1.0 + 0.1 * jax.random.normal(keys[ki], (ch,), jnp.float32)); ki += 1
        # Fold BatchNorm3d (eval mode) into an affine scale/bias (kept in f32).
        scale = gamma / jnp.sqrt(rvar + BN_EPS)
        bias = beta - rmean * scale
        convs.append((w, scale, bias))
        cur = ch
    fcs = []
    in_f = cur
    for h in FC_DIMS + [NUM_CLASSES]:
        w = (jax.random.normal(keys[ki], (h, in_f), jnp.float32)
             / np.sqrt(in_f)).astype(jnp.bfloat16); ki += 1
        b = 0.01 * jax.random.normal(keys[ki], (h,), jnp.float32); ki += 1
        fcs.append((w, b))
        in_f = h
    return {"convs": convs, "fcs": fcs}


# ----------------------------------------------------------------------------
# Pure-JAX reference (XLA conv, f32) for correctness checking
# ----------------------------------------------------------------------------
def reference_forward(params, x_ncdhw):
    x = jnp.transpose(x_ncdhw, (0, 2, 3, 4, 1)).astype(jnp.float32)
    for (w, scale, bias), st in zip(params["convs"], STRIDES):
        wt = jnp.transpose(w.astype(jnp.float32), (2, 3, 4, 1, 0))   # DHWIO
        x = jax.lax.conv_general_dilated(
            x, wt, window_strides=(st,) * 3, padding=[(1, 1)] * 3,
            dimension_numbers=("NDHWC", "DHWIO", "NDHWC"))
        x = jnp.maximum(x * scale + bias, 0.0)
    pooled = jnp.mean(x, axis=(1, 2, 3))
    (w1, b1), (w2, b2) = params["fcs"]
    h = jnp.maximum(pooled @ w1.astype(jnp.float32).T + b1, 0.0)
    return h @ w2.astype(jnp.float32).T + b2


if __name__ == "__main__":
    key = jax.random.PRNGKey(0)
    pkey, xkey = jax.random.split(key)
    params = init_params(pkey)
    # Small deterministic input: batch=2, in_channels=1, 16^3 volume (NCDHW).
    x = jax.random.normal(xkey, (2, IN_CHANNELS, 16, 16, 16), jnp.float32)

    out = jax.block_until_ready(jax.jit(forward)(params, x))
    assert out.shape == (2, NUM_CLASSES), out.shape

    ref = jax.block_until_ready(jax.jit(reference_forward)(params, x))
    np.testing.assert_allclose(np.asarray(out, np.float32), np.asarray(ref, np.float32),
                               rtol=2e-2, atol=2e-2)

    print("KERNEL_OK")
</pallas_src>

<mosaic_0001>
module attributes {stable_mosaic.version = 11 : i64} {
  func.func @kernel(%arg0: i32, %arg1: memref<1x1728x27xbf16, #tpu.memory_space<vmem>>, %arg2: memref<64x27xf32, #tpu.memory_space<vmem>>, %arg3: memref<27x16xbf16, #tpu.memory_space<vmem>>, %arg4: memref<1x16xf32, #tpu.memory_space<vmem>>, %arg5: memref<1x16xf32, #tpu.memory_space<vmem>>, %arg6: memref<432x32xbf16, #tpu.memory_space<vmem>>, %arg7: memref<1x32xf32, #tpu.memory_space<vmem>>, %arg8: memref<1x32xf32, #tpu.memory_space<vmem>>, %arg9: memref<216x64xbf16, #tpu.memory_space<vmem>>, %arg10: memref<864x64xbf16, #tpu.memory_space<vmem>>, %arg11: memref<1x64xf32, #tpu.memory_space<vmem>>, %arg12: memref<1x64xf32, #tpu.memory_space<vmem>>, %arg13: memref<512x128xbf16, #tpu.memory_space<vmem>>, %arg14: memref<1x128xf32, #tpu.memory_space<vmem>>, %arg15: memref<1x128xf32, #tpu.memory_space<vmem>>, %arg16: memref<128x256xbf16, #tpu.memory_space<vmem>>, %arg17: memref<1x256xf32, #tpu.memory_space<vmem>>, %arg18: memref<256x128xbf16, #tpu.memory_space<vmem>>, %arg19: memref<1x128xf32, #tpu.memory_space<vmem>>, %arg20: memref<1x8x128xf32, #tpu.memory_space<vmem>>, %arg21: memref<64x432xbf16, #tpu.memory_space<vmem>>, %arg22: memref<8x864xbf16, #tpu.memory_space<vmem>>, %arg23: memref<8x512xbf16, #tpu.memory_space<vmem>>) attributes {dimension_semantics = [#tpu.dimension_semantics<parallel>], iteration_bounds = array<i64: 2>, scalar_prefetch = 0 : i64, scratch_operands = 3 : i64, tpu.core_type = #tpu.core_type<tc>, window_params = [{transform_indices = @transform_0, window_bounds = array<i64: 1, 1728, 27>}, {pipeline_mode = #tpu.pipeline_mode<synchronous>, transform_indices = @transform_1, window_bounds = array<i64: 64, 27>}, {pipeline_mode = #tpu.pipeline_mode<synchronous>, transform_indices = @transform_2, window_bounds = array<i64: 27, 16>}, {pipeline_mode = #tpu.pipeline_mode<synchronous>, transform_indices = @transform_3, window_bounds = array<i64: 1, 16>}, {pipeline_mode = #tpu.pipeline_mode<synchronous>, transform_indices = @transform_4, window_bounds = array<i64: 1, 16>}, {pipeline_mode = #tpu.pipeline_mode<synchronous>, transform_indices = @transform_5, window_bounds = array<i64: 432, 32>}, {pipeline_mode = #tpu.pipeline_mode<synchronous>, transform_indices = @transform_6, window_bounds = array<i64: 1, 32>}, {pipeline_mode = #tpu.pipeline_mode<synchronous>, transform_indices = @transform_7, window_bounds = array<i64: 1, 32>}, {pipeline_mode = #tpu.pipeline_mode<synchronous>, transform_indices = @transform_8, window_bounds = array<i64: 216, 64>}, {pipeline_mode = #tpu.pipeline_mode<synchronous>, transform_indices = @transform_9, window_bounds = array<i64: 864, 64>}, {pipeline_mode = #tpu.pipeline_mode<synchronous>, transform_indices = @transform_10, window_bounds = array<i64: 1, 64>}, {pipeline_mode = #tpu.pipeline_mode<synchronous>, transform_indices = @transform_11, window_bounds = array<i64: 1, 64>}, {pipeline_mode = #tpu.pipeline_mode<synchronous>, transform_indices = @transform_12, window_bounds = array<i64: 512, 128>}, {pipeline_mode = #tpu.pipeline_mode<synchronous>, transform_indices = @transform_13, window_bounds = array<i64: 1, 128>}, {pipeline_mode = #tpu.pipeline_mode<synchronous>, transform_indices = @transform_14, window_bounds = array<i64: 1, 128>}, {pipeline_mode = #tpu.pipeline_mode<synchronous>, transform_indices = @transform_15, window_bounds = array<i64: 128, 256>}, {pipeline_mode = #tpu.pipeline_mode<synchronous>, transform_indices = @transform_16, window_bounds = array<i64: 1, 256>}, {pipeline_mode = #tpu.pipeline_mode<synchronous>, transform_indices = @transform_17, window_bounds = array<i64: 256, 128>}, {pipeline_mode = #tpu.pipeline_mode<synchronous>, transform_indices = @transform_18, window_bounds = array<i64: 1, 128>}, {transform_indices = @transform_19, window_bounds = array<i64: 1, 8, 128>}]} {
    %c0 = arith.constant 0 : index
    %c0_0 = arith.constant 0 : index
    %c0_1 = arith.constant 0 : index
    %0 = vector.load %arg1[%c0, %c0_0, %c0_1] : memref<1x1728x27xbf16, #tpu.memory_space<vmem>>, vector<1x64x27xbf16>
    %1 = vector.shape_cast %0 : vector<1x64x27xbf16> to vector<64x27xbf16>
    %c0_2 = arith.constant 0 : index
    %c0_3 = arith.constant 0 : index
    %2 = vector.load %arg3[%c0_2, %c0_3] : memref<27x16xbf16, #tpu.memory_space<vmem>>, vector<27x16xbf16>
    %cst = arith.constant dense<0.000000e+00> : vector<64x16xf32>
    %3 = tpu.matmul %1, %2, %cst {dimension_numbers = #tpu.dot_dimension_numbers<[1], [0], [0], [1], [0, 0, 1, 1], [], []>} : vector<64x27xbf16>, vector<27x16xbf16>, vector<64x16xf32> -> vector<64x16xf32>
    %c0_4 = arith.constant 0 : index
    %c0_5 = arith.constant 0 : index
    %4 = vector.load %arg4[%c0_4, %c0_5] : memref<1x16xf32, #tpu.memory_space<vmem>>, vector<1x16xf32>
    %5 = vector.broadcast %4 : vector<1x16xf32> to vector<64x16xf32>
    %6 = arith.mulf %3, %5 : vector<64x16xf32>
    %c0_6 = arith.constant 0 : index
    %c0_7 = arith.constant 0 : index
    %7 = vector.load %arg5[%c0_6, %c0_7] : memref<1x16xf32, #tpu.memory_space<vmem>>, vector<1x16xf32>
    %8 = vector.broadcast %7 : vector<1x16xf32> to vector<64x16xf32>
    %9 = arith.addf %6, %8 : vector<64x16xf32>
    %cst_8 = arith.constant 0.000000e+00 : f32
    %10 = vector.broadcast %cst_8 : f32 to vector<64x16xf32>
    %11 = arith.maximumf %9, %10 : vector<64x16xf32>
    %c0_9 = arith.constant 0 : index
    %c0_10 = arith.constant 0 : index
    %12 = vector.load %arg2[%c0_9, %c0_10] : memref<64x27xf32, #tpu.memory_space<vmem>>, vector<64x1xf32>
    %13 = vector.broadcast %12 : vector<64x1xf32> to vector<64x16xf32>
    %14 = arith.mulf %11, %13 : vector<64x16xf32>
    %15 = arith.truncf %14 : vector<64x16xf32> to vector<64x16xbf16>
    %c0_11 = arith.constant 0 : index
    %c0_12 = arith.constant 0 : index
    %16 = vector.load %arg21[%c0_11, %c0_12] : memref<64x432xbf16, #tpu.memory_space<vmem>>, vector<64x16xbf16>
    tpu.vector_store %arg21[%c0_11, %c0_12], %15 {strides = array<i32>} : memref<64x432xbf16, #tpu.memory_space<vmem>>, vector<64x16xbf16>,
    %c0_13 = arith.constant 0 : index
    %c64 = arith.constant 64 : index
    %c0_14 = arith.constant 0 : index
    %17 = vector.load %arg1[%c0_13, %c64, %c0_14] : memref<1x1728x27xbf16, #tpu.memory_space<vmem>>, vector<1x64x27xbf16>
    %18 = vector.shape_cast %17 : vector<1x64x27xbf16> to vector<64x27xbf16>
    %c0_15 = arith.constant 0 : index
    %c0_16 = arith.constant 0 : index
    %19 = vector.load %arg3[%c0_15, %c0_16] : memref<27x16xbf16, #tpu.memory_space<vmem>>, vector<27x16xbf16>
    %cst_17 = arith.constant dense<0.000000e+00> : vector<64x16xf32>
    %20 = tpu.matmul %18, %19, %cst_17 {dimension_numbers = #tpu.dot_dimension_numbers<[1], [0], [0], [1], [0, 0, 1, 1], [], []>} : vector<64x27xbf16>, vector<27x16xbf16>, vector<64x16xf32> -> vector<64x16xf32>
    %c0_18 = arith.constant 0 : index
    %c0_19 = arith.constant 0 : index
    %21 = vector.load %arg4[%c0_18, %c0_19] : memref<1x16xf32, #tpu.memory_space<vmem>>, vector<1x16xf32>
    %22 = vector.broadcast %21 : vector<1x16xf32> to vector<64x16xf32>
    %23 = arith.mulf %20, %22 : vector<64x16xf32>
    %c0_20 = arith.constant 0 : index
    %c0_21 = arith.constant 0 : index
    %24 = vector.load %arg5[%c0_20, %c0_21] : memref<1x16xf32, #tpu.memory_space<vmem>>, vector<1x16xf32>
    %25 = vector.broadcast %24 : vector<1x16xf32> to vector<64x16xf32>
    %26 = arith.addf %23, %25 : vector<64x16xf32>
    %cst_22 = arith.constant 0.000000e+00 : f32
    %27 = vector.broadcast %cst_22 : f32 to vector<64x16xf32>
    %28 = arith.maximumf %26, %27 : vector<64x16xf32>
    %c0_23 = arith.constant 0 : index
    %c1 = arith.constant 1 : index
    %29 = vector.load %arg2[%c0_23, %c1] : memref<64x27xf32, #tpu.memory_space<vmem>>, vector<64x1xf32>
    %30 = vector.broadcast %29 : vector<64x1xf32> to vector<64x16xf32>
    %31 = arith.mulf %28, %30 : vector<64x16xf32>
    %32 = arith.truncf %31 : vector<64x16xf32> to vector<64x16xbf16>
    %c0_24 = arith.constant 0 : index
    %c16 = arith.constant 16 : index
    %33 = vector.load %arg21[%c0_24, %c16] : memref<64x432xbf16, #tpu.memory_space<vmem>>, vector<64x16xbf16>
    tpu.vector_store %arg21[%c0_24, %c16], %32 {strides = array<i32>} : memref<64x432xbf16, #tpu.memory_space<vmem>>, vector<64x16xbf16>,
    %c0_25 = arith.constant 0 : index
    %c128 = arith.constant 128 : index
    %c0_26 = arith.constant 0 : index
    %34 = vector.load %arg1[%c0_25, %c128, %c0_26] : memref<1x1728x27xbf16, #tpu.memory_space<vmem>>, vector<1x64x27xbf16>
    %35 = vector.shape_cast %34 : vector<1x64x27xbf16> to vector<64x27xbf16>
    %c0_27 = arith.constant 0 : index
    %c0_28 = arith.constant 0 : index
    %36 = vector.load %arg3[%c0_27, %c0_28] : memref<27x16xbf16, #tpu.memory_space<vmem>>, vector<27x16xbf16>
    %cst_29 = arith.constant dense<0.000000e+00> : vector<64x16xf32>
    %37 = tpu.matmul %35, %36, %cst_29 {dimension_numbers = #tpu.dot_dimension_numbers<[1], [0], [0], [1], [0, 0, 1, 1], [], []>} : vector<64x27xbf16>, vector<27x16xbf16>, vector<64x16xf32> -> vector<64x16xf32>
    %c0_30 = arith.constant 0 : index
    %c0_31 = arith.constant 0 : index
    %38 = vector.load %arg4[%c0_30, %c0_31] : memref<1x16xf32, #tpu.memory_space<vmem>>, vector<1x16xf32>
    %39 = vector.broadcast %38 : vector<1x16xf32> to vector<64x16xf32>
    %40 = arith.mulf %37, %39 : vector<64x16xf32>
    %c0_32 = arith.constant 0 : index
    %c0_33 = arith.constant 0 : index
    %41 = vector.load %arg5[%c0_32, %c0_33] : memref<1x16xf32, #tpu.memory_space<vmem>>, vector<1x16xf32>
    %42 = vector.broadcast %41 : vector<1x16xf32> to vector<64x16xf32>
    %43 = arith.addf %40, %42 : vector<64x16xf32>
    %cst_34 = arith.constant 0.000000e+00 : f32
    %44 = vector.broadcast %cst_34 : f32 to vector<64x16xf32>
    %45 = arith.maximumf %43, %44 : vector<64x16xf32>
    %c0_35 = arith.constant 0 : index
    %c2 = arith.constant 2 : index
    %46 = vector.load %arg2[%c0_35, %c2] : memref<64x27xf32, #tpu.memory_space<vmem>>, vector<64x1xf32>
    %47 = vector.broadcast %46 : vector<64x1xf32> to vector<64x16xf32>
    %48 = arith.mulf %45, %47 : vector<64x16xf32>
    %49 = arith.truncf %48 : vector<64x16xf32> to vector<64x16xbf16>
    %c0_36 = arith.constant 0 : index
    %c32 = arith.constant 32 : index
    %50 = vector.load %arg21[%c0_36, %c32] : memref<64x432xbf16, #tpu.memory_space<vmem>>, vector<64x16xbf16>
    tpu.vector_store %arg21[%c0_36, %c32], %49 {strides = array<i32>} : memref<64x432xbf16, #tpu.memory_space<vmem>>, vector<64x16xbf16>,
    %c0_37 = arith.constant 0 : index
    %c192 = arith.constant 192 : index
    %c0_38 = arith.constant 0 : index
    %51 = vector.load %arg1[%c0_37, %c192, %c0_38] : memref<1x1728x27xbf16, #tpu.memory_space<vmem>>, vector<1x64x27xbf16>
    %52 = vector.shape_cast %51 : vector<1x64x27xbf16> to vector<64x27xbf16>
    %c0_39 = arith.constant 0 : index
    %c0_40 = arith.constant 0 : index
    %53 = vector.load %arg3[%c0_39, %c0_40] : memref<27x16xbf16, #tpu.memory_space<vmem>>, vector<27x16xbf16>
    %cst_41 = arith.constant dense<0.000000e+00> : vector<64x16xf32>
    %54 = tpu.matmul %52, %53, %cst_41 {dimension_numbers = #tpu.dot_dimension_numbers<[1], [0], [0], [1], [0, 0, 1, 1], [], []>} : vector<64x27xbf16>, vector<27x16xbf16>, vector<64x16xf32> -> vector<64x16xf32>
    %c0_42 = arith.constant 0 : index
    %c0_43 = arith.constant 0 : index
    %55 = vector.load %arg4[%c0_42, %c0_43] : memref<1x16xf32, #tpu.memory_space<vmem>>, vector<1x16xf32>
    %56 = vector.broadcast %55 : vector<1x16xf32> to vector<64x16xf32>
    %57 = arith.mulf %54, %56 : vector<64x16xf32>
    %c0_44 = arith.constant 0 : index
    %c0_45 = arith.constant 0 : index
    %58 = vector.load %arg5[%c0_44, %c0_45] : memref<1x16xf32, #tpu.memory_space<vmem>>, vector<1x16xf32>
    %59 = vector.broadcast %58 : vector<1x16xf32> to vector<64x16xf32>
    %60 = arith.addf %57, %59 : vector<64x16xf32>
    %cst_46 = arith.constant 0.000000e+00 : f32
    %61 = vector.broadcast %cst_46 : f32 to vector<64x16xf32>
    %62 = arith.maximumf %60, %61 : vector<64x16xf32>
    %c0_47 = arith.constant 0 : index
    %c3 = arith.constant 3 : index
    %63 = vector.load %arg2[%c0_47, %c3] : memref<64x27xf32, #tpu.memory_space<vmem>>, vector<64x1xf32>
    %64 = vector.broadcast %63 : vector<64x1xf32> to vector<64x16xf32>
    %65 = arith.mulf %62, %64 : vector<64x16xf32>
    %66 = arith.truncf %65 : vector<64x16xf32> to vector<64x16xbf16>
    %c0_48 = arith.constant 0 : index
    %c48 = arith.constant 48 : index
    %67 = vector.load %arg21[%c0_48, %c48] : memref<64x432xbf16, #tpu.memory_space<vmem>>, vector<64x16xbf16>
    tpu.vector_store %arg21[%c0_48, %c48], %66 {strides = array<i32>} : memref<64x432xbf16, #tpu.memory_space<vmem>>, vector<64x16xbf16>,
    %c0_49 = arith.constant 0 : index
    %c256 = arith.constant 256 : index
    %c0_50 = arith.constant 0 : index
    %68 = vector.load %arg1[%c0_49, %c256, %c0_50] : memref<1x1728x27xbf16, #tpu.memory_space<vmem>>, vector<1x64x27xbf16>
    %69 = vector.shape_cast %68 : vector<1x64x27xbf16> to vector<64x27xbf16>
    %c0_51 = arith.constant 0 : index
    %c0_52 = arith.constant 0 : index
    %70 = vector.load %arg3[%c0_51, %c0_52] : memref<27x16xbf16, #tpu.memory_space<vmem>>, vector<27x16xbf16>
    %cst_53 = arith.constant dense<0.000000e+00> : vector<64x16xf32>
    %71 = tpu.matmul %69, %70, %cst_53 {dimension_numbers = #tpu.dot_dimension_numbers<[1], [0], [0], [1], [0, 0, 1, 1], [], []>} : vector<64x27xbf16>, vector<27x16xbf16>, vector<64x16xf32> -> vector<64x16xf32>
    %c0_54 = arith.constant 0 : index
    %c0_55 = arith.constant 0 : index
    %72 = vector.load %arg4[%c0_54, %c0_55] : memref<1x16xf32, #tpu.memory_space<vmem>>, vector<1x16xf32>
    %73 = vector.broadcast %72 : vector<1x16xf32> to vector<64x16xf32>
    %74 = arith.mulf %71, %73 : vector<64x16xf32>
    %c0_56 = arith.constant 0 : index
    %c0_57 = arith.constant 0 : index
    %75 = vector.load %arg5[%c0_56, %c0_57] : memref<1x16xf32, #tpu.memory_space<vmem>>, vector<1x16xf32>
    %76 = vector.broadcast %75 : vector<1x16xf32> to vector<64x16xf32>
    %77 = arith.addf %74, %76 : vector<64x16xf32>
    %cst_58 = arith.constant 0.000000e+00 : f32
    %78 = vector.broadcast %cst_58 : f32 to vector<64x16xf32>
    %79 = arith.maximumf %77, %78 : vector<64x16xf32>
    %c0_59 = arith.constant 0 : index
    %c4 = arith.constant 4 : index
    %80 = vector.load %arg2[%c0_59, %c4] : memref<64x27xf32, #tpu.memory_space<vmem>>, vector<64x1xf32>
    %81 = vector.broadcast %80 : vector<64x1xf32> to vector<64x16xf32>
    %82 = arith.mulf %79, %81 : vector<64x16xf32>
    %83 = arith.truncf %82 : vector<64x16xf32> to vector<64x16xbf16>
    %c0_60 = arith.constant 0 : index
    %c64_61 = arith.constant 64 : index
    %84 = vector.load %arg21[%c0_60, %c64_61] : memref<64x432xbf16, #tpu.memory_space<vmem>>, vector<64x16xbf16>
    tpu.vector_store %arg21[%c0_60, %c64_61], %83 {strides = array<i32>} : memref<64x432xbf16, #tpu.memory_space<vmem>>, vector<64x16xbf16>,
    %c0_62 = arith.constant 0 : index
    %c320 = arith.constant 320 : index
    %c0_63 = arith.constant 0 : index
    %85 = vector.load %arg1[%c0_62, %c320, %c0_63] : memref<1x1728x27xbf16, #tpu.memory_space<vmem>>, vector<1x64x27xbf16>
    %86 = vector.shape_cast %85 : vector<1x64x27xbf16> to vector<64x27xbf16>
    %c0_64 = arith.constant 0 : index
    %c0_65 = arith.constant 0 : index
    %87 = vector.load %arg3[%c0_64, %c0_65] : memref<27x16xbf16, #tpu.memory_space<vmem>>, vector<27x16xbf16>
    %cst_66 = arith.constant dense<0.000000e+00> : vector<64x16xf32>
    %88 = tpu.matmul %86, %87, %cst_66 {dimension_numbers = #tpu.dot_dimension_numbers<[1], [0], [0], [1], [0, 0, 1, 1], [], []>} : vector<64x27xbf16>, vector<27x16xbf16>, vector<64x16xf32> -> vector<64x16xf32>
    %c0_67 = arith.constant 0 : index
    %c0_68 = arith.constant 0 : index
    %89 = vector.load %arg4[%c0_67, %c0_68] : memref<1x16xf32, #tpu.memory_space<vmem>>, vector<1x16xf32>
    %90 = vector.broadcast %89 : vector<1x16xf32> to vector<64x16xf32>
    %91 = arith.mulf %88, %90 : vector<64x16xf32>
    %c0_69 = arith.constant 0 : index
    %c0_70 = arith.constant 0 : index
    %92 = vector.load %arg5[%c0_69, %c0_70] : memref<1x16xf32, #tpu.memory_space<vmem>>, vector<1x16xf32>
    %93 = vector.broadcast %92 : vector<1x16xf32> to vector<64x16xf32>
    %94 = arith.addf %91, %93 : vector<64x16xf32>
    %cst_71 = arith.constant 0.000000e+00 : f32
    %95 = vector.broadcast %cst_71 : f32 to vector<64x16xf32>
    %96 = arith.maximumf %94, %95 : vector<64x16xf32>
    %c0_72 = arith.constant 0 : index
    %c5 = arith.constant 5 : index
    %97 = vector.load %arg2[%c0_72, %c5] : memref<64x27xf32, #tpu.memory_space<vmem>>, vector<64x1xf32>
    %98 = vector.broadcast %97 : vector<64x1xf32> to vector<64x16xf32>
    %99 = arith.mulf %96, %98 : vector<64x16xf32>
    %100 = arith.truncf %99 : vector<64x16xf32> to vector<64x16xbf16>
    %c0_73 = arith.constant 0 : index
    %c80 = arith.constant 80 : index
    %101 = vector.load %arg21[%c0_73, %c80] : memref<64x432xbf16, #tpu.memory_space<vmem>>, vector<64x16xbf16>
    tpu.vector_store %arg21[%c0_73, %c80], %100 {strides = array<i32>} : memref<64x432xbf16, #tpu.memory_space<vmem>>, vector<64x16xbf16>,
    %c0_74 = arith.constant 0 : index
    %c384 = arith.constant 384 : index
    %c0_75 = arith.constant 0 : index
    %102 = vector.load %arg1[%c0_74, %c384, %c0_75] : memref<1x1728x27xbf16, #tpu.memory_space<vmem>>, vector<1x64x27xbf16>
    %103 = vector.shape_cast %102 : vector<1x64x27xbf16> to vector<64x27xbf16>
    %c0_76 = arith.constant 0 : index
    %c0_77 = arith.constant 0 : index
    %104 = vector.load %arg3[%c0_76, %c0_77] : memref<27x16xbf16, #tpu.memory_space<vmem>>, vector<27x16xbf16>
    %cst_78 = arith.constant dense<0.000000e+00> : vector<64x16xf32>
    %105 = tpu.matmul %103, %104, %cst_78 {dimension_numbers = #tpu.dot_dimension_numbers<[1], [0], [0], [1], [0, 0, 1, 1], [], []>} : vector<64x27xbf16>, vector<27x16xbf16>, vector<64x16xf32> -> vector<64x16xf32>
    %c0_79 = arith.constant 0 : index
    %c0_80 = arith.constant 0 : index
    %106 = vector.load %arg4[%c0_79, %c0_80] : memref<1x16xf32, #tpu.memory_space<vmem>>, vector<1x16xf32>
    %107 = vector.broadcast %106 : vector<1x16xf32> to vector<64x16xf32>
    %108 = arith.mulf %105, %107 : vector<64x16xf32>
    %c0_81 = arith.constant 0 : index
    %c0_82 = arith.constant 0 : index
    %109 = vector.load %arg5[%c0_81, %c0_82] : memref<1x16xf32, #tpu.memory_space<vmem>>, vector<1x16xf32>
    %110 = vector.broadcast %109 : vector<1x16xf32> to vector<64x16xf32>
    %111 = arith.addf %108, %110 : vector<64x16xf32>
    %cst_83 = arith.constant 0.000000e+00 : f32
    %112 = vector.broadcast %cst_83 : f32 to vector<64x16xf32>
    %113 = arith.maximumf %111, %112 : vector<64x16xf32>
    %c0_84 = arith.constant 0 : index
    %c6 = arith.constant 6 : index
    %114 = vector.load %arg2[%c0_84, %c6] : memref<64x27xf32, #tpu.memory_space<vmem>>, vector<64x1xf32>
    %115 = vector.broadcast %114 : vector<64x1xf32> to vector<64x16xf32>
    %116 = arith.mulf %113, %115 : vector<64x16xf32>
    %117 = arith.truncf %116 : vector<64x16xf32> to vector<64x16xbf16>
    %c0_85 = arith.constant 0 : index
    %c96 = arith.constant 96 : index
    %118 = vector.load %arg21[%c0_85, %c96] : memref<64x432xbf16, #tpu.memory_space<vmem>>, vector<64x16xbf16>
    tpu.vector_store %arg21[%c0_85, %c96], %117 {strides = array<i32>} : memref<64x432xbf16, #tpu.memory_space<vmem>>, vector<64x16xbf16>,
    %c0_86 = arith.constant 0 : index
    %c448 = arith.constant 448 : index
    %c0_87 = arith.constant 0 : index
    %119 = vector.load %arg1[%c0_86, %c448, %c0_87] : memref<1x1728x27xbf16, #tpu.memory_space<vmem>>, vector<1x64x27xbf16>
    %120 = vector.shape_cast %119 : vector<1x64x27xbf16> to vector<64x27xbf16>
    %c0_88 = arith.constant 0 : index
    %c0_89 = arith.constant 0 : index
    %121 = vector.load %arg3[%c0_88, %c0_89] : memref<27x16xbf16, #tpu.memory_space<vmem>>, vector<27x16xbf16>
    %cst_90 = arith.constant dense<0.000000e+00> : vector<64x16xf32>
    %122 = tpu.matmul %120, %121, %cst_90 {dimension_numbers = #tpu.dot_dimension_numbers<[1], [0], [0], [1], [0, 0, 1, 1], [], []>} : vector<64x27xbf16>, vector<27x16xbf16>, vector<64x16xf32> -> vector<64x16xf32>
    %c0_91 = arith.constant 0 : index
    %c0_92 = arith.constant 0 : index
    %123 = vector.load %arg4[%c0_91, %c0_92] : memref<1x16xf32, #tpu.memory_space<vmem>>, vector<1x16xf32>
    %124 = vector.broadcast %123 : vector<1x16xf32> to vector<64x16xf32>
    %125 = arith.mulf %122, %124 : vector<64x16xf32>
    %c0_93 = arith.constant 0 : index
    %c0_94 = arith.constant 0 : index
    %126 = vector.load %arg5[%c0_93, %c0_94] : memref<1x16xf32, #tpu.memory_space<vmem>>, vector<1x16xf32>
    %127 = vector.broadcast %126 : vector<1x16xf32> to vector<64x16xf32>
    %128 = arith.addf %125, %127 : vector<64x16xf32>
    %cst_95 = arith.constant 0.000000e+00 : f32
    %129 = vector.broadcast %cst_95 : f32 to vector<64x16xf32>
    %130 = arith.maximumf %128, %129 : vector<64x16xf32>
    %c0_96 = arith.constant 0 : index
    %c7 = arith.constant 7 : index
    %131 = vector.load %arg2[%c0_96, %c7] : memref<64x27xf32, #tpu.memory_space<vmem>>, vector<64x1xf32>
    %132 = vector.broadcast %131 : vector<64x1xf32> to vector<64x16xf32>
    %133 = arith.mulf %130, %132 : vector<64x16xf32>
    %134 = arith.truncf %133 : vector<64x16xf32> to vector<64x16xbf16>
    %c0_97 = arith.constant 0 : index
    %c112 = arith.constant 112 : index
    %135 = vector.load %arg21[%c0_97, %c112] : memref<64x432xbf16, #tpu.memory_space<vmem>>, vector<64x16xbf16>
    tpu.vector_store %arg21[%c0_97, %c112], %134 {strides = array<i32>} : memref<64x432xbf16, #tpu.memory_space<vmem>>, vector<64x16xbf16>,
    %c0_98 = arith.constant 0 : index
    %c512 = arith.constant 512 : index
    %c0_99 = arith.constant 0 : index
    %136 = vector.load %arg1[%c0_98, %c512, %c0_99] : memref<1x1728x27xbf16, #tpu.memory_space<vmem>>, vector<1x64x27xbf16>
    %137 = vector.shape_cast %136 : vector<1x64x27xbf16> to vector<64x27xbf16>
    %c0_100 = arith.constant 0 : index
    %c0_101 = arith.constant 0 : index
    %138 = vector.load %arg3[%c0_100, %c0_101] : memref<27x16xbf16, #tpu.memory_space<vmem>>, vector<27x16xbf16>
    %cst_102 = arith.constant dense<0.000000e+00> : vector<64x16xf32>
    %139 = tpu.matmul %137, %138, %cst_102 {dimension_numbers = #tpu.dot_dimension_numbers<[1], [0], [0], [1], [0, 0, 1, 1], [], []>} : vector<64x27xbf16>, vector<27x16xbf16>, vector<64x16xf32> -> vector<64x16xf32>
    %c0_103 = arith.constant 0 : index
    %c0_104 = arith.constant 0 : index
    %140 = vector.load %arg4[%c0_103, %c0_104] : memref<1x16xf32, #tpu.memory_space<vmem>>, vector<1x16xf32>
    %141 = vector.broadcast %140 : vector<1x16xf32> to vector<64x16xf32>
    %142 = arith.mulf %139, %141 : vector<64x16xf32>
    %c0_105 = arith.constant 0 : index
    %c0_106 = arith.constant 0 : index
    %143 = vector.load %arg5[%c0_105, %c0_106] : memref<1x16xf32, #tpu.memory_space<vmem>>, vector<1x16xf32>
    %144 = vector.broadcast %143 : vector<1x16xf32> to vector<64x16xf32>
    %145 = arith.addf %142, %144 : vector<64x16xf32>
    %cst_107 = arith.constant 0.000000e+00 : f32
    %146 = vector.broadcast %cst_107 : f32 to vector<64x16xf32>
    %147 = arith.maximumf %145, %146 : vector<64x16xf32>
    %c0_108 = arith.constant 0 : index
    %c8 = arith.constant 8 : index
    %148 = vector.load %arg2[%c0_108, %c8] : memref<64x27xf32, #tpu.memory_space<vmem>>, vector<64x1xf32>
    %149 = vector.broadcast %148 : vector<64x1xf32> to vector<64x16xf32>
    %150 = arith.mulf %147, %149 : vector<64x16xf32>
    %151 = arith.truncf %150 : vector<64x16xf32> to vector<64x16xbf16>
    %c0_109 = arith.constant 0 : index
    %c128_110 = arith.constant 128 : index
    %152 = vector.load %arg21[%c0_109, %c128_110] : memref<64x432xbf16, #tpu.memory_space<vmem>>, vector<64x16xbf16>
    tpu.vector_store %arg21[%c0_109, %c128_110], %151 {strides = array<i32>} : memref<64x432xbf16, #tpu.memory_space<vmem>>, vector<64x16xbf16>,
    %c0_111 = arith.constant 0 : index
    %c576 = arith.constant 576 : index
    %c0_112 = arith.constant 0 : index
    %153 = vector.load %arg1[%c0_111, %c576, %c0_112] : memref<1x1728x27xbf16, #tpu.memory_space<vmem>>, vector<1x64x27xbf16>
    %154 = vector.shape_cast %153 : vector<1x64x27xbf16> to vector<64x27xbf16>
    %c0_113 = arith.constant 0 : index
    %c0_114 = arith.constant 0 : index
    %155 = vector.load %arg3[%c0_113, %c0_114] : memref<27x16xbf16, #tpu.memory_space<vmem>>, vector<27x16xbf16>
    %cst_115 = arith.constant dense<0.000000e+00> : vector<64x16xf32>
    %156 = tpu.matmul %154, %155, %cst_115 {dimension_numbers = #tpu.dot_dimension_numbers<[1], [0], [0], [1], [0, 0, 1, 1], [], []>} : vector<64x27xbf16>, vector<27x16xbf16>, vector<64x16xf32> -> vector<64x16xf32>
    %c0_116 = arith.constant 0 : index
    %c0_117 = arith.constant 0 : index
    %157 = vector.load %arg4[%c0_116, %c0_117] : memref<1x16xf32, #tpu.memory_space<vmem>>, vector<1x16xf32>
    %158 = vector.broadcast %157 : vector<1x16xf32> to vector<64x16xf32>
    %159 = arith.mulf %156, %158 : vector<64x16xf32>
    %c0_118 = arith.constant 0 : index
    %c0_119 = arith.constant 0 : index
    %160 = vector.load %arg5[%c0_118, %c0_119] : memref<1x16xf32, #tpu.memory_space<vmem>>, vector<1x16xf32>
    %161 = vector.broadcast %160 : vector<1x16xf32> to vector<64x16xf32>
    %162 = arith.addf %159, %161 : vector<64x16xf32>
    %cst_120 = arith.constant 0.000000e+00 : f32
    %163 = vector.broadcast %cst_120 : f32 to vector<64x16xf32>
    %164 = arith.maximumf %162, %163 : vector<64x16xf32>
    %c0_121 = arith.constant 0 : index
    %c9 = arith.constant 9 : index
    %165 = vector.load %arg2[%c0_121, %c9] : memref<64x27xf32, #tpu.memory_space<vmem>>, vector<64x1xf32>
    %166 = vector.broadcast %165 : vector<64x1xf32> to vector<64x16xf32>
    %167 = arith.mulf %164, %166 : vector<64x16xf32>
    %168 = arith.truncf %167 : vector<64x16xf32> to vector<64x16xbf16>
    %c0_122 = arith.constant 0 : index
    %c144 = arith.constant 144 : index
    %169 = vector.load %arg21[%c0_122, %c144] : memref<64x432xbf16, #tpu.memory_space<vmem>>, vector<64x16xbf16>
    tpu.vector_store %arg21[%c0_122, %c144], %168 {strides = array<i32>} : memref<64x432xbf16, #tpu.memory_space<vmem>>, vector<64x16xbf16>,
    %c0_123 = arith.constant 0 : index
    %c640 = arith.constant 640 : index
    %c0_124 = arith.constant 0 : index
    %170 = vector.load %arg1[%c0_123, %c640, %c0_124] : memref<1x1728x27xbf16, #tpu.memory_space<vmem>>, vector<1x64x27xbf16>
    %171 = vector.shape_cast %170 : vector<1x64x27xbf16> to vector<64x27xbf16>
    %c0_125 = arith.constant 0 : index
    %c0_126 = arith.constant 0 : index
    %172 = vector.load %arg3[%c0_125, %c0_126] : memref<27x16xbf16, #tpu.memory_space<vmem>>, vector<27x16xbf16>
    %cst_127 = arith.constant dense<0.000000e+00> : vector<64x16xf32>
    %173 = tpu.matmul %171, %172, %cst_127 {dimension_numbers = #tpu.dot_dimension_numbers<[1], [0], [0], [1], [0, 0, 1, 1], [], []>} : vector<64x27xbf16>, vector<27x16xbf16>, vector<64x16xf32> -> vector<64x16xf32>
    %c0_128 = arith.constant 0 : index
    %c0_129 = arith.constant 0 : index
    %174 = vector.load %arg4[%c0_128, %c0_129] : memref<1x16xf32, #tpu.memory_space<vmem>>, vector<1x16xf32>
    %175 = vector.broadcast %174 : vector<1x16xf32> to vector<64x16xf32>
    %176 = arith.mulf %173, %175 : vector<64x16xf32>
    %c0_130 = arith.constant 0 : index
    %c0_131 = arith.constant 0 : index
    %177 = vector.load %arg5[%c0_130, %c0_131] : memref<1x16xf32, #tpu.memory_space<vmem>>, vector<1x16xf32>
    %178 = vector.broadcast %177 : vector<1x16xf32> to vector<64x16xf32>
    %179 = arith.addf %176, %178 : vector<64x16xf32>
    %cst_132 = arith.constant 0.000000e+00 : f32
    %180 = vector.broadcast %cst_132 : f32 to vector<64x16xf32>
    %181 = arith.maximumf %179, %180 : vector<64x16xf32>
    %c0_133 = arith.constant 0 : index
    %c10 = arith.constant 10 : index
    %182 = vector.load %arg2[%c0_133, %c10] : memref<64x27xf32, #tpu.memory_space<vmem>>, vector<64x1xf32>
    %183 = vector.broadcast %182 : vector<64x1xf32> to vector<64x16xf32>
    %184 = arith.mulf %181, %183 : vector<64x16xf32>
    %185 = arith.truncf %184 : vector<64x16xf32> to vector<64x16xbf16>
    %c0_134 = arith.constant 0 : index
    %c160 = arith.constant 160 : index
    %186 = vector.load %arg21[%c0_134, %c160] : memref<64x432xbf16, #tpu.memory_space<vmem>>, vector<64x16xbf16>
    tpu.vector_store %arg21[%c0_134, %c160], %185 {strides = array<i32>} : memref<64x432xbf16, #tpu.memory_space<vmem>>, vector<64x16xbf16>,
    %c0_135 = arith.constant 0 : index
    %c704 = arith.constant 704 : index
    %c0_136 = arith.constant 0 : index
    %187 = vector.load %arg1[%c0_135, %c704, %c0_136] : memref<1x1728x27xbf16, #tpu.memory_space<vmem>>, vector<1x64x27xbf16>
    %188 = vector.shape_cast %187 : vector<1x64x27xbf16> to vector<64x27xbf16>
    %c0_137 = arith.constant 0 : index
    %c0_138 = arith.constant 0 : index
    %189 = vector.load %arg3[%c0_137, %c0_138] : memref<27x16xbf16, #tpu.memory_space<vmem>>, vector<27x16xbf16>
    %cst_139 = arith.constant dense<0.000000e+00> : vector<64x16xf32>
    %190 = tpu.matmul %188, %189, %cst_139 {dimension_numbers = #tpu.dot_dimension_numbers<[1], [0], [0], [1], [0, 0, 1, 1], [], []>} : vector<64x27xbf16>, vector<27x16xbf16>, vector<64x16xf32> -> vector<64x16xf32>
    %c0_140 = arith.constant 0 : index
    %c0_141 = arith.constant 0 : index
    %191 = vector.load %arg4[%c0_140, %c0_141] : memref<1x16xf32, #tpu.memory_space<vmem>>, vector<1x16xf32>
    %192 = vector.broadcast %191 : vector<1x16xf32> to vector<64x16xf32>
    %193 = arith.mulf %190, %192 : vector<64x16xf32>
    %c0_142 = arith.constant 0 : index
    %c0_143 = arith.constant 0 : index
    %194 = vector.load %arg5[%c0_142, %c0_143] : memref<1x16xf32, #tpu.memory_space<vmem>>, vector<1x16xf32>
    %195 = vector.broadcast %194 : vector<1x16xf32> to vector<64x16xf32>
    %196 = arith.addf %193, %195 : vector<64x16xf32>
    %cst_144 = arith.constant 0.000000e+00 : f32
    %197 = vector.broadcast %cst_144 : f32 to vector<64x16xf32>
    %198 = arith.maximumf %196, %197 : vector<64x16xf32>
    %c0_145 = arith.constant 0 : index
    %c11 = arith.constant 11 : index
    %199 = vector.load %arg2[%c0_145, %c11] : memref<64x27xf32, #tpu.memory_space<vmem>>, vector<64x1xf32>
    %200 = vector.broadcast %199 : vector<64x1xf32> to vector<64x16xf32>
    %201 = arith.mulf %198, %200 : vector<64x16xf32>
    %202 = arith.truncf %201 : vector<64x16xf32> to vector<64x16xbf16>
    %c0_146 = arith.constant 0 : index
    %c176 = arith.constant 176 : index
    %203 = vector.load %arg21[%c0_146, %c176] : memref<64x432xbf16, #tpu.memory_space<vmem>>, vector<64x16xbf16>
    tpu.vector_store %arg21[%c0_146, %c176], %202 {strides = array<i32>} : memref<64x432xbf16, #tpu.memory_space<vmem>>, vector<64x16xbf16>,
    %c0_147 = arith.constant 0 : index
    %c768 = arith.constant 768 : index
    %c0_148 = arith.constant 0 : index
    %204 = vector.load %arg1[%c0_147, %c768, %c0_148] : memref<1x1728x27xbf16, #tpu.memory_space<vmem>>, vector<1x64x27xbf16>
    %205 = vector.shape_cast %204 : vector<1x64x27xbf16> to vector<64x27xbf16>
    %c0_149 = arith.constant 0 : index
    %c0_150 = arith.constant 0 : index
    %206 = vector.load %arg3[%c0_149, %c0_150] : memref<27x16xbf16, #tpu.memory_space<vmem>>, vector<27x16xbf16>
    %cst_151 = arith.constant dense<0.000000e+00> : vector<64x16xf32>
    %207 = tpu.matmul %205, %206, %cst_151 {dimension_numbers = #tpu.dot_dimension_numbers<[1], [0], [0], [1], [0, 0, 1, 1], [], []>} : vector<64x27xbf16>, vector<27x16xbf16>, vector<64x16xf32> -> vector<64x16xf32>
    %c0_152 = arith.constant 0 : index
    %c0_153 = arith.constant 0 : index
    %208 = vector.load %arg4[%c0_152, %c0_153] : memref<1x16xf32, #tpu.memory_space<vmem>>, vector<1x16xf32>
    %209 = vector.broadcast %208 : vector<1x16xf32> to vector<64x16xf32>
    %210 = arith.mulf %207, %209 : vector<64x16xf32>
    %c0_154 = arith.constant 0 : index
    %c0_155 = arith.constant 0 : index
    %211 = vector.load %arg5[%c0_154, %c0_155] : memref<1x16xf32, #tpu.memory_space<vmem>>, vector<1x16xf32>
    %212 = vector.broadcast %211 : vector<1x16xf32> to vector<64x16xf32>
    %213 = arith.addf %210, %212 : vector<64x16xf32>
    %cst_156 = arith.constant 0.000000e+00 : f32
    %214 = vector.broadcast %cst_156 : f32 to vector<64x16xf32>
    %215 = arith.maximumf %213, %214 : vector<64x16xf32>
    %c0_157 = arith.constant 0 : index
    %c12 = arith.constant 12 : index
    %216 = vector.load %arg2[%c0_157, %c12] : memref<64x27xf32, #tpu.memory_space<vmem>>, vector<64x1xf32>
    %217 = vector.broadcast %216 : vector<64x1xf32> to vector<64x16xf32>
    %218 = arith.mulf %215, %217 : vector<64x16xf32>
    %219 = arith.truncf %218 : vector<64x16xf32> to vector<64x16xbf16>
    %c0_158 = arith.constant 0 : index
    %c192_159 = arith.constant 192 : index
    %220 = vector.load %arg21[%c0_158, %c192_159] : memref<64x432xbf16, #tpu.memory_space<vmem>>, vector<64x16xbf16>
    tpu.vector_store %arg21[%c0_158, %c192_159], %219 {strides = array<i32>} : memref<64x432xbf16, #tpu.memory_space<vmem>>, vector<64x16xbf16>,
    %c0_160 = arith.constant 0 : index
    %c832 = arith.constant 832 : index
    %c0_161 = arith.constant 0 : index
    %221 = vector.load %arg1[%c0_160, %c832, %c0_161] : memref<1x1728x27xbf16, #tpu.memory_space<vmem>>, vector<1x64x27xbf16>
    %222 = vector.shape_cast %221 : vector<1x64x27xbf16> to vector<64x27xbf16>
    %c0_162 = arith.constant 0 : index
    %c0_163 = arith.constant 0 : index
    %223 = vector.load %arg3[%c0_162, %c0_163] : memref<27x16xbf16, #tpu.memory_space<vmem>>, vector<27x16xbf16>
    %cst_164 = arith.constant dense<0.000000e+00> : vector<64x16xf32>
    %224 = tpu.matmul %222, %223, %cst_164 {dimension_numbers = #tpu.dot_dimension_numbers<[1], [0], [0], [1], [0, 0, 1, 1], [], []>} : vector<64x27xbf16>, vector<27x16xbf16>, vector<64x16xf32> -> vector<64x16xf32>
    %c0_165 = arith.constant 0 : index
    %c0_166 = arith.constant 0 : index
    %225 = vector.load %arg4[%c0_165, %c0_166] : memref<1x16xf32, #tpu.memory_space<vmem>>, vector<1x16xf32>
    %226 = vector.broadcast %225 : vector<1x16xf32> to vector<64x16xf32>
    %227 = arith.mulf %224, %226 : vector<64x16xf32>
    %c0_167 = arith.constant 0 : index
    %c0_168 = arith.constant 0 : index
    %228 = vector.load %arg5[%c0_167, %c0_168] : memref<1x16xf32, #tpu.memory_space<vmem>>, vector<1x16xf32>
    %229 = vector.broadcast %228 : vector<1x16xf32> to vector<64x16xf32>
    %230 = arith.addf %227, %229 : vector<64x16xf32>
    %cst_169 = arith.constant 0.000000e+00 : f32
    %231 = vector.broadcast %cst_169 : f32 to vector<64x16xf32>
    %232 = arith.maximumf %230, %231 : vector<64x16xf32>
    %c0_170 = arith.constant 0 : index
    %c13 = arith.constant 13 : index
    %233 = vector.load %arg2[%c0_170, %c13] : memref<64x27xf32, #tpu.memory_space<vmem>>, vector<64x1xf32>
    %234 = vector.broadcast %233 : vector<64x1xf32> to vector<64x16xf32>
    %235 = arith.mulf %232, %234 : vector<64x16xf32>
    %236 = arith.truncf %235 : vector<64x16xf32> to vector<64x16xbf16>
    %c0_171 = arith.constant 0 : index
    %c208 = arith.constant 208 : index
    %237 = vector.load %arg21[%c0_171, %c208] : memref<64x432xbf16, #tpu.memory_space<vmem>>, vector<64x16xbf16>
    tpu.vector_store %arg21[%c0_171, %c208], %236 {strides = array<i32>} : memref<64x432xbf16, #tpu.memory_space<vmem>>, vector<64x16xbf16>,
    %c0_172 = arith.constant 0 : index
    %c896 = arith.constant 896 : index
    %c0_173 = arith.constant 0 : index
    %238 = vector.load %arg1[%c0_172, %c896, %c0_173] : memref<1x1728x27xbf16, #tpu.memory_space<vmem>>, vector<1x64x27xbf16>
    %239 = vector.shape_cast %238 : vector<1x64x27xbf16> to vector<64x27xbf16>
    %c0_174 = arith.constant 0 : index
    %c0_175 = arith.constant 0 : index
    %240 = vector.load %arg3[%c0_174, %c0_175] : memref<27x16xbf16, #tpu.memory_space<vmem>>, vector<27x16xbf16>
    %cst_176 = arith.constant dense<0.000000e+00> : vector<64x16xf32>
    %241 = tpu.matmul %239, %240, %cst_176 {dimension_numbers = #tpu.dot_dimension_numbers<[1], [0], [0], [1], [0, 0, 1, 1], [], []>} : vector<64x27xbf16>, vector<27x16xbf16>, vector<64x16xf32> -> vector<64x16xf32>
    %c0_177 = arith.constant 0 : index
    %c0_178 = arith.constant 0 : index
    %242 = vector.load %arg4[%c0_177, %c0_178] : memref<1x16xf32, #tpu.memory_space<vmem>>, vector<1x16xf32>
    %243 = vector.broadcast %242 : vector<1x16xf32> to vector<64x16xf32>
    %244 = arith.mulf %241, %243 : vector<64x16xf32>
    %c0_179 = arith.constant 0 : index
    %c0_180 = arith.constant 0 : index
    %245 = vector.load %arg5[%c0_179, %c0_180] : memref<1x16xf32, #tpu.memory_space<vmem>>, vector<1x16xf32>
    %246 = vector.broadcast %245 : vector<1x16xf32> to vector<64x16xf32>
    %247 = arith.addf %244, %246 : vector<64x16xf32>
    %cst_181 = arith.constant 0.000000e+00 : f32
    %248 = vector.broadcast %cst_181 : f32 to vector<64x16xf32>
    %249 = arith.maximumf %247, %248 : vector<64x16xf32>
    %c0_182 = arith.constant 0 : index
    %c14 = arith.constant 14 : index
    %250 = vector.load %arg2[%c0_182, %c14] : memref<64x27xf32, #tpu.memory_space<vmem>>, vector<64x1xf32>
    %251 = vector.broadcast %250 : vector<64x1xf32> to vector<64x16xf32>
    %252 = arith.mulf %249, %251 : vector<64x16xf32>
    %253 = arith.truncf %252 : vector<64x16xf32> to vector<64x16xbf16>
    %c0_183 = arith.constant 0 : index
    %c224 = arith.constant 224 : index
    %254 = vector.load %arg21[%c0_183, %c224] : memref<64x432xbf16, #tpu.memory_space<vmem>>, vector<64x16xbf16>
    tpu.vector_store %arg21[%c0_183, %c224], %253 {strides = array<i32>} : memref<64x432xbf16, #tpu.memory_space<vmem>>, vector<64x16xbf16>,
    %c0_184 = arith.constant 0 : index
    %c960 = arith.constant 960 : index
    %c0_185 = arith.constant 0 : index
    %255 = vector.load %arg1[%c0_184, %c960, %c0_185] : memref<1x1728x27xbf16, #tpu.memory_space<vmem>>, vector<1x64x27xbf16>
    %256 = vector.shape_cast %255 : vector<1x64x27xbf16> to vector<64x27xbf16>
    %c0_186 = arith.constant 0 : index
    %c0_187 = arith.constant 0 : index
    %257 = vector.load %arg3[%c0_186, %c0_187] : memref<27x16xbf16, #tpu.memory_space<vmem>>, vector<27x16xbf16>
    %cst_188 = arith.constant dense<0.000000e+00> : vector<64x16xf32>
    %258 = tpu.matmul %256, %257, %cst_188 {dimension_numbers = #tpu.dot_dimension_numbers<[1], [0], [0], [1], [0, 0, 1, 1], [], []>} : vector<64x27xbf16>, vector<27x16xbf16>, vector<64x16xf32> -> vector<64x16xf32>
    %c0_189 = arith.constant 0 : index
    %c0_190 = arith.constant 0 : index
    %259 = vector.load %arg4[%c0_189, %c0_190] : memref<1x16xf32, #tpu.memory_space<vmem>>, vector<1x16xf32>
    %260 = vector.broadcast %259 : vector<1x16xf32> to vector<64x16xf32>
    %261 = arith.mulf %258, %260 : vector<64x16xf32>
    %c0_191 = arith.constant 0 : index
    %c0_192 = arith.constant 0 : index
    %262 = vector.load %arg5[%c0_191, %c0_192] : memref<1x16xf32, #tpu.memory_space<vmem>>, vector<1x16xf32>
    %263 = vector.broadcast %262 : vector<1x16xf32> to vector<64x16xf32>
    %264 = arith.addf %261, %263 : vector<64x16xf32>
    %cst_193 = arith.constant 0.000000e+00 : f32
    %265 = vector.broadcast %cst_193 : f32 to vector<64x16xf32>
    %266 = arith.maximumf %264, %265 : vector<64x16xf32>
    %c0_194 = arith.constant 0 : index
    %c15 = arith.constant 15 : index
    %267 = vector.load %arg2[%c0_194, %c15] : memref<64x27xf32, #tpu.memory_space<vmem>>, vector<64x1xf32>
    %268 = vector.broadcast %267 : vector<64x1xf32> to vector<64x16xf32>
    %269 = arith.mulf %266, %268 : vector<64x16xf32>
    %270 = arith.truncf %269 : vector<64x16xf32> to vector<64x16xbf16>
    %c0_195 = arith.constant 0 : index
    %c240 = arith.constant 240 : index
    %271 = vector.load %arg21[%c0_195, %c240] : memref<64x432xbf16, #tpu.memory_space<vmem>>, vector<64x16xbf16>
    tpu.vector_store %arg21[%c0_195, %c240], %270 {strides = array<i32>} : memref<64x432xbf16, #tpu.memory_space<vmem>>, vector<64x16xbf16>,
    %c0_196 = arith.constant 0 : index
    %c1024 = arith.constant 1024 : index
    %c0_197 = arith.constant 0 : index
    %272 = vector.load %arg1[%c0_196, %c1024, %c0_197] : memref<1x1728x27xbf16, #tpu.memory_space<vmem>>, vector<1x64x27xbf16>
    %273 = vector.shape_cast %272 : vector<1x64x27xbf16> to vector<64x27xbf16>
    %c0_198 = arith.constant 0 : index
    %c0_199 = arith.constant 0 : index
    %274 = vector.load %arg3[%c0_198, %c0_199] : memref<27x16xbf16, #tpu.memory_space<vmem>>, vector<27x16xbf16>
    %cst_200 = arith.constant dense<0.000000e+00> : vector<64x16xf32>
    %275 = tpu.matmul %273, %274, %cst_200 {dimension_numbers = #tpu.dot_dimension_numbers<[1], [0], [0], [1], [0, 0, 1, 1], [], []>} : vector<64x27xbf16>, vector<27x16xbf16>, vector<64x16xf32> -> vector<64x16xf32>
    %c0_201 = arith.constant 0 : index
    %c0_202 = arith.constant 0 : index
    %276 = vector.load %arg4[%c0_201, %c0_202] : memref<1x16xf32, #tpu.memory_space<vmem>>, vector<1x16xf32>
    %277 = vector.broadcast %276 : vector<1x16xf32> to vector<64x16xf32>
    %278 = arith.mulf %275, %277 : vector<64x16xf32>
    %c0_203 = arith.constant 0 : index
    %c0_204 = arith.constant 0 : index
    %279 = vector.load %arg5[%c0_203, %c0_204] : memref<1x16xf32, #tpu.memory_space<vmem>>, vector<1x16xf32>
    %280 = vector.broadcast %279 : vector<1x16xf32> to vector<64x16xf32>
    %281 = arith.addf %278, %280 : vector<64x16xf32>
    %cst_205 = arith.constant 0.000000e+00 : f32
    %282 = vector.broadcast %cst_205 : f32 to vector<64x16xf32>
    %283 = arith.maximumf %281, %282 : vector<64x16xf32>
    %c0_206 = arith.constant 0 : index
    %c16_207 = arith.constant 16 : index
    %284 = vector.load %arg2[%c0_206, %c16_207] : memref<64x27xf32, #tpu.memory_space<vmem>>, vector<64x1xf32>
    %285 = vector.broadcast %284 : vector<64x1xf32> to vector<64x16xf32>
    %286 = arith.mulf %283, %285 : vector<64x16xf32>
    %287 = arith.truncf %286 : vector<64x16xf32> to vector<64x16xbf16>
    %c0_208 = arith.constant 0 : index
    %c256_209 = arith.constant 256 : index
    %288 = vector.load %arg21[%c0_208, %c256_209] : memref<64x432xbf16, #tpu.memory_space<vmem>>, vector<64x16xbf16>
    tpu.vector_store %arg21[%c0_208, %c256_209], %287 {strides = array<i32>} : memref<64x432xbf16, #tpu.memory_space<vmem>>, vector<64x16xbf16>,
    %c0_210 = arith.constant 0 : index
    %c1088 = arith.constant 1088 : index
    %c0_211 = arith.constant 0 : index
    %289 = vector.load %arg1[%c0_210, %c1088, %c0_211] : memref<1x1728x27xbf16, #tpu.memory_space<vmem>>, vector<1x64x27xbf16>
    %290 = vector.shape_cast %289 : vector<1x64x27xbf16> to vector<64x27xbf16>
    %c0_212 = arith.constant 0 : index
    %c0_213 = arith.constant 0 : index
    %291 = vector.load %arg3[%c0_212, %c0_213] : memref<27x16xbf16, #tpu.memory_space<vmem>>, vector<27x16xbf16>
    %cst_214 = arith.constant dense<0.000000e+00> : vector<64x16xf32>
    %292 = tpu.matmul %290, %291, %cst_214 {dimension_numbers = #tpu.dot_dimension_numbers<[1], [0], [0], [1], [0, 0, 1, 1], [], []>} : vector<64x27xbf16>, vector<27x16xbf16>, vector<64x16xf32> -> vector<64x16xf32>
    %c0_215 = arith.constant 0 : index
    %c0_216 = arith.constant 0 : index
    %293 = vector.load %arg4[%c0_215, %c0_216] : memref<1x16xf32, #tpu.memory_space<vmem>>, vector<1x16xf32>
    %294 = vector.broadcast %293 : vector<1x16xf32> to vector<64x16xf32>
    %295 = arith.mulf %292, %294 : vector<64x16xf32>
    %c0_217 = arith.constant 0 : index
    %c0_218 = arith.constant 0 : index
    %296 = vector.load %arg5[%c0_217, %c0_218] : memref<1x16xf32, #tpu.memory_space<vmem>>, vector<1x16xf32>
    %297 = vector.broadcast %296 : vector<1x16xf32> to vector<64x16xf32>
    %298 = arith.addf %295, %297 : vector<64x16xf32>
    %cst_219 = arith.constant 0.000000e+00 : f32
    %299 = vector.broadcast %cst_219 : f32 to vector<64x16xf32>
    %300 = arith.maximumf %298, %299 : vector<64x16xf32>
    %c0_220 = arith.constant 0 : index
    %c17 = arith.constant 17 : index
    %301 = vector.load %arg2[%c0_220, %c17] : memref<64x27xf32, #tpu.memory_space<vmem>>, vector<64x1xf32>
    %302 = vector.broadcast %301 : vector<64x1xf32> to vector<64x16xf32>
    %303 = arith.mulf %300, %302 : vector<64x16xf32>
    %304 = arith.truncf %303 : vector<64x16xf32> to vector<64x16xbf16>
    %c0_221 = arith.constant 0 : index
    %c272 = arith.constant 272 : index
    %305 = vector.load %arg21[%c0_221, %c272] : memref<64x432xbf16, #tpu.memory_space<vmem>>, vector<64x16xbf16>
    tpu.vector_store %arg21[%c0_221, %c272], %304 {strides = array<i32>} : memref<64x432xbf16, #tpu.memory_space<vmem>>, vector<64x16xbf16>,
    %c0_222 = arith.constant 0 : index
    %c1152 = arith.constant 1152 : index
    %c0_223 = arith.constant 0 : index
    %306 = vector.load %arg1[%c0_222, %c1152, %c0_223] : memref<1x1728x27xbf16, #tpu.memory_space<vmem>>, vector<1x64x27xbf16>
    %307 = vector.shape_cast %306 : vector<1x64x27xbf16> to vector<64x27xbf16>
    %c0_224 = arith.constant 0 : index
    %c0_225 = arith.constant 0 : index
    %308 = vector.load %arg3[%c0_224, %c0_225] : memref<27x16xbf16, #tpu.memory_space<vmem>>, vector<27x16xbf16>
    %cst_226 = arith.constant dense<0.000000e+00> : vector<64x16xf32>
    %309 = tpu.matmul %307, %308, %cst_226 {dimension_numbers = #tpu.dot_dimension_numbers<[1], [0], [0], [1], [0, 0, 1, 1], [], []>} : vector<64x27xbf16>, vector<27x16xbf16>, vector<64x16xf32> -> vector<64x16xf32>
    %c0_227 = arith.constant 0 : index
    %c0_228 = arith.constant 0 : index
    %310 = vector.load %arg4[%c0_227, %c0_228] : memref<1x16xf32, #tpu.memory_space<vmem>>, vector<1x16xf32>
    %311 = vector.broadcast %310 : vector<1x16xf32> to vector<64x16xf32>
    %312 = arith.mulf %309, %311 : vector<64x16xf32>
    %c0_229 = arith.constant 0 : index
    %c0_230 = arith.constant 0 : index
    %313 = vector.load %arg5[%c0_229, %c0_230] : memref<1x16xf32, #tpu.memory_space<vmem>>, vector<1x16xf32>
    %314 = vector.broadcast %313 : vector<1x16xf32> to vector<64x16xf32>
    %315 = arith.addf %312, %314 : vector<64x16xf32>
    %cst_231 = arith.constant 0.000000e+00 : f32
    %316 = vector.broadcast %cst_231 : f32 to vector<64x16xf32>
    %317 = arith.maximumf %315, %316 : vector<64x16xf32>
    %c0_232 = arith.constant 0 : index
    %c18 = arith.constant 18 : index
    %318 = vector.load %arg2[%c0_232, %c18] : memref<64x27xf32, #tpu.memory_space<vmem>>, vector<64x1xf32>
    %319 = vector.broadcast %318 : vector<64x1xf32> to vector<64x16xf32>
    %320 = arith.mulf %317, %319 : vector<64x16xf32>
    %321 = arith.truncf %320 : vector<64x16xf32> to vector<64x16xbf16>
    %c0_233 = arith.constant 0 : index
    %c288 = arith.constant 288 : index
    %322 = vector.load %arg21[%c0_233, %c288] : memref<64x432xbf16, #tpu.memory_space<vmem>>, vector<64x16xbf16>
    tpu.vector_store %arg21[%c0_233, %c288], %321 {strides = array<i32>} : memref<64x432xbf16, #tpu.memory_space<vmem>>, vector<64x16xbf16>,
    %c0_234 = arith.constant 0 : index
    %c1216 = arith.constant 1216 : index
    %c0_235 = arith.constant 0 : index
    %323 = vector.load %arg1[%c0_234, %c1216, %c0_235] : memref<1x1728x27xbf16, #tpu.memory_space<vmem>>, vector<1x64x27xbf16>
    %324 = vector.shape_cast %323 : vector<1x64x27xbf16> to vector<64x27xbf16>
    %c0_236 = arith.constant 0 : index
    %c0_237 = arith.constant 0 : index
    %325 = vector.load %arg3[%c0_236, %c0_237] : memref<27x16xbf16, #tpu.memory_space<vmem>>, vector<27x16xbf16>
    %cst_238 = arith.constant dense<0.000000e+00> : vector<64x16xf32>
    %326 = tpu.matmul %324, %325, %cst_238 {dimension_numbers = #tpu.dot_dimension_numbers<[1], [0], [0], [1], [0, 0, 1, 1], [], []>} : vector<64x27xbf16>, vector<27x16xbf16>, vector<64x16xf32> -> vector<64x16xf32>
    %c0_239 = arith.constant 0 : index
    %c0_240 = arith.constant 0 : index
    %327 = vector.load %arg4[%c0_239, %c0_240] : memref<1x16xf32, #tpu.memory_space<vmem>>, vector<1x16xf32>
    %328 = vector.broadcast %327 : vector<1x16xf32> to vector<64x16xf32>
    %329 = arith.mulf %326, %328 : vector<64x16xf32>
    %c0_241 = arith.constant 0 : index
    %c0_242 = arith.constant 0 : index
    %330 = vector.load %arg5[%c0_241, %c0_242] : memref<1x16xf32, #tpu.memory_space<vmem>>, vector<1x16xf32>
    %331 = vector.broadcast %330 : vector<1x16xf32> to vector<64x16xf32>
    %332 = arith.addf %329, %331 : vector<64x16xf32>
    %cst_243 = arith.constant 0.000000e+00 : f32
    %333 = vector.broadcast %cst_243 : f32 to vector<64x16xf32>
    %334 = arith.maximumf %332, %333 : vector<64x16xf32>
    %c0_244 = arith.constant 0 : index
    %c19 = arith.constant 19 : index
    %335 = vector.load %arg2[%c0_244, %c19] : memref<64x27xf32, #tpu.memory_space<vmem>>, vector<64x1xf32>
    %336 = vector.broadcast %335 : vector<64x1xf32> to vector<64x16xf32>
    %337 = arith.mulf %334, %336 : vector<64x16xf32>
    %338 = arith.truncf %337 : vector<64x16xf32> to vector<64x16xbf16>
    %c0_245 = arith.constant 0 : index
    %c304 = arith.constant 304 : index
    %339 = vector.load %arg21[%c0_245, %c304] : memref<64x432xbf16, #tpu.memory_space<vmem>>, vector<64x16xbf16>
    tpu.vector_store %arg21[%c0_245, %c304], %338 {strides = array<i32>} : memref<64x432xbf16, #tpu.memory_space<vmem>>, vector<64x16xbf16>,
    %c0_246 = arith.constant 0 : index
    %c1280 = arith.constant 1280 : index
    %c0_247 = arith.constant 0 : index
    %340 = vector.load %arg1[%c0_246, %c1280, %c0_247] : memref<1x1728x27xbf16, #tpu.memory_space<vmem>>, vector<1x64x27xbf16>
    %341 = vector.shape_cast %340 : vector<1x64x27xbf16> to vector<64x27xbf16>
    %c0_248 = arith.constant 0 : index
    %c0_249 = arith.constant 0 : index
    %342 = vector.load %arg3[%c0_248, %c0_249] : memref<27x16xbf16, #tpu.memory_space<vmem>>, vector<27x16xbf16>
    %cst_250 = arith.constant dense<0.000000e+00> : vector<64x16xf32>
    %343 = tpu.matmul %341, %342, %cst_250 {dimension_numbers = #tpu.dot_dimension_numbers<[1], [0], [0], [1], [0, 0, 1, 1], [], []>} : vector<64x27xbf16>, vector<27x16xbf16>, vector<64x16xf32> -> vector<64x16xf32>
    %c0_251 = arith.constant 0 : index
    %c0_252 = arith.constant 0 : index
    %344 = vector.load %arg4[%c0_251, %c0_252] : memref<1x16xf32, #tpu.memory_space<vmem>>, vector<1x16xf32>
    %345 = vector.broadcast %344 : vector<1x16xf32> to vector<64x16xf32>
    %346 = arith.mulf %343, %345 : vector<64x16xf32>
    %c0_253 = arith.constant 0 : index
    %c0_254 = arith.constant 0 : index
    %347 = vector.load %arg5[%c0_253, %c0_254] : memref<1x16xf32, #tpu.memory_space<vmem>>, vector<1x16xf32>
    %348 = vector.broadcast %347 : vector<1x16xf32> to vector<64x16xf32>
    %349 = arith.addf %346, %348 : vector<64x16xf32>
    %cst_255 = arith.constant 0.000000e+00 : f32
    %350 = vector.broadcast %cst_255 : f32 to vector<64x16xf32>
    %351 = arith.maximumf %349, %350 : vector<64x16xf32>
    %c0_256 = arith.constant 0 : index
    %c20 = arith.constant 20 : index
    %352 = vector.load %arg2[%c0_256, %c20] : memref<64x27xf32, #tpu.memory_space<vmem>>, vector<64x1xf32>
    %353 = vector.broadcast %352 : vector<64x1xf32> to vector<64x16xf32>
    %354 = arith.mulf %351, %353 : vector<64x16xf32>
    %355 = arith.truncf %354 : vector<64x16xf32> to vector<64x16xbf16>
    %c0_257 = arith.constant 0 : index
    %c320_258 = arith.constant 320 : index
    %356 = vector.load %arg21[%c0_257, %c320_258] : memref<64x432xbf16, #tpu.memory_space<vmem>>, vector<64x16xbf16>
    tpu.vector_store %arg21[%c0_257, %c320_258], %355 {strides = array<i32>} : memref<64x432xbf16, #tpu.memory_space<vmem>>, vector<64x16xbf16>,
    %c0_259 = arith.constant 0 : index
    %c1344 = arith.constant 1344 : index
    %c0_260 = arith.constant 0 : index
    %357 = vector.load %arg1[%c0_259, %c1344, %c0_260] : memref<1x1728x27xbf16, #tpu.memory_space<vmem>>, vector<1x64x27xbf16>
    %358 = vector.shape_cast %357 : vector<1x64x27xbf16> to vector<64x27xbf16>
    %c0_261 = arith.constant 0 : index
    %c0_262 = arith.constant 0 : index
    %359 = vector.load %arg3[%c0_261, %c0_262] : memref<27x16xbf16, #tpu.memory_space<vmem>>, vector<27x16xbf16>
    %cst_263 = arith.constant dense<0.000000e+00> : vector<64x16xf32>
    %360 = tpu.matmul %358, %359, %cst_263 {dimension_numbers = #tpu.dot_dimension_numbers<[1], [0], [0], [1], [0, 0, 1, 1], [], []>} : vector<64x27xbf16>, vector<27x16xbf16>, vector<64x16xf32> -> vector<64x16xf32>
    %c0_264 = arith.constant 0 : index
    %c0_265 = arith.constant 0 : index
    %361 = vector.load %arg4[%c0_264, %c0_265] : memref<1x16xf32, #tpu.memory_space<vmem>>, vector<1x16xf32>
    %362 = vector.broadcast %361 : vector<1x16xf32> to vector<64x16xf32>
    %363 = arith.mulf %360, %362 : vector<64x16xf32>
    %c0_266 = arith.constant 0 : index
    %c0_267 = arith.constant 0 : index
    %364 = vector.load %arg5[%c0_266, %c0_267] : memref<1x16xf32, #tpu.memory_space<vmem>>, vector<1x16xf32>
    %365 = vector.broadcast %364 : vector<1x16xf32> to vector<64x16xf32>
    %366 = arith.addf %363, %365 : vector<64x16xf32>
    %cst_268 = arith.constant 0.000000e+00 : f32
    %367 = vector.broadcast %cst_268 : f32 to vector<64x16xf32>
    %368 = arith.maximumf %366, %367 : vector<64x16xf32>
    %c0_269 = arith.constant 0 : index
    %c21 = arith.constant 21 : index
    %369 = vector.load %arg2[%c0_269, %c21] : memref<64x27xf32, #tpu.memory_space<vmem>>, vector<64x1xf32>
    %370 = vector.broadcast %369 : vector<64x1xf32> to vector<64x16xf32>
    %371 = arith.mulf %368, %370 : vector<64x16xf32>
    %372 = arith.truncf %371 : vector<64x16xf32> to vector<64x16xbf16>
    %c0_270 = arith.constant 0 : index
    %c336 = arith.constant 336 : index
    %373 = vector.load %arg21[%c0_270, %c336] : memref<64x432xbf16, #tpu.memory_space<vmem>>, vector<64x16xbf16>
    tpu.vector_store %arg21[%c0_270, %c336], %372 {strides = array<i32>} : memref<64x432xbf16, #tpu.memory_space<vmem>>, vector<64x16xbf16>,
    %c0_271 = arith.constant 0 : index
    %c1408 = arith.constant 1408 : index
    %c0_272 = arith.constant 0 : index
    %374 = vector.load %arg1[%c0_271, %c1408, %c0_272] : memref<1x1728x27xbf16, #tpu.memory_space<vmem>>, vector<1x64x27xbf16>
    %375 = vector.shape_cast %374 : vector<1x64x27xbf16> to vector<64x27xbf16>
    %c0_273 = arith.constant 0 : index
    %c0_274 = arith.constant 0 : index
    %376 = vector.load %arg3[%c0_273, %c0_274] : memref<27x16xbf16, #tpu.memory_space<vmem>>, vector<27x16xbf16>
    %cst_275 = arith.constant dense<0.000000e+00> : vector<64x16xf32>
    %377 = tpu.matmul %375, %376, %cst_275 {dimension_numbers = #tpu.dot_dimension_numbers<[1], [0], [0], [1], [0, 0, 1, 1], [], []>} : vector<64x27xbf16>, vector<27x16xbf16>, vector<64x16xf32> -> vector<64x16xf32>
    %c0_276 = arith.constant 0 : index
    %c0_277 = arith.constant 0 : index
    %378 = vector.load %arg4[%c0_276, %c0_277] : memref<1x16xf32, #tpu.memory_space<vmem>>, vector<1x16xf32>
    %379 = vector.broadcast %378 : vector<1x16xf32> to vector<64x16xf32>
    %380 = arith.mulf %377, %379 : vector<64x16xf32>
    %c0_278 = arith.constant 0 : index
    %c0_279 = arith.constant 0 : index
    %381 = vector.load %arg5[%c0_278, %c0_279] : memref<1x16xf32, #tpu.memory_space<vmem>>, vector<1x16xf32>
    %382 = vector.broadcast %381 : vector<1x16xf32> to vector<64x16xf32>
    %383 = arith.addf %380, %382 : vector<64x16xf32>
    %cst_280 = arith.constant 0.000000e+00 : f32
    %384 = vector.broadcast %cst_280 : f32 to vector<64x16xf32>
    %385 = arith.maximumf %383, %384 : vector<64x16xf32>
    %c0_281 = arith.constant 0 : index
    %c22 = arith.constant 22 : index
    %386 = vector.load %arg2[%c0_281, %c22] : memref<64x27xf32, #tpu.memory_space<vmem>>, vector<64x1xf32>
    %387 = vector.broadcast %386 : vector<64x1xf32> to vector<64x16xf32>
    %388 = arith.mulf %385, %387 : vector<64x16xf32>
    %389 = arith.truncf %388 : vector<64x16xf32> to vector<64x16xbf16>
    %c0_282 = arith.constant 0 : index
    %c352 = arith.constant 352 : index
    %390 = vector.load %arg21[%c0_282, %c352] : memref<64x432xbf16, #tpu.memory_space<vmem>>, vector<64x16xbf16>
    tpu.vector_store %arg21[%c0_282, %c352], %389 {strides = array<i32>} : memref<64x432xbf16, #tpu.memory_space<vmem>>, vector<64x16xbf16>,
    %c0_283 = arith.constant 0 : index
    %c1472 = arith.constant 1472 : index
    %c0_284 = arith.constant 0 : index
    %391 = vector.load %arg1[%c0_283, %c1472, %c0_284] : memref<1x1728x27xbf16, #tpu.memory_space<vmem>>, vector<1x64x27xbf16>
    %392 = vector.shape_cast %391 : vector<1x64x27xbf16> to vector<64x27xbf16>
    %c0_285 = arith.constant 0 : index
    %c0_286 = arith.constant 0 : index
    %393 = vector.load %arg3[%c0_285, %c0_286] : memref<27x16xbf16, #tpu.memory_space<vmem>>, vector<27x16xbf16>
    %cst_287 = arith.constant dense<0.000000e+00> : vector<64x16xf32>
    %394 = tpu.matmul %392, %393, %cst_287 {dimension_numbers = #tpu.dot_dimension_numbers<[1], [0], [0], [1], [0, 0, 1, 1], [], []>} : vector<64x27xbf16>, vector<27x16xbf16>, vector<64x16xf32> -> vector<64x16xf32>
    %c0_288 = arith.constant 0 : index
    %c0_289 = arith.constant 0 : index
    %395 = vector.load %arg4[%c0_288, %c0_289] : memref<1x16xf32, #tpu.memory_space<vmem>>, vector<1x16xf32>
    %396 = vector.broadcast %395 : vector<1x16xf32> to vector<64x16xf32>
    %397 = arith.mulf %394, %396 : vector<64x16xf32>
    %c0_290 = arith.constant 0 : index
    %c0_291 = arith.constant 0 : index
    %398 = vector.load %arg5[%c0_290, %c0_291] : memref<1x16xf32, #tpu.memory_space<vmem>>, vector<1x16xf32>
    %399 = vector.broadcast %398 : vector<1x16xf32> to vector<64x16xf32>
    %400 = arith.addf %397, %399 : vector<64x16xf32>
    %cst_292 = arith.constant 0.000000e+00 : f32
    %401 = vector.broadcast %cst_292 : f32 to vector<64x16xf32>
    %402 = arith.maximumf %400, %401 : vector<64x16xf32>
    %c0_293 = arith.constant 0 : index
    %c23 = arith.constant 23 : index
    %403 = vector.load %arg2[%c0_293, %c23] : memref<64x27xf32, #tpu.memory_space<vmem>>, vector<64x1xf32>
    %404 = vector.broadcast %403 : vector<64x1xf32> to vector<64x16xf32>
    %405 = arith.mulf %402, %404 : vector<64x16xf32>
    %406 = arith.truncf %405 : vector<64x16xf32> to vector<64x16xbf16>
    %c0_294 = arith.constant 0 : index
    %c368 = arith.constant 368 : index
    %407 = vector.load %arg21[%c0_294, %c368] : memref<64x432xbf16, #tpu.memory_space<vmem>>, vector<64x16xbf16>
    tpu.vector_store %arg21[%c0_294, %c368], %406 {strides = array<i32>} : memref<64x432xbf16, #tpu.memory_space<vmem>>, vector<64x16xbf16>,
    %c0_295 = arith.constant 0 : index
    %c1536 = arith.constant 1536 : index
    %c0_296 = arith.constant 0 : index
    %408 = vector.load %arg1[%c0_295, %c1536, %c0_296] : memref<1x1728x27xbf16, #tpu.memory_space<vmem>>, vector<1x64x27xbf16>
    %409 = vector.shape_cast %408 : vector<1x64x27xbf16> to vector<64x27xbf16>
    %c0_297 = arith.constant 0 : index
    %c0_298 = arith.constant 0 : index
    %410 = vector.load %arg3[%c0_297, %c0_298] : memref<27x16xbf16, #tpu.memory_space<vmem>>, vector<27x16xbf16>
    %cst_299 = arith.constant dense<0.000000e+00> : vector<64x16xf32>
    %411 = tpu.matmul %409, %410, %cst_299 {dimension_numbers = #tpu.dot_dimension_numbers<[1], [0], [0], [1], [0, 0, 1, 1], [], []>} : vector<64x27xbf16>, vector<27x16xbf16>, vector<64x16xf32> -> vector<64x16xf32>
    %c0_300 = arith.constant 0 : index
    %c0_301 = arith.constant 0 : index
    %412 = vector.load %arg4[%c0_300, %c0_301] : memref<1x16xf32, #tpu.memory_space<vmem>>, vector<1x16xf32>
    %413 = vector.broadcast %412 : vector<1x16xf32> to vector<64x16xf32>
    %414 = arith.mulf %411, %413 : vector<64x16xf32>
    %c0_302 = arith.constant 0 : index
    %c0_303 = arith.constant 0 : index
    %415 = vector.load %arg5[%c0_302, %c0_303] : memref<1x16xf32, #tpu.memory_space<vmem>>, vector<1x16xf32>
    %416 = vector.broadcast %415 : vector<1x16xf32> to vector<64x16xf32>
    %417 = arith.addf %414, %416 : vector<64x16xf32>
    %cst_304 = arith.constant 0.000000e+00 : f32
    %418 = vector.broadcast %cst_304 : f32 to vector<64x16xf32>
    %419 = arith.maximumf %417, %418 : vector<64x16xf32>
    %c0_305 = arith.constant 0 : index
    %c24 = arith.constant 24 : index
    %420 = vector.load %arg2[%c0_305, %c24] : memref<64x27xf32, #tpu.memory_space<vmem>>, vector<64x1xf32>
    %421 = vector.broadcast %420 : vector<64x1xf32> to vector<64x16xf32>
    %422 = arith.mulf %419, %421 : vector<64x16xf32>
    %423 = arith.truncf %422 : vector<64x16xf32> to vector<64x16xbf16>
    %c0_306 = arith.constant 0 : index
    %c384_307 = arith.constant 384 : index
    %424 = vector.load %arg21[%c0_306, %c384_307] : memref<64x432xbf16, #tpu.memory_space<vmem>>, vector<64x16xbf16>
    tpu.vector_store %arg21[%c0_306, %c384_307], %423 {strides = array<i32>} : memref<64x432xbf16, #tpu.memory_space<vmem>>, vector<64x16xbf16>,
    %c0_308 = arith.constant 0 : index
    %c1600 = arith.constant 1600 : index
    %c0_309 = arith.constant 0 : index
    %425 = vector.load %arg1[%c0_308, %c1600, %c0_309] : memref<1x1728x27xbf16, #tpu.memory_space<vmem>>, vector<1x64x27xbf16>
    %426 = vector.shape_cast %425 : vector<1x64x27xbf16> to vector<64x27xbf16>
    %c0_310 = arith.constant 0 : index
    %c0_311 = arith.constant 0 : index
    %427 = vector.load %arg3[%c0_310, %c0_311] : memref<27x16xbf16, #tpu.memory_space<vmem>>, vector<27x16xbf16>
    %cst_312 = arith.constant dense<0.000000e+00> : vector<64x16xf32>
    %428 = tpu.matmul %426, %427, %cst_312 {dimension_numbers = #tpu.dot_dimension_numbers<[1], [0], [0], [1], [0, 0, 1, 1], [], []>} : vector<64x27xbf16>, vector<27x16xbf16>, vector<64x16xf32> -> vector<64x16xf32>
    %c0_313 = arith.constant 0 : index
    %c0_314 = arith.constant 0 : index
    %429 = vector.load %arg4[%c0_313, %c0_314] : memref<1x16xf32, #tpu.memory_space<vmem>>, vector<1x16xf32>
    %430 = vector.broadcast %429 : vector<1x16xf32> to vector<64x16xf32>
    %431 = arith.mulf %428, %430 : vector<64x16xf32>
    %c0_315 = arith.constant 0 : index
    %c0_316 = arith.constant 0 : index
    %432 = vector.load %arg5[%c0_315, %c0_316] : memref<1x16xf32, #tpu.memory_space<vmem>>, vector<1x16xf32>
    %433 = vector.broadcast %432 : vector<1x16xf32> to vector<64x16xf32>
    %434 = arith.addf %431, %433 : vector<64x16xf32>
    %cst_317 = arith.constant 0.000000e+00 : f32
    %435 = vector.broadcast %cst_317 : f32 to vector<64x16xf32>
    %436 = arith.maximumf %434, %435 : vector<64x16xf32>
    %c0_318 = arith.constant 0 : index
    %c25 = arith.constant 25 : index
    %437 = vector.load %arg2[%c0_318, %c25] : memref<64x27xf32, #tpu.memory_space<vmem>>, vector<64x1xf32>
    %438 = vector.broadcast %437 : vector<64x1xf32> to vector<64x16xf32>
    %439 = arith.mulf %436, %438 : vector<64x16xf32>
    %440 = arith.truncf %439 : vector<64x16xf32> to vector<64x16xbf16>
    %c0_319 = arith.constant 0 : index
    %c400 = arith.constant 400 : index
    %441 = vector.load %arg21[%c0_319, %c400] : memref<64x432xbf16, #tpu.memory_space<vmem>>, vector<64x16xbf16>
    tpu.vector_store %arg21[%c0_319, %c400], %440 {strides = array<i32>} : memref<64x432xbf16, #tpu.memory_space<vmem>>, vector<64x16xbf16>,
    %c0_320 = arith.constant 0 : index
    %c1664 = arith.constant 1664 : index
    %c0_321 = arith.constant 0 : index
    %442 = vector.load %arg1[%c0_320, %c1664, %c0_321] : memref<1x1728x27xbf16, #tpu.memory_space<vmem>>, vector<1x64x27xbf16>
    %443 = vector.shape_cast %442 : vector<1x64x27xbf16> to vector<64x27xbf16>
    %c0_322 = arith.constant 0 : index
    %c0_323 = arith.constant 0 : index
    %444 = vector.load %arg3[%c0_322, %c0_323] : memref<27x16xbf16, #tpu.memory_space<vmem>>, vector<27x16xbf16>
    %cst_324 = arith.constant dense<0.000000e+00> : vector<64x16xf32>
    %445 = tpu.matmul %443, %444, %cst_324 {dimension_numbers = #tpu.dot_dimension_numbers<[1], [0], [0], [1], [0, 0, 1, 1], [], []>} : vector<64x27xbf16>, vector<27x16xbf16>, vector<64x16xf32> -> vector<64x16xf32>
    %c0_325 = arith.constant 0 : index
    %c0_326 = arith.constant 0 : index
    %446 = vector.load %arg4[%c0_325, %c0_326] : memref<1x16xf32, #tpu.memory_space<vmem>>, vector<1x16xf32>
    %447 = vector.broadcast %446 : vector<1x16xf32> to vector<64x16xf32>
    %448 = arith.mulf %445, %447 : vector<64x16xf32>
    %c0_327 = arith.constant 0 : index
    %c0_328 = arith.constant 0 : index
    %449 = vector.load %arg5[%c0_327, %c0_328] : memref<1x16xf32, #tpu.memory_space<vmem>>, vector<1x16xf32>
    %450 = vector.broadcast %449 : vector<1x16xf32> to vector<64x16xf32>
    %451 = arith.addf %448, %450 : vector<64x16xf32>
    %cst_329 = arith.constant 0.000000e+00 : f32
    %452 = vector.broadcast %cst_329 : f32 to vector<64x16xf32>
    %453 = arith.maximumf %451, %452 : vector<64x16xf32>
    %c0_330 = arith.constant 0 : index
    %c26 = arith.constant 26 : index
    %454 = vector.load %arg2[%c0_330, %c26] : memref<64x27xf32, #tpu.memory_space<vmem>>, vector<64x1xf32>
    %455 = vector.broadcast %454 : vector<64x1xf32> to vector<64x16xf32>
    %456 = arith.mulf %453, %455 : vector<64x16xf32>
    %457 = arith.truncf %456 : vector<64x16xf32> to vector<64x16xbf16>
    %c0_331 = arith.constant 0 : index
    %c416 = arith.constant 416 : index
    %458 = vector.load %arg21[%c0_331, %c416] : memref<64x432xbf16, #tpu.memory_space<vmem>>, vector<64x16xbf16>
    tpu.vector_store %arg21[%c0_331, %c416], %457 {strides = array<i32>} : memref<64x432xbf16, #tpu.memory_space<vmem>>, vector<64x16xbf16>,
    %c0_332 = arith.constant 0 : index
    %c0_333 = arith.constant 0 : index
    %459 = vector.load %arg21[%c0_332, %c0_333] : memref<64x432xbf16, #tpu.memory_space<vmem>>, vector<64x432xbf16>
    %c0_334 = arith.constant 0 : index
    %c0_335 = arith.constant 0 : index
    %460 = vector.load %arg6[%c0_334, %c0_335] : memref<432x32xbf16, #tpu.memory_space<vmem>>, vector<432x32xbf16>
    %cst_336 = arith.constant dense<0.000000e+00> : vector<64x32xf32>
    %461 = tpu.matmul %459, %460, %cst_336 {dimension_numbers = #tpu.dot_dimension_numbers<[1], [0], [0], [1], [0, 0, 1, 1], [], []>} : vector<64x432xbf16>, vector<432x32xbf16>, vector<64x32xf32> -> vector<64x32xf32>
    %c0_337 = arith.constant 0 : index
    %c0_338 = arith.constant 0 : index
    %462 = vector.load %arg7[%c0_337, %c0_338] : memref<1x32xf32, #tpu.memory_space<vmem>>, vector<1x32xf32>
    %463 = vector.broadcast %462 : vector<1x32xf32> to vector<64x32xf32>
    %464 = arith.mulf %461, %463 : vector<64x32xf32>
    %c0_339 = arith.constant 0 : index
    %c0_340 = arith.constant 0 : index
    %465 = vector.load %arg8[%c0_339, %c0_340] : memref<1x32xf32, #tpu.memory_space<vmem>>, vector<1x32xf32>
    %466 = vector.broadcast %465 : vector<1x32xf32> to vector<64x32xf32>
    %467 = arith.addf %464, %466 : vector<64x32xf32>
    %cst_341 = arith.constant 0.000000e+00 : f32
    %468 = vector.broadcast %cst_341 : f32 to vector<64x32xf32>
    %469 = arith.maximumf %467, %468 : vector<64x32xf32>
    %470 = arith.truncf %469 : vector<64x32xf32> to vector<64x32xbf16>
    %c0_342 = arith.constant 0 : index
    %c0_343 = arith.constant 0 : index
    %471 = vector.load %arg9[%c0_342, %c0_343] : memref<216x64xbf16, #tpu.memory_space<vmem>>, vector<216x64xbf16>
    %cst_344 = arith.constant dense<0.000000e+00> : vector<216x32xf32>
    %472 = tpu.matmul %471, %470, %cst_344 {dimension_numbers = #tpu.dot_dimension_numbers<[1], [0], [0], [1], [0, 0, 1, 1], [], []>} : vector<216x64xbf16>, vector<64x32xbf16>, vector<216x32xf32> -> vector<216x32xf32>
    %473 = vector.extract_strided_slice %472 {offsets = [0, 0], sizes = [8, 32], strides = [1, 1]} : vector<216x32xf32> to vector<8x32xf32>
    %474 = arith.truncf %473 : vector<8x32xf32> to vector<8x32xbf16>
    %c0_345 = arith.constant 0 : index
    %c0_346 = arith.constant 0 : index
    %475 = vector.load %arg22[%c0_345, %c0_346] : memref<8x864xbf16, #tpu.memory_space<vmem>>, vector<8x32xbf16>
    tpu.vector_store %arg22[%c0_345, %c0_346], %474 {strides = array<i32>} : memref<8x864xbf16, #tpu.memory_space<vmem>>, vector<8x32xbf16>,
    %476 = vector.extract_strided_slice %472 {offsets = [8, 0], sizes = [8, 32], strides = [1, 1]} : vector<216x32xf32> to vector<8x32xf32>
    %477 = arith.truncf %476 : vector<8x32xf32> to vector<8x32xbf16>
    %c0_347 = arith.constant 0 : index
    %c32_348 = arith.constant 32 : index
    %478 = vector.load %arg22[%c0_347, %c32_348] : memref<8x864xbf16, #tpu.memory_space<vmem>>, vector<8x32xbf16>
    tpu.vector_store %arg22[%c0_347, %c32_348], %477 {strides = array<i32>} : memref<8x864xbf16, #tpu.memory_space<vmem>>, vector<8x32xbf16>,
    %479 = vector.extract_strided_slice %472 {offsets = [16, 0], sizes = [8, 32], strides = [1, 1]} : vector<216x32xf32> to vector<8x32xf32>
    %480 = arith.truncf %479 : vector<8x32xf32> to vector<8x32xbf16>
    %c0_349 = arith.constant 0 : index
    %c64_350 = arith.constant 64 : index
    %481 = vector.load %arg22[%c0_349, %c64_350] : memref<8x864xbf16, #tpu.memory_space<vmem>>, vector<8x32xbf16>
    tpu.vector_store %arg22[%c0_349, %c64_350], %480 {strides = array<i32>} : memref<8x864xbf16, #tpu.memory_space<vmem>>, vector<8x32xbf16>,
    %482 = vector.extract_strided_slice %472 {offsets = [24, 0], sizes = [8, 32], strides = [1, 1]} : vector<216x32xf32> to vector<8x32xf32>
    %483 = arith.truncf %482 : vector<8x32xf32> to vector<8x32xbf16>
    %c0_351 = arith.constant 0 : index
    %c96_352 = arith.constant 96 : index
    %484 = vector.load %arg22[%c0_351, %c96_352] : memref<8x864xbf16, #tpu.memory_space<vmem>>, vector<8x32xbf16>
    tpu.vector_store %arg22[%c0_351, %c96_352], %483 {strides = array<i32>} : memref<8x864xbf16, #tpu.memory_space<vmem>>, vector<8x32xbf16>,
    %485 = vector.extract_strided_slice %472 {offsets = [32, 0], sizes = [8, 32], strides = [1, 1]} : vector<216x32xf32> to vector<8x32xf32>
    %486 = arith.truncf %485 : vector<8x32xf32> to vector<8x32xbf16>
    %c0_353 = arith.constant 0 : index
    %c128_354 = arith.constant 128 : index
    %487 = vector.load %arg22[%c0_353, %c128_354] : memref<8x864xbf16, #tpu.memory_space<vmem>>, vector<8x32xbf16>
    tpu.vector_store %arg22[%c0_353, %c128_354], %486 {strides = array<i32>} : memref<8x864xbf16, #tpu.memory_space<vmem>>, vector<8x32xbf16>,
    %488 = vector.extract_strided_slice %472 {offsets = [40, 0], sizes = [8, 32], strides = [1, 1]} : vector<216x32xf32> to vector<8x32xf32>
    %489 = arith.truncf %488 : vector<8x32xf32> to vector<8x32xbf16>
    %c0_355 = arith.constant 0 : index
    %c160_356 = arith.constant 160 : index
    %490 = vector.load %arg22[%c0_355, %c160_356] : memref<8x864xbf16, #tpu.memory_space<vmem>>, vector<8x32xbf16>
    tpu.vector_store %arg22[%c0_355, %c160_356], %489 {strides = array<i32>} : memref<8x864xbf16, #tpu.memory_space<vmem>>, vector<8x32xbf16>,
    %491 = vector.extract_strided_slice %472 {offsets = [48, 0], sizes = [8, 32], strides = [1, 1]} : vector<216x32xf32> to vector<8x32xf32>
    %492 = arith.truncf %491 : vector<8x32xf32> to vector<8x32xbf16>
    %c0_357 = arith.constant 0 : index
    %c192_358 = arith.constant 192 : index
    %493 = vector.load %arg22[%c0_357, %c192_358] : memref<8x864xbf16, #tpu.memory_space<vmem>>, vector<8x32xbf16>
    tpu.vector_store %arg22[%c0_357, %c192_358], %492 {strides = array<i32>} : memref<8x864xbf16, #tpu.memory_space<vmem>>, vector<8x32xbf16>,
    %494 = vector.extract_strided_slice %472 {offsets = [56, 0], sizes = [8, 32], strides = [1, 1]} : vector<216x32xf32> to vector<8x32xf32>
    %495 = arith.truncf %494 : vector<8x32xf32> to vector<8x32xbf16>
    %c0_359 = arith.constant 0 : index
    %c224_360 = arith.constant 224 : index
    %496 = vector.load %arg22[%c0_359, %c224_360] : memref<8x864xbf16, #tpu.memory_space<vmem>>, vector<8x32xbf16>
    tpu.vector_store %arg22[%c0_359, %c224_360], %495 {strides = array<i32>} : memref<8x864xbf16, #tpu.memory_space<vmem>>, vector<8x32xbf16>,
    %497 = vector.extract_strided_slice %472 {offsets = [64, 0], sizes = [8, 32], strides = [1, 1]} : vector<216x32xf32> to vector<8x32xf32>
    %498 = arith.truncf %497 : vector<8x32xf32> to vector<8x32xbf16>
    %c0_361 = arith.constant 0 : index
    %c256_362 = arith.constant 256 : index
    %499 = vector.load %arg22[%c0_361, %c256_362] : memref<8x864xbf16, #tpu.memory_space<vmem>>, vector<8x32xbf16>
    tpu.vector_store %arg22[%c0_361, %c256_362], %498 {strides = array<i32>} : memref<8x864xbf16, #tpu.memory_space<vmem>>, vector<8x32xbf16>,
    %500 = vector.extract_strided_slice %472 {offsets = [72, 0], sizes = [8, 32], strides = [1, 1]} : vector<216x32xf32> to vector<8x32xf32>
    %501 = arith.truncf %500 : vector<8x32xf32> to vector<8x32xbf16>
    %c0_363 = arith.constant 0 : index
    %c288_364 = arith.constant 288 : index
    %502 = vector.load %arg22[%c0_363, %c288_364] : memref<8x864xbf16, #tpu.memory_space<vmem>>, vector<8x32xbf16>
    tpu.vector_store %arg22[%c0_363, %c288_364], %501 {strides = array<i32>} : memref<8x864xbf16, #tpu.memory_space<vmem>>, vector<8x32xbf16>,
    %503 = vector.extract_strided_slice %472 {offsets = [80, 0], sizes = [8, 32], strides = [1, 1]} : vector<216x32xf32> to vector<8x32xf32>
    %504 = arith.truncf %503 : vector<8x32xf32> to vector<8x32xbf16>
    %c0_365 = arith.constant 0 : index
    %c320_366 = arith.constant 320 : index
    %505 = vector.load %arg22[%c0_365, %c320_366] : memref<8x864xbf16, #tpu.memory_space<vmem>>, vector<8x32xbf16>
    tpu.vector_store %arg22[%c0_365, %c320_366], %504 {strides = array<i32>} : memref<8x864xbf16, #tpu.memory_space<vmem>>, vector<8x32xbf16>,
    %506 = vector.extract_strided_slice %472 {offsets = [88, 0], sizes = [8, 32], strides = [1, 1]} : vector<216x32xf32> to vector<8x32xf32>
    %507 = arith.truncf %506 : vector<8x32xf32> to vector<8x32xbf16>
    %c0_367 = arith.constant 0 : index
    %c352_368 = arith.constant 352 : index
    %508 = vector.load %arg22[%c0_367, %c352_368] : memref<8x864xbf16, #tpu.memory_space<vmem>>, vector<8x32xbf16>
    tpu.vector_store %arg22[%c0_367, %c352_368], %507 {strides = array<i32>} : memref<8x864xbf16, #tpu.memory_space<vmem>>, vector<8x32xbf16>,
    %509 = vector.extract_strided_slice %472 {offsets = [96, 0], sizes = [8, 32], strides = [1, 1]} : vector<216x32xf32> to vector<8x32xf32>
    %510 = arith.truncf %509 : vector<8x32xf32> to vector<8x32xbf16>
    %c0_369 = arith.constant 0 : index
    %c384_370 = arith.constant 384 : index
    %511 = vector.load %arg22[%c0_369, %c384_370] : memref<8x864xbf16, #tpu.memory_space<vmem>>, vector<8x32xbf16>
    tpu.vector_store %arg22[%c0_369, %c384_370], %510 {strides = array<i32>} : memref<8x864xbf16, #tpu.memory_space<vmem>>, vector<8x32xbf16>,
    %512 = vector.extract_strided_slice %472 {offsets = [104, 0], sizes = [8, 32], strides = [1, 1]} : vector<216x32xf32> to vector<8x32xf32>
    %513 = arith.truncf %512 : vector<8x32xf32> to vector<8x32xbf16>
    %c0_371 = arith.constant 0 : index
    %c416_372 = arith.constant 416 : index
    %514 = vector.load %arg22[%c0_371, %c416_372] : memref<8x864xbf16, #tpu.memory_space<vmem>>, vector<8x32xbf16>
    tpu.vector_store %arg22[%c0_371, %c416_372], %513 {strides = array<i32>} : memref<8x864xbf16, #tpu.memory_space<vmem>>, vector<8x32xbf16>,
    %515 = vector.extract_strided_slice %472 {offsets = [112, 0], sizes = [8, 32], strides = [1, 1]} : vector<216x32xf32> to vector<8x32xf32>
    %516 = arith.truncf %515 : vector<8x32xf32> to vector<8x32xbf16>
    %c0_373 = arith.constant 0 : index
    %c448_374 = arith.constant 448 : index
    %517 = vector.load %arg22[%c0_373, %c448_374] : memref<8x864xbf16, #tpu.memory_space<vmem>>, vector<8x32xbf16>
    tpu.vector_store %arg22[%c0_373, %c448_374], %516 {strides = array<i32>} : memref<8x864xbf16, #tpu.memory_space<vmem>>, vector<8x32xbf16>,
    %518 = vector.extract_strided_slice %472 {offsets = [120, 0], sizes = [8, 32], strides = [1, 1]} : vector<216x32xf32> to vector<8x32xf32>
    %519 = arith.truncf %518 : vector<8x32xf32> to vector<8x32xbf16>
    %c0_375 = arith.constant 0 : index
    %c480 = arith.constant 480 : index
    %520 = vector.load %arg22[%c0_375, %c480] : memref<8x864xbf16, #tpu.memory_space<vmem>>, vector<8x32xbf16>
    tpu.vector_store %arg22[%c0_375, %c480], %519 {strides = array<i32>} : memref<8x864xbf16, #tpu.memory_space<vmem>>, vector<8x32xbf16>,
    %521 = vector.extract_strided_slice %472 {offsets = [128, 0], sizes = [8, 32], strides = [1, 1]} : vector<216x32xf32> to vector<8x32xf32>
    %522 = arith.truncf %521 : vector<8x32xf32> to vector<8x32xbf16>
    %c0_376 = arith.constant 0 : index
    %c512_377 = arith.constant 512 : index
    %523 = vector.load %arg22[%c0_376, %c512_377] : memref<8x864xbf16, #tpu.memory_space<vmem>>, vector<8x32xbf16>
    tpu.vector_store %arg22[%c0_376, %c512_377], %522 {strides = array<i32>} : memref<8x864xbf16, #tpu.memory_space<vmem>>, vector<8x32xbf16>,
    %524 = vector.extract_strided_slice %472 {offsets = [136, 0], sizes = [8, 32], strides = [1, 1]} : vector<216x32xf32> to vector<8x32xf32>
    %525 = arith.truncf %524 : vector<8x32xf32> to vector<8x32xbf16>
    %c0_378 = arith.constant 0 : index
    %c544 = arith.constant 544 : index
    %526 = vector.load %arg22[%c0_378, %c544] : memref<8x864xbf16, #tpu.memory_space<vmem>>, vector<8x32xbf16>
    tpu.vector_store %arg22[%c0_378, %c544], %525 {strides = array<i32>} : memref<8x864xbf16, #tpu.memory_space<vmem>>, vector<8x32xbf16>,
    %527 = vector.extract_strided_slice %472 {offsets = [144, 0], sizes = [8, 32], strides = [1, 1]} : vector<216x32xf32> to vector<8x32xf32>
    %528 = arith.truncf %527 : vector<8x32xf32> to vector<8x32xbf16>
    %c0_379 = arith.constant 0 : index
    %c576_380 = arith.constant 576 : index
    %529 = vector.load %arg22[%c0_379, %c576_380] : memref<8x864xbf16, #tpu.memory_space<vmem>>, vector<8x32xbf16>
    tpu.vector_store %arg22[%c0_379, %c576_380], %528 {strides = array<i32>} : memref<8x864xbf16, #tpu.memory_space<vmem>>, vector<8x32xbf16>,
    %530 = vector.extract_strided_slice %472 {offsets = [152, 0], sizes = [8, 32], strides = [1, 1]} : vector<216x32xf32> to vector<8x32xf32>
    %531 = arith.truncf %530 : vector<8x32xf32> to vector<8x32xbf16>
    %c0_381 = arith.constant 0 : index
    %c608 = arith.constant 608 : index
    %532 = vector.load %arg22[%c0_381, %c608] : memref<8x864xbf16, #tpu.memory_space<vmem>>, vector<8x32xbf16>
    tpu.vector_store %arg22[%c0_381, %c608], %531 {strides = array<i32>} : memref<8x864xbf16, #tpu.memory_space<vmem>>, vector<8x32xbf16>,
    %533 = vector.extract_strided_slice %472 {offsets = [160, 0], sizes = [8, 32], strides = [1, 1]} : vector<216x32xf32> to vector<8x32xf32>
    %534 = arith.truncf %533 : vector<8x32xf32> to vector<8x32xbf16>
    %c0_382 = arith.constant 0 : index
    %c640_383 = arith.constant 640 : index
    %535 = vector.load %arg22[%c0_382, %c640_383] : memref<8x864xbf16, #tpu.memory_space<vmem>>, vector<8x32xbf16>
    tpu.vector_store %arg22[%c0_382, %c640_383], %534 {strides = array<i32>} : memref<8x864xbf16, #tpu.memory_space<vmem>>, vector<8x32xbf16>,
    %536 = vector.extract_strided_slice %472 {offsets = [168, 0], sizes = [8, 32], strides = [1, 1]} : vector<216x32xf32> to vector<8x32xf32>
    %537 = arith.truncf %536 : vector<8x32xf32> to vector<8x32xbf16>
    %c0_384 = arith.constant 0 : index
    %c672 = arith.constant 672 : index
    %538 = vector.load %arg22[%c0_384, %c672] : memref<8x864xbf16, #tpu.memory_space<vmem>>, vector<8x32xbf16>
    tpu.vector_store %arg22[%c0_384, %c672], %537 {strides = array<i32>} : memref<8x864xbf16, #tpu.memory_space<vmem>>, vector<8x32xbf16>,
    %539 = vector.extract_strided_slice %472 {offsets = [176, 0], sizes = [8, 32], strides = [1, 1]} : vector<216x32xf32> to vector<8x32xf32>
    %540 = arith.truncf %539 : vector<8x32xf32> to vector<8x32xbf16>
    %c0_385 = arith.constant 0 : index
    %c704_386 = arith.constant 704 : index
    %541 = vector.load %arg22[%c0_385, %c704_386] : memref<8x864xbf16, #tpu.memory_space<vmem>>, vector<8x32xbf16>
    tpu.vector_store %arg22[%c0_385, %c704_386], %540 {strides = array<i32>} : memref<8x864xbf16, #tpu.memory_space<vmem>>, vector<8x32xbf16>,
    %542 = vector.extract_strided_slice %472 {offsets = [184, 0], sizes = [8, 32], strides = [1, 1]} : vector<216x32xf32> to vector<8x32xf32>
    %543 = arith.truncf %542 : vector<8x32xf32> to vector<8x32xbf16>
    %c0_387 = arith.constant 0 : index
    %c736 = arith.constant 736 : index
    %544 = vector.load %arg22[%c0_387, %c736] : memref<8x864xbf16, #tpu.memory_space<vmem>>, vector<8x32xbf16>
    tpu.vector_store %arg22[%c0_387, %c736], %543 {strides = array<i32>} : memref<8x864xbf16, #tpu.memory_space<vmem>>, vector<8x32xbf16>,
    %545 = vector.extract_strided_slice %472 {offsets = [192, 0], sizes = [8, 32], strides = [1, 1]} : vector<216x32xf32> to vector<8x32xf32>
    %546 = arith.truncf %545 : vector<8x32xf32> to vector<8x32xbf16>
    %c0_388 = arith.constant 0 : index
    %c768_389 = arith.constant 768 : index
    %547 = vector.load %arg22[%c0_388, %c768_389] : memref<8x864xbf16, #tpu.memory_space<vmem>>, vector<8x32xbf16>
    tpu.vector_store %arg22[%c0_388, %c768_389], %546 {strides = array<i32>} : memref<8x864xbf16, #tpu.memory_space<vmem>>, vector<8x32xbf16>,
    %548 = vector.extract_strided_slice %472 {offsets = [200, 0], sizes = [8, 32], strides = [1, 1]} : vector<216x32xf32> to vector<8x32xf32>
    %549 = arith.truncf %548 : vector<8x32xf32> to vector<8x32xbf16>
    %c0_390 = arith.constant 0 : index
    %c800 = arith.constant 800 : index
    %550 = vector.load %arg22[%c0_390, %c800] : memref<8x864xbf16, #tpu.memory_space<vmem>>, vector<8x32xbf16>
    tpu.vector_store %arg22[%c0_390, %c800], %549 {strides = array<i32>} : memref<8x864xbf16, #tpu.memory_space<vmem>>, vector<8x32xbf16>,
    %551 = vector.extract_strided_slice %472 {offsets = [208, 0], sizes = [8, 32], strides = [1, 1]} : vector<216x32xf32> to vector<8x32xf32>
    %552 = arith.truncf %551 : vector<8x32xf32> to vector<8x32xbf16>
    %c0_391 = arith.constant 0 : index
    %c832_392 = arith.constant 832 : index
    %553 = vector.load %arg22[%c0_391, %c832_392] : memref<8x864xbf16, #tpu.memory_space<vmem>>, vector<8x32xbf16>
    tpu.vector_store %arg22[%c0_391, %c832_392], %552 {strides = array<i32>} : memref<8x864xbf16, #tpu.memory_space<vmem>>, vector<8x32xbf16>,
    %c0_393 = arith.constant 0 : index
    %c0_394 = arith.constant 0 : index
    %554 = vector.load %arg22[%c0_393, %c0_394] : memref<8x864xbf16, #tpu.memory_space<vmem>>, vector<8x864xbf16>
    %c0_395 = arith.constant 0 : index
    %c0_396 = arith.constant 0 : index
    %555 = vector.load %arg10[%c0_395, %c0_396] : memref<864x64xbf16, #tpu.memory_space<vmem>>, vector<864x64xbf16>
    %cst_397 = arith.constant dense<0.000000e+00> : vector<8x64xf32>
    %556 = tpu.matmul %554, %555, %cst_397 {dimension_numbers = #tpu.dot_dimension_numbers<[1], [0], [0], [1], [0, 0, 1, 1], [], []>} : vector<8x864xbf16>, vector<864x64xbf16>, vector<8x64xf32> -> vector<8x64xf32>
    %c0_398 = arith.constant 0 : index
    %c0_399 = arith.constant 0 : index
    %557 = vector.load %arg11[%c0_398, %c0_399] : memref<1x64xf32, #tpu.memory_space<vmem>>, vector<1x64xf32>
    %558 = vector.broadcast %557 : vector<1x64xf32> to vector<8x64xf32>
    %559 = arith.mulf %556, %558 : vector<8x64xf32>
    %c0_400 = arith.constant 0 : index
    %c0_401 = arith.constant 0 : index
    %560 = vector.load %arg12[%c0_400, %c0_401] : memref<1x64xf32, #tpu.memory_space<vmem>>, vector<1x64xf32>
    %561 = vector.broadcast %560 : vector<1x64xf32> to vector<8x64xf32>
    %562 = arith.addf %559, %561 : vector<8x64xf32>
    %cst_402 = arith.constant 0.000000e+00 : f32
    %563 = vector.broadcast %cst_402 : f32 to vector<8x64xf32>
    %564 = arith.maximumf %562, %563 : vector<8x64xf32>
    %565 = vector.extract_strided_slice %564 {offsets = [0, 0], sizes = [1, 64], strides = [1, 1]} : vector<8x64xf32> to vector<1x64xf32>
    %566 = vector.shape_cast %565 : vector<1x64xf32> to vector<1x64xf32>
    %567 = vector.broadcast %566 : vector<1x64xf32> to vector<8x64xf32>
    %568 = arith.truncf %567 : vector<8x64xf32> to vector<8x64xbf16>
    %c0_403 = arith.constant 0 : index
    %c0_404 = arith.constant 0 : index
    %569 = vector.load %arg23[%c0_403, %c0_404] : memref<8x512xbf16, #tpu.memory_space<vmem>>, vector<8x64xbf16>
    tpu.vector_store %arg23[%c0_403, %c0_404], %568 {strides = array<i32>} : memref<8x512xbf16, #tpu.memory_space<vmem>>, vector<8x64xbf16>,
    %570 = vector.extract_strided_slice %564 {offsets = [1, 0], sizes = [1, 64], strides = [1, 1]} : vector<8x64xf32> to vector<1x64xf32>
    %571 = vector.shape_cast %570 : vector<1x64xf32> to vector<1x64xf32>
    %572 = vector.broadcast %571 : vector<1x64xf32> to vector<8x64xf32>
    %573 = arith.truncf %572 : vector<8x64xf32> to vector<8x64xbf16>
    %c0_405 = arith.constant 0 : index
    %c64_406 = arith.constant 64 : index
    %574 = vector.load %arg23[%c0_405, %c64_406] : memref<8x512xbf16, #tpu.memory_space<vmem>>, vector<8x64xbf16>
    tpu.vector_store %arg23[%c0_405, %c64_406], %573 {strides = array<i32>} : memref<8x512xbf16, #tpu.memory_space<vmem>>, vector<8x64xbf16>,
    %575 = vector.extract_strided_slice %564 {offsets = [2, 0], sizes = [1, 64], strides = [1, 1]} : vector<8x64xf32> to vector<1x64xf32>
    %576 = vector.shape_cast %575 : vector<1x64xf32> to vector<1x64xf32>
    %577 = vector.broadcast %576 : vector<1x64xf32> to vector<8x64xf32>
    %578 = arith.truncf %577 : vector<8x64xf32> to vector<8x64xbf16>
    %c0_407 = arith.constant 0 : index
    %c128_408 = arith.constant 128 : index
    %579 = vector.load %arg23[%c0_407, %c128_408] : memref<8x512xbf16, #tpu.memory_space<vmem>>, vector<8x64xbf16>
    tpu.vector_store %arg23[%c0_407, %c128_408], %578 {strides = array<i32>} : memref<8x512xbf16, #tpu.memory_space<vmem>>, vector<8x64xbf16>,
    %580 = vector.extract_strided_slice %564 {offsets = [3, 0], sizes = [1, 64], strides = [1, 1]} : vector<8x64xf32> to vector<1x64xf32>
    %581 = vector.shape_cast %580 : vector<1x64xf32> to vector<1x64xf32>
    %582 = vector.broadcast %581 : vector<1x64xf32> to vector<8x64xf32>
    %583 = arith.truncf %582 : vector<8x64xf32> to vector<8x64xbf16>
    %c0_409 = arith.constant 0 : index
    %c192_410 = arith.constant 192 : index
    %584 = vector.load %arg23[%c0_409, %c192_410] : memref<8x512xbf16, #tpu.memory_space<vmem>>, vector<8x64xbf16>
    tpu.vector_store %arg23[%c0_409, %c192_410], %583 {strides = array<i32>} : memref<8x512xbf16, #tpu.memory_space<vmem>>, vector<8x64xbf16>,
    %585 = vector.extract_strided_slice %564 {offsets = [4, 0], sizes = [1, 64], strides = [1, 1]} : vector<8x64xf32> to vector<1x64xf32>
    %586 = vector.shape_cast %585 : vector<1x64xf32> to vector<1x64xf32>
    %587 = vector.broadcast %586 : vector<1x64xf32> to vector<8x64xf32>
    %588 = arith.truncf %587 : vector<8x64xf32> to vector<8x64xbf16>
    %c0_411 = arith.constant 0 : index
    %c256_412 = arith.constant 256 : index
    %589 = vector.load %arg23[%c0_411, %c256_412] : memref<8x512xbf16, #tpu.memory_space<vmem>>, vector<8x64xbf16>
    tpu.vector_store %arg23[%c0_411, %c256_412], %588 {strides = array<i32>} : memref<8x512xbf16, #tpu.memory_space<vmem>>, vector<8x64xbf16>,
    %590 = vector.extract_strided_slice %564 {offsets = [5, 0], sizes = [1, 64], strides = [1, 1]} : vector<8x64xf32> to vector<1x64xf32>
    %591 = vector.shape_cast %590 : vector<1x64xf32> to vector<1x64xf32>
    %592 = vector.broadcast %591 : vector<1x64xf32> to vector<8x64xf32>
    %593 = arith.truncf %592 : vector<8x64xf32> to vector<8x64xbf16>
    %c0_413 = arith.constant 0 : index
    %c320_414 = arith.constant 320 : index
    %594 = vector.load %arg23[%c0_413, %c320_414] : memref<8x512xbf16, #tpu.memory_space<vmem>>, vector<8x64xbf16>
    tpu.vector_store %arg23[%c0_413, %c320_414], %593 {strides = array<i32>} : memref<8x512xbf16, #tpu.memory_space<vmem>>, vector<8x64xbf16>,
    %595 = vector.extract_strided_slice %564 {offsets = [6, 0], sizes = [1, 64], strides = [1, 1]} : vector<8x64xf32> to vector<1x64xf32>
    %596 = vector.shape_cast %595 : vector<1x64xf32> to vector<1x64xf32>
    %597 = vector.broadcast %596 : vector<1x64xf32> to vector<8x64xf32>
    %598 = arith.truncf %597 : vector<8x64xf32> to vector<8x64xbf16>
    %c0_415 = arith.constant 0 : index
    %c384_416 = arith.constant 384 : index
    %599 = vector.load %arg23[%c0_415, %c384_416] : memref<8x512xbf16, #tpu.memory_space<vmem>>, vector<8x64xbf16>
    tpu.vector_store %arg23[%c0_415, %c384_416], %598 {strides = array<i32>} : memref<8x512xbf16, #tpu.memory_space<vmem>>, vector<8x64xbf16>,
    %600 = vector.extract_strided_slice %564 {offsets = [7, 0], sizes = [1, 64], strides = [1, 1]} : vector<8x64xf32> to vector<1x64xf32>
    %601 = vector.shape_cast %600 : vector<1x64xf32> to vector<1x64xf32>
    %602 = vector.broadcast %601 : vector<1x64xf32> to vector<8x64xf32>
    %603 = arith.truncf %602 : vector<8x64xf32> to vector<8x64xbf16>
    %c0_417 = arith.constant 0 : index
    %c448_418 = arith.constant 448 : index
    %604 = vector.load %arg23[%c0_417, %c448_418] : memref<8x512xbf16, #tpu.memory_space<vmem>>, vector<8x64xbf16>
    tpu.vector_store %arg23[%c0_417, %c448_418], %603 {strides = array<i32>} : memref<8x512xbf16, #tpu.memory_space<vmem>>, vector<8x64xbf16>,
    %c0_419 = arith.constant 0 : index
    %c0_420 = arith.constant 0 : index
    %605 = vector.load %arg23[%c0_419, %c0_420] : memref<8x512xbf16, #tpu.memory_space<vmem>>, vector<8x512xbf16>
    %c0_421 = arith.constant 0 : index
    %c0_422 = arith.constant 0 : index
    %606 = vector.load %arg13[%c0_421, %c0_422] : memref<512x128xbf16, #tpu.memory_space<vmem>>, vector<512x128xbf16>
    %cst_423 = arith.constant dense<0.000000e+00> : vector<8x128xf32>
    %607 = tpu.matmul %605, %606, %cst_423 {dimension_numbers = #tpu.dot_dimension_numbers<[1], [0], [0], [1], [0, 0, 1, 1], [], []>} : vector<8x512xbf16>, vector<512x128xbf16>, vector<8x128xf32> -> vector<8x128xf32>
    %c0_424 = arith.constant 0 : index
    %c0_425 = arith.constant 0 : index
    %608 = vector.load %arg14[%c0_424, %c0_425] : memref<1x128xf32, #tpu.memory_space<vmem>>, vector<1x128xf32>
    %609 = vector.broadcast %608 : vector<1x128xf32> to vector<8x128xf32>
    %610 = arith.mulf %607, %609 : vector<8x128xf32>
    %c0_426 = arith.constant 0 : index
    %c0_427 = arith.constant 0 : index
    %611 = vector.load %arg15[%c0_426, %c0_427] : memref<1x128xf32, #tpu.memory_space<vmem>>, vector<1x128xf32>
    %612 = vector.broadcast %611 : vector<1x128xf32> to vector<8x128xf32>
    %613 = arith.addf %610, %612 : vector<8x128xf32>
    %cst_428 = arith.constant 0.000000e+00 : f32
    %614 = vector.broadcast %cst_428 : f32 to vector<8x128xf32>
    %615 = arith.maximumf %613, %614 : vector<8x128xf32>
    %616 = arith.truncf %615 : vector<8x128xf32> to vector<8x128xbf16>
    %c0_429 = arith.constant 0 : index
    %c0_430 = arith.constant 0 : index
    %617 = vector.load %arg16[%c0_429, %c0_430] : memref<128x256xbf16, #tpu.memory_space<vmem>>, vector<128x256xbf16>
    %cst_431 = arith.constant dense<0.000000e+00> : vector<8x256xf32>
    %618 = tpu.matmul %616, %617, %cst_431 {dimension_numbers = #tpu.dot_dimension_numbers<[1], [0], [0], [1], [0, 0, 1, 1], [], []>} : vector<8x128xbf16>, vector<128x256xbf16>, vector<8x256xf32> -> vector<8x256xf32>
    %c0_432 = arith.constant 0 : index
    %c0_433 = arith.constant 0 : index
    %619 = vector.load %arg17[%c0_432, %c0_433] : memref<1x256xf32, #tpu.memory_space<vmem>>, vector<1x256xf32>
    %620 = vector.broadcast %619 : vector<1x256xf32> to vector<8x256xf32>
    %621 = arith.addf %618, %620 : vector<8x256xf32>
    %cst_434 = arith.constant 0.000000e+00 : f32
    %622 = vector.broadcast %cst_434 : f32 to vector<8x256xf32>
    %623 = arith.maximumf %621, %622 : vector<8x256xf32>
    %624 = arith.truncf %623 : vector<8x256xf32> to vector<8x256xbf16>
    %c0_435 = arith.constant 0 : index
    %c0_436 = arith.constant 0 : index
    %625 = vector.load %arg18[%c0_435, %c0_436] : memref<256x128xbf16, #tpu.memory_space<vmem>>, vector<256x128xbf16>
    %cst_437 = arith.constant dense<0.000000e+00> : vector<8x128xf32>
    %626 = tpu.matmul %624, %625, %cst_437 {dimension_numbers = #tpu.dot_dimension_numbers<[1], [0], [0], [1], [0, 0, 1, 1], [], []>} : vector<8x256xbf16>, vector<256x128xbf16>, vector<8x128xf32> -> vector<8x128xf32>
    %c0_438 = arith.constant 0 : index
    %c0_439 = arith.constant 0 : index
    %627 = vector.load %arg19[%c0_438, %c0_439] : memref<1x128xf32, #tpu.memory_space<vmem>>, vector<1x128xf32>
    %628 = vector.broadcast %627 : vector<1x128xf32> to vector<8x128xf32>
    %629 = arith.addf %626, %628 : vector<8x128xf32>
    %630 = vector.shape_cast %629 : vector<8x128xf32> to vector<1x8x128xf32>
    %c0_440 = arith.constant 0 : index
    %c0_441 = arith.constant 0 : index
    %c0_442 = arith.constant 0 : index
    %631 = vector.load %arg20[%c0_440, %c0_441, %c0_442] : memref<1x8x128xf32, #tpu.memory_space<vmem>>, vector<1x8x128xf32>
    tpu.vector_store %arg20[%c0_440, %c0_441, %c0_442], %630 {strides = array<i32>} : memref<1x8x128xf32, #tpu.memory_space<vmem>>, vector<1x8x128xf32>,
    return
  }
  func.func @transform_0(%arg0: i32) -> (i32, i32, i32) {
    %c0_i32 = arith.constant 0 : i32
    %c0_i32_0 = arith.constant 0 : i32
    %c0_i32_1 = arith.constant 0 : i32
    return %arg0, %c0_i32, %c0_i32_0 : i32, i32, i32
  }
  func.func @transform_1(%arg0: i32) -> (i32, i32) {
    %c0_i32 = arith.constant 0 : i32
    %c0_i32_0 = arith.constant 0 : i32
    %c0_i32_1 = arith.constant 0 : i32
    return %c0_i32, %c0_i32_0 : i32, i32
  }
  func.func @transform_2(%arg0: i32) -> (i32, i32) {
    %c0_i32 = arith.constant 0 : i32
    %c0_i32_0 = arith.constant 0 : i32
    %c0_i32_1 = arith.constant 0 : i32
    return %c0_i32, %c0_i32_0 : i32, i32
  }
  func.func @transform_3(%arg0: i32) -> (i32, i32) {
    %c0_i32 = arith.constant 0 : i32
    %c0_i32_0 = arith.constant 0 : i32
    %c0_i32_1 = arith.constant 0 : i32
    return %c0_i32, %c0_i32_0 : i32, i32
  }
  func.func @transform_4(%arg0: i32) -> (i32, i32) {
    %c0_i32 = arith.constant 0 : i32
    %c0_i32_0 = arith.constant 0 : i32
    %c0_i32_1 = arith.constant 0 : i32
    return %c0_i32, %c0_i32_0 : i32, i32
  }
  func.func @transform_5(%arg0: i32) -> (i32, i32) {
    %c0_i32 = arith.constant 0 : i32
    %c0_i32_0 = arith.constant 0 : i32
    %c0_i32_1 = arith.constant 0 : i32
    return %c0_i32, %c0_i32_0 : i32, i32
  }
  func.func @transform_6(%arg0: i32) -> (i32, i32) {
    %c0_i32 = arith.constant 0 : i32
    %c0_i32_0 = arith.constant 0 : i32
    %c0_i32_1 = arith.constant 0 : i32
    return %c0_i32, %c0_i32_0 : i32, i32
  }
  func.func @transform_7(%arg0: i32) -> (i32, i32) {
    %c0_i32 = arith.constant 0 : i32
    %c0_i32_0 = arith.constant 0 : i32
    %c0_i32_1 = arith.constant 0 : i32
    return %c0_i32, %c0_i32_0 : i32, i32
  }
  func.func @transform_8(%arg0: i32) -> (i32, i32) {
    %c0_i32 = arith.constant 0 : i32
    %c0_i32_0 = arith.constant 0 : i32
    %c0_i32_1 = arith.constant 0 : i32
    return %c0_i32, %c0_i32_0 : i32, i32
  }
  func.func @transform_9(%arg0: i32) -> (i32, i32) {
    %c0_i32 = arith.constant 0 : i32
    %c0_i32_0 = arith.constant 0 : i32
    %c0_i32_1 = arith.constant 0 : i32
    return %c0_i32, %c0_i32_0 : i32, i32
  }
  func.func @transform_10(%arg0: i32) -> (i32, i32) {
    %c0_i32 = arith.constant 0 : i32
    %c0_i32_0 = arith.constant 0 : i32
    %c0_i32_1 = arith.constant 0 : i32
    return %c0_i32, %c0_i32_0 : i32, i32
  }
  func.func @transform_11(%arg0: i32) -> (i32, i32) {
    %c0_i32 = arith.constant 0 : i32
    %c0_i32_0 = arith.constant 0 : i32
    %c0_i32_1 = arith.constant 0 : i32
    return %c0_i32, %c0_i32_0 : i32, i32
  }
  func.func @transform_12(%arg0: i32) -> (i32, i32) {
    %c0_i32 = arith.constant 0 : i32
    %c0_i32_0 = arith.constant 0 : i32
    %c0_i32_1 = arith.constant 0 : i32
    return %c0_i32, %c0_i32_0 : i32, i32
  }
  func.func @transform_13(%arg0: i32) -> (i32, i32) {
    %c0_i32 = arith.constant 0 : i32
    %c0_i32_0 = arith.constant 0 : i32
    %c0_i32_1 = arith.constant 0 : i32
    return %c0_i32, %c0_i32_0 : i32, i32
  }
  func.func @transform_14(%arg0: i32) -> (i32, i32) {
    %c0_i32 = arith.constant 0 : i32
    %c0_i32_0 = arith.constant 0 : i32
    %c0_i32_1 = arith.constant 0 : i32
    return %c0_i32, %c0_i32_0 : i32, i32
  }
  func.func @transform_15(%arg0: i32) -> (i32, i32) {
    %c0_i32 = arith.constant 0 : i32
    %c0_i32_0 = arith.constant 0 : i32
    %c0_i32_1 = arith.constant 0 : i32
    return %c0_i32, %c0_i32_0 : i32, i32
  }
  func.func @transform_16(%arg0: i32) -> (i32, i32) {
    %c0_i32 = arith.constant 0 : i32
    %c0_i32_0 = arith.constant 0 : i32
    %c0_i32_1 = arith.constant 0 : i32
    return %c0_i32, %c0_i32_0 : i32, i32
  }
  func.func @transform_17(%arg0: i32) -> (i32, i32) {
    %c0_i32 = arith.constant 0 : i32
    %c0_i32_0 = arith.constant 0 : i32
    %c0_i32_1 = arith.constant 0 : i32
    return %c0_i32, %c0_i32_0 : i32, i32
  }
  func.func @transform_18(%arg0: i32) -> (i32, i32) {
    %c0_i32 = arith.constant 0 : i32
    %c0_i32_0 = arith.constant 0 : i32
    %c0_i32_1 = arith.constant 0 : i32
    return %c0_i32, %c0_i32_0 : i32, i32
  }
  func.func @transform_19(%arg0: i32) -> (i32, i32, i32) {
    %c0_i32 = arith.constant 0 : i32
    %c0_i32_0 = arith.constant 0 : i32
    %c0_i32_1 = arith.constant 0 : i32
    return %arg0, %c0_i32, %c0_i32_0 : i32, i32, i32
  }
}

</mosaic_0001>

<bundles_post_ra>
// kernel: forward.1
= control target key start
LH: loop header
LB: loop body
LE: loop exit
PB: predicated region body
PF: predicated region fallthrough
CT: control target
= control target key end

     0   :  { %s14865_s0 = inlined_call_operand.vmem [shape: bf16[2,1728,27], index: 0, kind: input, shape index: {}]   ;;  %s14866_s1 = inlined_call_operand.vmem [shape: f32[64,27], index: 1, kind: input, shape index: {}]   ;;  %s14867_s2 = inlined_call_operand.vmem [shape: bf16[27,16], index: 2, kind: input, shape index: {}]   ;;  %s14868_s3 = inlined_call_operand.vmem [shape: f32[1,16], index: 3, kind: input, shape index: {}]   ;;  %s14869_s4 = inlined_call_operand.vmem [shape: f32[1,16], index: 4, kind: input, shape index: {}]   ;;  %s14870_s5 = inlined_call_operand.vmem [shape: bf16[432,32], index: 5, kind: input, shape index: {}]   ;;  %s14871_s6 = inlined_call_operand.vmem [shape: f32[1,32], index: 6, kind: input, shape index: {}]   ;;  %s14872_s7 = inlined_call_operand.vmem [shape: f32[1,32], index: 7, kind: input, shape index: {}]   ;;  %s14873_s8 = inlined_call_operand.vmem [shape: bf16[216,64], index: 8, kind: input, shape index: {}]   ;;  %s14874_s9 = inlined_call_operand.vmem [shape: bf16[864,64], index: 9, kind: input, shape index: {}]   ;;  %s14875_s10 = inlined_call_operand.vmem [shape: f32[1,64], index: 10, kind: input, shape index: {}]   ;;  %s14876_s11 = inlined_call_operand.vmem [shape: f32[1,64], index: 11, kind: input, shape index: {}]   ;;  %s14877_s12 = inlined_call_operand.vmem [shape: bf16[512,128], index: 12, kind: input, shape index: {}]   ;;  %s14878_s13 = inlined_call_operand.vmem [shape: f32[1,128], index: 13, kind: input, shape index: {}]   ;;  %s14879_s14 = inlined_call_operand.vmem [shape: f32[1,128], index: 14, kind: input, shape index: {}]   ;;  %s14880_s15 = inlined_call_operand.vmem [shape: bf16[128,256], index: 15, kind: input, shape index: {}]   ;;  %s14881_s16 = inlined_call_operand.vmem [shape: f32[1,256], index: 16, kind: input, shape index: {}]   ;;  %s14882_s17 = inlined_call_operand.vmem [shape: bf16[256,128], index: 17, kind: input, shape index: {}]   ;;  %s14883_s18 = inlined_call_operand.vmem [shape: f32[1,128], index: 18, kind: input, shape index: {}]   ;;  %s14884_s19 = inlined_call_operand.vmem [shape: f32[2,8,128], index: 19, kind: output, shape index: {}]  }
   0x1   :  { %14952 = sst [smem:[#allocation150_spill]] %s14865_s0  ;;  %s10889_s0 = smov 0  }
   0x2   :  { %14953 = sst [smem:[#allocation151_spill]] %s14866_s1 }
   0x3   :  { %14954 = sst [smem:[#allocation152_spill]] %s14867_s2 }
   0x4   :  { %14955 = sst [smem:[#allocation153_spill]] %s14868_s3 }
   0x5   :  { %14956 = sst [smem:[#allocation154_spill]] %s14884_s19 }
   0x6 LB: > { %14957 = sst [smem:[#allocation5_spill]] %s10752_s0  ;;  %s8623_s30 = sadd.s32 4294967295, %s10752_s0   ;;  %s10752_s0 = sphi %s10889_s0, %s29_s0  }
   0x7   : > { %p8627_p0 = scmp.ge.s32.totalorder %s10752_s0, 1  ;;  %p537_p1 = scmp.lt.s32.totalorder %s10752_s0, 3 }
   0x9   : > { %p538_p2 = pnand %p8627_p0, %p537_p1 }
   0xb   : > { %541 = sbr.rel (%p538_p2) target bundleno = 2888 (0xb48), region = 96 }
  0x10   : > { %s14958_s1 = sld [smem:[#allocation151_spill]]  ;;  %vm658_vm0 = vcmask 1044480   ;;  %v10754_v3 = vmov 0   ;;  %vm659_vm1 = vcmask 1045504   ;;  %v10755_v7 = vmov 65535   ;;  %p592_p3 = scmp.lt.s32.totalorder %s8623_s30, 1 }
  0x11   : > { %s14959_s25 = sld [smem:[#allocation152_spill]]  ;;  %10484 = vset.pattern.permute.xlu1 %v10754_v3  ;;  %10483 = vset.pattern.permute.xlu0 %v10754_v3  ;;  %v660_v8 = vsel %vm658_vm0, 4294967295, %v10755_v7  ;;  %vm645_vm2 = vcmask 220160   ;;  %v10756_v36 = vmov 1   ;;  %v10757_v52 = vmov 2   ;;  %s14888_s28 = smov 16  }
  0x12   : > { %v10929_v12 = vsel %vm659_vm1, %v660_v8, 0  ;;  %10485 = vset.pattern.permute.xlu2 %v10754_v3  ;;  %s15361_s30 = smov (!%p592_p3, %s8623_s30), 1  ;;  %s14960_s3 = sld [smem:[#allocation150_spill]]  ;;  %v10758_v60 = vmov 3   ;;  %v10759_v63 = vmov 4   ;;  %vm790_vm3 = vcmask 125952  }
  0x13   : > { %s10439_s21 = smul.u32 864, %s15361_s30  ;;  %s14961_s29 = sld [smem:[#allocation153_spill]]  ;;  %vm1014_vm4 = vcmask 257152   ;;  %vm1238_vm5 = vcmask 388352   ;;  %vm1462_vm6 = vcmask 519552   ;;  %vm1686_vm7 = vcmask 650752  }
  0x14   : > { %s14894_s20 = smov 32   ;;  %s14890_s23 = smov 64   ;;  %vm1910_vm8 = vcmask 781952   ;;  %vm2134_vm9 = vcmask 913152   ;;  %vm2358_vm10 = vcmask 1044352   ;;  %vm6816_vm11 = vcmask 392192  }
  0x15   : > { %s14896_s24 = smov 80   ;;  %s14900_s2 = smov 112   ;;  %vm7076_vm12 = vcmask 523264   ;;  %vm7198_vm13 = vcmask 257024   ;;  %vm7205_vm14 = vcmask 519424   ;;  %vm7212_vm15 = vcmask 781824  }
  0x16   : > { %v10900_v0 = vld [vmem:[%s14958_s1 + $0x10] sm:$0xff]  ;;  %v10905_v1 = vld [vmem:[%s14958_s1] sm:$0xff]  ;;  %v10958_v25 = vld [vmem:[%s14958_s1 + $0x18] sm:$0xff]  ;;  %s15093_s0 = smov 32   ;;  %vm7219_vm0 = vcmask 1044224   ;;  %vm7795_vm1 = vcmask 785408  }
  0x17   : > { %v8652_v2 = vld [vmem:[%s14959_s25 + $0x8] sm:$0xf]  ;;  %v10108_v4 = vld [vmem:[%s14959_s25 + $0x8] sm:$0x30]  ;;  %746 = vperm.xlu1 %10484, %v10900_v0   ;;  %736 = vperm.xlu0 %10483, %v10905_v1   ;;  %v10927_v11 = vld [vmem:[%s14958_s1 + $0x20] sm:$0xff]  ;;  %s15358_s22 = sld [smem:[#allocation154_spill]] }
  0x18   : > { %v8680_v5 = vld [vmem:[%s14959_s25 + $0x8] sm:$0xf]  ;;  %v8653_v6 = vor.u32 %v10108_v4, %v8652_v2  ;;  %v10114_v9 = vld [vmem:[%s14959_s25 + $0x8] sm:$0x30]  ;;  %756 = vperm.xlu2 %10485, %v10927_v11   ;;  %v10107_v21 = vld [vmem:[%s14959_s25] sm:$0xff]  ;;  %s10983_s26 = scalar_lea.vmem %s14960_s3, %s10439_s21  ;;  %s14892_s21 = smov 48  }
  0x19   : > { %v8708_v10 = vld [vmem:[%s14959_s25 + $0x8] sm:$0xf]  ;;  %v8681_v13 = vor.u32 %v10114_v9, %v8680_v5  ;;  %v10120_v14 = vld [vmem:[%s14959_s25 + $0x8] sm:$0x30]  ;;  %v10113_v22 = vld [vmem:[%s14959_s25] sm:$0xff]  ;;  %v10760_v5 = vmov 5  }
  0x1a   : > { %v8736_v15 = vld [vmem:[%s14959_s25 + $0x8] sm:$0xf]  ;;  %v663_v16 = vand.u32 %v8653_v6, %v10929_v12  ;;  %v8709_v17 = vor.u32 %v10120_v14, %v8708_v10  ;;  %v10126_v18 = vld [vmem:[%s14959_s25 + $0x8] sm:$0x30]  ;;  %v10119_v24 = vld [vmem:[%s14959_s25] sm:$0xff]  ;;  %s15107_s3 = smov 112  }
  0x1b   : > { %v855_v19 = vand.u32 %v8681_v13, %v10929_v12  ;;  %v8737_v20 = vor.u32 %v10126_v18, %v8736_v15  ;;  %v10963_v26 = vld [vmem:[%s14958_s1 + $0x8] sm:$0xff]  ;;  %v10125_v28 = vld [vmem:[%s14959_s25] sm:$0xff]  ;;  %v10996_v34 = vld [vmem:[%s14958_s1 + $0x38] sm:$0xff] }
  0x1c   : > { %671 = vmatpush.bf16.msra.mxu0 %v663_v16  ;;  %v1079_v23 = vand.u32 %v8709_v17, %v10929_v12  ;;  %v10977_v29 = vld [vmem:[%s14958_s1 + $0x28] sm:$0xff]  ;;  %v10103_v30 = vld [vmem:[%s10983_s26] sm:$0xff]  ;;  %v11001_v35 = vld [vmem:[%s14958_s1 + $0x30] sm:$0xff] }
  0x1d   : > { %863 = vmatpush.bf16.msra.mxu1 %v855_v19  ;;  %v1303_v27 = vand.u32 %v8737_v20, %v10929_v12  ;;  %v10109_v31 = vld [vmem:[%s10983_s26 + $0x20] sm:$0xff]  ;;  %v10104_v37 = vld [vmem:[%s10983_s26 + $0x8] sm:$0xff]  ;;  %v10105_v49 = vld [vmem:[%s10983_s26 + $0x10] sm:$0xff] }
  0x1e   : > { %1087 = vmatpush.bf16.msra.mxu2 %v1079_v23  ;;  %v10115_v32 = vld [vmem:[%s10983_s26 + $0x40] sm:$0xff]  ;;  %v10110_v38 = vld [vmem:[%s10983_s26 + $0x28] sm:$0xff]  ;;  %v10111_v50 = vld [vmem:[%s10983_s26 + $0x30] sm:$0xff] }
  0x1f   : > { %1311 = vmatpush.bf16.msra.mxu3 %v1303_v27  ;;  %751 = vperm.xlu1 %10484, %v10958_v25   ;;  %v10121_v33 = vld [vmem:[%s10983_s26 + $0x60] sm:$0xff]  ;;  %v10116_v39 = vld [vmem:[%s10983_s26 + $0x48] sm:$0xff]  ;;  %v10117_v51 = vld [vmem:[%s10983_s26 + $0x50] sm:$0xff] }
  0x20   : > { %672 = vmatpush.bf16.msra.mxu0 %v10107_v21  ;;  %741 = vperm.xlu0 %10483, %v10963_v26   ;;  %v10122_v40 = vld [vmem:[%s10983_s26 + $0x68] sm:$0xff]  ;;  %v10123_v53 = vld [vmem:[%s10983_s26 + $0x70] sm:$0xff]  ;;  %v10131_v54 = vld [vmem:[%s14959_s25] sm:$0xff] }
  0x21   : > { %864 = vmatpush.bf16.msra.mxu1 %v10113_v22  ;;  %761 = vperm.xlu2 %10485, %v10977_v29   ;;  %v8764_v41 = vld [vmem:[%s14959_s25 + $0x8] sm:$0xf]  ;;  %v10132_v42 = vld [vmem:[%s14959_s25 + $0x8] sm:$0x30]  ;;  %v10137_v55 = vld [vmem:[%s14959_s25] sm:$0xff] }
  0x22   : > { %1088 = vmatpush.bf16.msra.mxu2 %v10119_v24  ;;  %v8792_v43 = vld [vmem:[%s14959_s25 + $0x8] sm:$0xf]  ;;  %v8765_v44 = vor.u32 %v10132_v42, %v8764_v41  ;;  %v10138_v45 = vld [vmem:[%s14959_s25 + $0x8] sm:$0x30]  ;;  %v10106_v56 = vld [vmem:[%s10983_s26 + $0x18] sm:$0xff] }
  0x23   : > { %1312 = vmatpush.bf16.msra.mxu3 %v10125_v28  ;;  %8654 = vmatmul.msk.bf16.vlgmr.msra.gmra.mxu0 %vm645_vm2, %v10103_v30  ;;  %v8793_v46 = vor.u32 %v10138_v45, %v8792_v43  ;;  %v10112_v57 = vld [vmem:[%s10983_s26 + $0x38] sm:$0xff]  ;;  %v10127_v61 = vld [vmem:[%s10983_s26 + $0x80] sm:$0xff]  ;;  %v10128_v2 = vld [vmem:[%s10983_s26 + $0x88] sm:$0xff] }
  0x24   : > { %8682 = vmatmul.msk.bf16.vlgmr.msra.gmra.mxu1 %vm645_vm2, %v10109_v31  ;;  %v1527_v47 = vand.u32 %v8765_v44, %v10929_v12  ;;  %v10118_v58 = vld [vmem:[%s10983_s26 + $0x58] sm:$0xff]  ;;  %v10133_v62 = vld [vmem:[%s10983_s26 + $0xa0] sm:$0xff]  ;;  %v10134_v3 = vld [vmem:[%s10983_s26 + $0xa8] sm:$0xff] }
  0x25   : > { %8710 = vmatmul.msk.bf16.vlgmr.msra.gmra.mxu2 %vm645_vm2, %v10115_v32  ;;  %v1751_v48 = vand.u32 %v8793_v46, %v10929_v12  ;;  %v10124_v59 = vld [vmem:[%s10983_s26 + $0x78] sm:$0xff]  ;;  %v10129_v7 = vld [vmem:[%s10983_s26 + $0x90] sm:$0xff]  ;;  %v8820_v19 = vld [vmem:[%s14959_s25 + $0x8] sm:$0xf] }
  0x26   : > { %8738 = vmatmul.msk.bf16.vlgmr.msra.gmra.mxu3 %vm645_vm2, %v10121_v33  ;;  %1535 = vmatpush.bf16.msrb.mxu0 %v1527_v47  ;;  %v10135_v8 = vld [vmem:[%s10983_s26 + $0xb0] sm:$0xff]  ;;  %v10130_v14 = vld [vmem:[%s10983_s26 + $0x98] sm:$0xff]  ;;  %v10144_v20 = vld [vmem:[%s14959_s25 + $0x8] sm:$0x30] }
  0x27   : > { %771 = vperm.xlu1 %10484, %v10996_v34   ;;  %1759 = vmatpush.bf16.msrb.mxu1 %v1751_v48  ;;  %v10136_v15 = vld [vmem:[%s10983_s26 + $0xb8] sm:$0xff]  ;;  %v8821_v22 = vor.u32 %v10144_v20, %v8820_v19  ;;  %v10143_v30 = vld [vmem:[%s14959_s25] sm:$0xff] }
  0x28   : > { %766 = vperm.xlu0 %10483, %v11001_v35   ;;  %v11205_v19 = vld [vmem:[%s14961_s29] ss:$0 sm:$0xff] }
  0x29   : > { %10486 = vset.pattern.permute.xlu2 %v10756_v36  ;;  %v1975_v24 = vand.u32 %v8821_v22, %v10929_v12 }
  0x2a   : > { %928 = vperm.xlu2 %10486, %v10905_v1   ;;  %1536 = vmatpush.bf16.msrb.mxu0 %v10131_v54 }
  0x2b   : > { %1760 = vmatpush.bf16.msrb.mxu1 %v10137_v55  ;;  %1983 = vmatpush.bf16.msrb.mxu2 %v1975_v24  ;;  %v11181_v55 = vld [vmem:[%s14869_s4] ss:$0 sm:$0xff] }
  0x2c   : > { %v11211_v24 = vld [vmem:[%s14869_s4] ss:$0 sm:$0xff] }
  0x2f   : > { %10488 = vset.pattern.permute.xlu1 %v10756_v36  ;;  %1984 = vmatpush.bf16.msrb.mxu2 %v10143_v30 }
  0x30   : > { %10487 = vset.pattern.permute.xlu0 %v10756_v36  ;;  %938 = vperm.xlu1 %10488, %v10900_v0  }
  0x31   : > { %933 = vperm.xlu0 %10487, %v10963_v26  }
  0x32   : > { %943 = vperm.xlu2 %10486, %v10958_v25  }
  0x33   : > { %8655 = vmatmul.msk.bf16.gmra.mxu0 %vm645_vm2, %v10104_v37  ;;  %v10139_v37 = vld [vmem:[%s10983_s26 + $0xc0] sm:$0xff] }
  0x34   : > { %8683 = vmatmul.msk.bf16.gmra.mxu1 %vm645_vm2, %v10110_v38 }
  0x35   : > { %8711 = vmatmul.msk.bf16.gmra.mxu2 %vm645_vm2, %v10116_v39 }
  0x36   : > { %8739 = vmatmul.msk.bf16.gmra.mxu3 %vm645_vm2, %v10122_v40 }
  0x38   : > { %948 = vperm.xlu1 %10488, %v10927_v11  }
  0x39   : > { %958 = vperm.xlu0 %10487, %v11001_v35  }
  0x3a   : > { %953 = vperm.xlu2 %10486, %v10977_v29  }
  0x40   : > { %963 = vperm.xlu1 %10488, %v10996_v34  }
  0x41   : > { %10491 = vset.pattern.permute.xlu0 %v10757_v52 }
  0x42   : > { %1162 = vperm.xlu0 %10491, %v10900_v0   ;;  %10490 = vset.pattern.permute.xlu2 %v10757_v52 }
  0x43   : > { %8656 = vmatmul.msk.bf16.gmra.mxu0 %vm645_vm2, %v10105_v49  ;;  %1157 = vperm.xlu2 %10490, %v10963_v26  }
  0x44   : > { %8684 = vmatmul.msk.bf16.gmra.mxu1 %vm645_vm2, %v10111_v50 }
  0x45   : > { %8712 = vmatmul.msk.bf16.gmra.mxu2 %vm645_vm2, %v10117_v51 }
  0x46   : > { %8740 = vmatmul.msk.bf16.gmra.mxu3 %vm645_vm2, %v10123_v53  ;;  %v11176_v53 = vld [vmem:[%s14961_s29] ss:$0 sm:$0xff] }
  0x48   : > { %10489 = vset.pattern.permute.xlu1 %v10757_v52 }
  0x49   : > { %1152 = vperm.xlu1 %10489, %v10905_v1  }
  0x4a   : > { %1187 = vperm.xlu0 %10491, %v10996_v34  }
  0x4b   : > { %1172 = vperm.xlu2 %10490, %v10927_v11  }
  0x51   : > { %1167 = vperm.xlu1 %10489, %v10958_v25  }
  0x52   : > { %10492 = vset.pattern.permute.xlu0 %v10758_v60 }
  0x53   : > { %8657 = vmatmul.msk.bf16.gmra.mxu0 %vm645_vm2, %v10106_v56  ;;  %1376 = vperm.xlu0 %10492, %v10905_v1  }
  0x54   : > { %8685 = vmatmul.msk.bf16.gmra.mxu1 %vm645_vm2, %v10112_v57  ;;  %1182 = vperm.xlu2 %10490, %v11001_v35  }
  0x55   : > { %8713 = vmatmul.msk.bf16.gmra.mxu2 %vm645_vm2, %v10118_v58 }
  0x56   : > { %8741 = vmatmul.msk.bf16.gmra.mxu3 %vm645_vm2, %v10124_v59 }
  0x59   : > { %1177 = vperm.xlu1 %10489, %v10977_v29  }
  0x5b   : > { %1401 = vperm.xlu0 %10492, %v10977_v29  }
  0x5c   : > { %10494 = vset.pattern.permute.xlu2 %v10758_v60 }
  0x5d   : > { %1386 = vperm.xlu2 %10494, %v10900_v0  }
  0x61   : > { %10493 = vset.pattern.permute.xlu1 %v10758_v60 }
  0x62   : > { %1381 = vperm.xlu1 %10493, %v10963_v26  }
  0x63   : > { %8766 = vmatmul.msk.bf16.vlgmr.msrb.gmra.mxu0 %vm645_vm2, %v10127_v61  ;;  %10496 = vset.pattern.permute.xlu0 %v10759_v63 }
  0x64   : > { %8794 = vmatmul.msk.bf16.vlgmr.msrb.gmra.mxu1 %vm645_vm2, %v10133_v62  ;;  %1605 = vperm.xlu0 %10496, %v10963_v26  }
  0x65   : > { %1396 = vperm.xlu2 %10494, %v10927_v11   ;;  %8822 = vmatmul.msk.bf16.vlgmr.msrb.gmra.mxu2 %vm645_vm2, %v10139_v37 }
  0x6a   : > { %1391 = vperm.xlu1 %10493, %v10958_v25  }
  0x6c   : > { %1630 = vperm.xlu0 %10496, %v11001_v35  }
  0x6d   : > { %1411 = vperm.xlu2 %10494, %v10996_v34  }
  0x72   : > { %1406 = vperm.xlu1 %10493, %v11001_v35   ;;  %v11085_v4 = vpop.permute.xlu2 %756 }
  0x73   : > { %8767 = vmatmul.msk.bf16.gmra.mxu0 %vm645_vm2, %v10128_v2 }
  0x74   : > { %8795 = vmatmul.msk.bf16.gmra.mxu1 %vm645_vm2, %v10134_v3  ;;  %10500 = vset.pattern.permute.xlu0 %v10760_v5 }
  0x75   : > { %10495 = vset.pattern.permute.xlu2 %v10759_v63  ;;  %1834 = vperm.xlu0 %10500, %v10900_v0  }
  0x76   : > { %1600 = vperm.xlu2 %10495, %v10905_v1  }
  0x7a   : > { %10497 = vset.pattern.permute.xlu1 %v10759_v63 }
  0x7b   : > { %1610 = vperm.xlu1 %10497, %v10900_v0   ;;  %v11090_v6 = vpop.permute.xlu2 %761 }
  0x7d   : > { %1859 = vperm.xlu0 %10500, %v10996_v34  }
  0x7e   : > { %1615 = vperm.xlu2 %10495, %v10958_v25  }
  0x83   : > { %8768 = vmatmul.msk.bf16.gmra.mxu0 %vm645_vm2, %v10129_v7  ;;  %1620 = vperm.xlu1 %10497, %v10927_v11  }
  0x84   : > { %8796 = vmatmul.msk.bf16.gmra.mxu1 %vm645_vm2, %v10135_v8  ;;  %v929_v9 = vpop.permute.xlu2 %928 }
  0x86   : > { %1625 = vperm.xlu2 %10495, %v10977_v29  }
  0x89   : > { %v11100_v10 = vpop.permute.xlu1 %746  ;;  %v737_v0 = vpop.permute.xlu0 %736 }
  0x8b   : > { %1635 = vperm.xlu1 %10497, %v10996_v34  }
  0x8c   : > { %v11103_v13 = vpop.permute.xlu2 %943 }
  0x8e   : > { %10499 = vset.pattern.permute.xlu2 %v10760_v5 }
  0x8f   : > { %1829 = vperm.xlu2 %10499, %v10963_v26   ;;  %v11141_v26 = vld [vmem:[%s14869_s4] ss:$0 sm:$0xff] }
  0x91   : > { %v11108_v16 = vpop.permute.xlu1 %751 }
  0x92   : > { %v742_v17 = vpop.permute.xlu0 %741 }
  0x93   : > { %8769 = vmatmul.msk.bf16.gmra.mxu0 %vm645_vm2, %v10130_v14  ;;  %10498 = vset.pattern.permute.xlu1 %v10760_v5 }
  0x94   : > { %8797 = vmatmul.msk.bf16.gmra.mxu1 %vm645_vm2, %v10136_v15  ;;  %1824 = vperm.xlu1 %10498, %v10905_v1   ;;  %v11113_v18 = vpop.permute.xlu2 %953  ;;  %v11131_v1 = vld [vmem:[%s14961_s29] ss:$0 sm:$0xff] }
  0x97   : > { %1844 = vperm.xlu2 %10499, %v10927_v11   ;;  %v11136_v11 = vld [vmem:[%s14961_s29] ss:$0 sm:$0xff] }
  0x99   : > { %v11122_v21 = vpop.permute.xlu1 %771 }
  0x9a   : > { %v11124_v23 = vpop.permute.xlu0 %766 }
  0x9c   : > { %1839 = vperm.xlu1 %10498, %v10958_v25   ;;  %v11146_v25 = vld [vmem:[%s14869_s4] ss:$0 sm:$0xff] }
  0x9d   : > { %v1158_v27 = vpop.permute.xlu2 %1157 }
  0x9f   : > { %1854 = vperm.xlu2 %10499, %v11001_v35  }
  0xa0   : > { %v674_v28 = vpop.f32.mrf.mxu0 }
  0xa1   : > { %v698_v31 = vmul.f32 %v11131_v1, %v674_v28  ;;  %v866_v32 = vpop.f32.mrf.mxu1 }
  0xa2   : > { %v890_v33 = vmul.f32 %v11136_v11, %v866_v32  ;;  %v11155_v36 = vpop.permute.xlu1 %938 }
  0xa3   : > { %v710_v34 = vadd.f32 %v11141_v26, %v698_v31  ;;  %v11159_v39 = vpop.permute.xlu0 %933 }
  0xa4   : > { %v902_v38 = vadd.f32 %v11146_v25, %v890_v33  ;;  %1849 = vperm.xlu1 %10498, %v10977_v29  }
  0xa5   : > { %v718_v35 = vmax.f32 %v710_v34, 0.0  ;;  %v11163_v42 = vpop.permute.xlu2 %1172 }
  0xa6   : > { %v910_v40 = vmax.f32 %v902_v38, 0.0 }
  0xa7   : > { %v774_v41 = vmul.f32 %v737_v0, %v718_v35 }
  0xa8   : > { %v1090_v43 = vpop.f32.mrf.mxu2  ;;  %v676_v44 = vpop.f32.mrf.mxu0  ;;  %v966_v45 = vmul.f32 %v929_v9, %v910_v40  ;;  %v10140_v9 = vld [vmem:[%s10983_s26 + $0xc8] sm:$0xff] }
  0xa9   : > { %v782_v46 = vpack.c.bf16 %v774_v41, %v774_v41  ;;  %v1314_v47 = vpop.f32.mrf.mxu3  ;;  %v699_v48 = vmul.f32 %v11131_v1, %v676_v44  ;;  %v868_v49 = vpop.f32.mrf.mxu1  ;;  %v1114_v60 = vmul.f32 %v11176_v53, %v1090_v43  ;;  %8823 = vmatmul.msk.bf16.gmra.mxu2 %vm645_vm2, %v10140_v9 }
  0xaa   : > { %v974_v50 = vpack.c.bf16 %v966_v45, %v966_v45  ;;  %v11167_v52 = vpop.permute.xlu1 %948 }
  0xab   : > { %v711_v51 = vadd.f32 %v11141_v26, %v699_v48  ;;  %791 = vst.msk [vmem:[#allocation2] sm:$0xf] %vm790_vm3, %v782_v46  ;;  %v11170_v29 = vpop.permute.xlu0 %958  ;;  %v1126_v0 = vadd.f32 %v11181_v55, %v1114_v60 }
  0xac   : > { %990 = vrot.lane.b32.xlu2 %v974_v50, %s14888_s28 }
  0xad   : > { %v719_v54 = vmax.f32 %v711_v51, 0.0  ;;  %v1134_v31 = vmax.f32 %v1126_v0, 0.0 }
  0xae   : > { %v11183_v57 = vpop.permute.xlu2 %1182 }
  0xaf   : > { %v775_v56 = vmul.f32 %v742_v17, %v719_v54 }
  0xb0   : > { %v1092_v58 = vpop.f32.mrf.mxu2  ;;  %v679_v59 = vpop.f32.mrf.mxu0 }
  0xb1   : > { %v1115_v61 = vmul.f32 %v11176_v53, %v1092_v58  ;;  %v11187_v62 = vpop.f32.mrf.mxu3  ;;  %v700_v63 = vmul.f32 %v11131_v1, %v679_v59  ;;  %v11190_v2 = vpop.f32.mrf.mxu1  ;;  %v783_v3 = vpack.c.bf16 %v775_v56, %v775_v56  ;;  %v891_v58 = vmul.f32 %v11136_v11, %v868_v49 }
  0xb2   : > { %v11194_v8 = vpop.permute.xlu1 %963 }
  0xb3   : > { %v1127_v5 = vadd.f32 %v11181_v55, %v1115_v61  ;;  %v712_v7 = vadd.f32 %v11141_v26, %v700_v63  ;;  %792 = vst.msk [vmem:[#allocation2 + $0x10] sm:$0xf] %vm790_vm3, %v783_v3 }
  0xb4   : > { %v11199_v17 = vpop.permute.xlu0 %1162 }
  0xb5   : > { %v1135_v14 = vmax.f32 %v1127_v5, 0.0  ;;  %v720_v15 = vmax.f32 %v712_v7, 0.0 }
  0xb7   : > { %v776_v20 = vmul.f32 %v11100_v10, %v720_v15  ;;  %v1191_v22 = vmul.f32 %v1158_v27, %v1135_v14  ;;  %v1387_v10 = vpop.permute.xlu2 %1386  ;;  %v1338_v27 = vmul.f32 %v11205_v19, %v1314_v47 }
  0xb8   : > { %v1095_v28 = vpop.f32.mrf.mxu2  ;;  %v681_v30 = vpop.f32.mrf.mxu0 }
  0xb9   : > { %v784_v32 = vpack.c.bf16 %v776_v20, %v776_v20  ;;  %v1319_v33 = vpop.f32.mrf.mxu3  ;;  %v701_v34 = vmul.f32 %v11131_v1, %v681_v30  ;;  %v873_v37 = vpop.f32.mrf.mxu1  ;;  %v1199_v38 = vpack.c.bf16 %v1191_v22, %v1191_v22  ;;  %v1350_v54 = vadd.f32 %v11211_v24, %v1338_v27  ;;  %v10141_v20 = vld [vmem:[%s10983_s26 + $0xd0] sm:$0xff] }
  0xba   : > { %v1340_v35 = vmul.f32 %v11205_v19, %v1319_v33  ;;  %v893_v40 = vmul.f32 %v11136_v11, %v873_v37  ;;  %v903_v22 = vadd.f32 %v11146_v25, %v891_v58  ;;  %8824 = vmatmul.msk.bf16.gmra.mxu2 %vm645_vm2, %v10141_v20  ;;  %v1116_v27 = vmul.f32 %v11176_v53, %v1095_v28 }
  0xbb   : > { %v713_v41 = vadd.f32 %v11141_v26, %v701_v34  ;;  %1216 = vrot.lane.b32.xlu2 %v1199_v38, %s14894_s20  ;;  %793 = vst.msk [vmem:[#allocation2 + $0x20] sm:$0xf] %vm790_vm3, %v784_v32  ;;  %v1153_v44 = vpop.permute.xlu1 %1152  ;;  %v1358_v15 = vmax.f32 %v1350_v54, 0.0  ;;  %v1339_v28 = vmul.f32 %v11205_v19, %v11187_v62 }
  0xbc   : > { %v1352_v43 = vadd.f32 %v11211_v24, %v1340_v35  ;;  %v1190_v46 = vmul.f32 %v1153_v44, %v1134_v31  ;;  %v11221_v48 = vpop.permute.xlu0 %1187  ;;  %v905_v51 = vadd.f32 %v11146_v25, %v893_v40  ;;  %v911_v35 = vmax.f32 %v903_v22, 0.0 }
  0xbd   : > { %v721_v45 = vmax.f32 %v713_v41, 0.0 }
  0xbe   : > { %v1360_v50 = vmax.f32 %v1352_v43, 0.0  ;;  %v1198_v56 = vpack.c.bf16 %v1190_v46, %v1190_v46  ;;  %v913_v9 = vmax.f32 %v905_v51, 0.0 }
  0xbf   : > { %v777_v47 = vmul.f32 %v11108_v16, %v721_v45  ;;  %v11232_v16 = vpop.permute.xlu2 %1396 }
  0xc0   : > { %v1416_v59 = vmul.f32 %v1387_v10, %v1360_v50  ;;  %v11227_v60 = vpop.f32.mrf.mxu2  ;;  %v684_v61 = vpop.f32.mrf.mxu0  ;;  %1214 = vrot.lane.b32.xlu1 %v1198_v56, %s14894_s20  ;;  %v969_v34 = vmul.f32 %v11103_v13, %v913_v9  ;;  %v1351_v9 = vadd.f32 %v11211_v24, %v1339_v28 }
  0xc1   : > { %v1321_v63 = vpop.f32.mrf.mxu3  ;;  %v702_v3 = vmul.f32 %v11131_v1, %v684_v61  ;;  %v876_v5 = vpop.f32.mrf.mxu1  ;;  %v785_v7 = vpack.c.bf16 %v777_v47, %v777_v47 }
  0xc2   : > { %v1424_v0 = vpack.c.bf16 %v1416_v59, %v1416_v59  ;;  %v894_v14 = vmul.f32 %v11136_v11, %v876_v5  ;;  %v977_v13 = vpack.c.bf16 %v969_v34, %v969_v34  ;;  %v1128_v59 = vadd.f32 %v11181_v55, %v1116_v27 }
  0xc3   : > { %v714_v49 = vadd.f32 %v11141_v26, %v702_v3  ;;  %794 = vst.msk [vmem:[#allocation2 + $0x30] sm:$0xf] %vm790_vm3, %v785_v7  ;;  %v11242_v31 = vpop.permute.xlu1 %1167  ;;  %v967_v3 = vmul.f32 %v11159_v39, %v911_v35  ;;  %v892_v7 = vmul.f32 %v11136_v11, %v11190_v2  ;;  %v1341_v34 = vmul.f32 %v11205_v19, %v1321_v63  ;;  %v10142_v35 = vld [vmem:[%s10983_s26 + $0xd8] sm:$0xff] }
  0xc4   : > { %v11239_v30 = vadd.f32 %v11146_v25, %v894_v14  ;;  %1442 = vrot.lane.b32.xlu2 %v1424_v0, %s14892_s21  ;;  %v1359_v27 = vmax.f32 %v1351_v9, 0.0 }
  0xc5   : > { %v722_v32 = vmax.f32 %v714_v49, 0.0  ;;  %v1377_v33 = vpop.permute.xlu0 %1376  ;;  %v1136_v49 = vmax.f32 %v1128_v59, 0.0 }
  0xc6   : > { %v1414_v38 = vmul.f32 %v1377_v33, %v1358_v15  ;;  %v975_v33 = vpack.c.bf16 %v967_v3, %v967_v3 }
  0xc7   : > { %v778_v37 = vmul.f32 %v11085_v4, %v722_v32  ;;  %v11253_v54 = vpop.permute.xlu2 %1411 }
  0xc8   : > { %v1100_v40 = vpop.f32.mrf.mxu2  ;;  %v686_v10 = vpop.f32.mrf.mxu0  ;;  %v1422_v43 = vpack.c.bf16 %v1414_v38, %v1414_v38 }
  0xc9   : > { %v786_v41 = vpack.c.bf16 %v778_v37, %v778_v37  ;;  %v1118_v44 = vmul.f32 %v11176_v53, %v1100_v40  ;;  %v11249_v45 = vpop.f32.mrf.mxu3  ;;  %v878_v46 = vpop.f32.mrf.mxu1  ;;  %v703_v50 = vmul.f32 %v11131_v1, %v686_v10 }
  0xca   : > { %v895_v51 = vmul.f32 %v11136_v11, %v878_v46  ;;  %1438 = vrot.lane.b32.xlu0 %v1422_v43, %s14892_s21  ;;  %8825 = vmatmul.msk.bf16.gmra.mxu2 %vm645_vm2, %v10142_v35  ;;  %v1353_v46 = vadd.f32 %v11211_v24, %v1341_v34  ;;  %v10764_v35 = vmov 6  }
  0xcb   : > { %v1130_v4 = vadd.f32 %v11181_v55, %v1118_v44  ;;  %795 = vst.msk [vmem:[#allocation2 + $0x40] sm:$0xf] %vm790_vm3, %v786_v41  ;;  %v715_v47 = vadd.f32 %v11141_v26, %v703_v50  ;;  %v11265_v58 = vpop.permute.xlu1 %1177  ;;  %v1192_v44 = vmul.f32 %v11199_v17, %v1136_v49  ;;  %10503 = vset.pattern.permute.xlu2 %v10764_v35 }
  0xcc   : > { %v11262_v56 = vadd.f32 %v11146_v25, %v895_v51  ;;  %996 = vrot.lane.b32.xlu2 %v977_v13, %s14888_s28  ;;  %10501 = vset.pattern.permute.xlu0 %v10764_v35 }
  0xcd   : > { %v1138_v61 = vmax.f32 %v1130_v4, 0.0  ;;  %v723_v5 = vmax.f32 %v715_v47, 0.0  ;;  %v1402_v41 = vpop.permute.xlu0 %1401  ;;  %v1117_v47 = vmul.f32 %v11176_v53, %v11227_v60  ;;  %v1361_v60 = vmax.f32 %v1353_v46, 0.0  ;;  %10502 = vset.pattern.permute.xlu1 %v10764_v35 }
  0xcf   : > { %v1194_v62 = vmul.f32 %v11163_v42, %v1138_v61  ;;  %v779_v0 = vmul.f32 %v11090_v6, %v723_v5  ;;  %v904_v6 = vadd.f32 %v11146_v25, %v892_v7 }
  0xd0   : > { %v11274_v14 = vpop.f32.mrf.mxu2  ;;  %v689_v15 = vpop.f32.mrf.mxu0 }
  0xd1   : > { %v1326_v20 = vpop.f32.mrf.mxu3  ;;  %v704_v22 = vmul.f32 %v11131_v1, %v689_v15  ;;  %v881_v32 = vpop.f32.mrf.mxu1  ;;  %v1202_v39 = vpack.c.bf16 %v1194_v62, %v1194_v62  ;;  %v787_v40 = vpack.c.bf16 %v779_v0, %v779_v0  ;;  %v912_v4 = vmax.f32 %v904_v6, 0.0 }
  0xd2   : > { %v1343_v2 = vmul.f32 %v11205_v19, %v1326_v20  ;;  %v896_v42 = vmul.f32 %v11136_v11, %v881_v32  ;;  %v11280_v37 = vpop.permute.xlu2 %1600  ;;  %992 = vrot.lane.b32.xlu0 %v975_v33, %s14888_s28  ;;  %v1200_v15 = vpack.c.bf16 %v1192_v44, %v1192_v44  ;;  %v1129_v33 = vadd.f32 %v11181_v55, %v1117_v47 }
  0xd3   : > { %v716_v38 = vadd.f32 %v11141_v26, %v704_v22  ;;  %796 = vst.msk [vmem:[#allocation2 + $0x50] sm:$0xf] %vm790_vm3, %v787_v40 }
  0xd4   : > { %v1355_v10 = vadd.f32 %v11211_v24, %v1343_v2  ;;  %1222 = vrot.lane.b32.xlu2 %v1202_v39, %s14894_s20  ;;  %v1382_v43 = vpop.permute.xlu1 %1381  ;;  %v908_v50 = vadd.f32 %v11146_v25, %v896_v42  ;;  %v11319_v42 = vld [vmem:[%s14961_s29] ss:$0 sm:$0xff]  ;;  %v1137_v40 = vmax.f32 %v1129_v33, 0.0 }
  0xd5   : > { %v724_v63 = vmax.f32 %v716_v38, 0.0  ;;  %v1415_v13 = vmul.f32 %v1382_v43, %v1359_v27  ;;  %v11329_v43 = vld [vmem:[%s14869_s4] ss:$0 sm:$0xff] }
  0xd6   : > { %v1363_v51 = vmax.f32 %v1355_v10, 0.0  ;;  %v916_v49 = vmax.f32 %v908_v50, 0.0  ;;  %v1342_v10 = vmul.f32 %v11205_v19, %v11249_v45 }
  0xd7   : > { %v780_v28 = vmul.f32 %v11124_v23, %v724_v63  ;;  %v1423_v61 = vpack.c.bf16 %v1415_v13, %v1415_v13 }
  0xd8   : > { %v1419_v59 = vmul.f32 %v1402_v41, %v1363_v51  ;;  %v1105_v3 = vpop.f32.mrf.mxu2  ;;  %v691_v17 = vpop.f32.mrf.mxu0  ;;  %v972_v6 = vmul.f32 %v11170_v29, %v916_v49 }
  0xd9   : > { %v788_v5 = vpack.c.bf16 %v780_v28, %v780_v28  ;;  %v1120_v7 = vmul.f32 %v11176_v53, %v1105_v3  ;;  %v11297_v62 = vpop.f32.mrf.mxu3  ;;  %v705_v9 = vmul.f32 %v11131_v1, %v691_v17  ;;  %v883_v0 = vpop.f32.mrf.mxu1  ;;  %1440 = vrot.lane.b32.xlu1 %v1423_v61, %s14892_s21  ;;  %v968_v1 = vmul.f32 %v11155_v36, %v912_v4 }
  0xda   : > { %v1427_v20 = vpack.c.bf16 %v1419_v59, %v1419_v59  ;;  %v897_v23 = vmul.f32 %v11136_v11, %v883_v0  ;;  %v11302_v22 = vpop.permute.xlu2 %1615  ;;  %1218 = vrot.lane.b32.xlu0 %v1200_v15, %s14894_s20  ;;  %v980_v51 = vpack.c.bf16 %v972_v6, %v972_v6  ;;  %v11362_v15 = vld [vmem:[%s14869_s4] ss:$0 sm:$0xff] }
  0xdb   : > { %v11305_v32 = vadd.f32 %v11181_v55, %v1120_v7  ;;  %v717_v39 = vadd.f32 %v11141_v26, %v705_v9  ;;  %797 = vst.msk [vmem:[#allocation2 + $0x60] sm:$0xf] %vm790_vm3, %v788_v5  ;;  %v976_v38 = vpack.c.bf16 %v968_v1, %v968_v1  ;;  %v11356_v5 = vld [vmem:[%s14961_s29] ss:$0 sm:$0xff] }
  0xdc   : > { %v11313_v11 = vadd.f32 %v11146_v25, %v897_v23  ;;  %1448 = vrot.lane.b32.xlu2 %v1427_v20, %s14892_s21  ;;  %v1392_v2 = vpop.permute.xlu1 %1391  ;;  %v914_v25 = vmax.f32 %v11239_v30, 0.0 }
  0xdd   : > { %v725_v34 = vmax.f32 %v717_v39, 0.0  ;;  %v1417_v26 = vmul.f32 %v1392_v2, %v1361_v60 }
  0xde   : > { %v970_v17 = vmul.f32 %v11167_v52, %v914_v25  ;;  %v1344_v52 = vmul.f32 %v11205_v19, %v11297_v62 }
  0xdf   : > { %v781_v36 = vmul.f32 %v11122_v21, %v725_v34  ;;  %v1425_v27 = vpack.c.bf16 %v1417_v26, %v1417_v26  ;;  %v1119_v21 = vmul.f32 %v11176_v53, %v11274_v14  ;;  %v1354_v14 = vadd.f32 %v11211_v24, %v1342_v10 }
  0xe0   : > { %v1107_v63 = vpop.f32.mrf.mxu2  ;;  %v1538_v41 = vpop.f32.mrf.mxu0  ;;  %v978_v60 = vpack.c.bf16 %v970_v17, %v970_v17  ;;  %v915_v26 = vmax.f32 %v11262_v56, 0.0 }
  0xe1   : > { %v1121_v29 = vmul.f32 %v11176_v53, %v1107_v63  ;;  %v1331_v44 = vpop.f32.mrf.mxu3  ;;  %v1562_v30 = vmul.f32 %v11319_v42, %v1538_v41  ;;  %v11335_v46 = vpop.f32.mrf.mxu1  ;;  %v789_v45 = vpack.c.bf16 %v781_v36, %v781_v36  ;;  %994 = vrot.lane.b32.xlu1 %v976_v38, %s14888_s28  ;;  %v1193_v53 = vmul.f32 %v11242_v31, %v1137_v40 }
  0xe2   : > { %v1345_v50 = vmul.f32 %v11205_v19, %v1331_v44  ;;  %v11339_v13 = vpop.permute.xlu2 %1625  ;;  %1444 = vrot.lane.b32.xlu0 %v1425_v27, %s14892_s21  ;;  %v1131_v59 = vadd.f32 %v11181_v55, %v1119_v21  ;;  %v1362_v9 = vmax.f32 %v1354_v14, 0.0  ;;  %v1356_v19 = vadd.f32 %v11211_v24, %v1344_v52  ;;  %v1606_v56 = vpop.permute.xlu0 %1605 }
  0xe3   : > { %v1133_v4 = vadd.f32 %v11181_v55, %v1121_v29  ;;  %798 = vst.msk [vmem:[#allocation2 + $0x70] sm:$0xf] %vm790_vm3, %v789_v45  ;;  %v1574_v47 = vadd.f32 %v11329_v43, %v1562_v30  ;;  %v1201_v7 = vpack.c.bf16 %v1193_v53, %v1193_v53  ;;  %v1140_v41 = vmax.f32 %v11305_v32, 0.0 }
  0xe4   : > { %v11347_v28 = vadd.f32 %v11211_v24, %v1345_v50  ;;  %1002 = vrot.lane.b32.xlu2 %v980_v51, %s14888_s28  ;;  %v1407_v3 = vpop.permute.xlu1 %1406  ;;  %v1139_v49 = vmax.f32 %v1131_v59, 0.0  ;;  %v1418_v1 = vmul.f32 %v11232_v16, %v1362_v9  ;;  %v1364_v25 = vmax.f32 %v1356_v19, 0.0 }
  0xe5   : > { %v1141_v61 = vmax.f32 %v1133_v4, 0.0  ;;  %v1582_v0 = vmax.f32 %v1574_v47, 0.0  ;;  %v917_v30 = vmax.f32 %v11313_v11, 0.0  ;;  %v1196_v4 = vmul.f32 %v11183_v57, %v1140_v41  ;;  %v11412_v57 = vld [vmem:[%s14958_s1 + $0x10] sm:$0xff]  ;;  %v11437_v41 = vld [vmem:[%s14958_s1 + $0x20] sm:$0xff] }
  0xe6   : > { %v1195_v62 = vmul.f32 %v11265_v58, %v1139_v49  ;;  %v1426_v6 = vpack.c.bf16 %v1418_v1, %v1418_v1  ;;  %v971_v58 = vmul.f32 %v11113_v18, %v915_v26  ;;  %v1786_v53 = vmul.f32 %v11356_v5, %v11335_v46 }
  0xe7   : > { %v1197_v31 = vmul.f32 %v11221_v48, %v1141_v61  ;;  %v1638_v34 = vmul.f32 %v11280_v37, %v1582_v0  ;;  %v1420_v37 = vmul.f32 %v1407_v3, %v1364_v25  ;;  %v973_v11 = vmul.f32 %v11194_v8, %v917_v30 }
  0xe8   : > { %v1540_v55 = vpop.f32.mrf.mxu0  ;;  %v1203_v40 = vpack.c.bf16 %v1195_v62, %v1195_v62  ;;  %v979_v44 = vpack.c.bf16 %v971_v58, %v971_v58  ;;  %v1365_v17 = vmax.f32 %v11347_v28, 0.0  ;;  %v1798_v46 = vadd.f32 %v11362_v15, %v1786_v53 }
  0xe9   : > { %v1764_v20 = vpop.f32.mrf.mxu1  ;;  %v1205_v23 = vpack.c.bf16 %v1197_v31, %v1197_v31  ;;  %1220 = vrot.lane.b32.xlu1 %v1201_v7, %s14894_s20  ;;  %v1646_v38 = vpack.c.bf16 %v1638_v34, %v1638_v34  ;;  %v1563_v63 = vmul.f32 %v11319_v42, %v1540_v55  ;;  %v1428_v45 = vpack.c.bf16 %v1420_v37, %v1420_v37 }
  0xea   : > { %v1787_v39 = vmul.f32 %v11356_v5, %v1764_v20  ;;  %v1830_v48 = vpop.permute.xlu2 %1829  ;;  %998 = vrot.lane.b32.xlu0 %v978_v60, %s14888_s28  ;;  %v11403_v47 = vpop.permute.xlu0 %1630  ;;  %v1204_v7 = vpack.c.bf16 %v1196_v4, %v1196_v4  ;;  %v981_v8 = vpack.c.bf16 %v973_v11, %v973_v11  ;;  %v1421_v28 = vmul.f32 %v11253_v54, %v1365_v17 }
  0xeb   : > { %v1575_v18 = vadd.f32 %v11329_v43, %v1563_v63  ;;  %v1806_v52 = vmax.f32 %v1798_v46, 0.0 }
  0xec   : > { %v1799_v33 = vadd.f32 %v11362_v15, %v1787_v39  ;;  %1228 = vrot.lane.b32.xlu2 %v1205_v23, %s14894_s20  ;;  %v1429_v34 = vpack.c.bf16 %v1421_v28, %v1421_v28 }
  0xed   : > { %v11375_v2 = vpop.permute.xlu1 %1610  ;;  %v1583_v61 = vmax.f32 %v1575_v18, 0.0 }
  0xee   : > { %v1807_v35 = vmax.f32 %v1799_v33, 0.0 }
  0xef   : > { %v1639_v49 = vmul.f32 %v1606_v56, %v1583_v61  ;;  %v11458_v61 = vld [vmem:[%s14958_s1] sm:$0xff] }
  0xf0   : > { %v1543_v36 = vpop.f32.mrf.mxu0  ;;  %v1863_v24 = vmul.f32 %v1830_v48, %v1807_v35 }
  0xf1   : > { %v1767_v16 = vpop.f32.mrf.mxu1  ;;  %1446 = vrot.lane.b32.xlu1 %v1426_v6, %s14892_s21  ;;  %v1647_v39 = vpack.c.bf16 %v1639_v49, %v1639_v49  ;;  %v1564_v48 = vmul.f32 %v11319_v42, %v1543_v36  ;;  %v11475_v49 = vld [vmem:[%s14958_s1 + $0x8] sm:$0xff] }
  0xf2   : > { %v11379_v10 = vpop.permute.xlu2 %1844  ;;  %1224 = vrot.lane.b32.xlu0 %v1203_v40, %s14894_s20  ;;  %v1871_v21 = vpack.c.bf16 %v1863_v24, %v1863_v24  ;;  %v1788_v59 = vmul.f32 %v11356_v5, %v1767_v16  ;;  %v1835_v19 = vpop.permute.xlu0 %1834 }
  0xf3   : > { %v1576_v36 = vadd.f32 %v11329_v43, %v1564_v48 }
  0xf4   : > { %1662 = vrot.lane.b32.xlu2 %v1646_v38, %s14890_s23  ;;  %v1800_v55 = vadd.f32 %v11362_v15, %v1788_v59 }
  0xf5   : > { %v11384_v27 = vpop.permute.xlu1 %1620  ;;  %v1584_v24 = vmax.f32 %v1576_v36, 0.0 }
  0xf6   : > { %v1808_v60 = vmax.f32 %v1800_v55, 0.0 }
  0xf8   : > { %v1545_v29 = vpop.f32.mrf.mxu0  ;;  %v1864_v35 = vmul.f32 %v1835_v19, %v1808_v60 }
  0xf9   : > { %v11389_v50 = vpop.f32.mrf.mxu1  ;;  %v1565_v51 = vmul.f32 %v11319_v42, %v1545_v29  ;;  %1000 = vrot.lane.b32.xlu1 %v979_v44, %s14888_s28 }
  0xfa   : > { %1450 = vrot.lane.b32.xlu0 %v1428_v45, %s14892_s21  ;;  %v11396_v32 = vpop.permute.xlu2 %1854  ;;  %v1872_v40 = vpack.c.bf16 %v1864_v35, %v1864_v35  ;;  %v1640_v45 = vmul.f32 %v11375_v2, %v1584_v24  ;;  %v1789_v11 = vmul.f32 %v11356_v5, %v11389_v50 }
  0xfb   : > { %v1577_v14 = vadd.f32 %v11329_v43, %v1565_v51 }
  0xfc   : > { %1888 = vrot.lane.b32.xlu2 %v1871_v21, %s14896_s24  ;;  %v1801_v50 = vadd.f32 %v11362_v15, %v1789_v11  ;;  %v11537_v11 = vld [vmem:[%s14869_s4] ss:$0 sm:$0xff] }
  0xfd   : > { %v11406_v3 = vpop.permute.xlu1 %1635  ;;  %v1585_v0 = vmax.f32 %v1577_v14, 0.0 }
  0xff   : > { %v1641_v20 = vmul.f32 %v11302_v22, %v1585_v0 }
 0x100   : > { %v1548_v31 = vpop.f32.mrf.mxu0 }
 0x101   : > { %v1772_v9 = vpop.f32.mrf.mxu1  ;;  %1226 = vrot.lane.b32.xlu1 %v1204_v7, %s14894_s20  ;;  %v1649_v38 = vpack.c.bf16 %v1641_v20, %v1641_v20  ;;  %v1566_v37 = vmul.f32 %v11319_v42, %v1548_v31  ;;  %s14898_s20 = smov 96  }
 0x102   : > { %1004 = vrot.lane.b32.xlu0 %v981_v8, %s14888_s28  ;;  %v1790_v1 = vmul.f32 %v11356_v5, %v1772_v9  ;;  %s15098_s28 = smov 64  }
 0x103   : > { %v1578_v51 = vadd.f32 %v11329_v43, %v1566_v37 }
 0x104   : > { %2058 = vperm.xlu2 %10503, %v11412_v57   ;;  %v1802_v25 = vadd.f32 %v11362_v15, %v1790_v1 }
 0x105   : > { %v1586_v17 = vmax.f32 %v1578_v51, 0.0 }
 0x106   : > { %v991_v23 = vpop.permute.xlu2 %990  ;;  %v1825_v62 = vpop.permute.xlu1 %1824  ;;  %v1810_v58 = vmax.f32 %v1802_v25, 0.0 }
 0x107   : > { %1015 = vst.msk [vmem:[#allocation2] sm:$0xf] %vm1014_vm4, %v991_v23  ;;  %v1862_v54 = vmul.f32 %v1825_v62, %v1806_v52  ;;  %v1642_v46 = vmul.f32 %v11384_v27, %v1586_v17  ;;  %v1860_v62 = vpop.permute.xlu0 %1859 }
 0x108   : > { %v1550_v33 = vpop.f32.mrf.mxu0  ;;  %v1866_v30 = vmul.f32 %v11379_v10, %v1810_v58  ;;  %v1648_v10 = vpack.c.bf16 %v1640_v45, %v1640_v45  ;;  %v11531_v45 = vld [vmem:[%s14961_s29] ss:$0 sm:$0xff] }
 0x109   : > { %v1567_v26 = vmul.f32 %v11319_v42, %v1550_v33  ;;  %v1774_v6 = vpop.f32.mrf.mxu1  ;;  %1452 = vrot.lane.b32.xlu1 %v1429_v34, %s14892_s21  ;;  %v1870_v16 = vpack.c.bf16 %v1862_v54, %v1862_v54  ;;  %v1650_v52 = vpack.c.bf16 %v1642_v46, %v1642_v46  ;;  %v11483_v33 = vpop.f32.mrf.mxu2  ;;  %v10149_v46 = vld [vmem:[%s14959_s25] sm:$0xff]  ;;  %s15101_s21 = smov 80  }
 0x10a   : > { %1664 = vrot.lane.b32.xlu0 %v1647_v39, %s14890_s23  ;;  %v1874_v59 = vpack.c.bf16 %v1866_v30, %v1866_v30  ;;  %v1791_v2 = vmul.f32 %v11356_v5, %v1774_v6  ;;  %v11498_v6 = vld [vmem:[%s14958_s1 + $0x18] sm:$0xff] }
 0x10b   : > { %v11427_v22 = vadd.f32 %v11329_v43, %v1567_v26 }
 0x10c   : > { %1668 = vrot.lane.b32.xlu2 %v1649_v38, %s14890_s23  ;;  %v1803_v8 = vadd.f32 %v11362_v15, %v1791_v2  ;;  %v11504_v38 = vld [vmem:[%s14958_s1 + $0x28] sm:$0xff] }
 0x10d   : > { %v1587_v54 = vmax.f32 %v11427_v22, 0.0 }
 0x10e   : > { %v1840_v53 = vpop.permute.xlu1 %1839  ;;  %v1811_v28 = vmax.f32 %v1803_v8, 0.0  ;;  %v10157_v8 = vld [vmem:[%s10983_s26 + $0x120] sm:$0xff] }
 0x10f   : > { %v1643_v22 = vmul.f32 %v11339_v13, %v1587_v54  ;;  %v8904_v13 = vld [vmem:[%s14959_s25 + $0x8] sm:$0xf] }
 0x110   : > { %v1553_v56 = vpop.f32.mrf.mxu0 }
 0x111   : > { %v1777_v63 = vpop.f32.mrf.mxu1  ;;  %v1568_v21 = vmul.f32 %v11319_v42, %v1553_v56  ;;  %1886 = vrot.lane.b32.xlu1 %v1870_v16, %s14896_s24  ;;  %v11506_v35 = vpop.f32.mrf.mxu2  ;;  %v1651_v56 = vpack.c.bf16 %v1643_v22, %v1643_v22  ;;  %v10146_v22 = vld [vmem:[%s10983_s26 + $0xe8] sm:$0xff] }
 0x112   : > { %v1792_v29 = vmul.f32 %v11356_v5, %v1777_v63  ;;  %1890 = vrot.lane.b32.xlu0 %v1872_v40, %s14896_s24 }
 0x113   : > { %v1580_v4 = vadd.f32 %v11329_v43, %v1568_v21 }
 0x114   : > { %v11444_v44 = vadd.f32 %v11362_v15, %v1792_v29  ;;  %2068 = vperm.xlu2 %10503, %v11437_v41  }
 0x115   : > { %v11450_v18 = vpop.permute.xlu2 %1216  ;;  %v1588_v7 = vmax.f32 %v1580_v4, 0.0 }
 0x116   : > { %v1850_v20 = vpop.permute.xlu1 %1849  ;;  %v1812_v58 = vmax.f32 %v11444_v44, 0.0 }
 0x117   : > { %v1644_v55 = vmul.f32 %v11403_v47, %v1588_v7  ;;  %v1867_v47 = vmul.f32 %v1850_v20, %v1811_v28 }
 0x118   : > { %v1555_v14 = vpop.f32.mrf.mxu0  ;;  %v1868_v21 = vmul.f32 %v11396_v32, %v1812_v58 }
 0x119   : > { %v1569_v31 = vmul.f32 %v11319_v42, %v1555_v14  ;;  %1666 = vrot.lane.b32.xlu1 %v1648_v10, %s14890_s23  ;;  %v1779_v42 = vpop.f32.mrf.mxu1  ;;  %v1652_v60 = vpack.c.bf16 %v1644_v55, %v1644_v55  ;;  %v1875_v34 = vpack.c.bf16 %v1867_v47, %v1867_v47  ;;  %v10161_v14 = vld [vmem:[%s14959_s25] sm:$0xff]  ;;  %v10150_v10 = vld [vmem:[%s14959_s25 + $0x8] sm:$0x30] }
 0x11a   : > { %2048 = vperm.xlu0 %10501, %v11458_v61   ;;  %v1793_v23 = vmul.f32 %v11356_v5, %v1779_v42  ;;  %v11488_v5 = vld [vmem:[%s14958_s1 + $0x38] sm:$0xff]  ;;  %v1876_v32 = vpack.c.bf16 %v1868_v21, %v1868_v21  ;;  %v10145_v42 = vld [vmem:[%s10983_s26 + $0xe0] sm:$0xff] }
 0x11b   : > { %v1581_v9 = vadd.f32 %v11329_v43, %v1569_v31  ;;  %v1809_v43 = vmax.f32 %v1801_v50, 0.0  ;;  %v11562_v50 = vld [vmem:[%s14958_s1 + $0x30] sm:$0xff] }
 0x11c   : > { %1894 = vrot.lane.b32.xlu2 %v1874_v59, %s14896_s24  ;;  %v1805_v39 = vadd.f32 %v11362_v15, %v1793_v23  ;;  %v8848_v59 = vld [vmem:[%s14959_s25 + $0x8] sm:$0xf] }
 0x11d   : > { %v1865_v27 = vmul.f32 %v1840_v53, %v1809_v43  ;;  %v1589_v36 = vmax.f32 %v1581_v9, 0.0  ;;  %v8849_v2 = vor.u32 %v10150_v10, %v8848_v59  ;;  %v10168_v43 = vld [vmem:[%s14959_s25 + $0x8] sm:$0x30]  ;;  %v10165_v10 = vld [vmem:[%s10983_s26 + $0x150] sm:$0xff] }
 0x11e   : > { %v11469_v0 = vpop.permute.xlu2 %1442  ;;  %v1813_v19 = vmax.f32 %v1805_v39, 0.0  ;;  %v10167_v39 = vld [vmem:[%s14959_s25] sm:$0xff] }
 0x11f   : > { %v1873_v1 = vpack.c.bf16 %v1865_v27, %v1865_v27  ;;  %v1645_v40 = vmul.f32 %v11406_v3, %v1589_v36  ;;  %v10162_v3 = vld [vmem:[%s14959_s25 + $0x8] sm:$0x30]  ;;  %v2199_v7 = vand.u32 %v8849_v2, %v10929_v12 }
 0x120   : > { %v1869_v15 = vmul.f32 %v1860_v62, %v1813_v19  ;;  %v8905_v30 = vor.u32 %v10162_v3, %v8904_v13  ;;  %v10158_v36 = vld [vmem:[%s10983_s26 + $0x128] sm:$0xff] }
 0x121   : > { %2053 = vperm.xlu1 %10502, %v11475_v49   ;;  %v1653_v63 = vpack.c.bf16 %v1645_v40, %v1645_v40  ;;  %2207 = vmatpush.bf16.msrb.mxu3 %v2199_v7  ;;  %v10164_v3 = vld [vmem:[%s10983_s26 + $0x148] sm:$0xff] }
 0x122   : > { %1670 = vrot.lane.b32.xlu0 %v1650_v52, %s14890_s23  ;;  %v1877_v25 = vpack.c.bf16 %v1869_v15, %v1869_v15  ;;  %v2614_v4 = vand.u32 %v8905_v30, %v10929_v12 }
 0x124   : > { %1674 = vrot.lane.b32.xlu2 %v1652_v60, %s14890_s23  ;;  %2622 = vmatpush.bf16.msra.mxu1 %v2614_v4  ;;  %v10147_v4 = vld [vmem:[%s10983_s26 + $0xf0] sm:$0xff] }
 0x125   : > { %2208 = vmatpush.bf16.msrb.mxu3 %v10149_v46 }
 0x126   : > { %v997_v48 = vpop.permute.xlu2 %996 }
 0x127   : > { %1018 = vst.msk [vmem:[#allocation2 + $0x30] sm:$0xf] %vm1014_vm4, %v997_v48  ;;  %v10163_v48 = vld [vmem:[%s10983_s26 + $0x140] sm:$0xff] }
 0x128   : > { %2623 = vmatpush.bf16.msra.mxu1 %v10161_v14  ;;  %8850 = vmatmul.msk.bf16.vlgmr.msrb.gmra.mxu3 %vm645_vm2, %v10145_v42  ;;  %v9016_v42 = vld [vmem:[%s14959_s25 + $0x8] sm:$0xf] }
 0x129   : > { %1892 = vrot.lane.b32.xlu1 %v1873_v1, %s14896_s24 }
 0x12a   : > { %1896 = vrot.lane.b32.xlu0 %v1875_v34, %s14896_s24 }
 0x12b   : > { %8906 = vmatmul.msk.bf16.vlgmr.msra.gmra.mxu1 %vm645_vm2, %v10157_v8  ;;  %v10160_v8 = vld [vmem:[%s10983_s26 + $0x138] sm:$0xff] }
 0x12c   : > { %2083 = vperm.xlu2 %10503, %v11488_v5   ;;  %v1991_v37 = vpop.f32.mrf.mxu2 }
 0x12d   : > { %v2012_v1 = vmul.f32 %v11531_v45, %v1991_v37 }
 0x12e   : > { %v11493_v26 = vpop.permute.xlu2 %1222 }
 0x12f   : > { %v2024_v54 = vadd.f32 %v11537_v11, %v2012_v1  ;;  %v9044_v1 = vld [vmem:[%s14959_s25 + $0x8] sm:$0xf] }
 0x131   : > { %2063 = vperm.xlu1 %10502, %v11498_v6   ;;  %v2032_v40 = vmax.f32 %v2024_v54, 0.0 }
 0x132   : > { %2073 = vperm.xlu0 %10501, %v11504_v38   ;;  %v1215_v16 = vpop.permute.xlu1 %1214 }
 0x133   : > { %1239 = vst.msk [vmem:[#allocation2] sm:$0xf] %vm1238_vm5, %v1215_v16 }
 0x134   : > { %1900 = vrot.lane.b32.xlu2 %v1877_v25, %s14896_s24  ;;  %v1993_v51 = vpop.f32.mrf.mxu2 }
 0x135   : > { %v2013_v53 = vmul.f32 %v11531_v45, %v1993_v51 }
 0x136   : > { %v11514_v24 = vpop.permute.xlu2 %1448 }
 0x137   : > { %v11551_v17 = vadd.f32 %v11537_v11, %v2013_v53 }
 0x138   : > { %8851 = vmatmul.msk.bf16.gmra.mxu3 %vm645_vm2, %v10146_v22 }
 0x139   : > { %1672 = vrot.lane.b32.xlu1 %v1651_v56, %s14890_s23 }
 0x13a   : > { %1676 = vrot.lane.b32.xlu0 %v1653_v63, %s14890_s23 }
 0x13b   : > { %8907 = vmatmul.msk.bf16.gmra.mxu1 %vm645_vm2, %v10158_v36 }
 0x13c   : > { %v1439_v29 = vpop.permute.xlu0 %1438 }
 0x13d   : > { %1463 = vst.msk [vmem:[#allocation2] sm:$0xf] %vm1462_vm6, %v1439_v29  ;;  %v11568_v55 = vpop.f32.mrf.mxu2 }
 0x13e   : > { %v1003_v44 = vpop.permute.xlu2 %1002 }
 0x13f   : > { %1021 = vst.msk [vmem:[#allocation2 + $0x60] sm:$0xf] %vm1014_vm4, %v1003_v44 }
 0x141   : > { %1898 = vrot.lane.b32.xlu1 %v1876_v32, %s14896_s24  ;;  %s15163_s24 = smov 96  }
 0x144   : > { %v993_v31 = vpop.permute.xlu0 %992 }
 0x145   : > { %1016 = vst.msk [vmem:[#allocation2 + $0x10] sm:$0xf] %vm1014_vm4, %v993_v31  ;;  %v1998_v27 = vpop.f32.mrf.mxu2 }
 0x146   : > { %v11554_v9 = vpop.permute.xlu2 %1228  ;;  %1240 = vst.msk [vmem:[#allocation2 + $0x10] sm:$0xf] %vm1238_vm5, %v11450_v18  ;;  %v8932_v18 = vld [vmem:[%s14959_s25 + $0x8] sm:$0xf]  ;;  %v2015_v47 = vmul.f32 %v11531_v45, %v1998_v27 }
 0x147   : > { %v8933_v28 = vor.u32 %v10168_v43, %v8932_v18  ;;  %v10186_v18 = vld [vmem:[%s14959_s25 + $0x8] sm:$0x30] }
 0x148   : > { %v11590_v34 = vadd.f32 %v11537_v11, %v2015_v47  ;;  %8852 = vmatmul.msk.bf16.gmra.mxu3 %vm645_vm2, %v10147_v4  ;;  %v10173_v4 = vld [vmem:[%s14959_s25] sm:$0xff] }
 0x149   : > { %2078 = vperm.xlu1 %10502, %v11562_v50   ;;  %v2837_v23 = vand.u32 %v8933_v28, %v10929_v12 }
 0x14b   : > { %v1441_v52 = vpop.permute.xlu1 %1440  ;;  %2845 = vmatpush.bf16.msra.mxu2 %v2837_v23  ;;  %v10185_v23 = vld [vmem:[%s14959_s25] sm:$0xff] }
 0x14c   : > { %1464 = vst.msk [vmem:[#allocation2 + $0x10] sm:$0xf] %vm1462_vm6, %v1441_v52  ;;  %v1219_v20 = vpop.permute.xlu0 %1218  ;;  %v10148_v52 = vld [vmem:[%s10983_s26 + $0xf8] sm:$0xff] }
 0x14d   : > { %v2001_v25 = vpop.f32.mrf.mxu2 }
 0x14e   : > { %v1663_v60 = vpop.permute.xlu2 %1662  ;;  %v2016_v16 = vmul.f32 %v11531_v45, %v2001_v25 }
 0x14f   : > { %1687 = vst.msk [vmem:[#allocation2] sm:$0xf] %vm1686_vm7, %v1663_v60  ;;  %2846 = vmatpush.bf16.msra.mxu2 %v10167_v39  ;;  %v2010_v60 = vmul.f32 %v11531_v45, %v11483_v33  ;;  %v10181_v39 = vld [vmem:[%s10983_s26 + $0x1a0] sm:$0xff]  ;;  %v10192_v33 = vld [vmem:[%s14959_s25 + $0x8] sm:$0x30] }
 0x150   : > { %v11605_v58 = vadd.f32 %v11537_v11, %v2016_v16 }
 0x152   : > { %8934 = vmatmul.msk.bf16.vlgmr.msra.gmra.mxu2 %vm645_vm2, %v10163_v48  ;;  %v2022_v48 = vadd.f32 %v11537_v11, %v2010_v60  ;;  %v10183_v60 = vld [vmem:[%s10983_s26 + $0x1b0] sm:$0xff] }
 0x153   : > { %v995_v19 = vpop.permute.xlu1 %994 }
 0x154   : > { %v1445_v62 = vpop.permute.xlu0 %1444  ;;  %1017 = vst.msk [vmem:[#allocation2 + $0x20] sm:$0xf] %vm1014_vm4, %v995_v19  ;;  %v2011_v19 = vmul.f32 %v11531_v45, %v11506_v35 }
 0x155   : > { %1241 = vst.msk [vmem:[#allocation2 + $0x20] sm:$0xf] %vm1238_vm5, %v1219_v20  ;;  %v2003_v21 = vpop.f32.mrf.mxu2  ;;  %v10166_v20 = vld [vmem:[%s10983_s26 + $0x158] sm:$0xff] }
 0x156   : > { %v11593_v15 = vpop.permute.xlu2 %1888  ;;  %1465 = vst.msk [vmem:[#allocation2 + $0x20] sm:$0xf] %vm1462_vm6, %v11469_v0  ;;  %v2017_v13 = vmul.f32 %v11531_v45, %v2003_v21  ;;  %v2023_v22 = vadd.f32 %v11537_v11, %v2011_v19 }
 0x158   : > { %v11616_v44 = vadd.f32 %v11537_v11, %v2017_v13  ;;  %8853 = vmatmul.msk.bf16.gmra.mxu3 %vm645_vm2, %v10148_v52  ;;  %v2031_v21 = vmax.f32 %v2023_v22, 0.0  ;;  %v10182_v13 = vld [vmem:[%s10983_s26 + $0x1a8] sm:$0xff]  ;;  %v10184_v22 = vld [vmem:[%s10983_s26 + $0x1b8] sm:$0xff] }
 0x15b   : > { %v1221_v56 = vpop.permute.xlu1 %1220 }
 0x15c   : > { %1242 = vst.msk [vmem:[#allocation2 + $0x30] sm:$0xf] %vm1238_vm5, %v1221_v56  ;;  %v999_v37 = vpop.permute.xlu0 %998  ;;  %v10191_v56 = vld [vmem:[%s14959_s25] sm:$0xff] }
 0x15d   : > { %1466 = vst.msk [vmem:[#allocation2 + $0x30] sm:$0xf] %vm1462_vm6, %v1445_v62  ;;  %v9045_v62 = vor.u32 %v10192_v33, %v9044_v1  ;;  %v10170_v33 = vld [vmem:[%s10983_s26 + $0x168] sm:$0xff] }
 0x15e   : > { %v2059_v63 = vpop.permute.xlu2 %2058  ;;  %1019 = vst.msk [vmem:[#allocation2 + $0x40] sm:$0xf] %vm1014_vm4, %v999_v37  ;;  %v10768_v37 = vmov 7  }
 0x15f   : > { %v2088_v0 = vmul.f32 %v2059_v63, %v2032_v40  ;;  %1243 = vst.msk [vmem:[#allocation2 + $0x40] sm:$0xf] %vm1238_vm5, %v11493_v26  ;;  %v10159_v26 = vld [vmem:[%s10983_s26 + $0x130] sm:$0xff]  ;;  %v3729_v25 = vand.u32 %v9045_v62, %v10929_v12  ;;  %v2014_v40 = vmul.f32 %v11531_v45, %v11568_v55  ;;  %10506 = vset.pattern.permute.xlu1 %v10768_v37  ;;  %v10187_v63 = vld [vmem:[%s10983_s26 + $0x1c0] sm:$0xff] }
 0x160   : > { %8908 = vmatmul.msk.bf16.gmra.mxu1 %vm645_vm2, %v10159_v26  ;;  %10504 = vset.pattern.permute.xlu2 %v10768_v37  ;;  %v10189_v62 = vld [vmem:[%s10983_s26 + $0x1d0] sm:$0xff] }
 0x161   : > { %v2096_v29 = vpack.c.bf16 %v2088_v0, %v2088_v0  ;;  %3737 = vmatpush.bf16.msrb.mxu2 %v3729_v25  ;;  %v2026_v0 = vadd.f32 %v11537_v11, %v2014_v40  ;;  %10505 = vset.pattern.permute.xlu0 %v10768_v37  ;;  %v10152_v37 = vld [vmem:[%s10983_s26 + $0x108] sm:$0xff] }
 0x162   : > { %8935 = vmatmul.msk.bf16.gmra.mxu2 %vm645_vm2, %v10164_v3  ;;  %v8960_v3 = vld [vmem:[%s14959_s25 + $0x8] sm:$0xf] }
 0x163   : > { %2114 = vrot.lane.b32.xlu2 %v2096_v29, %s14898_s20  ;;  %v1447_v30 = vpop.permute.xlu1 %1446 }
 0x164   : > { %1467 = vst.msk [vmem:[#allocation2 + $0x40] sm:$0xf] %vm1462_vm6, %v1447_v30  ;;  %v1225_v32 = vpop.permute.xlu0 %1224  ;;  %v10174_v30 = vld [vmem:[%s14959_s25 + $0x8] sm:$0x30] }
 0x165   : > { %3738 = vmatpush.bf16.msrb.mxu2 %v10191_v56  ;;  %v8961_v11 = vor.u32 %v10174_v30, %v8960_v3  ;;  %v10190_v3 = vld [vmem:[%s10983_s26 + $0x1d8] sm:$0xff] }
 0x166   : > { %v1669_v51 = vpop.permute.xlu2 %1668 }
 0x167   : > { %1690 = vst.msk [vmem:[#allocation2 + $0x30] sm:$0xf] %vm1686_vm7, %v1669_v51  ;;  %v3060_v26 = vand.u32 %v8961_v11, %v10929_v12  ;;  %v10197_v11 = vld [vmem:[%s14959_s25] sm:$0xff] }
 0x169   : > { %3068 = vmatpush.bf16.msra.mxu3 %v3060_v26  ;;  %v10180_v26 = vld [vmem:[%s14959_s25 + $0x8] sm:$0x30] }
 0x16b   : > { %v1001_v53 = vpop.permute.xlu1 %1000 }
 0x16c   : > { %v1451_v14 = vpop.permute.xlu0 %1450  ;;  %1020 = vst.msk [vmem:[#allocation2 + $0x50] sm:$0xf] %vm1014_vm4, %v1001_v53 }
 0x16d   : > { %1244 = vst.msk [vmem:[#allocation2 + $0x50] sm:$0xf] %vm1238_vm5, %v1225_v32  ;;  %v2034_v32 = vmax.f32 %v2026_v0, 0.0  ;;  %3069 = vmatpush.bf16.msra.mxu3 %v10173_v4  ;;  %v10215_v0 = vld [vmem:[%s14959_s25] sm:$0xff] }
 0x16e   : > { %v11626_v59 = vpop.permute.xlu2 %2068  ;;  %1468 = vst.msk [vmem:[#allocation2 + $0x50] sm:$0xf] %vm1462_vm6, %v11514_v24 }
 0x16f   : > { %v2090_v53 = vmul.f32 %v11626_v59, %v2034_v32  ;;  %v10156_v59 = vld [vmem:[%s14959_s25 + $0x8] sm:$0x30] }
 0x170   : > { %8909 = vmatmul.msk.bf16.gmra.mxu1 %vm645_vm2, %v10160_v8 }
 0x172   : > { %8936 = vmatmul.msk.bf16.gmra.mxu2 %vm645_vm2, %v10165_v10 }
 0x173   : > { %v1227_v2 = vpop.permute.xlu1 %1226 }
 0x174   : > { %1245 = vst.msk [vmem:[#allocation2 + $0x60] sm:$0xf] %vm1238_vm5, %v1227_v2  ;;  %v1005_v31 = vpop.permute.xlu0 %1004  ;;  %v2098_v2 = vpack.c.bf16 %v2090_v53, %v2090_v53 }
 0x175   : > { %1469 = vst.msk [vmem:[#allocation2 + $0x60] sm:$0xf] %vm1462_vm6, %v1451_v14 }
 0x176   : > { %v11634_v7 = vpop.permute.xlu2 %1894  ;;  %1022 = vst.msk [vmem:[#allocation2 + $0x70] sm:$0xf] %vm1014_vm4, %v1005_v31  ;;  %v2037_v31 = vmax.f32 %v11616_v44, 0.0  ;;  %v2033_v44 = vmax.f32 %v11551_v17, 0.0  ;;  %v10155_v17 = vld [vmem:[%s14959_s25] sm:$0xff] }
 0x177   : > { %1246 = vst.msk [vmem:[#allocation2 + $0x70] sm:$0xf] %vm1238_vm5, %v11554_v9  ;;  %v9017_v9 = vor.u32 %v10186_v18, %v9016_v42  ;;  %v10188_v42 = vld [vmem:[%s10983_s26 + $0x1c8] sm:$0xff] }
 0x179   : > { %v3506_v28 = vand.u32 %v9017_v9, %v10929_v12  ;;  %v2035_v9 = vmax.f32 %v11590_v34, 0.0  ;;  %v10151_v34 = vld [vmem:[%s10983_s26 + $0x100] sm:$0xff] }
 0x17b   : > { %v1453_v24 = vpop.permute.xlu1 %1452  ;;  %3514 = vmatpush.bf16.msrb.mxu1 %v3506_v28 }
 0x17c   : > { %1470 = vst.msk [vmem:[#allocation2 + $0x70] sm:$0xf] %vm1462_vm6, %v1453_v24  ;;  %v1665_v46 = vpop.permute.xlu0 %1664  ;;  %v8876_v24 = vld [vmem:[%s14959_s25 + $0x8] sm:$0xf] }
 0x17d   : > { %1688 = vst.msk [vmem:[#allocation2 + $0x10] sm:$0xf] %vm1686_vm7, %v1665_v46  ;;  %v8877_v46 = vor.u32 %v10156_v59, %v8876_v24  ;;  %v10661_v24 = vld [vmem:[%s14869_s4] ss:$0 sm:$0xff] }
 0x17e   : > { %v1675_v43 = vpop.permute.xlu2 %1674  ;;  %1912 = vst.msk [vmem:[#allocation2 + $0x10] sm:$0xf] %vm1910_vm8, %v11593_v15  ;;  %v2030_v15 = vmax.f32 %v2022_v48, 0.0 }
 0x17f   : > { %1693 = vst.msk [vmem:[#allocation2 + $0x60] sm:$0xf] %vm1686_vm7, %v1675_v43  ;;  %3515 = vmatpush.bf16.msrb.mxu1 %v10185_v23  ;;  %v2423_v28 = vand.u32 %v8877_v46, %v10929_v12 }
 0x181   : > { %2431 = vmatpush.bf16.msra.mxu0 %v2423_v28  ;;  %v11841_v28 = vld [vmem:[%s14869_s4] ss:$0 sm:$0xff] }
 0x182   : > { %8937 = vmatmul.msk.bf16.gmra.mxu2 %vm645_vm2, %v10166_v20  ;;  %9018 = vmatmul.msk.bf16.vlgmr.msrb.gmra.mxu1 %vm645_vm2, %v10181_v39 }
 0x183   : > { %v1887_v27 = vpop.permute.xlu1 %1886 }
 0x184   : > { %1911 = vst.msk [vmem:[#allocation2] sm:$0xf] %vm1910_vm8, %v1887_v27  ;;  %v1891_v47 = vpop.permute.xlu0 %1890 }
 0x185   : > { %2432 = vmatpush.bf16.msra.mxu0 %v10155_v17  ;;  %v10207_v17 = vld [vmem:[%s10983_s26 + $0x230] sm:$0xff] }
 0x186   : > { %v2084_v8 = vpop.permute.xlu2 %2083 }
 0x187   : > { %v2093_v18 = vmul.f32 %v2084_v8, %v2037_v31  ;;  %v11813_v31 = vld [vmem:[%s14961_s29] ss:$0 sm:$0xff]  ;;  %v10206_v8 = vld [vmem:[%s10983_s26 + $0x228] sm:$0xff] }
 0x188   : > { %8878 = vmatmul.msk.bf16.vlgmr.msra.gmra.mxu0 %vm645_vm2, %v10151_v34 }
 0x189   : > { %v2101_v27 = vpack.c.bf16 %v2093_v18, %v2093_v18  ;;  %v10154_v18 = vld [vmem:[%s10983_s26 + $0x118] sm:$0xff] }
 0x18b   : > { %v1667_v54 = vpop.permute.xlu1 %1666 }
 0x18c   : > { %v2049_v36 = vpop.permute.xlu0 %2048  ;;  %1689 = vst.msk [vmem:[#allocation2 + $0x20] sm:$0xf] %vm1686_vm7, %v1667_v54  ;;  %v10210_v54 = vld [vmem:[%s14959_s25 + $0x8] sm:$0x30] }
 0x18d   : > { %v2086_v16 = vmul.f32 %v2049_v36, %v2030_v15  ;;  %1913 = vst.msk [vmem:[#allocation2 + $0x20] sm:$0xf] %vm1910_vm8, %v1891_v47  ;;  %v9128_v15 = vld [vmem:[%s14959_s25 + $0x8] sm:$0xf] }
 0x18e   : > { %v1901_v19 = vpop.permute.xlu2 %1900  ;;  %v9129_v36 = vor.u32 %v10210_v54, %v9128_v15 }
 0x18f   : > { %v2094_v35 = vpack.c.bf16 %v2086_v16, %v2086_v16  ;;  %v10216_v16 = vld [vmem:[%s14959_s25 + $0x8] sm:$0x30] }
 0x191   : > { %2110 = vrot.lane.b32.xlu0 %v2094_v35, %s14898_s20  ;;  %v10209_v35 = vld [vmem:[%s14959_s25] sm:$0xff] }
 0x192   : > { %9046 = vmatmul.msk.bf16.vlgmr.msrb.gmra.mxu2 %vm645_vm2, %v10187_v63  ;;  %9019 = vmatmul.msk.bf16.gmra.mxu1 %vm645_vm2, %v10182_v13  ;;  %v2036_v63 = vmax.f32 %v11605_v58, 0.0 }
 0x193   : > { %v2054_v29 = vpop.permute.xlu1 %2053 }
 0x194   : > { %v2087_v45 = vmul.f32 %v2054_v29, %v2031_v21  ;;  %v1671_v55 = vpop.permute.xlu0 %1670 }
 0x195   : > { %1691 = vst.msk [vmem:[#allocation2 + $0x40] sm:$0xf] %vm1686_vm7, %v1671_v55  ;;  %v10198_v55 = vld [vmem:[%s14959_s25 + $0x8] sm:$0x30] }
 0x196   : > { %v2095_v51 = vpack.c.bf16 %v2087_v45, %v2087_v45  ;;  %1915 = vst.msk [vmem:[#allocation2 + $0x40] sm:$0xf] %vm1910_vm8, %v11634_v7  ;;  %v10169_v7 = vld [vmem:[%s10983_s26 + $0x160] sm:$0xff] }
 0x197   : > { %8962 = vmatmul.msk.bf16.vlgmr.msra.gmra.mxu3 %vm645_vm2, %v10169_v7 }
 0x198   : > { %2112 = vrot.lane.b32.xlu1 %v2095_v51, %s14898_s20  ;;  %8879 = vmatmul.msk.bf16.gmra.mxu0 %vm645_vm2, %v10152_v37  ;;  %v8988_v51 = vld [vmem:[%s14959_s25 + $0x8] sm:$0xf] }
 0x199   : > { %v8989_v4 = vor.u32 %v10180_v26, %v8988_v51 }
 0x19b   : > { %v1893_v14 = vpop.permute.xlu1 %1892 }
 0x19c   : > { %1914 = vst.msk [vmem:[#allocation2 + $0x30] sm:$0xf] %vm1910_vm8, %v1893_v14  ;;  %v1897_v10 = vpop.permute.xlu0 %1896  ;;  %v10172_v14 = vld [vmem:[%s10983_s26 + $0x178] sm:$0xff] }
 0x1a0   : > { %2118 = vrot.lane.b32.xlu1 %v2098_v2, %s14898_s20  ;;  %v10211_v2 = vld [vmem:[%s10983_s26 + $0x240] sm:$0xff] }
 0x1a2   : > { %9047 = vmatmul.msk.bf16.gmra.mxu2 %vm645_vm2, %v10188_v42  ;;  %9020 = vmatmul.msk.bf16.gmra.mxu1 %vm645_vm2, %v10183_v60  ;;  %v10212_v60 = vld [vmem:[%s10983_s26 + $0x248] sm:$0xff] }
 0x1a3   : > { %v2064_v43 = vpop.permute.xlu1 %2063 }
 0x1a4   : > { %v2089_v52 = vmul.f32 %v2064_v43, %v2033_v44  ;;  %v2074_v20 = vpop.permute.xlu0 %2073  ;;  %v11832_v44 = vld [vmem:[%s14961_s29] ss:$0 sm:$0xff] }
 0x1a5   : > { %v2091_v23 = vmul.f32 %v2074_v20, %v2035_v9  ;;  %v10193_v9 = vld [vmem:[%s10983_s26 + $0x1e0] sm:$0xff] }
 0x1a6   : > { %v2097_v47 = vpack.c.bf16 %v2089_v52, %v2089_v52 }
 0x1a7   : > { %v2099_v39 = vpack.c.bf16 %v2091_v23, %v2091_v23  ;;  %8963 = vmatmul.msk.bf16.gmra.mxu3 %vm645_vm2, %v10170_v33 }
 0x1a8   : > { %2124 = vrot.lane.b32.xlu1 %v2101_v27, %s14898_s20  ;;  %2116 = vrot.lane.b32.xlu0 %v2097_v47, %s14898_s20  ;;  %v11787_v32 = vpop.f32.mrf.mxu1 }
 0x1a9   : > { %2120 = vrot.lane.b32.xlu2 %v2099_v39, %s14898_s20  ;;  %v10179_v39 = vld [vmem:[%s14959_s25] sm:$0xff] }
 0x1ab   : > { %v1673_v48 = vpop.permute.xlu1 %1672 }
 0x1ac   : > { %1692 = vst.msk [vmem:[#allocation2 + $0x50] sm:$0xf] %vm1686_vm7, %v1673_v48  ;;  %v1677_v1 = vpop.permute.xlu0 %1676 }
 0x1ad   : > { %1916 = vst.msk [vmem:[#allocation2 + $0x50] sm:$0xf] %vm1910_vm8, %v1897_v10  ;;  %v11806_v10 = vpop.f32.mrf.mxu3 }
 0x1ae   : > { %1694 = vst.msk [vmem:[#allocation2 + $0x70] sm:$0xf] %vm1686_vm7, %v1677_v1 }
 0x1af   : > { %1918 = vst.msk [vmem:[#allocation2 + $0x70] sm:$0xf] %vm1910_vm8, %v1901_v19 }
 0x1b0   : > { %2282 = vperm.xlu1 %10506, %v11412_v57   ;;  %v4366_v57 = vand.u32 %v9129_v36, %v10929_v12  ;;  %v11801_v53 = vpop.f32.mrf.mxu1 }
 0x1b1   : > { %2272 = vperm.xlu2 %10504, %v11458_v61   ;;  %v9156_v61 = vld [vmem:[%s14959_s25 + $0x8] sm:$0xf] }
 0x1b2   : > { %9048 = vmatmul.msk.bf16.gmra.mxu2 %vm645_vm2, %v10189_v62  ;;  %v9157_v40 = vor.u32 %v10216_v16, %v9156_v61  ;;  %4374 = vmatpush.bf16.msra.mxu1 %v4366_v57  ;;  %v10175_v62 = vld [vmem:[%s10983_s26 + $0x180] sm:$0xff] }
 0x1b3   : > { %v1899_v25 = vpop.permute.xlu1 %1898  ;;  %9021 = vmatmul.msk.bf16.gmra.mxu1 %vm645_vm2, %v10184_v22  ;;  %v10213_v22 = vld [vmem:[%s10983_s26 + $0x250] sm:$0xff] }
 0x1b4   : > { %1917 = vst.msk [vmem:[#allocation2 + $0x60] sm:$0xf] %vm1910_vm8, %v1899_v25  ;;  %v4589_v56 = vand.u32 %v9157_v40, %v10929_v12  ;;  %v10194_v25 = vld [vmem:[%s10983_s26 + $0x1e8] sm:$0xff] }
 0x1b5   : > { %v11823_v46 = vpop.f32.mrf.mxu3 }
 0x1b6   : > { %4375 = vmatpush.bf16.msra.mxu1 %v10209_v35  ;;  %4597 = vmatpush.bf16.msra.mxu2 %v4589_v56 }
 0x1b8   : > { %2292 = vperm.xlu1 %10506, %v11437_v41   ;;  %v10171_v41 = vld [vmem:[%s10983_s26 + $0x170] sm:$0xff]  ;;  %v2630_v7 = vpop.f32.mrf.mxu1 }
 0x1b9   : > { %2287 = vperm.xlu2 %10504, %v11498_v6   ;;  %v9072_v6 = vld [vmem:[%s14959_s25 + $0x8] sm:$0xf]  ;;  %8964 = vmatmul.msk.bf16.gmra.mxu3 %vm645_vm2, %v10171_v41 }
 0x1ba   : > { %4598 = vmatpush.bf16.msra.mxu2 %v10215_v0  ;;  %v9073_v13 = vor.u32 %v10198_v55, %v9072_v6  ;;  %v9240_v6 = vld [vmem:[%s14959_s25 + $0x8] sm:$0xf] }
 0x1bb   : > { %v2079_v21 = vpop.permute.xlu1 %2078 }
 0x1bc   : > { %v2092_v29 = vmul.f32 %v2079_v21, %v2036_v63  ;;  %v3952_v30 = vand.u32 %v9073_v13, %v10929_v12  ;;  %v10208_v63 = vld [vmem:[%s10983_s26 + $0x238] sm:$0xff] }
 0x1bd   : > { %v2115_v45 = vpop.permute.xlu2 %2114  ;;  %v11843_v52 = vpop.f32.mrf.mxu3 }
 0x1be   : > { %2137 = vst.msk [vmem:[#allocation2 + $0x20] sm:$0xf] %vm2134_vm9, %v2115_v45  ;;  %v2100_v58 = vpack.c.bf16 %v2092_v29, %v2092_v29  ;;  %3960 = vmatpush.bf16.msrb.mxu3 %v3952_v30  ;;  %v10176_v45 = vld [vmem:[%s10983_s26 + $0x188] sm:$0xff]  ;;  %v11901_v30 = vld [vmem:[%s14961_s29] ss:$0 sm:$0xff] }
 0x1c0   : > { %2307 = vperm.xlu1 %10506, %v11488_v5   ;;  %2122 = vrot.lane.b32.xlu0 %v2100_v58, %s14898_s20  ;;  %v10205_v5 = vld [vmem:[%s10983_s26 + $0x220] sm:$0xff]  ;;  %v11835_v43 = vpop.f32.mrf.mxu1  ;;  %v10234_v58 = vld [vmem:[%s14959_s25 + $0x8] sm:$0x30]  ;;  %s15123_s20 = smov 16  }
 0x1c1   : > { %2297 = vperm.xlu2 %10504, %v11504_v38   ;;  %v10153_v38 = vld [vmem:[%s10983_s26 + $0x110] sm:$0xff]  ;;  %14963 = vst [vmem:[#allocation7_spill] sm:$0xff] %v11835_v43 }
 0x1c2   : > { %9049 = vmatmul.msk.bf16.gmra.mxu2 %vm645_vm2, %v10190_v3  ;;  %3961 = vmatpush.bf16.msrb.mxu3 %v10197_v11  ;;  %v9241_v3 = vor.u32 %v10234_v58, %v9240_v6 }
 0x1c3   : > { %9130 = vmatmul.msk.bf16.vlgmr.msra.gmra.mxu1 %vm645_vm2, %v10205_v5  ;;  %8880 = vmatmul.msk.bf16.gmra.mxu0 %vm645_vm2, %v10153_v38  ;;  %v10195_v5 = vld [vmem:[%s10983_s26 + $0x1f0] sm:$0xff] }
 0x1c4   : > { %v5258_v38 = vand.u32 %v9241_v3, %v10929_v12 }
 0x1c5   : > { %v2217_v33 = vpop.f32.mrf.mxu3 }
 0x1c6   : > { %5266 = vmatpush.bf16.msrb.mxu1 %v5258_v38 }
 0x1c8   : > { %2277 = vperm.xlu0 %10505, %v11475_v49   ;;  %v3283_v49 = vand.u32 %v8989_v4, %v10929_v12 }
 0x1c9   : > { %8965 = vmatmul.msk.bf16.gmra.mxu3 %vm645_vm2, %v10172_v14  ;;  %v10214_v14 = vld [vmem:[%s10983_s26 + $0x258] sm:$0xff] }
 0x1ca   : > { %3291 = vmatpush.bf16.msrb.mxu0 %v3283_v49  ;;  %v10233_v49 = vld [vmem:[%s14959_s25] sm:$0xff] }
 0x1cb   : > { %5267 = vmatpush.bf16.msrb.mxu1 %v10233_v49  ;;  %v9184_v49 = vld [vmem:[%s14959_s25 + $0x8] sm:$0xf] }
 0x1cd   : > { %v11873_v40 = vpop.f32.mrf.mxu3 }
 0x1ce   : > { %3292 = vmatpush.bf16.msrb.mxu0 %v10179_v39 }
 0x1d0   : > { %2302 = vperm.xlu0 %10505, %v11562_v50   ;;  %v2651_v50 = vmul.f32 %v11813_v31, %v2630_v7 }
 0x1d2   : > { %9158 = vmatmul.msk.bf16.vlgmr.msra.gmra.mxu2 %vm645_vm2, %v10211_v2  ;;  %v11821_v59 = vadd.f32 %v10661_v24, %v2651_v50  ;;  %v2234_v2 = vmul.f32 %v11901_v30, %v11806_v10 }
 0x1d3   : > { %9131 = vmatmul.msk.bf16.gmra.mxu1 %vm645_vm2, %v10206_v8  ;;  %8881 = vmatmul.msk.bf16.gmra.mxu0 %vm645_vm2, %v10154_v18  ;;  %v10229_v18 = vld [vmem:[%s10983_s26 + $0x2a0] sm:$0xff] }
 0x1d4   : > { %14962 = vst [vmem:[#allocation6_spill] sm:$0xff] %v11821_v59 }
 0x1d5   : > { %v11825_v42 = vpop.f32.mrf.mxu2  ;;  %v11895_v55 = vpop.f32.mrf.mxu3 }
 0x1d9   : > { %9074 = vmatmul.msk.bf16.vlgmr.msrb.gmra.mxu3 %vm645_vm2, %v10193_v9 }
 0x1dd   : > { %v2850_v20 = vpop.f32.mrf.mxu2  ;;  %v2635_v47 = vpop.f32.mrf.mxu1 }
 0x1de   : > { %v2873_v23 = vmul.f32 %v11832_v44, %v2850_v20  ;;  %v2653_v34 = vmul.f32 %v11813_v31, %v2635_v47  ;;  %v11929_v10 = vpop.f32.mrf.mxu3  ;;  %v9268_v20 = vld [vmem:[%s14959_s25 + $0x8] sm:$0xf] }
 0x1e0   : > { %v11849_v27 = vadd.f32 %v11841_v28, %v2873_v23  ;;  %v11857_v48 = vadd.f32 %v10661_v24, %v2653_v34  ;;  %v10240_v23 = vld [vmem:[%s14959_s25 + $0x8] sm:$0x30]  ;;  %v10177_v34 = vld [vmem:[%s10983_s26 + $0x190] sm:$0xff] }
 0x1e2   : > { %9159 = vmatmul.msk.bf16.gmra.mxu2 %vm645_vm2, %v10212_v60  ;;  %14964 = vst [vmem:[#allocation8_spill] sm:$0xff] %v11857_v48  ;;  %v2237_v60 = vmul.f32 %v11901_v30, %v2217_v33 }
 0x1e3   : > { %9132 = vmatmul.msk.bf16.gmra.mxu1 %vm645_vm2, %v10207_v17  ;;  %8990 = vmatmul.msk.bf16.vlgmr.msrb.gmra.mxu0 %vm645_vm2, %v10175_v62  ;;  %v9269_v17 = vor.u32 %v10240_v23, %v9268_v20 }
 0x1e5   : > { %v2853_v1 = vpop.f32.mrf.mxu2  ;;  %v2637_v54 = vpop.f32.mrf.mxu1  ;;  %v5481_v62 = vand.u32 %v9269_v17, %v10929_v12  ;;  %v10178_v17 = vld [vmem:[%s10983_s26 + $0x198] sm:$0xff] }
 0x1e6   : > { %v2874_v19 = vmul.f32 %v11832_v44, %v2853_v1  ;;  %v2654_v36 = vmul.f32 %v11813_v31, %v2637_v54 }
 0x1e7   : > { %5489 = vmatpush.bf16.msrb.mxu2 %v5481_v62 }
 0x1e8   : > { %v11863_v15 = vadd.f32 %v11841_v28, %v2874_v19  ;;  %v11868_v57 = vadd.f32 %v10661_v24, %v2654_v36 }
 0x1e9   : > { %9075 = vmatmul.msk.bf16.gmra.mxu3 %vm645_vm2, %v10194_v25 }
 0x1ea   : > { %14965 = vst [vmem:[#allocation9_spill] sm:$0xff] %v11863_v15 }
 0x1eb   : > { %14966 = vst [vmem:[#allocation10_spill] sm:$0xff] %v11868_v57  ;;  %v14913_v57 = vmov 25  }
 0x1ed   : > { %v2855_v61 = vpop.f32.mrf.mxu2  ;;  %v2640_v56 = vpop.f32.mrf.mxu1 }
 0x1ee   : > { %v2875_v16 = vmul.f32 %v11832_v44, %v2855_v61  ;;  %v2655_v37 = vmul.f32 %v11813_v31, %v2640_v56  ;;  %v11952_v61 = vld [vmem:[%s14961_s29] ss:$0 sm:$0xff]  ;;  %v10196_v56 = vld [vmem:[%s10983_s26 + $0x1f8] sm:$0xff] }
 0x1f0   : > { %v11876_v35 = vadd.f32 %v11841_v28, %v2875_v16  ;;  %v11881_v0 = vadd.f32 %v10661_v24, %v2655_v37  ;;  %v10239_v37 = vld [vmem:[%s14959_s25] sm:$0xff] }
 0x1f1   : > { %5490 = vmatpush.bf16.msrb.mxu2 %v10239_v37 }
 0x1f2   : > { %14967 = vst [vmem:[#allocation11_spill] sm:$0xff] %v11876_v35  ;;  %9160 = vmatmul.msk.bf16.gmra.mxu2 %vm645_vm2, %v10213_v22  ;;  %v2227_v22 = vpop.f32.mrf.mxu3  ;;  %v10243_v35 = vld [vmem:[%s10983_s26 + $0x2f0] sm:$0xff] }
 0x1f3   : > { %14968 = vst [vmem:[#allocation12_spill] sm:$0xff] %v11881_v0  ;;  %9133 = vmatmul.msk.bf16.gmra.mxu1 %vm645_vm2, %v10208_v63  ;;  %8991 = vmatmul.msk.bf16.gmra.mxu0 %vm645_vm2, %v10176_v45  ;;  %v2241_v45 = vmul.f32 %v11901_v30, %v2227_v22 }
 0x1f5   : > { %v2858_v21 = vpop.f32.mrf.mxu2  ;;  %v2642_v13 = vpop.f32.mrf.mxu1 }
 0x1f6   : > { %v2876_v29 = vmul.f32 %v11832_v44, %v2858_v21  ;;  %v2656_v11 = vmul.f32 %v11813_v31, %v2642_v13  ;;  %v11919_v31 = vld [vmem:[%s14869_s4] ss:$0 sm:$0xff] }
 0x1f7   : > { %v2246_v9 = vadd.f32 %v11919_v31, %v2234_v2  ;;  %v2249_v33 = vadd.f32 %v11919_v31, %v2237_v60  ;;  %v11962_v21 = vld [vmem:[%s14869_s4] ss:$0 sm:$0xff]  ;;  %v11971_v13 = vadd.f32 %v11919_v31, %v2241_v45  ;;  %v10222_v2 = vld [vmem:[%s14959_s25 + $0x8] sm:$0x30] }
 0x1f8   : > { %v11887_v41 = vadd.f32 %v11841_v28, %v2876_v29  ;;  %v11906_v51 = vadd.f32 %v10661_v24, %v2656_v11  ;;  %v10236_v45 = vld [vmem:[%s10983_s26 + $0x2c8] sm:$0xff] }
 0x1f9   : > { %9076 = vmatmul.msk.bf16.gmra.mxu3 %vm645_vm2, %v10195_v5  ;;  %v2254_v1 = vmax.f32 %v2246_v9, 0.0  ;;  %v2257_v6 = vmax.f32 %v2249_v33, 0.0  ;;  %v10235_v5 = vld [vmem:[%s10983_s26 + $0x2c0] sm:$0xff] }
 0x1fa   : > { %14969 = vst [vmem:[#allocation13_spill] sm:$0xff] %v11887_v41 }
 0x1fb   : > { %14970 = vst [vmem:[#allocation14_spill] sm:$0xff] %v11906_v51  ;;  %v10245_v51 = vld [vmem:[%s14959_s25] sm:$0xff] }
 0x1fd   : > { %v2860_v26 = vpop.f32.mrf.mxu2 }
 0x1fe   : > { %v2877_v4 = vmul.f32 %v11832_v44, %v2860_v26 }
 0x1ff   : > { %v11926_v50 = vpop.f32.mrf.mxu1 }
 0x200   : > { %v11922_v24 = vadd.f32 %v11841_v28, %v2877_v4 }
 0x202   : > { %14971 = vst [vmem:[#allocation15_spill] sm:$0xff] %v11922_v24  ;;  %9161 = vmatmul.msk.bf16.gmra.mxu2 %vm645_vm2, %v10214_v14 }
 0x203   : > { %v2121_v7 = vpop.permute.xlu2 %2120  ;;  %v2111_v8 = vpop.permute.xlu0 %2110  ;;  %9242 = vmatmul.msk.bf16.vlgmr.msrb.gmra.mxu1 %vm645_vm2, %v10229_v18  ;;  %8992 = vmatmul.msk.bf16.gmra.mxu0 %vm645_vm2, %v10177_v34 }
 0x204   : > { %2140 = vst.msk [vmem:[#allocation2 + $0x50] sm:$0xf] %vm2134_vm9, %v2121_v7  ;;  %v10230_v7 = vld [vmem:[%s10983_s26 + $0x2a8] sm:$0xff] }
 0x205   : > { %2135 = vst.msk [vmem:[#allocation2] sm:$0xf] %vm2134_vm9, %v2111_v8  ;;  %v2863_v47 = vpop.f32.mrf.mxu2  ;;  %v9185_v8 = vor.u32 %v10222_v2, %v9184_v49  ;;  %v10231_v2 = vld [vmem:[%s10983_s26 + $0x2b0] sm:$0xff] }
 0x206   : > { %v2878_v39 = vmul.f32 %v11832_v44, %v2863_v47  ;;  %v2236_v47 = vmul.f32 %v11901_v30, %v11843_v52  ;;  %v2239_v52 = vmul.f32 %v11901_v30, %v11895_v55  ;;  %v12025_v55 = vld [vmem:[%s14961_s29] ss:$0 sm:$0xff] }
 0x207   : > { %v3519_v16 = vpop.f32.mrf.mxu1  ;;  %v4812_v20 = vand.u32 %v9185_v8, %v10929_v12 }
 0x208   : > { %v11946_v36 = vadd.f32 %v11841_v28, %v2878_v39  ;;  %v3542_v29 = vmul.f32 %v11952_v61, %v3519_v16  ;;  %v10221_v39 = vld [vmem:[%s14959_s25] sm:$0xff]  ;;  %v10204_v16 = vld [vmem:[%s14959_s25 + $0x8] sm:$0x30] }
 0x209   : > { %9077 = vmatmul.msk.bf16.gmra.mxu3 %vm645_vm2, %v10196_v56 }
 0x20a   : > { %v2113_v19 = vpop.permute.xlu1 %2112  ;;  %14972 = vst [vmem:[#allocation16_spill] sm:$0xff] %v11946_v36  ;;  %v11968_v58 = vadd.f32 %v11962_v21, %v3542_v29  ;;  %4820 = vmatpush.bf16.msra.mxu3 %v4812_v20  ;;  %v2251_v29 = vadd.f32 %v11919_v31, %v2239_v52 }
 0x20b   : > { %2136 = vst.msk [vmem:[#allocation2 + $0x10] sm:$0xf] %vm2134_vm9, %v2113_v19  ;;  %v2273_v54 = vpop.permute.xlu2 %2272  ;;  %v2248_v19 = vadd.f32 %v11919_v31, %v2236_v47 }
 0x20c   : > { %v2310_v25 = vmul.f32 %v2273_v54, %v2254_v1  ;;  %14973 = vst [vmem:[#allocation17_spill] sm:$0xff] %v11968_v58  ;;  %v10217_v54 = vld [vmem:[%s10983_s26 + $0x260] sm:$0xff] }
 0x20d   : > { %v2865_v3 = vpop.f32.mrf.mxu2 }
 0x20e   : > { %v2318_v63 = vpack.c.bf16 %v2310_v25, %v2310_v25  ;;  %v2879_v11 = vmul.f32 %v11832_v44, %v2865_v3  ;;  %4821 = vmatpush.bf16.msra.mxu3 %v10221_v39  ;;  %v9100_v25 = vld [vmem:[%s14959_s25 + $0x8] sm:$0xf]  ;;  %v12033_v3 = vld [vmem:[%s14869_s4] ss:$0 sm:$0xff] }
 0x20f   : > { %v3522_v44 = vpop.f32.mrf.mxu1  ;;  %v9101_v37 = vor.u32 %v10204_v16, %v9100_v25 }
 0x210   : > { %2334 = vrot.lane.b32.xlu2 %v2318_v63, %s14900_s2  ;;  %v11978_v4 = vadd.f32 %v11841_v28, %v2879_v11  ;;  %v3543_v9 = vmul.f32 %v11952_v61, %v3522_v44  ;;  %v10770_v28 = vmov 8   ;;  %v2256_v63 = vmax.f32 %v2248_v19, 0.0  ;;  %v12063_v19 = vpop.f32.mrf.mxu0 }
 0x211   : > { %10507 = vset.pattern.permute.xlu1 %v10770_v28  ;;  %10508 = vset.pattern.permute.xlu2 %v10770_v28  ;;  %v4175_v11 = vand.u32 %v9101_v37, %v10929_v12 }
 0x212   : > { %v2119_v38 = vpop.permute.xlu1 %2118  ;;  %14974 = vst [vmem:[#allocation18_spill] sm:$0xff] %v11978_v4  ;;  %9270 = vmatmul.msk.bf16.vlgmr.msrb.gmra.mxu2 %vm645_vm2, %v10235_v5  ;;  %10509 = vset.pattern.permute.xlu0 %v10770_v28  ;;  %v11992_v23 = vadd.f32 %v11962_v21, %v3543_v9  ;;  %v12049_v9 = vld [vmem:[%s14961_s29] ss:$0 sm:$0xff] }
 0x213   : > { %2139 = vst.msk [vmem:[#allocation2 + $0x40] sm:$0xf] %vm2134_vm9, %v2119_v38  ;;  %v2288_v26 = vpop.permute.xlu2 %2287  ;;  %9243 = vmatmul.msk.bf16.gmra.mxu1 %vm645_vm2, %v10230_v7  ;;  %8993 = vmatmul.msk.bf16.gmra.mxu0 %vm645_vm2, %v10178_v17  ;;  %v12055_v17 = vld [vmem:[%s14869_s4] ss:$0 sm:$0xff] }
 0x214   : > { %v2313_v14 = vmul.f32 %v2288_v26, %v2257_v6  ;;  %14975 = vst [vmem:[#allocation19_spill] sm:$0xff] %v11992_v23  ;;  %4183 = vmatpush.bf16.msra.mxu0 %v4175_v11 }
 0x215   : > { %v11994_v60 = vpop.f32.mrf.mxu2 }
 0x216   : > { %v2321_v18 = vpack.c.bf16 %v2313_v14, %v2313_v14  ;;  %14976 = vst [vmem:[#allocation20_spill] sm:$0xff] %v11994_v60  ;;  %v2259_v14 = vmax.f32 %v2251_v29, 0.0 }
 0x217   : > { %v3524_v62 = vpop.f32.mrf.mxu1 }
 0x218   : > { %2340 = vrot.lane.b32.xlu2 %v2321_v18, %s14900_s2  ;;  %v3544_v33 = vmul.f32 %v11952_v61, %v3524_v62  ;;  %v10203_v18 = vld [vmem:[%s14959_s25] sm:$0xff] }
 0x219   : > { %9186 = vmatmul.msk.bf16.vlgmr.msra.gmra.mxu3 %vm645_vm2, %v10217_v54  ;;  %4184 = vmatpush.bf16.msra.mxu0 %v10203_v18  ;;  %v2238_v18 = vmul.f32 %v11901_v30, %v11873_v40  ;;  %v9352_v40 = vld [vmem:[%s14959_s25 + $0x8] sm:$0xf] }
 0x21a   : > { %v2125_v34 = vpop.permute.xlu1 %2124  ;;  %v2117_v1 = vpop.permute.xlu0 %2116  ;;  %v12018_v22 = vadd.f32 %v11962_v21, %v3544_v33  ;;  %v10218_v33 = vld [vmem:[%s10983_s26 + $0x268] sm:$0xff] }
 0x21b   : > { %2142 = vst.msk [vmem:[#allocation2 + $0x70] sm:$0xf] %vm2134_vm9, %v2125_v34  ;;  %v3071_v38 = vpop.f32.mrf.mxu3  ;;  %v2298_v44 = vpop.permute.xlu2 %2297 }
 0x21c   : > { %2138 = vst.msk [vmem:[#allocation2 + $0x30] sm:$0xf] %vm2134_vm9, %v2117_v1  ;;  %v3095_v26 = vmul.f32 %v12025_v55, %v3071_v38  ;;  %v2315_v47 = vmul.f32 %v2298_v44, %v2259_v14  ;;  %v10199_v1 = vld [vmem:[%s10983_s26 + $0x200] sm:$0xff]  ;;  %v12086_v38 = vpop.f32.mrf.mxu0 }
 0x21d   : > { %14977 = vst [vmem:[#allocation21_spill] sm:$0xff] %v12018_v22  ;;  %v12020_v56 = vpop.f32.mrf.mxu2 }
 0x21e   : > { %14978 = vst [vmem:[#allocation22_spill] sm:$0xff] %v12020_v56  ;;  %v12040_v7 = vadd.f32 %v12033_v3, %v3095_v26  ;;  %v2323_v54 = vpack.c.bf16 %v2315_v47, %v2315_v47 }
 0x21f   : > { %v3527_v8 = vpop.f32.mrf.mxu1 }
 0x220   : > { %v3545_v28 = vmul.f32 %v11952_v61, %v3527_v8 }
 0x222   : > { %v2283_v6 = vpop.permute.xlu1 %2282  ;;  %9271 = vmatmul.msk.bf16.gmra.mxu2 %vm645_vm2, %v10236_v45  ;;  %v12058_v39 = vadd.f32 %v11962_v21, %v3545_v28  ;;  %v2240_v28 = vmul.f32 %v11901_v30, %v11929_v10 }
 0x223   : > { %v2312_v5 = vmul.f32 %v2283_v6, %v2256_v63  ;;  %9244 = vmatmul.msk.bf16.gmra.mxu1 %vm645_vm2, %v10231_v2  ;;  %v12068_v62 = vpop.f32.mrf.mxu3  ;;  %9102 = vmatmul.msk.bf16.vlgmr.msra.gmra.mxu0 %vm645_vm2, %v10199_v1  ;;  %v2235_v63 = vmul.f32 %v11901_v30, %v11823_v46  ;;  %v10237_v6 = vld [vmem:[%s10983_s26 + $0x2d0] sm:$0xff]  ;;  %v12091_v46 = vld [vmem:[%s14958_s1] sm:$0xff]  ;;  %v10232_v2 = vld [vmem:[%s10983_s26 + $0x2b8] sm:$0xff] }
 0x224   : > { %14979 = vst [vmem:[#allocation23_spill] sm:$0xff] %v12058_v39  ;;  %v10258_v30 = vld [vmem:[%s14959_s25 + $0x8] sm:$0x30] }
 0x225   : > { %v2320_v49 = vpack.c.bf16 %v2312_v5, %v2312_v5  ;;  %v3745_v20 = vpop.f32.mrf.mxu2 }
 0x226   : > { %v3766_v34 = vmul.f32 %v12049_v9, %v3745_v20 }
 0x227   : > { %2338 = vrot.lane.b32.xlu1 %v2320_v49, %s14900_s2  ;;  %v3529_v25 = vpop.f32.mrf.mxu1  ;;  %v2247_v49 = vadd.f32 %v11919_v31, %v2235_v63 }
 0x228   : > { %v12066_v52 = vadd.f32 %v12055_v17, %v3766_v34  ;;  %v3546_v16 = vmul.f32 %v11952_v61, %v3529_v25  ;;  %v9353_v25 = vor.u32 %v10258_v30, %v9352_v40 }
 0x229   : > { %9187 = vmatmul.msk.bf16.gmra.mxu3 %vm645_vm2, %v10218_v33  ;;  %v2255_v34 = vmax.f32 %v2247_v49, 0.0  ;;  %v10200_v33 = vld [vmem:[%s10983_s26 + $0x208] sm:$0xff] }
 0x22a   : > { %14980 = vst [vmem:[#allocation24_spill] sm:$0xff] %v12066_v52  ;;  %v12077_v29 = vadd.f32 %v11962_v21, %v3546_v16  ;;  %v2250_v16 = vadd.f32 %v11919_v31, %v2238_v18 }
 0x22b   : > { %v3076_v26 = vpop.f32.mrf.mxu3 }
 0x22c   : > { %14981 = vst [vmem:[#allocation25_spill] sm:$0xff] %v12077_v29  ;;  %v3097_v14 = vmul.f32 %v12025_v55, %v3076_v26  ;;  %v2293_v26 = vpop.permute.xlu1 %2292  ;;  %v12493_v29 = vld [vmem:[%s14869_s4] ss:$0 sm:$0xff] }
 0x22d   : > { %v3747_v37 = vpop.f32.mrf.mxu2 }
 0x22e   : > { %v3767_v45 = vmul.f32 %v12049_v9, %v3747_v37  ;;  %v12098_v44 = vadd.f32 %v12033_v3, %v3097_v14  ;;  %v2252_v37 = vadd.f32 %v11919_v31, %v2240_v28  ;;  %v12128_v14 = vld [vmem:[%s14958_s1 + $0x18] sm:$0xff]  ;;  %v10219_v31 = vld [vmem:[%s10983_s26 + $0x270] sm:$0xff] }
 0x22f   : > { %2344 = vrot.lane.b32.xlu1 %v2323_v54, %s14900_s2 }
 0x230   : > { %v12084_v5 = vadd.f32 %v12055_v17, %v3767_v45  ;;  %14983 = vst [vmem:[#allocation27_spill] sm:$0xff] %v12098_v44  ;;  %v3532_v8 = vpop.f32.mrf.mxu1 }
 0x231   : > { %v3547_v20 = vmul.f32 %v11952_v61, %v3532_v8 }
 0x232   : > { %v2123_v11 = vpop.permute.xlu0 %2122  ;;  %14982 = vst [vmem:[#allocation26_spill] sm:$0xff] %v12084_v5  ;;  %9272 = vmatmul.msk.bf16.gmra.mxu2 %vm645_vm2, %v10237_v6  ;;  %v12123_v6 = vpop.f32.mrf.mxu0 }
 0x233   : > { %2141 = vst.msk [vmem:[#allocation2 + $0x60] sm:$0xf] %vm2134_vm9, %v2123_v11  ;;  %v12107_v1 = vadd.f32 %v11962_v21, %v3547_v20  ;;  %9245 = vmatmul.msk.bf16.gmra.mxu1 %vm645_vm2, %v10232_v2  ;;  %v3078_v11 = vpop.f32.mrf.mxu3  ;;  %v6118_v2 = vand.u32 %v9353_v25, %v10929_v12  ;;  %9103 = vmatmul.msk.bf16.gmra.mxu0 %vm645_vm2, %v10200_v33  ;;  %v2258_v20 = vmax.f32 %v2250_v16, 0.0  ;;  %v10257_v25 = vld [vmem:[%s14959_s25] sm:$0xff] }
 0x234   : > { %v3098_v49 = vmul.f32 %v12025_v55, %v3078_v11 }
 0x235   : > { %v3750_v47 = vpop.f32.mrf.mxu2  ;;  %14984 = vst [vmem:[#allocation28_spill] sm:$0xff] %v12107_v1  ;;  %6126 = vmatpush.bf16.msra.mxu1 %v6118_v2  ;;  %v2314_v40 = vmul.f32 %v2293_v26, %v2258_v20 }
 0x236   : > { %v3768_v54 = vmul.f32 %v12049_v9, %v3750_v47  ;;  %v12135_v18 = vadd.f32 %v12033_v3, %v3098_v49  ;;  %v2260_v47 = vmax.f32 %v2252_v37, 0.0  ;;  %v2261_v49 = vmax.f32 %v11971_v13, 0.0 }
 0x237   : > { %2496 = vperm.xlu1 %10507, %v12091_v46   ;;  %v2322_v26 = vpack.c.bf16 %v2314_v40, %v2314_v40  ;;  %v10201_v40 = vld [vmem:[%s10983_s26 + $0x210] sm:$0xff] }
 0x238   : > { %v12121_v45 = vadd.f32 %v12055_v17, %v3768_v54  ;;  %14986 = vst [vmem:[#allocation30_spill] sm:$0xff] %v12135_v18  ;;  %v3534_v28 = vpop.f32.mrf.mxu1 }
 0x239   : > { %9188 = vmatmul.msk.bf16.gmra.mxu3 %vm645_vm2, %v10219_v31  ;;  %6127 = vmatpush.bf16.msra.mxu1 %v10257_v25  ;;  %v10253_v31 = vld [vmem:[%s10983_s26 + $0x320] sm:$0xff] }
 0x23a   : > { %v2278_v10 = vpop.permute.xlu0 %2277  ;;  %14985 = vst [vmem:[#allocation29_spill] sm:$0xff] %v12121_v45  ;;  %v10228_v45 = vld [vmem:[%s14959_s25 + $0x8] sm:$0x30] }
 0x23b   : > { %v2311_v63 = vmul.f32 %v2278_v10, %v2255_v34  ;;  %v3548_v34 = vmul.f32 %v11952_v61, %v3534_v28  ;;  %v10238_v10 = vld [vmem:[%s10983_s26 + $0x2d8] sm:$0xff]  ;;  %v12152_v61 = vpop.f32.mrf.mxu0  ;;  %v2308_v28 = vpop.permute.xlu1 %2307 }
 0x23c   : > { %v3081_v11 = vpop.f32.mrf.mxu3  ;;  %v2317_v13 = vmul.f32 %v2308_v28, %v2261_v49  ;;  %v12186_v49 = vld [vmem:[%s14958_s1 + $0x8] sm:$0xff]  ;;  %v10263_v28 = vld [vmem:[%s14959_s25] sm:$0xff] }
 0x23d   : > { %v2319_v8 = vpack.c.bf16 %v2311_v63, %v2311_v63  ;;  %v3752_v54 = vpop.f32.mrf.mxu2  ;;  %v12141_v30 = vadd.f32 %v11962_v21, %v3548_v34  ;;  %v2491_v21 = vld [vmem:[%s14958_s1 + $0x28] sm:$0xff] }
 0x23e   : > { %v3769_v33 = vmul.f32 %v12049_v9, %v3752_v54 }
 0x23f   : > { %2511 = vperm.xlu1 %10507, %v12128_v14   ;;  %2336 = vrot.lane.b32.xlu0 %v2319_v8, %s14900_s2  ;;  %14987 = vst [vmem:[#allocation31_spill] sm:$0xff] %v12141_v30  ;;  %v3099_v8 = vmul.f32 %v12025_v55, %v3081_v11 }
 0x240   : > { %v12150_v63 = vadd.f32 %v12055_v17, %v3769_v33  ;;  %v12161_v20 = vpop.f32.mrf.mxu1  ;;  %v9380_v33 = vld [vmem:[%s14959_s25 + $0x8] sm:$0xf] }
 0x242   : > { %v2303_v16 = vpop.permute.xlu0 %2302  ;;  %14988 = vst [vmem:[#allocation32_spill] sm:$0xff] %v12150_v63  ;;  %9273 = vmatmul.msk.bf16.gmra.mxu2 %vm645_vm2, %v10238_v10  ;;  %v10264_v10 = vld [vmem:[%s14959_s25 + $0x8] sm:$0x30] }
 0x243   : > { %v2316_v37 = vmul.f32 %v2303_v16, %v2260_v47  ;;  %v12165_v47 = vadd.f32 %v12033_v3, %v3099_v8  ;;  %9354 = vmatmul.msk.bf16.vlgmr.msra.gmra.mxu1 %vm645_vm2, %v10253_v31  ;;  %v9381_v25 = vor.u32 %v10264_v10, %v9380_v33  ;;  %9104 = vmatmul.msk.bf16.gmra.mxu0 %vm645_vm2, %v10201_v40  ;;  %v10220_v8 = vld [vmem:[%s10983_s26 + $0x278] sm:$0xff]  ;;  %v10259_v33 = vld [vmem:[%s10983_s26 + $0x340] sm:$0xff] }
 0x245   : > { %v2324_v2 = vpack.c.bf16 %v2316_v37, %v2316_v37  ;;  %14989 = vst [vmem:[#allocation33_spill] sm:$0xff] %v12165_v47  ;;  %v3755_v34 = vpop.f32.mrf.mxu2  ;;  %v12180_v37 = vpop.f32.mrf.mxu0  ;;  %v6341_v11 = vand.u32 %v9381_v25, %v10929_v12 }
 0x246   : > { %v3770_v54 = vmul.f32 %v12049_v9, %v3755_v34  ;;  %v14903_v34 = vmov 9  }
 0x247   : > { %2521 = vperm.xlu1 %10507, %v2491_v21   ;;  %2342 = vrot.lane.b32.xlu0 %v2322_v26, %s14900_s2  ;;  %v3083_v21 = vpop.f32.mrf.mxu3  ;;  %v2325_v26 = vpack.c.bf16 %v2317_v13, %v2317_v13 }
 0x248   : > { %2346 = vrot.lane.b32.xlu2 %v2324_v2, %s14900_s2  ;;  %v12178_v16 = vadd.f32 %v12055_v17, %v3770_v54  ;;  %v3100_v2 = vmul.f32 %v12025_v55, %v3083_v21  ;;  %v12191_v31 = vpop.f32.mrf.mxu1  ;;  %6349 = vmatpush.bf16.msra.mxu2 %v6341_v11  ;;  %v12214_v21 = vld [vmem:[%s14958_s1 + $0x10] sm:$0xff] }
 0x249   : > { %14991 = vst [vmem:[#allocation35_spill] sm:$0xff] %v12191_v31  ;;  %9189 = vmatmul.msk.bf16.gmra.mxu3 %vm645_vm2, %v10220_v8 }
 0x24a   : > { %14990 = vst [vmem:[#allocation34_spill] sm:$0xff] %v12178_v16  ;;  %v12199_v13 = vadd.f32 %v12033_v3, %v3100_v2  ;;  %v12228_v2 = vld [vmem:[%s14961_s29] ss:$0 sm:$0xff] }
 0x24c   : > { %14992 = vst [vmem:[#allocation36_spill] sm:$0xff] %v12199_v13  ;;  %6350 = vmatpush.bf16.msra.mxu2 %v10263_v28  ;;  %v12235_v28 = vld [vmem:[%s14961_s29] ss:$0 sm:$0xff] }
 0x24d   : > { %v3757_v54 = vpop.f32.mrf.mxu2  ;;  %v12209_v25 = vpop.f32.mrf.mxu0 }
 0x24e   : > { %v3771_v40 = vmul.f32 %v12049_v9, %v3757_v54  ;;  %v10246_v9 = vld [vmem:[%s14959_s25 + $0x8] sm:$0x30] }
 0x24f   : > { %10510 = vset.pattern.permute.xlu1 %v14903_v34  ;;  %2348 = vrot.lane.b32.xlu0 %v2325_v26, %s14900_s2  ;;  %v3086_v11 = vpop.f32.mrf.mxu3  ;;  %v9296_v26 = vld [vmem:[%s14959_s25 + $0x8] sm:$0xf]  ;;  %v12241_v34 = vld [vmem:[%s14869_s4] ss:$0 sm:$0xff]  ;;  %s15095_s2 = smov 48  }
 0x250   : > { %2501 = vperm.xlu2 %10508, %v12186_v49   ;;  %2687 = vperm.xlu1 %10510, %v12091_v46   ;;  %v12207_v10 = vadd.f32 %v12055_v17, %v3771_v40  ;;  %v2490_v17 = vld [vmem:[%s14958_s1 + $0x20] sm:$0xff]  ;;  %v3101_v8 = vmul.f32 %v12025_v55, %v3086_v11  ;;  %v9297_v54 = vor.u32 %v10246_v9, %v9296_v26  ;;  %v4382_v40 = vpop.f32.mrf.mxu1  ;;  %v14905_v9 = vmov 10  }
 0x251   : > { %v12250_v11 = vld [vmem:[%s14869_s4] ss:$0 sm:$0xff] }
 0x252   : > { %14993 = vst [vmem:[#allocation37_spill] sm:$0xff] %v12207_v10  ;;  %9382 = vmatmul.msk.bf16.vlgmr.msra.gmra.mxu2 %vm645_vm2, %v10259_v33  ;;  %v12244_v10 = vadd.f32 %v12033_v3, %v3101_v8  ;;  %v4403_v33 = vmul.f32 %v12228_v2, %v4382_v40  ;;  %v5704_v26 = vand.u32 %v9297_v54, %v10929_v12 }
 0x254   : > { %14994 = vst [vmem:[#allocation38_spill] sm:$0xff] %v12244_v10  ;;  %v12256_v8 = vadd.f32 %v12241_v34, %v4403_v33  ;;  %5712 = vmatpush.bf16.msrb.mxu3 %v5704_v26  ;;  %v10202_v10 = vld [vmem:[%s10983_s26 + $0x218] sm:$0xff]  ;;  %v10241_v26 = vld [vmem:[%s10983_s26 + $0x2e0] sm:$0xff] }
 0x255   : > { %v4600_v30 = vpop.f32.mrf.mxu2  ;;  %v12266_v54 = vpop.f32.mrf.mxu0  ;;  %9105 = vmatmul.msk.bf16.gmra.mxu0 %vm645_vm2, %v10202_v10 }
 0x256   : > { %14995 = vst [vmem:[#allocation39_spill] sm:$0xff] %v12256_v8  ;;  %v4624_v40 = vmul.f32 %v12235_v28, %v4600_v30  ;;  %v2492_v30 = vld [vmem:[%s14958_s1 + $0x30] sm:$0xff]  ;;  %v15008_v8 = vmov 17  }
 0x257   : > { %2506 = vperm.xlu0 %10509, %v12214_v21   ;;  %v3088_v4 = vpop.f32.mrf.mxu3 }
 0x258   : > { %2516 = vperm.xlu2 %10508, %v2490_v17   ;;  %10512 = vset.pattern.permute.xlu1 %v14905_v9  ;;  %v12264_v17 = vadd.f32 %v12250_v11, %v4624_v40  ;;  %v2493_v9 = vld [vmem:[%s14958_s1 + $0x38] sm:$0xff]  ;;  %v3102_v33 = vmul.f32 %v12025_v55, %v3088_v4  ;;  %v12277_v0 = vpop.f32.mrf.mxu1  ;;  %v9212_v40 = vld [vmem:[%s14959_s25 + $0x8] sm:$0xf] }
 0x259   : > { %2915 = vperm.xlu1 %10512, %v12186_v49   ;;  %5713 = vmatpush.bf16.msrb.mxu3 %v10245_v51  ;;  %14997 = vst [vmem:[#allocation41_spill] sm:$0xff] %v12277_v0  ;;  %v9213_v13 = vor.u32 %v10228_v45, %v9212_v40  ;;  %v14907_v51 = vmov 11  }
 0x25a   : > { %14996 = vst [vmem:[#allocation40_spill] sm:$0xff] %v12264_v17  ;;  %v12286_v39 = vadd.f32 %v12033_v3, %v3102_v33  ;;  %v10227_v3 = vld [vmem:[%s14959_s25] sm:$0xff] }
 0x25b   : > { %v5035_v55 = vand.u32 %v9213_v13, %v10929_v12  ;;  %v14999_v13 = vmov 9  }
 0x25c   : > { %14998 = vst [vmem:[#allocation42_spill] sm:$0xff] %v12286_v39  ;;  %9298 = vmatmul.msk.bf16.vlgmr.msrb.gmra.mxu3 %vm645_vm2, %v10241_v26  ;;  %v14917_v39 = vmov 19  }
 0x25d   : > { %v12288_v4 = vpop.f32.mrf.mxu2  ;;  %v12294_v10 = vpop.f32.mrf.mxu0  ;;  %5043 = vmatpush.bf16.msrb.mxu0 %v5035_v55 }
 0x25f   : > { %2531 = vperm.xlu0 %10509, %v2493_v9   ;;  %v12296_v9 = vpop.f32.mrf.mxu3 }
 0x260   : > { %2526 = vperm.xlu2 %10508, %v2492_v30   ;;  %v4387_v45 = vpop.f32.mrf.mxu1  ;;  %v14909_v30 = vmov 17  }
 0x261   : > { %10514 = vset.pattern.permute.xlu1 %v14907_v51  ;;  %v4405_v33 = vmul.f32 %v12228_v2, %v4387_v45  ;;  %5044 = vmatpush.bf16.msrb.mxu0 %v10227_v3  ;;  %v10223_v51 = vld [vmem:[%s10983_s26 + $0x280] sm:$0xff] }
 0x262   : > { %3138 = vperm.xlu1 %10514, %v12186_v49  }
 0x263   : > { %v12307_v40 = vadd.f32 %v12241_v34, %v4405_v33 }
 0x265   : > { %v4605_v26 = vpop.f32.mrf.mxu2  ;;  %15000 = vst [vmem:[#allocation43_spill] sm:$0xff] %v12307_v40  ;;  %v12317_v45 = vpop.f32.mrf.mxu0  ;;  %9214 = vmatmul.msk.bf16.vlgmr.msrb.gmra.mxu0 %vm645_vm2, %v10223_v51 }
 0x266   : > { %v4626_v55 = vmul.f32 %v12235_v28, %v4605_v26  ;;  %v10242_v26 = vld [vmem:[%s10983_s26 + $0x2e8] sm:$0xff] }
 0x267   : > { %10516 = vset.pattern.permute.xlu0 %v14909_v30  ;;  %v14911_v30 = vmov 12   ;;  %v12319_v48 = vpop.f32.mrf.mxu3 }
 0x268   : > { %10511 = vset.pattern.permute.xlu2 %v14999_v13  ;;  %4444 = vperm.xlu0 %10516, %v12186_v49   ;;  %v12315_v3 = vadd.f32 %v12250_v11, %v4626_v55  ;;  %15002 = vst [vmem:[#allocation45_spill] sm:$0xff] %v12319_v48  ;;  %v4389_v33 = vpop.f32.mrf.mxu1  ;;  %v14933_v48 = vmov 23  }
 0x269   : > { %2692 = vperm.xlu2 %10511, %v12186_v49   ;;  %v4406_v47 = vmul.f32 %v12228_v2, %v4389_v33  ;;  %v12340_v33 = vld [vmem:[%s14869_s4] ss:$0 sm:$0xff] }
 0x26a   : > { %v2335_v41 = vpop.permute.xlu2 %2334  ;;  %10517 = vset.pattern.permute.xlu1 %v14911_v30  ;;  %15001 = vst [vmem:[#allocation44_spill] sm:$0xff] %v12315_v3  ;;  %v15003_v30 = vmov 11  }
 0x26b   : > { %2359 = vst.msk [vmem:[#allocation2] sm:$0xf] %vm2358_vm10, %v2335_v41  ;;  %3356 = vperm.xlu1 %10517, %v12091_v46   ;;  %v12328_v41 = vld [vmem:[%s14961_s29] ss:$0 sm:$0xff]  ;;  %v12333_v5 = vadd.f32 %v12241_v34, %v4406_v47 }
 0x26c   : > { %9299 = vmatmul.msk.bf16.gmra.mxu3 %vm645_vm2, %v10242_v26  ;;  %v12348_v47 = vld [vmem:[%s14961_s29] ss:$0 sm:$0xff] }
 0x26d   : > { %v4607_v55 = vpop.f32.mrf.mxu2  ;;  %15004 = vst [vmem:[#allocation46_spill] sm:$0xff] %v12333_v5  ;;  %v3296_v5 = vpop.f32.mrf.mxu0 }
 0x26e   : > { %v4627_v51 = vmul.f32 %v12235_v28, %v4607_v55  ;;  %v3319_v22 = vmul.f32 %v12328_v41, %v3296_v5 }
 0x26f   : > { %v3968_v1 = vpop.f32.mrf.mxu3 }
 0x270   : > { %10521 = vset.pattern.permute.xlu0 %v14913_v57  ;;  %v14915_v57 = vmov 18   ;;  %v12351_v55 = vadd.f32 %v12250_v11, %v4627_v51  ;;  %v12356_v26 = vmul.f32 %v12348_v47, %v3968_v1 }
 0x271   : > { %10513 = vset.pattern.permute.xlu2 %v15003_v30  ;;  %6191 = vperm.xlu0 %10521, %v12091_v46  }
 0x272   : > { %v2341_v16 = vpop.permute.xlu2 %2340  ;;  %3133 = vperm.xlu2 %10513, %v12091_v46   ;;  %15005 = vst [vmem:[#allocation47_spill] sm:$0xff] %v12351_v55 }
 0x273   : > { %2362 = vst.msk [vmem:[#allocation2 + $0x30] sm:$0xf] %vm2358_vm10, %v2341_v16  ;;  %10519 = vset.pattern.permute.xlu1 %v14915_v57  ;;  %v12359_v16 = vadd.f32 %v12340_v33, %v3319_v22  ;;  %v4392_v57 = vpop.f32.mrf.mxu1  ;;  %v10288_v22 = vld [vmem:[%s14870_s5 + $0x38] sm:$0xff] }
 0x274   : > { %4662 = vperm.xlu1 %10519, %v12091_v46   ;;  %15006 = vst [vmem:[#allocation48_spill] sm:$0xff] %v12356_v26  ;;  %v4407_v52 = vmul.f32 %v12228_v2, %v4392_v57  ;;  %6829 = vmatpush.bf16.msra.mxu3 %v10288_v22  ;;  %v14919_v22 = vmov 20  }
 0x275   : > { %v4610_v23 = vpop.f32.mrf.mxu2  ;;  %v3299_v1 = vpop.f32.mrf.mxu0 }
 0x276   : > { %v12364_v51 = vadd.f32 %v12241_v34, %v4407_v52  ;;  %v4628_v5 = vmul.f32 %v12235_v28, %v4610_v23  ;;  %v3320_v52 = vmul.f32 %v12328_v41, %v3299_v1 }
 0x278   : > { %15007 = vst [vmem:[#allocation49_spill] sm:$0xff] %v12364_v51  ;;  %v12374_v57 = vadd.f32 %v12250_v11, %v4628_v5  ;;  %v12378_v51 = vpop.f32.mrf.mxu3  ;;  %v12382_v23 = vadd.f32 %v12340_v33, %v3320_v52  ;;  %v10287_v5 = vld [vmem:[%s14870_s5 + $0x30] sm:$0xff]  ;;  %v15014_v52 = vmov 12  }
 0x279   : > { %10526 = vset.pattern.permute.xlu0 %v14917_v39  ;;  %v15010_v39 = vmov 25   ;;  %15011 = vst [vmem:[#allocation51_spill] sm:$0xff] %v12378_v51  ;;  %6830 = vmatpush.bf16.msra.mxu3 %v10287_v5 }
 0x27a   : > { %10515 = vset.pattern.permute.xlu2 %v15008_v8  ;;  %4890 = vperm.xlu0 %10526, %v12186_v49   ;;  %15009 = vst [vmem:[#allocation50_spill] sm:$0xff] %v12374_v57 }
 0x27b   : > { %4439 = vperm.xlu2 %10515, %v12091_v46   ;;  %15012 = vst [vmem:[#allocation52_spill] sm:$0xff] %v12382_v23  ;;  %v4394_v26 = vpop.f32.mrf.mxu1 }
 0x27c   : > { %10522 = vset.pattern.permute.xlu1 %v15010_v39  ;;  %v4408_v55 = vmul.f32 %v12228_v2, %v4394_v26  ;;  %9300 = vmatmul.msk.bf16.gmra.mxu3 %vm645_vm2, %v10243_v35  ;;  %v10286_v35 = vld [vmem:[%s14870_s5 + $0x28] sm:$0xff] }
 0x27d   : > { %6196 = vperm.xlu1 %10522, %v12186_v49   ;;  %v4612_v36 = vpop.f32.mrf.mxu2  ;;  %v3301_v26 = vpop.f32.mrf.mxu0  ;;  %6831 = vmatpush.bf16.msra.mxu3 %v10286_v35 }
 0x27e   : > { %v12390_v57 = vadd.f32 %v12241_v34, %v4408_v55  ;;  %v4629_v1 = vmul.f32 %v12235_v28, %v4612_v36  ;;  %v12403_v34 = vld [vmem:[%s14961_s29] ss:$0 sm:$0xff]  ;;  %v3321_v36 = vmul.f32 %v12328_v41, %v3301_v26 }
 0x280   : > { %15013 = vst [vmem:[#allocation53_spill] sm:$0xff] %v12390_v57  ;;  %v12398_v2 = vadd.f32 %v12250_v11, %v4629_v1  ;;  %v3973_v55 = vpop.f32.mrf.mxu3  ;;  %v12416_v57 = vadd.f32 %v12340_v33, %v3321_v36 }
 0x281   : > { %v12412_v1 = vmul.f32 %v12348_v47, %v3973_v55  ;;  %v14923_v55 = vmov 21  }
 0x282   : > { %10531 = vset.pattern.permute.xlu0 %v14919_v22  ;;  %15015 = vst [vmem:[#allocation54_spill] sm:$0xff] %v12398_v2  ;;  %v14921_v22 = vmov 13  }
 0x283   : > { %10518 = vset.pattern.permute.xlu2 %v15014_v52  ;;  %5108 = vperm.xlu0 %10531, %v12091_v46   ;;  %15016 = vst [vmem:[#allocation55_spill] sm:$0xff] %v12412_v1  ;;  %v5269_v2 = vpop.f32.mrf.mxu1  ;;  %v15024_v1 = vmov 13  }
 0x284   : > { %3361 = vperm.xlu2 %10518, %v12186_v49   ;;  %15017 = vst [vmem:[#allocation56_spill] sm:$0xff] %v12416_v57  ;;  %v12419_v26 = vmul.f32 %v12403_v34, %v5269_v2  ;;  %v15020_v57 = vmov 18  }
 0x285   : > { %10524 = vset.pattern.permute.xlu1 %v14921_v22  ;;  %v4615_v5 = vpop.f32.mrf.mxu2  ;;  %v10285_v22 = vld [vmem:[%s14870_s5 + $0x20] sm:$0xff]  ;;  %v3304_v36 = vpop.f32.mrf.mxu0 }
 0x286   : > { %3584 = vperm.xlu1 %10524, %v12186_v49   ;;  %15018 = vst [vmem:[#allocation57_spill] sm:$0xff] %v12419_v26  ;;  %v4630_v59 = vmul.f32 %v12235_v28, %v4615_v5  ;;  %v3322_v2 = vmul.f32 %v12328_v41, %v3304_v36  ;;  %6832 = vmatpush.bf16.msra.mxu3 %v10285_v22  ;;  %v14925_v5 = vmov 26   ;;  %v10284_v36 = vld [vmem:[%s14870_s5 + $0x18] sm:$0xff]  ;;  %v10283_v22 = vld [vmem:[%s14870_s5 + $0x10] sm:$0xff] }
 0x288   : > { %v12427_v23 = vadd.f32 %v12250_v11, %v4630_v59  ;;  %v12432_v35 = vpop.f32.mrf.mxu3 }
 0x289   : > { %15021 = vst [vmem:[#allocation59_spill] sm:$0xff] %v12432_v35 }
 0x28a   : > { %15019 = vst [vmem:[#allocation58_spill] sm:$0xff] %v12427_v23  ;;  %v10244_v23 = vld [vmem:[%s10983_s26 + $0x2f8] sm:$0xff]  ;;  %6833 = vmatpush.bf16.msra.mxu3 %v10284_v36  ;;  %v14927_v36 = vmov 14  }
 0x28b   : > { %10536 = vset.pattern.permute.xlu0 %v14923_v55  ;;  %v12437_v55 = vadd.f32 %v12340_v33, %v3322_v2  ;;  %v12439_v59 = vpop.f32.mrf.mxu1 }
 0x28c   : > { %10520 = vset.pattern.permute.xlu2 %v15020_v57  ;;  %5336 = vperm.xlu0 %10536, %v12186_v49  }
 0x28d   : > { %4667 = vperm.xlu2 %10520, %v12186_v49   ;;  %15022 = vst [vmem:[#allocation60_spill] sm:$0xff] %v12437_v55  ;;  %v4617_v18 = vpop.f32.mrf.mxu2  ;;  %9301 = vmatmul.msk.bf16.gmra.mxu3 %vm645_vm2, %v10244_v23 }
 0x28e   : > { %10527 = vset.pattern.permute.xlu1 %v14925_v5  ;;  %v4631_v35 = vmul.f32 %v12235_v28, %v4617_v18  ;;  %v3306_v5 = vpop.f32.mrf.mxu0  ;;  %6834 = vmatpush.bf16.msra.mxu3 %v10283_v22 }
 0x28f   : > { %6414 = vperm.xlu1 %10527, %v12091_v46   ;;  %v3323_v55 = vmul.f32 %v12328_v41, %v3306_v5 }
 0x290   : > { %v12452_v2 = vadd.f32 %v12250_v11, %v4631_v35  ;;  %v3978_v15 = vpop.f32.mrf.mxu3 }
 0x291   : > { %v12459_v18 = vmul.f32 %v12348_v47, %v3978_v15  ;;  %v12463_v23 = vadd.f32 %v12340_v33, %v3323_v55  ;;  %v12478_v55 = vld [vmem:[%s14961_s29] ss:$0 sm:$0xff] }
 0x292   : > { %15023 = vst [vmem:[#allocation61_spill] sm:$0xff] %v12452_v2  ;;  %v10282_v2 = vld [vmem:[%s14870_s5 + $0x8] sm:$0xff]  ;;  %v2458_v63 = vmul.f32 %v12478_v55, %v12063_v19  ;;  %v15033_v19 = vmov 20   ;;  %v2461_v26 = vmul.f32 %v12478_v55, %v12152_v61 }
 0x293   : > { %15025 = vst [vmem:[#allocation62_spill] sm:$0xff] %v12459_v18  ;;  %v5274_v35 = vpop.f32.mrf.mxu1  ;;  %6835 = vmatpush.bf16.msra.mxu3 %v10282_v2  ;;  %v15030_v2 = vmov 19  }
 0x294   : > { %10545 = vset.pattern.permute.xlu0 %v15003_v30  ;;  %15026 = vst [vmem:[#allocation63_spill] sm:$0xff] %v12463_v23  ;;  %v12467_v5 = vmul.f32 %v12403_v34, %v5274_v35  ;;  %v10281_v35 = vld [vmem:[%s14870_s5] sm:$0xff] }
 0x295   : > { %10523 = vset.pattern.permute.xlu2 %v15024_v1  ;;  %3148 = vperm.xlu0 %10545, %v12128_v14   ;;  %v12473_v15 = vpop.f32.mrf.mxu2 }
 0x296   : > { %3579 = vperm.xlu2 %10523, %v12091_v46   ;;  %15027 = vst [vmem:[#allocation64_spill] sm:$0xff] %v12467_v5  ;;  %v3309_v22 = vpop.f32.mrf.mxu0 }
 0x297   : > { %10529 = vset.pattern.permute.xlu1 %v14927_v36  ;;  %15028 = vst [vmem:[#allocation65_spill] sm:$0xff] %v12473_v15  ;;  %v3324_v36 = vmul.f32 %v12328_v41, %v3309_v22  ;;  %6836 = vmatpush.bf16.msra.mxu3 %v10281_v35 }
 0x298   : > { %3802 = vperm.xlu1 %10529, %v12091_v46   ;;  %v12485_v5 = vpop.f32.mrf.mxu3 }
 0x299   : > { %v2339_v18 = vpop.permute.xlu1 %2338  ;;  %15029 = vst [vmem:[#allocation66_spill] sm:$0xff] %v12485_v5  ;;  %v2459_v5 = vmul.f32 %v12478_v55, %v12086_v38 }
 0x29a   : > { %2361 = vst.msk [vmem:[#allocation2 + $0x20] sm:$0xf] %vm2358_vm10, %v2339_v18  ;;  %v12498_v18 = vadd.f32 %v12340_v33, %v3324_v36  ;;  %v12512_v36 = vld [vmem:[%s14961_s29] ss:$0 sm:$0xff] }
 0x29b   : > { %v12500_v22 = vpop.f32.mrf.mxu1 }
 0x29c   : > { %15031 = vst [vmem:[#allocation67_spill] sm:$0xff] %v12498_v18 }
 0x29d   : > { %10550 = vset.pattern.permute.xlu0 %v15020_v57  ;;  %15032 = vst [vmem:[#allocation68_spill] sm:$0xff] %v12500_v22  ;;  %v12506_v23 = vpop.f32.mrf.mxu2  ;;  %v2470_v22 = vadd.f32 %v12493_v29, %v2458_v63 }
 0x29e   : > { %10525 = vset.pattern.permute.xlu2 %v15030_v2  ;;  %4672 = vperm.xlu0 %10550, %v12214_v21   ;;  %15034 = vst [vmem:[#allocation69_spill] sm:$0xff] %v12506_v23  ;;  %v3311_v35 = vpop.f32.mrf.mxu0 }
 0x29f   : > { %4885 = vperm.xlu2 %10525, %v12091_v46   ;;  %v2471_v46 = vadd.f32 %v12493_v29, %v2459_v5  ;;  %v3325_v18 = vmul.f32 %v12328_v41, %v3311_v35  ;;  %v2478_v51 = vmax.f32 %v2470_v22, 0.0  ;;  %v2462_v5 = vmul.f32 %v12478_v55, %v12180_v37 }
 0x2a0   : > { %10532 = vset.pattern.permute.xlu1 %v15033_v19  ;;  %v4823_v24 = vpop.f32.mrf.mxu3  ;;  %v14929_v22 = vmov 15  }
 0x2a1   : > { %5113 = vperm.xlu1 %10532, %v12186_v49   ;;  %v2345_v40 = vpop.permute.xlu1 %2344  ;;  %v12520_v15 = vmul.f32 %v12512_v36, %v4823_v24  ;;  %v12526_v63 = vadd.f32 %v12340_v33, %v3325_v18  ;;  %v2479_v35 = vmax.f32 %v2471_v46, 0.0 }
 0x2a2   : > { %2364 = vst.msk [vmem:[#allocation2 + $0x50] sm:$0xf] %vm2358_vm10, %v2345_v40  ;;  %v2347_v38 = vpop.permute.xlu2 %2346 }
 0x2a3   : > { %2365 = vst.msk [vmem:[#allocation2 + $0x60] sm:$0xf] %vm2358_vm10, %v2347_v38  ;;  %v5279_v40 = vpop.f32.mrf.mxu1  ;;  %v15037_v38 = vmov 26  }
 0x2a4   : > { %15035 = vst [vmem:[#allocation70_spill] sm:$0xff] %v12520_v15  ;;  %v12533_v24 = vmul.f32 %v12403_v34, %v5279_v40 }
 0x2a5   : > { %15036 = vst [vmem:[#allocation71_spill] sm:$0xff] %v12526_v63  ;;  %v12536_v61 = vpop.f32.mrf.mxu2  ;;  %v2473_v63 = vadd.f32 %v12493_v29, %v2461_v26 }
 0x2a6   : > { %10555 = vset.pattern.permute.xlu0 %v15024_v1  ;;  %15038 = vst [vmem:[#allocation72_spill] sm:$0xff] %v12533_v24  ;;  %v12542_v3 = vpop.f32.mrf.mxu0 }
 0x2a7   : > { %10528 = vset.pattern.permute.xlu2 %v15037_v38  ;;  %3594 = vperm.xlu0 %10555, %v12128_v14   ;;  %15039 = vst [vmem:[#allocation73_spill] sm:$0xff] %v12536_v61  ;;  %v2474_v14 = vadd.f32 %v12493_v29, %v2462_v5  ;;  %v2463_v61 = vmul.f32 %v12478_v55, %v12209_v25  ;;  %v15042_v5 = vmov 14   ;;  %v12560_v25 = vld [vmem:[%s14958_s1] sm:$0xff] }
 0x2a8   : > { %6419 = vperm.xlu2 %10528, %v12186_v49   ;;  %15040 = vst [vmem:[#allocation74_spill] sm:$0xff] %v12542_v3  ;;  %v12544_v24 = vpop.f32.mrf.mxu3 }
 0x2a9   : > { %10534 = vset.pattern.permute.xlu1 %v14929_v22  ;;  %v2497_v18 = vpop.permute.xlu1 %2496  ;;  %v2481_v22 = vmax.f32 %v2473_v63, 0.0 }
 0x2aa   : > { %v2534_v23 = vmul.f32 %v2497_v18, %v2478_v51  ;;  %v2502_v37 = vpop.permute.xlu2 %2501  ;;  %4030 = vperm.xlu1 %10534, %v12186_v49   ;;  %v2482_v51 = vmax.f32 %v2474_v14, 0.0  ;;  %v2464_v18 = vmul.f32 %v12478_v55, %v12266_v54  ;;  %v2475_v54 = vadd.f32 %v12493_v29, %v2463_v61 }
 0x2ab   : > { %v2535_v46 = vmul.f32 %v2502_v37, %v2479_v35  ;;  %v12549_v26 = vpop.f32.mrf.mxu1  ;;  %v14931_v14 = vmov 22  }
 0x2ac   : > { %v2542_v40 = vpack.c.bf16 %v2534_v23, %v2534_v23  ;;  %15041 = vst [vmem:[#allocation75_spill] sm:$0xff] %v12549_v26  ;;  %v2483_v61 = vmax.f32 %v2475_v54, 0.0  ;;  %v10254_v54 = vld [vmem:[%s10983_s26 + $0x328] sm:$0xff] }
 0x2ad   : > { %v2543_v60 = vpack.c.bf16 %v2535_v46, %v2535_v46  ;;  %v12562_v23 = vpop.f32.mrf.mxu2  ;;  %9355 = vmatmul.msk.bf16.gmra.mxu1 %vm645_vm2, %v10254_v54 }
 0x2ae   : > { %2550 = vst.msk [vmem:[#allocation2 + $0x4] sm:$0xf] %vm790_vm3, %v2542_v40  ;;  %v12570_v40 = vpop.f32.mrf.mxu0 }
 0x2af   : > { %2551 = vst.msk [vmem:[#allocation2 + $0x14] sm:$0xf] %vm790_vm3, %v2543_v60  ;;  %10560 = vset.pattern.permute.xlu0 %v15042_v5 }
 0x2b0   : > { %10530 = vset.pattern.permute.xlu2 %v15042_v5  ;;  %3812 = vperm.xlu0 %10560, %v12214_v21   ;;  %15043 = vst [vmem:[#allocation76_spill] sm:$0xff] %v12562_v23  ;;  %v2476_v21 = vadd.f32 %v12493_v29, %v2464_v18  ;;  %v12572_v23 = vpop.f32.mrf.mxu3 }
 0x2b1   : > { %3807 = vperm.xlu2 %10530, %v12186_v49   ;;  %v2512_v63 = vpop.permute.xlu1 %2511  ;;  %v2337_v35 = vpop.permute.xlu0 %2336  ;;  %15044 = vst [vmem:[#allocation77_spill] sm:$0xff] %v12570_v40 }
 0x2b2   : > { %v2537_v60 = vmul.f32 %v2512_v63, %v2481_v22  ;;  %v2517_v37 = vpop.permute.xlu2 %2516  ;;  %2360 = vst.msk [vmem:[#allocation2 + $0x10] sm:$0xf] %vm2358_vm10, %v2337_v35  ;;  %10537 = vset.pattern.permute.xlu1 %v14931_v14  ;;  %v12578_v22 = vld [vmem:[%s14958_s1 + $0x18] sm:$0xff]  ;;  %v2484_v18 = vmax.f32 %v2476_v21, 0.0  ;;  %v9388_v21 = vld [vmem:[#allocation2] sm:$0xf] }
 0x2b3   : > { %v2538_v46 = vmul.f32 %v2517_v37, %v2482_v51  ;;  %5554 = vperm.xlu1 %10537, %v12560_v25   ;;  %15045 = vst [vmem:[#allocation78_spill] sm:$0xff] %v12572_v23  ;;  %v5284_v63 = vpop.f32.mrf.mxu1  ;;  %v10684_v51 = vld [vmem:[%s14961_s29] ss:$0 sm:$0xff] }
 0x2b4   : > { %v2545_v49 = vpack.c.bf16 %v2537_v60, %v2537_v60  ;;  %v12585_v35 = vmul.f32 %v12403_v34, %v5284_v63  ;;  %v15047_v60 = vmov 15  }
 0x2b5   : > { %v2546_v26 = vpack.c.bf16 %v2538_v46, %v2538_v46  ;;  %v5502_v37 = vpop.f32.mrf.mxu2 }
 0x2b6   : > { %2553 = vst.msk [vmem:[#allocation2 + $0x34] sm:$0xf] %vm790_vm3, %v2545_v49 }
 0x2b7   : > { %2554 = vst.msk [vmem:[#allocation2 + $0x44] sm:$0xf] %vm790_vm3, %v2546_v26  ;;  %v12591_v26 = vmul.f32 %v10684_v51, %v5502_v37  ;;  %v4191_v37 = vpop.f32.mrf.mxu0 }
 0x2b8   : > { %15046 = vst [vmem:[#allocation79_spill] sm:$0xff] %v12585_v35  ;;  %10565 = vset.pattern.permute.xlu0 %v15047_v60  ;;  %v12598_v35 = vld [vmem:[%s14961_s29] ss:$0 sm:$0xff] }
 0x2b9   : > { %10533 = vset.pattern.permute.xlu2 %v15047_v60  ;;  %v2522_v46 = vpop.permute.xlu1 %2521  ;;  %4040 = vperm.xlu0 %10565, %v12578_v22   ;;  %v2343_v49 = vpop.permute.xlu0 %2342  ;;  %v10267_v14 = vld [vmem:[#allocation2 + $0xc] sm:$0xf0]  ;;  %15048 = vst [vmem:[#allocation80_spill] sm:$0xff] %v12591_v26 }
 0x2ba   : > { %v2539_v40 = vmul.f32 %v2522_v46, %v2483_v61  ;;  %4025 = vperm.xlu2 %10533, %v12560_v25   ;;  %v2527_v3 = vpop.permute.xlu2 %2526  ;;  %2363 = vst.msk [vmem:[#allocation2 + $0x40] sm:$0xf] %vm2358_vm10, %v2343_v49  ;;  %v9389_v63 = vor.u32 %v10267_v14, %v9388_v21  ;;  %v12604_v61 = vmul.f32 %v12598_v35, %v4191_v37  ;;  %v12606_v14 = vpop.f32.mrf.mxu3  ;;  %v15053_v21 = vmov 21  }
 0x2bb   : > { %v2540_v23 = vmul.f32 %v2527_v3, %v2484_v18  ;;  %10539 = vset.pattern.permute.xlu1 %v14933_v48  ;;  %15050 = vst [vmem:[#allocation82_spill] sm:$0xff] %v12606_v14  ;;  %v2460_v49 = vmul.f32 %v12478_v55, %v12123_v6  ;;  %v15052_v18 = vmov 10   ;;  %v9404_v48 = vld [vmem:[#allocation2 + $0x20] sm:$0xf]  ;;  %v15057_v14 = vmov 22  }
 0x2bc   : > { %v2547_v26 = vpack.c.bf16 %v2539_v40, %v2539_v40  ;;  %5777 = vperm.xlu1 %10539, %v12560_v25   ;;  %6837 = vmatmul.bf16.vlgmr.msra.gmra.mxu3 %v9389_v63  ;;  %15049 = vst [vmem:[#allocation81_spill] sm:$0xff] %v12604_v61  ;;  %v5545_v61 = vld [vmem:[%s14958_s1 + $0x8] sm:$0xff] }
 0x2bd   : > { %v2548_v46 = vpack.c.bf16 %v2540_v23, %v2540_v23  ;;  %v12612_v3 = vpop.f32.mrf.mxu2  ;;  %v2472_v54 = vadd.f32 %v12493_v29, %v2460_v49  ;;  %v2465_v49 = vmul.f32 %v12478_v55, %v12294_v10 }
 0x2be   : > { %2555 = vst.msk [vmem:[#allocation2 + $0x54] sm:$0xf] %vm790_vm3, %v2547_v26 }
 0x2bf   : > { %2556 = vst.msk [vmem:[#allocation2 + $0x64] sm:$0xf] %vm790_vm3, %v2548_v46  ;;  %v12624_v26 = vpop.f32.mrf.mxu0  ;;  %v2480_v46 = vmax.f32 %v2472_v54, 0.0  ;;  %v2477_v10 = vadd.f32 %v12493_v29, %v2465_v49  ;;  %v12663_v29 = vld [vmem:[%s14958_s1 + $0x20] sm:$0xff] }
 0x2c0   : > { %15051 = vst [vmem:[#allocation83_spill] sm:$0xff] %v12612_v3 }
 0x2c1   : > { %10566 = vset.pattern.permute.xlu0 %v15052_v18  ;;  %v2349_v40 = vpop.permute.xlu0 %2348  ;;  %15054 = vst [vmem:[#allocation84_spill] sm:$0xff] %v12624_v26 }
 0x2c2   : > { %10535 = vset.pattern.permute.xlu2 %v15053_v21  ;;  %2366 = vst.msk [vmem:[#allocation2 + $0x70] sm:$0xf] %vm2358_vm10, %v2349_v40  ;;  %v12618_v23 = vpop.permute.xlu1 %2687  ;;  %2910 = vperm.xlu0 %10566, %v12560_v25   ;;  %v4833_v63 = vpop.f32.mrf.mxu3  ;;  %v10260_v40 = vld [vmem:[%s10983_s26 + $0x348] sm:$0xff] }
 0x2c3   : > { %5331 = vperm.xlu2 %10535, %v12560_v25   ;;  %v12622_v6 = vpop.permute.xlu2 %2692  ;;  %v12629_v37 = vmul.f32 %v12512_v36, %v4833_v63  ;;  %v12637_v25 = vld [vmem:[%s14958_s1 + $0x28] sm:$0xff]  ;;  %9383 = vmatmul.msk.bf16.gmra.mxu2 %vm645_vm2, %v10260_v40  ;;  %v10271_v63 = vld [vmem:[#allocation2 + $0x2c] sm:$0xf0] }
 0x2c4   : > { %10541 = vset.pattern.permute.xlu1 %v14999_v13  ;;  %v9405_v55 = vor.u32 %v10271_v63, %v9404_v48  ;;  %v2485_v48 = vmax.f32 %v2477_v10, 0.0 }
 0x2c5   : > { %2702 = vperm.xlu1 %10541, %v12578_v22   ;;  %15055 = vst [vmem:[#allocation85_spill] sm:$0xff] %v12629_v37  ;;  %v5507_v3 = vpop.f32.mrf.mxu2 }
 0x2c6   : > { %v12643_v54 = vmul.f32 %v10684_v51, %v5507_v3 }
 0x2c7   : > { %v4196_v44 = vpop.f32.mrf.mxu0 }
 0x2c8   : > { %15056 = vst [vmem:[#allocation86_spill] sm:$0xff] %v12643_v54  ;;  %v12653_v56 = vmul.f32 %v12598_v35, %v4196_v44 }
 0x2c9   : > { %v2507_v37 = vpop.permute.xlu0 %2506 }
 0x2ca   : > { %2935 = vperm.xlu0 %10566, %v12637_v25   ;;  %v2536_v26 = vmul.f32 %v2507_v37, %v2480_v46  ;;  %15059 = vst [vmem:[#allocation88_spill] sm:$0xff] %v12653_v56  ;;  %v12655_v51 = vpop.f32.mrf.mxu3  ;;  %v15062_v37 = vmov 23  }
 0x2cb   : > { %10538 = vset.pattern.permute.xlu2 %v15057_v14  ;;  %v12648_v0 = vpop.permute.xlu1 %2915  ;;  %15060 = vst [vmem:[#allocation89_spill] sm:$0xff] %v12655_v51 }
 0x2cc   : > { %5559 = vperm.xlu2 %10538, %v5545_v61   ;;  %v12650_v40 = vpop.permute.xlu2 %3133  ;;  %6842 = vmatmul.bf16.gmra.mxu3 %v9405_v55  ;;  %v2544_v15 = vpack.c.bf16 %v2536_v26, %v2536_v26 }
 0x2cd   : > { %15058 = vst [vmem:[#allocation87_spill] sm:$0xff] %v12650_v40  ;;  %10543 = vset.pattern.permute.xlu1 %v15052_v18 }
 0x2ce   : > { %2925 = vperm.xlu1 %10543, %v12578_v22   ;;  %2552 = vst.msk [vmem:[#allocation2 + $0x24] sm:$0xf] %vm790_vm3, %v2544_v15  ;;  %v12675_v15 = vld [vmem:[%s14958_s1 + $0x10] sm:$0xff] }
 0x2cf   : > { %v12667_v44 = vpop.f32.mrf.mxu0 }
 0x2d0   : > { %15061 = vst [vmem:[#allocation90_spill] sm:$0xff] %v12667_v44 }
 0x2d1   : > { %v2532_v3 = vpop.permute.xlu0 %2531 }
 0x2d2   : > { %10587 = vset.pattern.permute.xlu0 %v15037_v38  ;;  %v2541_v26 = vmul.f32 %v2532_v3, %v2485_v48  ;;  %v4838_v63 = vpop.f32.mrf.mxu3  ;;  %v9420_v48 = vld [vmem:[#allocation2 + $0x40] sm:$0xf]  ;;  %v10275_v3 = vld [vmem:[#allocation2 + $0x4c] sm:$0xf0] }
 0x2d3   : > { %6434 = vperm.xlu0 %10587, %v12663_v29   ;;  %v12680_v55 = vmul.f32 %v12512_v36, %v4838_v63  ;;  %v9421_v56 = vor.u32 %v10275_v3, %v9420_v48 }
 0x2d4   : > { %10540 = vset.pattern.permute.xlu2 %v15062_v37  ;;  %v12670_v46 = vpop.permute.xlu1 %3138  ;;  %v2549_v49 = vpack.c.bf16 %v2541_v26, %v2541_v26 }
 0x2d5   : > { %5782 = vperm.xlu2 %10540, %v5545_v61   ;;  %v12677_v10 = vpop.permute.xlu2 %4439  ;;  %15063 = vst [vmem:[#allocation91_spill] sm:$0xff] %v12680_v55  ;;  %v10224_v55 = vld [vmem:[%s10983_s26 + $0x288] sm:$0xff] }
 0x2d6   : > { %10546 = vset.pattern.permute.xlu1 %v15008_v8  ;;  %2557 = vst.msk [vmem:[#allocation2 + $0x74] sm:$0xf] %vm790_vm3, %v2549_v49  ;;  %9215 = vmatmul.msk.bf16.gmra.mxu0 %vm645_vm2, %v10224_v55  ;;  %v10279_v55 = vld [vmem:[#allocation2 + $0x6c] sm:$0xf0] }
 0x2d7   : > { %4449 = vperm.xlu1 %10546, %v12675_v15   ;;  %v4201_v61 = vpop.f32.mrf.mxu0 }
 0x2d8   : > { %v12690_v26 = vmul.f32 %v12598_v35, %v4201_v61 }
 0x2da   : > { %v12685_v44 = vpop.permute.xlu0 %4444  ;;  %15065 = vst [vmem:[#allocation93_spill] sm:$0xff] %v12690_v26  ;;  %v12692_v63 = vpop.f32.mrf.mxu3  ;;  %v9436_v26 = vld [vmem:[#allocation2 + $0x60] sm:$0xf] }
 0x2db   : > { %15064 = vst [vmem:[#allocation92_spill] sm:$0xff] %v12685_v44  ;;  %10596 = vset.pattern.permute.xlu0 %v15057_v14  ;;  %v9437_v51 = vor.u32 %v10279_v55, %v9436_v26 }
 0x2dc   : > { %5574 = vperm.xlu0 %10596, %v12663_v29   ;;  %6847 = vmatmul.bf16.gmra.mxu3 %v9421_v56  ;;  %15066 = vst [vmem:[#allocation94_spill] sm:$0xff] %v12692_v63 }
 0x2dd   : > { %10542 = vset.pattern.permute.xlu2 %v15052_v18  ;;  %v12696_v49 = vpop.permute.xlu1 %3356 }
 0x2de   : > { %2920 = vperm.xlu2 %10542, %v12675_v15   ;;  %v12699_v48 = vpop.permute.xlu2 %3361 }
 0x2df   : > { %10548 = vset.pattern.permute.xlu1 %v15014_v52 }
 0x2e0   : > { %3366 = vperm.xlu1 %10548, %v12675_v15  }
 0x2e2   : > { %v12707_v35 = vpop.f32.mrf.mxu3 }
 0x2e3   : > { %v12704_v56 = vpop.permute.xlu0 %6191  ;;  %15068 = vst [vmem:[#allocation96_spill] sm:$0xff] %v12707_v35 }
 0x2e4   : > { %15067 = vst [vmem:[#allocation95_spill] sm:$0xff] %v12704_v56  ;;  %10597 = vset.pattern.permute.xlu0 %v14999_v13  ;;  %v10709_v56 = vld [vmem:[%s14961_s29] ss:$0 sm:$0xff] }
 0x2e5   : > { %2697 = vperm.xlu0 %10597, %v12675_v15   ;;  %v3096_v31 = vmul.f32 %v10709_v56, %v12068_v62  ;;  %v3318_v62 = vmul.f32 %v12328_v41, %v12317_v45 }
 0x2e6   : > { %10544 = vset.pattern.permute.xlu2 %v15003_v30  ;;  %v12711_v3 = vpop.permute.xlu1 %4662 }
 0x2e7   : > { %15069 = vst [vmem:[#allocation97_spill] sm:$0xff] %v12711_v3  ;;  %3143 = vperm.xlu2 %10544, %v12675_v15   ;;  %v12714_v61 = vpop.permute.xlu2 %4667 }
 0x2e8   : > { %10551 = vset.pattern.permute.xlu1 %v15020_v57 }
 0x2e9   : > { %4677 = vperm.xlu1 %10551, %v12578_v22  }
 0x2ea   : > { %v12720_v35 = vpop.f32.mrf.mxu3 }
 0x2eb   : > { %15070 = vst [vmem:[#allocation98_spill] sm:$0xff] %v12720_v35 }
 0x2ec   : > { %6852 = vmatmul.bf16.gmra.mxu3 %v9437_v51  ;;  %v12718_v54 = vpop.permute.xlu0 %4890  ;;  %v12733_v51 = vld [vmem:[%s14961_s29] ss:$0 sm:$0xff] }
 0x2ed   : > { %15072 = vst [vmem:[#allocation100_spill] sm:$0xff] %v12733_v51 }
 0x2ef   : > { %10547 = vset.pattern.permute.xlu2 %v15008_v8  ;;  %v12723_v63 = vpop.permute.xlu1 %6196 }
 0x2f0   : > { %15071 = vst [vmem:[#allocation99_spill] sm:$0xff] %v12723_v63  ;;  %4454 = vperm.xlu2 %10547, %v12578_v22   ;;  %v12726_v3 = vpop.permute.xlu2 %3579 }
 0x2f1   : > { %10553 = vset.pattern.permute.xlu1 %v15010_v39 }
 0x2f2   : > { %6206 = vperm.xlu1 %10553, %v12578_v22   ;;  %v5720_v55 = vpop.f32.mrf.mxu3 }
 0x2f3   : > { %v12738_v35 = vmul.f32 %v12733_v51, %v5720_v55 }
 0x2f5   : > { %v12735_v26 = vpop.permute.xlu0 %5108  ;;  %15074 = vst [vmem:[#allocation102_spill] sm:$0xff] %v12738_v35 }
 0x2f6   : > { %15073 = vst [vmem:[#allocation101_spill] sm:$0xff] %v12735_v26 }
 0x2f8   : > { %10549 = vset.pattern.permute.xlu2 %v15014_v52  ;;  %v12741_v63 = vpop.permute.xlu1 %3584 }
 0x2f9   : > { %15075 = vst [vmem:[#allocation103_spill] sm:$0xff] %v12741_v63  ;;  %3371 = vperm.xlu2 %10549, %v12578_v22   ;;  %v12744_v43 = vpop.permute.xlu2 %4885 }
 0x2fa   : > { %15076 = vst [vmem:[#allocation104_spill] sm:$0xff] %v12744_v43  ;;  %10556 = vset.pattern.permute.xlu1 %v15030_v2 }
 0x2fb   : > { %4895 = vperm.xlu1 %10556, %v12675_v15  }
 0x2fe   : > { %v12748_v17 = vpop.permute.xlu0 %5336 }
 0x301   : > { %10552 = vset.pattern.permute.xlu2 %v15010_v39  ;;  %v12751_v26 = vpop.permute.xlu1 %6414 }
 0x302   : > { %15077 = vst [vmem:[#allocation105_spill] sm:$0xff] %v12751_v26  ;;  %6201 = vperm.xlu2 %10552, %v12675_v15   ;;  %v12754_v55 = vpop.permute.xlu2 %6419 }
 0x303   : > { %15078 = vst [vmem:[#allocation106_spill] sm:$0xff] %v12754_v55  ;;  %10558 = vset.pattern.permute.xlu1 %v15037_v38 }
 0x304   : > { %6424 = vperm.xlu1 %10558, %v12675_v15  }
 0x307   : > { %v12758_v35 = vpop.permute.xlu0 %3148 }
 0x308   : > { %15079 = vst [vmem:[#allocation107_spill] sm:$0xff] %v12758_v35 }
 0x30a   : > { %10554 = vset.pattern.permute.xlu2 %v15024_v1  ;;  %v12761_v51 = vpop.permute.xlu1 %3802 }
 0x30b   : > { %15080 = vst [vmem:[#allocation108_spill] sm:$0xff] %v12761_v51  ;;  %3589 = vperm.xlu2 %10554, %v12675_v15   ;;  %v12764_v43 = vpop.permute.xlu2 %3807 }
 0x30c   : > { %15081 = vst [vmem:[#allocation109_spill] sm:$0xff] %v12764_v43  ;;  %10561 = vset.pattern.permute.xlu1 %v15042_v5 }
 0x30d   : > { %3817 = vperm.xlu1 %10561, %v12578_v22  }
 0x310   : > { %v12768_v26 = vpop.permute.xlu0 %4672 }
 0x311   : > { %15082 = vst [vmem:[#allocation110_spill] sm:$0xff] %v12768_v26 }
 0x313   : > { %10557 = vset.pattern.permute.xlu2 %v15030_v2  ;;  %v12771_v55 = vpop.permute.xlu1 %5113 }
 0x314   : > { %4900 = vperm.xlu2 %10557, %v12578_v22   ;;  %v12774_v35 = vpop.permute.xlu2 %4025 }
 0x315   : > { %10563 = vset.pattern.permute.xlu1 %v15033_v19 }
 0x316   : > { %5123 = vperm.xlu1 %10563, %v12578_v22  }
 0x319   : > { %v12778_v51 = vpop.permute.xlu0 %3594 }
 0x31a   : > { %15083 = vst [vmem:[#allocation111_spill] sm:$0xff] %v12778_v51 }
 0x31c   : > { %10559 = vset.pattern.permute.xlu2 %v15037_v38  ;;  %v12781_v43 = vpop.permute.xlu1 %4030 }
 0x31d   : > { %15084 = vst [vmem:[#allocation112_spill] sm:$0xff] %v12781_v43  ;;  %6429 = vperm.xlu2 %10559, %v12578_v22   ;;  %v12784_v26 = vpop.permute.xlu2 %5331 }
 0x31e   : > { %15085 = vst [vmem:[#allocation113_spill] sm:$0xff] %v12784_v26  ;;  %10567 = vset.pattern.permute.xlu1 %v15053_v21  ;;  %v10707_v26 = vld [vmem:[%s14961_s29] ss:$0 sm:$0xff] }
 0x31f   : > { %5341 = vperm.xlu1 %10567, %v12675_v15   ;;  %v2872_v43 = vmul.f32 %v10707_v26, %v11825_v42 }
 0x322   : > { %v12788_v44 = vpop.permute.xlu0 %3812 }
 0x323   : > { %15086 = vst [vmem:[#allocation114_spill] sm:$0xff] %v12788_v44  ;;  %v10255_v44 = vld [vmem:[%s10983_s26 + $0x330] sm:$0xff] }
 0x324   : > { %9356 = vmatmul.msk.bf16.gmra.mxu1 %vm645_vm2, %v10255_v44 }
 0x325   : > { %10562 = vset.pattern.permute.xlu2 %v15033_v19  ;;  %v12791_v63 = vpop.permute.xlu1 %5554 }
 0x326   : > { %15087 = vst [vmem:[#allocation115_spill] sm:$0xff] %v12791_v63  ;;  %5118 = vperm.xlu2 %10562, %v12675_v15   ;;  %v12794_v51 = vpop.permute.xlu2 %5559 }
 0x327   : > { %15088 = vst [vmem:[#allocation116_spill] sm:$0xff] %v12794_v51  ;;  %10569 = vset.pattern.permute.xlu1 %v15057_v14  ;;  %v10708_v51 = vld [vmem:[%s14869_s4] ss:$0 sm:$0xff] }
 0x328   : > { %5564 = vperm.xlu1 %10569, %v12675_v15   ;;  %v2884_v40 = vadd.f32 %v10708_v51, %v2872_v43  ;;  %v10710_v43 = vld [vmem:[%s14869_s4] ss:$0 sm:$0xff] }
 0x329   : > { %v3108_v51 = vadd.f32 %v10710_v43, %v3096_v31  ;;  %v10261_v31 = vld [vmem:[%s10983_s26 + $0x350] sm:$0xff] }
 0x32a   : > { %v2892_v26 = vmax.f32 %v2884_v40, 0.0  ;;  %v3330_v40 = vadd.f32 %v12340_v33, %v3318_v62  ;;  %9384 = vmatmul.msk.bf16.gmra.mxu2 %vm645_vm2, %v10261_v31  ;;  %v12856_v62 = vpop.f32.mrf.mxu0  ;;  %v4848_v31 = vmul.f32 %v12512_v36, %v12544_v24 }
 0x32b   : > { %v12802_v58 = vpop.permute.xlu0 %4040  ;;  %15096 = vst [vmem:[#allocation122_spill] sm:$0xff] %v12856_v62 }
 0x32c   : > { %15089 = vst [vmem:[#allocation117_spill] sm:$0xff] %v12802_v58  ;;  %v3338_v41 = vmax.f32 %v3330_v40, 0.0 }
 0x32e   : > { %10564 = vset.pattern.permute.xlu2 %v15047_v60  ;;  %v12806_v63 = vpop.permute.xlu1 %5777 }
 0x32f   : > { %15090 = vst [vmem:[#allocation118_spill] sm:$0xff] %v12806_v63  ;;  %4035 = vperm.xlu2 %10564, %v12675_v15   ;;  %v12816_v42 = vpop.permute.xlu2 %5782  ;;  %v3116_v15 = vmax.f32 %v3108_v51, 0.0 }
 0x330   : > { %15091 = vst [vmem:[#allocation119_spill] sm:$0xff] %v12816_v42  ;;  %10571 = vset.pattern.permute.xlu1 %v15062_v37 }
 0x331   : > { %5792 = vperm.xlu1 %10571, %v12578_v22   ;;  %v3172_v45 = vmul.f32 %v12670_v46, %v3116_v15  ;;  %v3394_v46 = vmul.f32 %v12696_v49, %v3338_v41  ;;  %v10712_v49 = vld [vmem:[%s14869_s4] ss:$0 sm:$0xff] }
 0x333   : > { %v3402_v51 = vpack.c.bf16 %v3394_v46, %v3394_v46 }
 0x334   : > { %v2911_v63 = vpop.permute.xlu0 %2910 }
 0x335   : > { %v2948_v58 = vmul.f32 %v2911_v63, %v2892_v26  ;;  %v3180_v63 = vpack.c.bf16 %v3172_v45, %v3172_v45  ;;  %v12876_v45 = vld [vmem:[%s14869_s4] ss:$0 sm:$0xff] }
 0x336   : > { %v4860_v41 = vadd.f32 %v12876_v45, %v4848_v31 }
 0x337   : > { %v2956_v56 = vpack.c.bf16 %v2948_v58, %v2948_v58  ;;  %10568 = vset.pattern.permute.xlu2 %v15053_v21  ;;  %v12827_v44 = vpop.permute.xlu1 %2702  ;;  %v4625_v58 = vmul.f32 %v12235_v28, %v12288_v4  ;;  %v10711_v28 = vld [vmem:[%s14961_s29] ss:$0 sm:$0xff] }
 0x338   : > { %5346 = vperm.xlu2 %10568, %v12578_v22   ;;  %v12830_v42 = vpop.permute.xlu2 %2920  ;;  %v3541_v4 = vmul.f32 %v10711_v28, %v11926_v50  ;;  %v4868_v46 = vmax.f32 %v4860_v41, 0.0 }
 0x339   : > { %15092 = vst [vmem:[#allocation120_spill] sm:$0xff] %v12830_v42  ;;  %10573 = vset.pattern.permute.xlu1 %v14999_v13  ;;  %2972 = vrot.lane.b32.xlu0 %v2956_v56, %s15093_s0  ;;  %v4637_v33 = vadd.f32 %v12250_v11, %v4625_v58 }
 0x33a   : > { %2712 = vperm.xlu1 %10573, %v12637_v25   ;;  %v3553_v50 = vadd.f32 %v10712_v49, %v3541_v4  ;;  %v4924_v4 = vmul.f32 %v12718_v54, %v4868_v46  ;;  %v12911_v54 = vld [vmem:[%s14869_s4] ss:$0 sm:$0xff] }
 0x33b   : > { %v12935_v46 = vld [vmem:[%s14869_s4] ss:$0 sm:$0xff] }
 0x33c   : > { %v3561_v40 = vmax.f32 %v3553_v50, 0.0  ;;  %v4932_v50 = vpack.c.bf16 %v4924_v4, %v4924_v4 }
 0x33e   : > { %v3617_v36 = vmul.f32 %v12726_v3, %v3561_v40  ;;  %v12898_v3 = vld [vmem:[%s14961_s29] ss:$0 sm:$0xff]  ;;  %v10226_v40 = vld [vmem:[%s10983_s26 + $0x298] sm:$0xff] }
 0x340   : > { %10570 = vset.pattern.permute.xlu2 %v15057_v14  ;;  %v12842_v26 = vpop.permute.xlu1 %2925  ;;  %v3625_v28 = vpack.c.bf16 %v3617_v36, %v3617_v36  ;;  %v3987_v36 = vmul.f32 %v12348_v47, %v12296_v9  ;;  %v10252_v9 = vld [vmem:[%s14959_s25 + $0x8] sm:$0x30]  ;;  %v5294_v47 = vmul.f32 %v12403_v34, %v12439_v59 }
 0x341   : > { %15094 = vst [vmem:[#allocation121_spill] sm:$0xff] %v12842_v26  ;;  %5569 = vperm.xlu2 %10570, %v12578_v22   ;;  %v12845_v43 = vpop.permute.xlu2 %3143  ;;  %3197 = vrot.lane.b32.xlu0 %v3180_v63, %s15095_s2  ;;  %v4645_v22 = vmax.f32 %v4637_v33, 0.0  ;;  %v10225_v63 = vld [vmem:[%s10983_s26 + $0x290] sm:$0xff]  ;;  %v13106_v26 = vld [vmem:[%s14869_s4] ss:$0 sm:$0xff] }
 0x342   : > { %10575 = vset.pattern.permute.xlu1 %v15003_v30  ;;  %9216 = vmatmul.msk.bf16.gmra.mxu0 %vm645_vm2, %v10225_v63  ;;  %v12928_v63 = vld [vmem:[%s14958_s1 + $0x30] sm:$0xff] }
 0x343   : > { %3153 = vperm.xlu1 %10575, %v12663_v29   ;;  %v4701_v56 = vmul.f32 %v12714_v61, %v4645_v22  ;;  %v12881_v61 = vpop.f32.mrf.mxu0 }
 0x345   : > { %v4709_v58 = vpack.c.bf16 %v4701_v56, %v4701_v56 }
 0x349   : > { %10572 = vset.pattern.permute.xlu2 %v14999_v13  ;;  %v12859_v15 = vpop.permute.xlu1 %4449  ;;  %3418 = vrot.lane.b32.xlu0 %v3402_v51, %s15098_s28 }
 0x34a   : > { %15097 = vst [vmem:[#allocation123_spill] sm:$0xff] %v12859_v15  ;;  %2707 = vperm.xlu2 %10572, %v12663_v29   ;;  %v12863_v11 = vpop.permute.xlu2 %4454 }
 0x34b   : > { %10577 = vset.pattern.permute.xlu1 %v15008_v8  ;;  %v5048_v22 = vpop.f32.mrf.mxu0 }
 0x34c   : > { %4459 = vperm.xlu1 %10577, %v12663_v29   ;;  %v5071_v56 = vmul.f32 %v12898_v3, %v5048_v22  ;;  %v9324_v22 = vld [vmem:[%s14959_s25 + $0x8] sm:$0xf] }
 0x34e   : > { %v5083_v31 = vadd.f32 %v12911_v54, %v5071_v56  ;;  %v9325_v56 = vor.u32 %v10252_v9, %v9324_v22  ;;  %v10247_v9 = vld [vmem:[%s10983_s26 + $0x300] sm:$0xff] }
 0x350   : > { %v5927_v34 = vand.u32 %v9325_v56, %v10929_v12  ;;  %v12976_v12 = vld [vmem:[%s14958_s1 + $0x28] sm:$0xff] }
 0x351   : > { %4726 = vrot.lane.b32.xlu0 %v4709_v58, %s15093_s0 }
 0x352   : > { %10574 = vset.pattern.permute.xlu2 %v15052_v18  ;;  %v12884_v33 = vpop.permute.xlu1 %3366  ;;  %9217 = vmatmul.msk.bf16.gmra.mxu0 %vm645_vm2, %v10226_v40  ;;  %v12958_v40 = vld [vmem:[%s14869_s4] ss:$0 sm:$0xff] }
 0x353   : > { %15099 = vst [vmem:[#allocation124_spill] sm:$0xff] %v12884_v33  ;;  %2930 = vperm.xlu2 %10574, %v12663_v29   ;;  %v12888_v24 = vpop.permute.xlu2 %3371  ;;  %v5306_v59 = vadd.f32 %v12958_v40, %v5294_v47  ;;  %5935 = vmatpush.bf16.msra.mxu0 %v5927_v34  ;;  %v3339_v33 = vmax.f32 %v12359_v16, 0.0 }
 0x354   : > { %15100 = vst [vmem:[#allocation125_spill] sm:$0xff] %v12888_v24  ;;  %10579 = vset.pattern.permute.xlu1 %v15014_v52 }
 0x355   : > { %3381 = vperm.xlu1 %10579, %v12637_v25   ;;  %v3395_v16 = vmul.f32 %v12699_v48, %v3339_v33 }
 0x359   : > { %3641 = vrot.lane.b32.xlu0 %v3625_v28, %s15101_s21  ;;  %v3999_v28 = vadd.f32 %v12935_v46, %v3987_v36 }
 0x35b   : > { %10576 = vset.pattern.permute.xlu2 %v15003_v30  ;;  %v12901_v51 = vpop.permute.xlu1 %4677 }
 0x35c   : > { %15102 = vst [vmem:[#allocation126_spill] sm:$0xff] %v12901_v51  ;;  %3158 = vperm.xlu2 %10576, %v12637_v25   ;;  %v12904_v49 = vpop.permute.xlu2 %6201  ;;  %v15120_v51 = vmov 16  }
 0x35d   : > { %15103 = vst [vmem:[#allocation127_spill] sm:$0xff] %v12904_v49  ;;  %10581 = vset.pattern.permute.xlu1 %v15020_v57 }
 0x35e   : > { %4687 = vperm.xlu1 %10581, %v12637_v25  }
 0x361   : > { %4949 = vrot.lane.b32.xlu0 %v4932_v50, %s15095_s2 }
 0x364   : > { %10578 = vset.pattern.permute.xlu2 %v15008_v8  ;;  %v12918_v58 = vpop.permute.xlu1 %6206 }
 0x365   : > { %4464 = vperm.xlu2 %10578, %v12637_v25   ;;  %v12922_v41 = vpop.permute.xlu2 %3589  ;;  %v5091_v25 = vmax.f32 %v5083_v31, 0.0 }
 0x366   : > { %15104 = vst [vmem:[#allocation128_spill] sm:$0xff] %v12922_v41  ;;  %10583 = vset.pattern.permute.xlu1 %v15024_v1  ;;  %v14938_v41 = vmov 24  }
 0x367   : > { %3599 = vperm.xlu1 %10583, %v12663_v29   ;;  %v5147_v4 = vmul.f32 %v12771_v55, %v5091_v25  ;;  %v4007_v55 = vmax.f32 %v3999_v28, 0.0  ;;  %v5314_v28 = vmax.f32 %v5306_v59, 0.0  ;;  %v13004_v59 = vld [vmem:[%s14958_s1 + $0x20] sm:$0xff] }
 0x369   : > { %2717 = vperm.xlu0 %10597, %v12928_v63   ;;  %v5155_v36 = vpack.c.bf16 %v5147_v4, %v5147_v4  ;;  %v4063_v25 = vmul.f32 %v12774_v35, %v4007_v55  ;;  %v10251_v4 = vld [vmem:[%s14959_s25] sm:$0xff]  ;;  %v5370_v35 = vmul.f32 %v12748_v17, %v5314_v28  ;;  %v12996_v17 = vpop.permute.xlu0 %2935 }
 0x36a   : > { %5936 = vmatpush.bf16.msra.mxu0 %v10251_v4 }
 0x36b   : > { %v4071_v47 = vpack.c.bf16 %v4063_v25, %v4063_v25  ;;  %v5378_v55 = vpack.c.bf16 %v5370_v35, %v5370_v35 }
 0x36d   : > { %10580 = vset.pattern.permute.xlu2 %v15020_v57  ;;  %v12950_v50 = vpop.permute.xlu1 %4895  ;;  %9326 = vmatmul.msk.bf16.vlgmr.msra.gmra.mxu0 %vm645_vm2, %v10247_v9 }
 0x36e   : > { %4682 = vperm.xlu2 %10580, %v12663_v29   ;;  %v12953_v31 = vpop.permute.xlu2 %4900 }
 0x36f   : > { %15105 = vst [vmem:[#allocation129_spill] sm:$0xff] %v12953_v31  ;;  %10585 = vset.pattern.permute.xlu1 %v15030_v2 }
 0x370   : > { %4905 = vperm.xlu1 %10585, %v12663_v29  }
 0x371   : > { %5172 = vrot.lane.b32.xlu0 %v5155_v36, %s15098_s28  ;;  %v13012_v28 = vpop.permute.xlu0 %6434 }
 0x372   : > { %10609 = vset.pattern.permute.xlu0 %v15008_v8  ;;  %15111 = vst [vmem:[#allocation134_spill] sm:$0xff] %v13012_v28 }
 0x376   : > { %10582 = vset.pattern.permute.xlu2 %v15010_v39  ;;  %v12971_v22 = vpop.permute.xlu1 %6424 }
 0x377   : > { %15106 = vst [vmem:[#allocation130_spill] sm:$0xff] %v12971_v22  ;;  %6211 = vperm.xlu2 %10582, %v12663_v29   ;;  %v12980_v56 = vpop.permute.xlu2 %6429  ;;  %v14936_v22 = vmov 16  }
 0x378   : > { %10588 = vset.pattern.permute.xlu1 %v15037_v38 }
 0x379   : > { %6439 = vperm.xlu1 %10588, %v12976_v12   ;;  %4087 = vrot.lane.b32.xlu0 %v4071_v47, %s15107_s3  ;;  %v13027_v47 = vld [vmem:[%s14958_s1 + $0x38] sm:$0xff]  ;;  %v13029_v35 = vpop.permute.xlu0 %5574 }
 0x37a   : > { %15114 = vst [vmem:[#allocation137_spill] sm:$0xff] %v13029_v35 }
 0x37f   : > { %10584 = vset.pattern.permute.xlu2 %v15024_v1  ;;  %v12988_v36 = vpop.permute.xlu1 %3817 }
 0x380   : > { %15108 = vst [vmem:[#allocation131_spill] sm:$0xff] %v12988_v36  ;;  %3604 = vperm.xlu2 %10584, %v12976_v12   ;;  %v12991_v29 = vpop.permute.xlu2 %5118  ;;  %v13058_v36 = vld [vmem:[%s14961_s29] ss:$0 sm:$0xff] }
 0x381   : > { %10590 = vset.pattern.permute.xlu1 %v15042_v5  ;;  %5395 = vrot.lane.b32.xlu0 %v5378_v55, %s15101_s21 }
 0x382   : > { %3827 = vperm.xlu1 %10590, %v12976_v12  }
 0x388   : > { %10586 = vset.pattern.permute.xlu2 %v15030_v2  ;;  %v12999_v34 = vpop.permute.xlu1 %5123 }
 0x389   : > { %15109 = vst [vmem:[#allocation132_spill] sm:$0xff] %v12999_v34  ;;  %4910 = vperm.xlu2 %10586, %v12976_v12   ;;  %v13007_v25 = vpop.permute.xlu2 %4035  ;;  %4469 = vperm.xlu0 %10609, %v12928_v63   ;;  %v13067_v34 = vld [vmem:[%s14869_s4] ss:$0 sm:$0xff] }
 0x38a   : > { %15110 = vst [vmem:[#allocation133_spill] sm:$0xff] %v13007_v25  ;;  %10592 = vset.pattern.permute.xlu1 %v15047_v60  ;;  %v13050_v25 = vld [vmem:[%s14958_s1 + $0x8] sm:$0xff] }
 0x38b   : > { %4045 = vperm.xlu1 %10592, %v13004_v59  }
 0x391   : > { %10589 = vset.pattern.permute.xlu2 %v15042_v5  ;;  %v13015_v4 = vpop.permute.xlu1 %5341  ;;  %10610 = vset.pattern.permute.xlu0 %v15014_v52 }
 0x392   : > { %15112 = vst [vmem:[#allocation135_spill] sm:$0xff] %v13015_v4  ;;  %3822 = vperm.xlu2 %10589, %v13004_v59   ;;  %v13019_v9 = vpop.permute.xlu2 %5346  ;;  %3376 = vperm.xlu0 %10610, %v13004_v59   ;;  %v2649_v4 = vmul.f32 %v13058_v36, %v11787_v32  ;;  %v5990_v32 = vld [vmem:[%s14958_s1] sm:$0xff] }
 0x393   : > { %15113 = vst [vmem:[#allocation136_spill] sm:$0xff] %v13019_v9  ;;  %10594 = vset.pattern.permute.xlu1 %v15053_v21  ;;  %v13041_v9 = vpop.permute.xlu0 %2697 }
 0x394   : > { %5351 = vperm.xlu1 %10594, %v13004_v59   ;;  %15116 = vst [vmem:[#allocation139_spill] sm:$0xff] %v13041_v9 }
 0x39a   : > { %10591 = vset.pattern.permute.xlu2 %v15033_v19  ;;  %v13032_v55 = vpop.permute.xlu1 %5564  ;;  %3391 = vperm.xlu0 %10610, %v13027_v47  }
 0x39b   : > { %5128 = vperm.xlu2 %10591, %v13004_v59   ;;  %v13036_v62 = vpop.permute.xlu2 %5569 }
 0x39c   : > { %15115 = vst [vmem:[#allocation138_spill] sm:$0xff] %v13036_v62  ;;  %10598 = vset.pattern.permute.xlu1 %v15057_v14  ;;  %v3403_v14 = vpack.c.bf16 %v3395_v16, %v3395_v16  ;;  %v15134_v16 = vld [vmem:[#allocation87_spill] sm:$0xff] }
 0x39d   : > { %5579 = vperm.xlu1 %10598, %v12976_v12  }
 0x3a2   : > { %10613 = vset.pattern.permute.xlu0 %v15010_v39 }
 0x3a3   : > { %10593 = vset.pattern.permute.xlu2 %v15047_v60  ;;  %v13044_v35 = vpop.permute.xlu1 %5792  ;;  %6216 = vperm.xlu0 %10613, %v12976_v12  }
 0x3a4   : > { %4050 = vperm.xlu2 %10593, %v12976_v12   ;;  %v13053_v62 = vpop.permute.xlu2 %2707 }
 0x3a5   : > { %15117 = vst [vmem:[#allocation140_spill] sm:$0xff] %v13053_v62  ;;  %10600 = vset.pattern.permute.xlu1 %v14936_v22  ;;  %v2661_v62 = vadd.f32 %v13067_v34, %v2649_v4 }
 0x3a6   : > { %4253 = vperm.xlu1 %10600, %v13050_v25  }
 0x3a7   : > { %v2669_v22 = vmax.f32 %v2661_v62, 0.0  ;;  %v13091_v62 = vld [vmem:[%s14961_s29] ss:$0 sm:$0xff] }
 0x3a9   : > { %v2725_v4 = vmul.f32 %v12618_v23, %v2669_v22 }
 0x3ab   : > { %6221 = vperm.xlu0 %10613, %v12928_v63   ;;  %v13071_v49 = vpop.permute.xlu0 %2972 }
 0x3ac   : > { %10595 = vset.pattern.permute.xlu2 %v15053_v21  ;;  %v13074_v31 = vpop.permute.xlu1 %2712 }
 0x3ad   : > { %15118 = vst [vmem:[#allocation141_spill] sm:$0xff] %v13074_v31  ;;  %5356 = vperm.xlu2 %10595, %v12976_v12   ;;  %v13080_v24 = vpop.permute.xlu2 %2930  ;;  %v2733_v31 = vpack.c.bf16 %v2725_v4, %v2725_v4  ;;  %v13110_v4 = vpop.f32.mrf.mxu1 }
 0x3ae   : > { %15119 = vst [vmem:[#allocation142_spill] sm:$0xff] %v13080_v24  ;;  %10602 = vset.pattern.permute.xlu1 %v14938_v41  ;;  %v4401_v24 = vmul.f32 %v13091_v62, %v12161_v20  ;;  %v2893_v41 = vmax.f32 %v11849_v27, 0.0 }
 0x3af   : > { %6000 = vperm.xlu1 %10602, %v5990_v32  }
 0x3b0   : > { %v4413_v20 = vadd.f32 %v13106_v26, %v4401_v24  ;;  %v2949_v27 = vmul.f32 %v12648_v0, %v2893_v41 }
 0x3b3   : > { %10620 = vset.pattern.permute.xlu0 %v15030_v2  ;;  %v13085_v15 = vpop.permute.xlu0 %3197  ;;  %v15139_v2 = vld [vmem:[#allocation92_spill] sm:$0xff] }
 0x3b4   : > { %4920 = vperm.xlu0 %10620, %v13027_v47  }
 0x3b5   : > { %10599 = vset.pattern.permute.xlu2 %v15120_v51  ;;  %v13097_v23 = vpop.permute.xlu1 %3153  ;;  %v15143_v51 = vld [vmem:[#allocation7_spill] sm:$0xff] }
 0x3b6   : > { %15121 = vst [vmem:[#allocation143_spill] sm:$0xff] %v13097_v23  ;;  %4248 = vperm.xlu2 %10599, %v5990_v32   ;;  %v13099_v22 = vpop.permute.xlu2 %3158  ;;  %v4421_v32 = vmax.f32 %v4413_v20, 0.0  ;;  %v13130_v20 = vld [vmem:[%s14961_s29] ss:$0 sm:$0xff] }
 0x3b7   : > { %15122 = vst [vmem:[#allocation144_spill] sm:$0xff] %v13099_v22  ;;  %2749 = vrot.lane.b32.xlu1 %v2733_v31, %s15123_s20  ;;  %v2957_v22 = vpack.c.bf16 %v2949_v27, %v2949_v27  ;;  %v6129_v27 = vpop.f32.mrf.mxu1 }
 0x3b8   : > { %10604 = vset.pattern.permute.xlu1 %v14999_v13  ;;  %v2650_v13 = vmul.f32 %v13058_v36, %v11801_v53  ;;  %v4477_v24 = vmul.f32 %v12677_v10, %v4421_v32  ;;  %v6153_v42 = vmul.f32 %v13130_v20, %v6129_v27  ;;  %v13140_v10 = vld [vmem:[%s14869_s4] ss:$0 sm:$0xff]  ;;  %v15126_v32 = vmov 24  }
 0x3ba   : > { %v2662_v41 = vadd.f32 %v13067_v34, %v2650_v13  ;;  %v4485_v23 = vpack.c.bf16 %v4477_v24, %v4477_v24  ;;  %v6165_v24 = vadd.f32 %v13140_v10, %v6153_v42  ;;  %v15132_v42 = vld [vmem:[#allocation95_spill] sm:$0xff] }
 0x3bb   : > { %v13112_v9 = vpop.permute.xlu0 %3418 }
 0x3bc   : > { %10621 = vset.pattern.permute.xlu0 %v15033_v19  ;;  %v6173_v60 = vmax.f32 %v6165_v24, 0.0  ;;  %v15130_v19 = vld [vmem:[#allocation35_spill] sm:$0xff] }
 0x3bd   : > { %5133 = vperm.xlu0 %10621, %v12976_v12  }
 0x3be   : > { %10601 = vset.pattern.permute.xlu2 %v15062_v37  ;;  %v13119_v31 = vpop.permute.xlu1 %4459  ;;  %v6229_v33 = vmul.f32 %v15132_v42, %v6173_v60  ;;  %v13183_v60 = vld [vmem:[%s14958_s1 + $0x10] sm:$0xff] }
 0x3bf   : > { %15124 = vst [vmem:[#allocation145_spill] sm:$0xff] %v13119_v31  ;;  %5797 = vperm.xlu2 %10601, %v13004_v59   ;;  %v13122_v0 = vpop.permute.xlu2 %4464  ;;  %2974 = vrot.lane.b32.xlu1 %v2957_v22, %s15093_s0  ;;  %v2670_v22 = vmax.f32 %v2662_v41, 0.0  ;;  %v6131_v5 = vpop.f32.mrf.mxu1 }
 0x3c0   : > { %15125 = vst [vmem:[#allocation146_spill] sm:$0xff] %v13122_v0  ;;  %v13152_v0 = vpop.f32.mrf.mxu2  ;;  %v6237_v42 = vpack.c.bf16 %v6229_v33, %v6229_v33 }
 0x3c1   : > { %v2726_v41 = vmul.f32 %v12622_v6, %v2670_v22  ;;  %15129 = vst [vmem:[#allocation149_spill] sm:$0xff] %v13152_v0  ;;  %v13169_v22 = vld [vmem:[%s14961_s29] ss:$0 sm:$0xff] }
 0x3c2   : > { %15135 = vst [vmem:[#allocation87_spill] sm:$0xff] %v13183_v60 }
 0x3c3   : > { %v13132_v53 = vpop.permute.xlu0 %4726  ;;  %v2734_v48 = vpack.c.bf16 %v2726_v41, %v2726_v41 }
 0x3c5   : > { %5138 = vperm.xlu0 %10621, %v12928_v63  }
 0x3c7   : > { %10603 = vset.pattern.permute.xlu2 %v15126_v32  ;;  %v13143_v13 = vpop.permute.xlu1 %3381  ;;  %4501 = vrot.lane.b32.xlu1 %v4485_v23, %s15123_s20  ;;  %v3115_v23 = vmax.f32 %v12040_v7, 0.0 }
 0x3c8   : > { %15127 = vst [vmem:[#allocation147_spill] sm:$0xff] %v13143_v13  ;;  %6005 = vperm.xlu2 %10603, %v13050_v25   ;;  %v13149_v27 = vpop.permute.xlu2 %4682  ;;  %v4402_v25 = vmul.f32 %v13091_v62, %v15130_v19 }
 0x3c9   : > { %15128 = vst [vmem:[#allocation148_spill] sm:$0xff] %v13149_v27  ;;  %v3171_v24 = vmul.f32 %v15134_v16, %v3115_v23  ;;  %v13189_v27 = vld [vmem:[%s14869_s4] ss:$0 sm:$0xff] }
 0x3ca   : > { %v4414_v19 = vadd.f32 %v13106_v26, %v4402_v25  ;;  %v15136_v25 = vld [vmem:[#allocation17_spill] sm:$0xff] }
 0x3cb   : > { %v13154_v28 = vpop.permute.xlu0 %3641  ;;  %v3562_v23 = vmax.f32 %v15136_v25, 0.0  ;;  %v3179_v16 = vpack.c.bf16 %v3171_v24, %v3171_v24 }
 0x3cc   : > { %v4422_v0 = vmax.f32 %v4414_v19, 0.0 }
 0x3cd   : > { %10630 = vset.pattern.permute.xlu0 %v15053_v21 }
 0x3ce   : > { %5366 = vperm.xlu0 %10630, %v13027_v47   ;;  %v4478_v13 = vmul.f32 %v15139_v2, %v4422_v0  ;;  %v15144_v2 = vld [vmem:[#allocation105_spill] sm:$0xff] }
 0x3cf   : > { %3420 = vrot.lane.b32.xlu1 %v3403_v14, %s15098_s28  ;;  %v13176_v14 = vpop.f32.mrf.mxu0 }
 0x3d0   : > { %2751 = vrot.lane.b32.xlu2 %v2734_v48, %s15123_s20  ;;  %v13163_v6 = vpop.permute.xlu1 %4687  ;;  %v6352_v48 = vpop.f32.mrf.mxu2 }
 0x3d1   : > { %15131 = vst [vmem:[#allocation35_spill] sm:$0xff] %v13163_v6  ;;  %v13171_v7 = vpop.permute.xlu2 %6211  ;;  %10606 = vset.pattern.permute.xlu2 %v15052_v18  ;;  %v6376_v6 = vmul.f32 %v13169_v22, %v6352_v48  ;;  %v15137_v48 = vld [vmem:[#allocation103_spill] sm:$0xff] }
 0x3d2   : > { %15133 = vst [vmem:[#allocation95_spill] sm:$0xff] %v13171_v7  ;;  %v3618_v21 = vmul.f32 %v15137_v48, %v3562_v23  ;;  %v2652_v23 = vmul.f32 %v13058_v36, %v15143_v51  ;;  %v15145_v48 = vld [vmem:[#allocation97_spill] sm:$0xff] }
 0x3d3   : > { %v13178_v41 = vpop.permute.xlu0 %4949  ;;  %v6388_v33 = vadd.f32 %v13189_v27, %v6376_v6  ;;  %v6154_v6 = vmul.f32 %v13130_v20, %v6131_v5 }
 0x3d6   : > { %10631 = vset.pattern.permute.xlu0 %v15062_v37  ;;  %v3626_v37 = vpack.c.bf16 %v3618_v21, %v3618_v21  ;;  %v6166_v21 = vadd.f32 %v13140_v10, %v6154_v6 }
 0x3d7   : > { %6253 = vrot.lane.b32.xlu1 %v6237_v42, %s15123_s20  ;;  %5787 = vperm.xlu0 %10631, %v13183_v60   ;;  %v13205_v24 = vpop.f32.mrf.mxu0  ;;  %v6396_v42 = vmax.f32 %v6388_v33, 0.0  ;;  %v15142_v60 = vld [vmem:[#allocation40_spill] sm:$0xff] }
 0x3d8   : > { %3195 = vrot.lane.b32.xlu2 %v3179_v16, %s15095_s2  ;;  %15141 = vst [vmem:[#allocation92_spill] sm:$0xff] %v13205_v24  ;;  %v4644_v31 = vmax.f32 %v15142_v60, 0.0  ;;  %v4486_v16 = vpack.c.bf16 %v4478_v13, %v4478_v13  ;;  %v2664_v13 = vadd.f32 %v13067_v34, %v2652_v23  ;;  %v10718_v34 = vld [vmem:[%s14869_s4] ss:$0 sm:$0xff] }
 0x3d9   : > { %v13198_v7 = vpop.permute.xlu1 %3599  ;;  %v6452_v0 = vmul.f32 %v15144_v2, %v6396_v42 }
 0x3da   : > { %15138 = vst [vmem:[#allocation17_spill] sm:$0xff] %v13198_v7  ;;  %v13201_v25 = vpop.permute.xlu2 %3604  ;;  %v2672_v6 = vmax.f32 %v2664_v13, 0.0 }
 0x3db   : > { %v13203_v19 = vpop.permute.xlu0 %2717  ;;  %v6460_v42 = vpack.c.bf16 %v6452_v0, %v6452_v0  ;;  %v15151_v0 = vld [vmem:[#allocation99_spill] sm:$0xff] }
 0x3dc   : > { %15140 = vst [vmem:[#allocation103_spill] sm:$0xff] %v13203_v19  ;;  %v4700_v19 = vmul.f32 %v15145_v48, %v4644_v31  ;;  %v2728_v2 = vmul.f32 %v12827_v44, %v2672_v6  ;;  %v15150_v48 = vld [vmem:[#allocation70_spill] sm:$0xff] }
 0x3de   : > { %v4708_v31 = vpack.c.bf16 %v4700_v19, %v4700_v19  ;;  %v2736_v24 = vpack.c.bf16 %v2728_v2, %v2728_v2 }
 0x3df   : > { %3643 = vrot.lane.b32.xlu1 %v3626_v37, %s15101_s21  ;;  %5802 = vperm.xlu0 %10631, %v12976_v12   ;;  %v13224_v51 = vpop.f32.mrf.mxu0  ;;  %v10717_v37 = vld [vmem:[%s14961_s29] ss:$0 sm:$0xff]  ;;  %v15149_v12 = vld [vmem:[#allocation22_spill] sm:$0xff] }
 0x3e0   : > { %4503 = vrot.lane.b32.xlu2 %v4486_v16, %s15123_s20  ;;  %15148 = vst [vmem:[#allocation105_spill] sm:$0xff] %v13224_v51  ;;  %v3765_v36 = vmul.f32 %v10717_v37, %v15149_v12  ;;  %v6174_v16 = vmax.f32 %v6166_v21, 0.0  ;;  %v4859_v12 = vadd.f32 %v12876_v45, %v15150_v48  ;;  %v6354_v21 = vpop.f32.mrf.mxu2  ;;  %v15155_v51 = vld [vmem:[#allocation41_spill] sm:$0xff] }
 0x3e2   : > { %v13217_v33 = vpop.permute.xlu1 %4905  ;;  %v3777_v23 = vadd.f32 %v10718_v34, %v3765_v36  ;;  %v6230_v19 = vmul.f32 %v15151_v0, %v6174_v16  ;;  %v4867_v6 = vmax.f32 %v4859_v12, 0.0  ;;  %v6377_v16 = vmul.f32 %v13169_v22, %v6354_v21  ;;  %v13254_v0 = vpop.f32.mrf.mxu1  ;;  %v15159_v12 = vld [vmem:[#allocation104_spill] sm:$0xff] }
 0x3e3   : > { %15146 = vst [vmem:[#allocation40_spill] sm:$0xff] %v13217_v33  ;;  %v13220_v5 = vpop.permute.xlu2 %4910  ;;  %v13222_v60 = vpop.permute.xlu0 %5172  ;;  %v4404_v33 = vmul.f32 %v13091_v62, %v15155_v51  ;;  %v15158_v51 = vld [vmem:[#allocation109_spill] sm:$0xff] }
 0x3e4   : > { %15147 = vst [vmem:[#allocation7_spill] sm:$0xff] %v13220_v5  ;;  %v3785_v36 = vmax.f32 %v3777_v23, 0.0  ;;  %v6238_v48 = vpack.c.bf16 %v6230_v19, %v6230_v19  ;;  %v4923_v19 = vmul.f32 %v15159_v12, %v4867_v6  ;;  %v6389_v21 = vadd.f32 %v13189_v27, %v6377_v16 }
 0x3e5   : > { %15157 = vst [vmem:[#allocation99_spill] sm:$0xff] %v13254_v0  ;;  %v4416_v62 = vadd.f32 %v13106_v26, %v4404_v33 }
 0x3e6   : > { %v3841_v23 = vmul.f32 %v15158_v51, %v3785_v36  ;;  %v4931_v16 = vpack.c.bf16 %v4923_v19, %v4923_v19  ;;  %v6397_v12 = vmax.f32 %v6389_v21, 0.0 }
 0x3e7   : > { %6476 = vrot.lane.b32.xlu1 %v6460_v42, %s15093_s0  ;;  %5807 = vperm.xlu0 %10631, %v12928_v63   ;;  %v13244_v5 = vpop.f32.mrf.mxu0  ;;  %v4424_v51 = vmax.f32 %v4416_v62, 0.0 }
 0x3e8   : > { %4724 = vrot.lane.b32.xlu2 %v4708_v31, %s15093_s0  ;;  %15153 = vst [vmem:[#allocation22_spill] sm:$0xff] %v13244_v5  ;;  %v15154_v31 = vld [vmem:[#allocation27_spill] sm:$0xff]  ;;  %v3849_v33 = vpack.c.bf16 %v3841_v23, %v3841_v23 }
 0x3e9   : > { %v3117_v7 = vmax.f32 %v15154_v31, 0.0  ;;  %v4480_v62 = vmul.f32 %v12863_v11, %v4424_v51  ;;  %v5070_v11 = vmul.f32 %v12898_v3, %v12881_v61 }
 0x3ea   : > { %v6136_v19 = vpop.f32.mrf.mxu1 }
 0x3eb   : > { %v13240_v13 = vpop.permute.xlu1 %6439  ;;  %v13242_v42 = vpop.permute.xlu0 %4087  ;;  %v3173_v2 = vmul.f32 %v12845_v43, %v3117_v7  ;;  %v15162_v7 = vld [vmem:[#allocation20_spill] sm:$0xff] }
 0x3ec   : > { %15152 = vst [vmem:[#allocation97_spill] sm:$0xff] %v13240_v13  ;;  %v13249_v44 = vpop.permute.xlu2 %3822  ;;  %v3764_v6 = vmul.f32 %v10717_v37, %v15162_v7  ;;  %v15166_v7 = vld [vmem:[#allocation44_spill] sm:$0xff] }
 0x3ed   : > { %15156 = vst [vmem:[#allocation70_spill] sm:$0xff] %v13249_v44  ;;  %v3181_v36 = vpack.c.bf16 %v3173_v2, %v3173_v2 }
 0x3ee   : > { %v3776_v2 = vadd.f32 %v10718_v34, %v3764_v6  ;;  %v15170_v6 = vld [vmem:[#allocation110_spill] sm:$0xff] }
 0x3ef   : > { %2722 = vperm.xlu1 %10604, %v13027_v47   ;;  %2755 = vrot.lane.b32.xlu0 %v2736_v24, %s15123_s20  ;;  %v13270_v24 = vld [vmem:[%s14961_s29] ss:$0 sm:$0xff]  ;;  %v13277_v5 = vpop.f32.mrf.mxu0 }
 0x3f0   : > { %6255 = vrot.lane.b32.xlu2 %v6238_v48, %s15123_s20  ;;  %10641 = vset.pattern.permute.xlu0 %v15126_v32  ;;  %v15160_v48 = vld [vmem:[#allocation45_spill] sm:$0xff] }
 0x3f1   : > { %v3988_v26 = vmul.f32 %v13270_v24, %v15160_v48  ;;  %v15164_v48 = vld [vmem:[#allocation106_spill] sm:$0xff] }
 0x3f2   : > { %v6453_v37 = vmul.f32 %v15164_v48, %v6397_v12  ;;  %v15172_v48 = vld [vmem:[#allocation108_spill] sm:$0xff] }
 0x3f3   : > { %v13263_v31 = vpop.permute.xlu0 %5395  ;;  %v4000_v23 = vadd.f32 %v12935_v46, %v3988_v26  ;;  %v13299_v26 = vpop.f32.mrf.mxu2 }
 0x3f4   : > { %v13265_v44 = vpop.permute.xlu1 %3827  ;;  %v6461_v32 = vpack.c.bf16 %v6453_v37, %v6453_v37  ;;  %15168 = vst [vmem:[#allocation104_spill] sm:$0xff] %v13299_v26 }
 0x3f5   : > { %v13274_v43 = vpop.permute.xlu2 %5128  ;;  %v4008_v13 = vmax.f32 %v4000_v23, 0.0  ;;  %v15171_v23 = vld [vmem:[#allocation112_spill] sm:$0xff] }
 0x3f6   : > { %15161 = vst [vmem:[#allocation27_spill] sm:$0xff] %v13274_v43  ;;  %v4646_v43 = vmax.f32 %v15166_v7, 0.0  ;;  %v15174_v7 = vld [vmem:[#allocation78_spill] sm:$0xff] }
 0x3f7   : > { %3866 = vrot.lane.b32.xlu1 %v3849_v33, %s15163_s24  ;;  %3199 = vrot.lane.b32.xlu0 %v3181_v36, %s15095_s2  ;;  %v4488_v33 = vpack.c.bf16 %v4480_v62, %v4480_v62  ;;  %v6156_v36 = vmul.f32 %v13130_v20, %v6136_v19  ;;  %v13302_v51 = vpop.f32.mrf.mxu0  ;;  %v4064_v62 = vmul.f32 %v15171_v23, %v4008_v13 }
 0x3f8   : > { %4947 = vrot.lane.b32.xlu2 %v4931_v16, %s15095_s2  ;;  %10605 = vset.pattern.permute.xlu1 %v15052_v18  ;;  %v10256_v16 = vld [vmem:[%s10983_s26 + $0x338] sm:$0xff]  ;;  %v3784_v18 = vmax.f32 %v3776_v2, 0.0  ;;  %15169 = vst [vmem:[#allocation45_spill] sm:$0xff] %v13302_v51  ;;  %v4702_v12 = vmul.f32 %v15170_v6, %v4646_v43  ;;  %v5082_v2 = vadd.f32 %v12911_v54, %v5070_v11  ;;  %v15176_v11 = vld [vmem:[#allocation74_spill] sm:$0xff] }
 0x3f9   : > { %9357 = vmatmul.msk.bf16.gmra.mxu1 %vm645_vm2, %v10256_v16  ;;  %v6168_v61 = vadd.f32 %v13140_v10, %v6156_v36  ;;  %v4072_v43 = vpack.c.bf16 %v4064_v62, %v4064_v62 }
 0x3fa   : > { %v3840_v37 = vmul.f32 %v15172_v48, %v3784_v18  ;;  %v4710_v16 = vpack.c.bf16 %v4702_v12, %v4702_v12  ;;  %v5090_v13 = vmax.f32 %v5082_v2, 0.0  ;;  %v10721_v18 = vld [vmem:[%s14961_s29] ss:$0 sm:$0xff] }
 0x3fb   : > { %v13286_v21 = vpop.permute.xlu0 %4469  ;;  %v6176_v6 = vmax.f32 %v6168_v61, 0.0  ;;  %v4210_v48 = vmul.f32 %v10721_v18, %v15176_v11  ;;  %v15178_v61 = vld [vmem:[#allocation101_spill] sm:$0xff] }
 0x3fc   : > { %15165 = vst [vmem:[#allocation41_spill] sm:$0xff] %v13286_v21  ;;  %v3848_v23 = vpack.c.bf16 %v3840_v37, %v3840_v37  ;;  %v10689_v21 = vld [vmem:[%s14869_s4] ss:$0 sm:$0xff]  ;;  %v5146_v2 = vmul.f32 %v15178_v61, %v5090_v13  ;;  %v6359_v37 = vpop.f32.mrf.mxu2 }
 0x3fd   : > { %v13290_v0 = vpop.permute.xlu1 %4045  ;;  %v6232_v62 = vmul.f32 %v12918_v58, %v6176_v6  ;;  %v4222_v11 = vadd.f32 %v10689_v21, %v4210_v48  ;;  %v13349_v58 = vld [vmem:[%s14961_s29] ss:$0 sm:$0xff]  ;;  %v15181_v48 = vld [vmem:[#allocation77_spill] sm:$0xff] }
 0x3fe   : > { %v13295_v34 = vpop.permute.xlu2 %4050  ;;  %v5154_v13 = vpack.c.bf16 %v5146_v2, %v5146_v2  ;;  %v15183_v2 = vld [vmem:[#allocation57_spill] sm:$0xff] }
 0x3ff   : > { %15167 = vst [vmem:[#allocation109_spill] sm:$0xff] %v13295_v34  ;;  %2940 = vperm.xlu1 %10605, %v12928_v63   ;;  %4507 = vrot.lane.b32.xlu0 %v4488_v33, %s15123_s20  ;;  %v6240_v51 = vpack.c.bf16 %v6232_v62, %v6232_v62 }
 0x400   : > { %6478 = vrot.lane.b32.xlu2 %v6461_v32, %s15093_s0  ;;  %v13315_v32 = vld [vmem:[%s14961_s29] ss:$0 sm:$0xff] }
 0x401   : > { %v4849_v33 = vmul.f32 %v13315_v32, %v15174_v7  ;;  %v5938_v7 = vpop.f32.mrf.mxu0 }
 0x403   : > { %v4861_v12 = vadd.f32 %v12876_v45, %v4849_v33  ;;  %v15180_v33 = vld [vmem:[#allocation69_spill] sm:$0xff] }
 0x404   : > { %v13310_v19 = vpop.permute.xlu0 %3376  ;;  %v5517_v6 = vmul.f32 %v13349_v58, %v15180_v33 }
 0x405   : > { %15173 = vst [vmem:[#allocation20_spill] sm:$0xff] %v13310_v19  ;;  %v4869_v19 = vmax.f32 %v4861_v12, 0.0  ;;  %v4211_v12 = vmul.f32 %v10721_v18, %v15181_v48  ;;  %v13368_v18 = vld [vmem:[%s14961_s29] ss:$0 sm:$0xff] }
 0x406   : > { %v13319_v36 = vpop.permute.xlu1 %5351  ;;  %15184 = vst [vmem:[#allocation108_spill] sm:$0xff] %v13368_v18 }
 0x407   : > { %15175 = vst [vmem:[#allocation106_spill] sm:$0xff] %v13319_v36  ;;  %v13328_v34 = vpop.permute.xlu2 %5356  ;;  %4089 = vrot.lane.b32.xlu1 %v4072_v43, %s15107_s3  ;;  %4728 = vrot.lane.b32.xlu0 %v4710_v16, %s15093_s0  ;;  %v10262_v36 = vld [vmem:[%s10983_s26 + $0x358] sm:$0xff]  ;;  %v6379_v43 = vmul.f32 %v13169_v22, %v6359_v37  ;;  %v13344_v16 = vld [vmem:[%s14869_s4] ss:$0 sm:$0xff]  ;;  %v4925_v37 = vmul.f32 %v12950_v50, %v4869_v19 }
 0x408   : > { %15177 = vst [vmem:[#allocation44_spill] sm:$0xff] %v13328_v34  ;;  %3864 = vrot.lane.b32.xlu2 %v3848_v23, %s15163_s24  ;;  %10607 = vset.pattern.permute.xlu1 %v15003_v30  ;;  %v4230_v23 = vmax.f32 %v4222_v11, 0.0  ;;  %v5529_v11 = vadd.f32 %v13344_v16, %v5517_v6  ;;  %v4223_v48 = vadd.f32 %v10689_v21, %v4211_v12 }
 0x409   : > { %9385 = vmatmul.msk.bf16.gmra.mxu2 %vm645_vm2, %v10262_v36  ;;  %v5305_v36 = vadd.f32 %v12958_v40, %v15183_v2  ;;  %v4933_v34 = vpack.c.bf16 %v4925_v37, %v4925_v37  ;;  %v5072_v50 = vmul.f32 %v12898_v3, %v13176_v14  ;;  %v5962_v6 = vmul.f32 %v13368_v18, %v5938_v7  ;;  %v15186_v2 = vld [vmem:[#allocation113_spill] sm:$0xff] }
 0x40a   : > { %v4231_v21 = vmax.f32 %v4223_v48, 0.0 }
 0x40b   : > { %v5084_v7 = vadd.f32 %v12911_v54, %v5072_v50 }
 0x40c   : > { %v13339_v26 = vpop.permute.xlu0 %3391 }
 0x40d   : > { %15179 = vst [vmem:[#allocation110_spill] sm:$0xff] %v13339_v26  ;;  %v6391_v26 = vadd.f32 %v13189_v27, %v6379_v43  ;;  %v5313_v43 = vmax.f32 %v5305_v36, 0.0 }
 0x40f   : > { %v13355_v62 = vpop.permute.xlu1 %5579  ;;  %3163 = vperm.xlu1 %10607, %v12928_v63   ;;  %6259 = vrot.lane.b32.xlu0 %v6240_v51, %s15123_s20  ;;  %v5369_v36 = vmul.f32 %v15186_v2, %v5313_v43 }
 0x410   : > { %15182 = vst [vmem:[#allocation112_spill] sm:$0xff] %v13355_v62  ;;  %v4249_v61 = vpop.permute.xlu2 %4248  ;;  %5170 = vrot.lane.b32.xlu2 %v5154_v13, %s15098_s28  ;;  %v5940_v62 = vpop.f32.mrf.mxu0  ;;  %v6399_v13 = vmax.f32 %v6391_v26, 0.0 }
 0x411   : > { %v4286_v33 = vmul.f32 %v4249_v61, %v4230_v23  ;;  %v5537_v23 = vmax.f32 %v5529_v11, 0.0  ;;  %v13379_v61 = vld [vmem:[%s14869_s4] ss:$0 sm:$0xff]  ;;  %v5963_v14 = vmul.f32 %v13368_v18, %v5940_v62  ;;  %v15189_v18 = vld [vmem:[#allocation65_spill] sm:$0xff] }
 0x412   : > { %v6455_v12 = vmul.f32 %v12980_v56, %v6399_v13  ;;  %v5516_v56 = vmul.f32 %v13349_v58, %v15189_v18  ;;  %v15190_v13 = vld [vmem:[#allocation94_spill] sm:$0xff] }
 0x413   : > { %v4294_v51 = vpack.c.bf16 %v4286_v33, %v4286_v33  ;;  %v5975_v62 = vadd.f32 %v13379_v61, %v5963_v14  ;;  %v4854_v50 = vmul.f32 %v13315_v32, %v15190_v13  ;;  %v13408_v14 = vld [vmem:[%s14869_s4] ss:$0 sm:$0xff] }
 0x415   : > { %4302 = vst.msk [vmem:[#allocation2 + $0x8] sm:$0xf] %vm790_vm3, %v4294_v51  ;;  %v13373_v19 = vpop.permute.xlu0 %6216  ;;  %v15188_v51 = vld [vmem:[#allocation51_spill] sm:$0xff] }
 0x416   : > { %15185 = vst [vmem:[#allocation78_spill] sm:$0xff] %v13373_v19  ;;  %v3990_v19 = vmul.f32 %v13270_v24, %v15188_v51  ;;  %v5377_v24 = vpack.c.bf16 %v5369_v36, %v5369_v36  ;;  %v4866_v51 = vadd.f32 %v12876_v45, %v4854_v50  ;;  %v5528_v36 = vadd.f32 %v13344_v16, %v5516_v56 }
 0x417   : > { %10611 = vset.pattern.permute.xlu1 %v15008_v8  ;;  %4951 = vrot.lane.b32.xlu0 %v4933_v34, %s15095_s2  ;;  %v15187_v8 = vld [vmem:[#allocation116_spill] sm:$0xff]  ;;  %v5974_v34 = vadd.f32 %v13379_v61, %v5962_v6 }
 0x418   : > { %2945 = vperm.xlu2 %10606, %v13027_v47   ;;  %v4254_v26 = vpop.permute.xlu1 %4253  ;;  %4474 = vperm.xlu1 %10611, %v13027_v47   ;;  %v5593_v11 = vmul.f32 %v15187_v8, %v5537_v23  ;;  %v15191_v23 = vld [vmem:[#allocation96_spill] sm:$0xff]  ;;  %v5536_v45 = vmax.f32 %v5528_v36, 0.0 }
 0x419   : > { %v4287_v37 = vmul.f32 %v4254_v26, %v4231_v21  ;;  %v13388_v33 = vpop.permute.xlu2 %5797  ;;  %v6463_v21 = vpack.c.bf16 %v6455_v12, %v6455_v12  ;;  %v5092_v26 = vmax.f32 %v5084_v7, 0.0  ;;  %v15192_v6 = vld [vmem:[#allocation100_spill] sm:$0xff]  ;;  %v5982_v18 = vmax.f32 %v5974_v34, 0.0 }
 0x41a   : > { %v5601_v2 = vpack.c.bf16 %v5593_v11, %v5593_v11  ;;  %v5983_v12 = vmax.f32 %v5975_v62, 0.0  ;;  %v4002_v7 = vadd.f32 %v12935_v46, %v3990_v19 }
 0x41b   : > { %v4295_v48 = vpack.c.bf16 %v4287_v37, %v4287_v37  ;;  %v5739_v37 = vmul.f32 %v15192_v6, %v15191_v23  ;;  %v5148_v8 = vmul.f32 %v12991_v29, %v5092_v26  ;;  %v15193_v23 = vld [vmem:[#allocation73_spill] sm:$0xff] }
 0x41c   : > { %v5518_v46 = vmul.f32 %v13349_v58, %v15193_v23  ;;  %v4010_v29 = vmax.f32 %v4002_v7, 0.0  ;;  %v15195_v7 = vld [vmem:[#allocation115_spill] sm:$0xff] }
 0x41d   : > { %4303 = vst.msk [vmem:[#allocation2 + $0x18] sm:$0xf] %vm790_vm3, %v4295_v48  ;;  %v13401_v43 = vpop.permute.xlu0 %6221  ;;  %v5751_v11 = vadd.f32 %v13408_v14, %v5739_v37  ;;  %v5156_v26 = vpack.c.bf16 %v5148_v8, %v5148_v8  ;;  %v5592_v8 = vmul.f32 %v15195_v7, %v5536_v45 }
 0x41f   : > { %6482 = vrot.lane.b32.xlu0 %v6463_v21, %s15093_s0  ;;  %v10248_v21 = vld [vmem:[%s10983_s26 + $0x308] sm:$0xff]  ;;  %v5759_v50 = vmax.f32 %v5751_v11, 0.0  ;;  %v5722_v11 = vpop.f32.mrf.mxu3 }
 0x420   : > { %5393 = vrot.lane.b32.xlu2 %v5377_v24, %s15101_s21  ;;  %5618 = vrot.lane.b32.xlu1 %v5601_v2, %s15163_s24  ;;  %v5530_v24 = vadd.f32 %v13344_v16, %v5518_v46  ;;  %v15194_v2 = vld [vmem:[#allocation117_spill] sm:$0xff]  ;;  %v5600_v46 = vpack.c.bf16 %v5592_v8, %v5592_v8 }
 0x421   : > { %v6001_v48 = vpop.permute.xlu1 %6000  ;;  %10608 = vset.pattern.permute.xlu2 %v15003_v30  ;;  %10614 = vset.pattern.permute.xlu1 %v15020_v57  ;;  %v4874_v30 = vmax.f32 %v4866_v51, 0.0 }
 0x422   : > { %v6038_v34 = vmul.f32 %v6001_v48, %v5982_v18  ;;  %v6006_v62 = vpop.permute.xlu2 %6005  ;;  %9327 = vmatmul.msk.bf16.gmra.mxu0 %vm645_vm2, %v10248_v21  ;;  %v4066_v18 = vmul.f32 %v15194_v2, %v4010_v29  ;;  %v15196_v48 = vld [vmem:[#allocation118_spill] sm:$0xff] }
 0x423   : > { %v6039_v13 = vmul.f32 %v6006_v62, %v5983_v12  ;;  %v5815_v51 = vmul.f32 %v15196_v48, %v5759_v50  ;;  %v5538_v62 = vmax.f32 %v5530_v24, 0.0 }
 0x424   : > { %v6046_v19 = vpack.c.bf16 %v6038_v34, %v6038_v34  ;;  %v5076_v34 = vmul.f32 %v12898_v3, %v13277_v5  ;;  %v4074_v23 = vpack.c.bf16 %v4066_v18, %v4066_v18 }
 0x425   : > { %v6047_v6 = vpack.c.bf16 %v6039_v13, %v6039_v13  ;;  %v13444_v13 = vld [vmem:[%s14961_s29] ss:$0 sm:$0xff]  ;;  %v5594_v29 = vmul.f32 %v13032_v55, %v5538_v62  ;;  %v15201_v62 = vld [vmem:[#allocation119_spill] sm:$0xff] }
 0x426   : > { %6054 = vst.msk [vmem:[#allocation2 + $0xc] sm:$0xf] %vm790_vm3, %v6046_v19  ;;  %v4921_v56 = vpop.permute.xlu0 %4920  ;;  %v5742_v21 = vmul.f32 %v13444_v13, %v5722_v11  ;;  %v5823_v19 = vpack.c.bf16 %v5815_v51, %v5815_v51  ;;  %v5088_v3 = vadd.f32 %v12911_v54, %v5076_v34 }
 0x427   : > { %6055 = vst.msk [vmem:[#allocation2 + $0x1c] sm:$0xf] %vm790_vm3, %v6047_v6  ;;  %v13426_v37 = vmul.f32 %v4921_v56, %v4874_v30  ;;  %5174 = vrot.lane.b32.xlu0 %v5156_v26, %s15098_s28  ;;  %v10249_v6 = vld [vmem:[%s10983_s26 + $0x310] sm:$0xff]  ;;  %v5602_v45 = vpack.c.bf16 %v5594_v29, %v5594_v29 }
 0x428   : > { %3168 = vperm.xlu2 %10608, %v13027_v47   ;;  %4692 = vperm.xlu1 %10614, %v12928_v63   ;;  %v5754_v5 = vadd.f32 %v13408_v14, %v5742_v21  ;;  %v5096_v54 = vmax.f32 %v5088_v3, 0.0  ;;  %v15202_v3 = vld [vmem:[#allocation15_spill] sm:$0xff] }
 0x429   : > { %v2750_v12 = vpop.permute.xlu1 %2749  ;;  %v10295_v29 = vld [vmem:[%s14870_s5 + $0x70] sm:$0xff] }
 0x42a   : > { %2773 = vst.msk [vmem:[#allocation2 + $0x4] sm:$0xf] %vm1014_vm4, %v2750_v12  ;;  %v2752_v36 = vpop.permute.xlu2 %2751  ;;  %v5762_v50 = vmax.f32 %v5754_v5, 0.0  ;;  %v2897_v5 = vmax.f32 %v15202_v3, 0.0 }
 0x42b   : > { %2996 = vst.msk [vmem:[#allocation2 + $0x4] sm:$0xf] %vm1238_vm5, %v13071_v49 }
 0x42c   : > { %2774 = vst.msk [vmem:[#allocation2 + $0x14] sm:$0xf] %vm1014_vm4, %v2752_v36  ;;  %v5818_v24 = vmul.f32 %v13044_v35, %v5762_v50  ;;  %v10306_v35 = vld [vmem:[%s14870_s5 + $0xc8] sm:$0xff] }
 0x42e   : > { %v5826_v8 = vpack.c.bf16 %v5818_v24, %v5818_v24 }
 0x42f   : > { %4093 = vrot.lane.b32.xlu0 %v4074_v23, %s15107_s3  ;;  %v13448_v49 = vpop.permute.xlu0 %5133 }
 0x430   : > { %5616 = vrot.lane.b32.xlu2 %v5600_v46, %s15163_s24  ;;  %5839 = vrot.lane.b32.xlu1 %v5823_v19, %s15107_s3 }
 0x431   : > { %v2975_v26 = vpop.permute.xlu1 %2974  ;;  %10612 = vset.pattern.permute.xlu2 %v15014_v52  ;;  %10616 = vset.pattern.permute.xlu1 %v15010_v39  ;;  %v13470_v39 = vld [vmem:[%s14961_s29] ss:$0 sm:$0xff] }
 0x432   : > { %2997 = vst.msk [vmem:[#allocation2 + $0x14] sm:$0xf] %vm1238_vm5, %v2975_v26  ;;  %v3196_v30 = vpop.permute.xlu2 %3195  ;;  %9328 = vmatmul.msk.bf16.gmra.mxu0 %vm645_vm2, %v10249_v6  ;;  %v5300_v52 = vmul.f32 %v13470_v39, %v13110_v4  ;;  %v10307_v4 = vld [vmem:[%s14870_s5 + $0xd0] sm:$0xff]  ;;  %v2953_v26 = vmul.f32 %v12996_v17, %v2897_v5  ;;  %v10294_v17 = vld [vmem:[%s14870_s5 + $0x68] sm:$0xff] }
 0x433   : > { %3220 = vst.msk [vmem:[#allocation2 + $0x14] sm:$0xf] %vm1462_vm6, %v13085_v15  ;;  %v15197_v15 = vld [vmem:[#allocation98_spill] sm:$0xff]  ;;  %6921 = vmatpush.bf16.msrb.mxu2 %v10307_v4  ;;  %v15205_v4 = vld [vmem:[#allocation145_spill] sm:$0xff] }
 0x434   : > { %3219 = vst.msk [vmem:[#allocation2 + $0x4] sm:$0xf] %vm1462_vm6, %v3196_v30  ;;  %v5740_v55 = vmul.f32 %v13444_v13, %v15197_v15  ;;  %v5312_v7 = vadd.f32 %v12958_v40, %v5300_v52  ;;  %v2961_v52 = vpack.c.bf16 %v2953_v26, %v2953_v26  ;;  %v15211_v26 = vmov 20  }
 0x435   : > { %3442 = vst.msk [vmem:[#allocation2 + $0x4] sm:$0xf] %vm1686_vm7, %v13112_v9 }
 0x436   : > { %3665 = vst.msk [vmem:[#allocation2 + $0x4] sm:$0xf] %vm1910_vm8, %v13154_v28  ;;  %v13481_v28 = vpop.f32.mrf.mxu3  ;;  %v5752_v12 = vadd.f32 %v13408_v14, %v5740_v55  ;;  %v5320_v40 = vmax.f32 %v5312_v7, 0.0 }
 0x437   : > { %5620 = vrot.lane.b32.xlu0 %v5602_v45, %s15163_s24  ;;  %v5139_v56 = vpop.permute.xlu0 %5138  ;;  %6922 = vmatpush.bf16.msrb.mxu2 %v10306_v35 }
 0x438   : > { %3386 = vperm.xlu2 %10612, %v12928_v63   ;;  %6226 = vperm.xlu1 %10616, %v13027_v47   ;;  %v13479_v9 = vmul.f32 %v5139_v56, %v5096_v54  ;;  %v5760_v48 = vmax.f32 %v5752_v12, 0.0  ;;  %v15203_v56 = vld [vmem:[#allocation43_spill] sm:$0xff] }
 0x439   : > { %v4502_v2 = vpop.permute.xlu1 %4501  ;;  %v4425_v24 = vmax.f32 %v15203_v56, 0.0 }
 0x43a   : > { %15198 = vst [vmem:[#allocation74_spill] sm:$0xff] %v13479_v9  ;;  %v4504_v18 = vpop.permute.xlu2 %4503  ;;  %v5816_v21 = vmul.f32 %v15201_v62, %v5760_v48  ;;  %v15268_v9 = vld [vmem:[#allocation135_spill] sm:$0xff] }
 0x43b   : > { %4525 = vst.msk [vmem:[#allocation2 + $0x8] sm:$0xf] %vm1014_vm4, %v4502_v2  ;;  %v15204_v2 = vmov 16  }
 0x43c   : > { %4526 = vst.msk [vmem:[#allocation2 + $0x18] sm:$0xf] %vm1014_vm4, %v4504_v18  ;;  %v5824_v19 = vpack.c.bf16 %v5816_v21, %v5816_v21  ;;  %v4481_v18 = vmul.f32 %v15205_v4, %v4425_v24  ;;  %v10291_v21 = vld [vmem:[%s14870_s5 + $0x50] sm:$0xff]  ;;  %v15213_v4 = vmov 15  }
 0x43d   : > { %4749 = vst.msk [vmem:[#allocation2 + $0x18] sm:$0xf] %vm1238_vm5, %v13132_v53  ;;  %v10305_v53 = vld [vmem:[%s14870_s5 + $0xc0] sm:$0xff] }
 0x43e   : > { %4972 = vst.msk [vmem:[#allocation2 + $0x18] sm:$0xf] %vm1462_vm6, %v13178_v41  ;;  %v5727_v34 = vpop.f32.mrf.mxu3  ;;  %6923 = vmatpush.bf16.msrb.mxu2 %v10305_v53  ;;  %v15206_v53 = vmov 14  }
 0x43f   : > { %5195 = vst.msk [vmem:[#allocation2 + $0x18] sm:$0xf] %vm1686_vm7, %v13222_v60  ;;  %5845 = vrot.lane.b32.xlu0 %v5826_v8, %s15107_s3  ;;  %v5744_v23 = vmul.f32 %v13444_v13, %v5727_v34  ;;  %v6139_v8 = vpop.f32.mrf.mxu1  ;;  %v15207_v34 = vld [vmem:[#allocation63_spill] sm:$0xff] }
 0x440   : > { %5418 = vst.msk [vmem:[#allocation2 + $0x18] sm:$0xf] %vm1910_vm8, %v13263_v31  ;;  %10615 = vset.pattern.permute.xlu2 %v15020_v57  ;;  %10618 = vset.pattern.permute.xlu1 %v15024_v1  ;;  %v5367_v41 = vpop.permute.xlu0 %5366  ;;  %v15200_v31 = vld [vmem:[#allocation102_spill] sm:$0xff]  ;;  %v10296_v57 = vld [vmem:[%s14870_s5 + $0x78] sm:$0xff]  ;;  %v3343_v62 = vmax.f32 %v15207_v34, 0.0 }
 0x441   : > { %4697 = vperm.xlu2 %10615, %v13027_v47   ;;  %v13509_v60 = vmul.f32 %v5367_v41, %v5320_v40  ;;  %v3421_v51 = vpop.permute.xlu1 %3420  ;;  %3614 = vperm.xlu1 %10618, %v13027_v47   ;;  %v5753_v36 = vadd.f32 %v13408_v14, %v15200_v31  ;;  %v10725_v41 = vld [vmem:[%s14958_s1 + $0x30] sm:$0xff]  ;;  %v10250_v31 = vld [vmem:[%s10983_s26 + $0x318] sm:$0xff] }
 0x442   : > { %3443 = vst.msk [vmem:[#allocation2 + $0x14] sm:$0xf] %vm1686_vm7, %v3421_v51  ;;  %v4725_v11 = vpop.permute.xlu2 %4724  ;;  %6858 = vmatpush.bf16.msrb.mxu0 %v10296_v57  ;;  %v6157_v51 = vmul.f32 %v13130_v20, %v6139_v8  ;;  %v15208_v57 = vld [vmem:[#allocation147_spill] sm:$0xff] }
 0x443   : > { %15199 = vst [vmem:[#allocation101_spill] sm:$0xff] %v13509_v60  ;;  %v5761_v46 = vmax.f32 %v5753_v36, 0.0  ;;  %v10292_v36 = vld [vmem:[%s14870_s5 + $0x58] sm:$0xff]  ;;  %9329 = vmatmul.msk.bf16.gmra.mxu0 %vm645_vm2, %v10250_v31  ;;  %vm7903_vm2 = vcmask 519168  }
 0x444   : > { %4748 = vst.msk [vmem:[#allocation2 + $0x8] sm:$0xf] %vm1238_vm5, %v4725_v11  ;;  %v6169_v20 = vadd.f32 %v13140_v10, %v6157_v51  ;;  %v10290_v10 = vld [vmem:[%s14870_s5 + $0x48] sm:$0xff]  ;;  %v10304_v31 = vld [vmem:[%s14870_s5 + $0xb8] sm:$0xff] }
 0x445   : > { %6887 = vmatpush.bf16.msrb.mxu1 %v10304_v31  ;;  %v5993_v31 = vld [vmem:[%s14958_s1 + $0x18] sm:$0xff] }
 0x446   : > { %6859 = vmatpush.bf16.msrb.mxu0 %v10295_v29  ;;  %v5730_v50 = vpop.f32.mrf.mxu3 }
 0x447   : > { %6020 = vperm.xlu0 %10641, %v13004_v59   ;;  %v5756_v59 = vadd.f32 %v13408_v14, %v5744_v23  ;;  %v5745_v15 = vmul.f32 %v13444_v13, %v5730_v50  ;;  %v3399_v23 = vmul.f32 %v15208_v57, %v3343_v62  ;;  %v10303_v62 = vld [vmem:[%s14870_s5 + $0xb0] sm:$0xff]  ;;  %v10302_v57 = vld [vmem:[%s14870_s5 + $0xa8] sm:$0xff] }
 0x449   : > { %5841 = vrot.lane.b32.xlu2 %v5824_v19, %s15107_s3  ;;  %10622 = vset.pattern.permute.xlu1 %v15037_v38  ;;  %v6254_v6 = vpop.permute.xlu1 %6253  ;;  %v5788_v30 = vpop.permute.xlu0 %5787  ;;  %v5764_v55 = vmax.f32 %v5756_v59, 0.0  ;;  %v5757_v35 = vadd.f32 %v13408_v14, %v5745_v15  ;;  %v15212_v59 = vld [vmem:[#allocation95_spill] sm:$0xff] }
 0x44a   : > { %v6256_v54 = vpop.permute.xlu2 %6255  ;;  %6277 = vst.msk [vmem:[#allocation2 + $0xc] sm:$0xf] %vm1014_vm4, %v6254_v6  ;;  %v13530_v45 = vmul.f32 %v5788_v30, %v5761_v46  ;;  %6444 = vperm.xlu1 %10622, %v12928_v63   ;;  %10617 = vset.pattern.permute.xlu2 %v15024_v1  ;;  %v10293_v1 = vld [vmem:[%s14870_s5 + $0x60] sm:$0xff]  ;;  %v15209_v46 = vmov 19   ;;  %v3407_v6 = vpack.c.bf16 %v3399_v23, %v3399_v23  ;;  %v6177_v30 = vmax.f32 %v6169_v20, 0.0 }
 0x44b   : > { %6278 = vst.msk [vmem:[#allocation2 + $0x1c] sm:$0xf] %vm1014_vm4, %v6256_v54  ;;  %6860 = vmatpush.bf16.msrb.mxu0 %v10294_v17  ;;  %v5765_v11 = vmax.f32 %v5757_v35, 0.0  ;;  %v10289_v54 = vld [vmem:[%s14870_s5 + $0x40] sm:$0xff]  ;;  %6888 = vmatpush.bf16.msrb.mxu1 %v10303_v62  ;;  %v15223_v62 = vmov 24  }
 0x44c   : > { %v6233_v17 = vmul.f32 %v15212_v59, %v6177_v30  ;;  %v15217_v23 = vld [vmem:[#allocation32_spill] sm:$0xff]  ;;  %v15220_v59 = vmov 21  }
 0x44d   : > { %v3789_v20 = vmax.f32 %v15217_v23, 0.0  ;;  %v13647_v30 = vld [vmem:[%s14869_s4] ss:$0 sm:$0xff] }
 0x44f   : > { %2982 = vrot.lane.b32.xlu0 %v2961_v52, %s15093_s0  ;;  %6861 = vmatpush.bf16.msrb.mxu0 %v10293_v1  ;;  %v6362_v1 = vpop.f32.mrf.mxu2 }
 0x450   : > { %10643 = vset.pattern.permute.xlu0 %v15204_v2  ;;  %6889 = vmatpush.bf16.msrb.mxu1 %v10302_v57  ;;  %v15225_v57 = vld [vmem:[#allocation44_spill] sm:$0xff] }
 0x451   : > { %3609 = vperm.xlu2 %10617, %v12928_v63   ;;  %v3644_v12 = vpop.permute.xlu1 %3643  ;;  %v5803_v7 = vpop.permute.xlu0 %5802  ;;  %v4489_v63 = vpack.c.bf16 %v4481_v18, %v4481_v18  ;;  %v6241_v18 = vpack.c.bf16 %v6233_v17, %v6233_v17  ;;  %v10300_v17 = vld [vmem:[%s14870_s5 + $0x98] sm:$0xff] }
 0x452   : > { %v4948_v48 = vpop.permute.xlu2 %4947  ;;  %3666 = vst.msk [vmem:[#allocation2 + $0x14] sm:$0xf] %vm1910_vm8, %v3644_v12  ;;  %v13550_v40 = vmul.f32 %v5803_v7, %v5764_v55  ;;  %10624 = vset.pattern.permute.xlu1 %v15206_v53  ;;  %v6380_v12 = vmul.f32 %v13169_v22, %v6362_v1  ;;  %v15214_v7 = vld [vmem:[#allocation25_spill] sm:$0xff]  ;;  %v13609_v22 = vld [vmem:[%s14958_s1 + $0x30] sm:$0xff] }
 0x453   : > { %4971 = vst.msk [vmem:[#allocation2 + $0x8] sm:$0xf] %vm1462_vm6, %v4948_v48  ;;  %3832 = vperm.xlu1 %10624, %v10725_v41   ;;  %6862 = vmatpush.bf16.msrb.mxu0 %v10292_v36  ;;  %v3566_v35 = vmax.f32 %v15214_v7, 0.0 }
 0x454   : > { %v6392_v48 = vadd.f32 %v13189_v27, %v6380_v12  ;;  %v15215_v27 = vmov 22  }
 0x455   : > { %v3622_v8 = vmul.f32 %v13201_v25, %v3566_v35 }
 0x456   : > { %v6400_v51 = vmax.f32 %v6392_v48, 0.0  ;;  %v10299_v48 = vld [vmem:[%s14870_s5 + $0x90] sm:$0xff] }
 0x457   : > { %4509 = vrot.lane.b32.xlu0 %v4489_v63, %s15123_s20  ;;  %6863 = vmatpush.bf16.msrb.mxu0 %v10291_v21  ;;  %v3630_v25 = vpack.c.bf16 %v3622_v8, %v3622_v8 }
 0x459   : > { %10619 = vset.pattern.permute.xlu2 %v15209_v46  ;;  %v6477_v19 = vpop.permute.xlu1 %6476  ;;  %v5808_v3 = vpop.permute.xlu0 %5807  ;;  %v15218_v46 = vld [vmem:[#allocation87_spill] sm:$0xff] }
 0x45a   : > { %v6479_v5 = vpop.permute.xlu2 %6478  ;;  %6500 = vst.msk [vmem:[#allocation2 + $0xc] sm:$0xf] %vm1238_vm5, %v6477_v19  ;;  %4915 = vperm.xlu2 %10619, %v10725_v41   ;;  %v13572_v29 = vmul.f32 %v5808_v3, %v5765_v11  ;;  %v3845_v19 = vmul.f32 %v13265_v44, %v3789_v20 }
 0x45b   : > { %6501 = vst.msk [vmem:[#allocation2 + $0x1c] sm:$0xf] %vm1238_vm5, %v6479_v5  ;;  %10626 = vset.pattern.permute.xlu1 %v15211_v26  ;;  %6864 = vmatpush.bf16.msrb.mxu0 %v10290_v10  ;;  %v15219_v10 = vld [vmem:[#allocation55_spill] sm:$0xff] }
 0x45c   : > { %15210 = vst [vmem:[#allocation69_spill] sm:$0xff] %v13572_v29  ;;  %5143 = vperm.xlu1 %10626, %v13027_v47   ;;  %v3853_v44 = vpack.c.bf16 %v3845_v19, %v3845_v19 }
 0x45f   : > { %3428 = vrot.lane.b32.xlu0 %v3407_v6, %s15098_s28  ;;  %6865 = vmatpush.bf16.msrb.mxu0 %v10289_v54  ;;  %v10301_v6 = vld [vmem:[%s14870_s5 + $0xa0] sm:$0xff]  ;;  %v4003_v54 = vadd.f32 %v13647_v30, %v15219_v10 }
 0x460   : > { %6890 = vmatpush.bf16.msrb.mxu1 %v10301_v6  ;;  %v15226_v6 = vld [vmem:[#allocation120_spill] sm:$0xff] }
 0x461   : > { %v13585_v50 = vpop.permute.xlu1 %2722  ;;  %v2756_v52 = vpop.permute.xlu0 %2755  ;;  %v10266_v15 = vld [vmem:[#allocation2 + $0xc] sm:$0xf] }
 0x462   : > { %v3865_v55 = vpop.permute.xlu2 %3864  ;;  %10623 = vset.pattern.permute.xlu2 %v15037_v38  ;;  %2776 = vst.msk [vmem:[#allocation2 + $0x34] sm:$0xf] %vm1014_vm4, %v2756_v52  ;;  %v9398_v56 = vld [vmem:[#allocation2 + $0x18] sm:$0xf0]  ;;  %v4011_v52 = vmax.f32 %v4003_v54, 0.0 }
 0x463   : > { %3888 = vst.msk [vmem:[#allocation2 + $0x4] sm:$0xf] %vm2134_vm9, %v3865_v55  ;;  %6449 = vperm.xlu2 %10623, %v13027_v47   ;;  %v9401_v24 = vor.u32 %v10266_v15, %v9398_v56  ;;  %v15221_v15 = vld [vmem:[#allocation75_spill] sm:$0xff]  ;;  %v15222_v56 = vmov 23  }
 0x464   : > { %4111 = vst.msk [vmem:[#allocation2 + $0x4] sm:$0xf] %vm2358_vm10, %v13242_v42  ;;  %10628 = vset.pattern.permute.xlu1 %v15213_v4  ;;  %v5298_v55 = vmul.f32 %v13470_v39, %v15221_v15  ;;  %v4067_v1 = vmul.f32 %v13290_v0, %v4011_v52  ;;  %6891 = vmatpush.bf16.msrb.mxu1 %v10300_v17 }
 0x465   : > { %9558 = vmatmul.msk.bf16.vlgmr.msrb.gmra.mxu2 %vm6816_vm11, %v9401_v24  ;;  %4060 = vperm.xlu1 %10628, %v13027_v47   ;;  %v10727_v24 = vld [vmem:[%s14958_s1 + $0x38] sm:$0xff] }
 0x467   : > { %6261 = vrot.lane.b32.xlu0 %v6241_v18, %s15123_s20 }
 0x468   : > { %6892 = vmatpush.bf16.msrb.mxu1 %v10299_v48 }
 0x469   : > { %v3867_v41 = vpop.permute.xlu1 %3866  ;;  %v13601_v42 = vpop.permute.xlu0 %3199 }
 0x46a   : > { %3889 = vst.msk [vmem:[#allocation2 + $0x14] sm:$0xf] %vm2134_vm9, %v3867_v41  ;;  %v5171_v63 = vpop.permute.xlu2 %5170  ;;  %v13677_v41 = vld [vmem:[%s14869_s4] ss:$0 sm:$0xff] }
 0x46b   : > { %5194 = vst.msk [vmem:[#allocation2 + $0x8] sm:$0xf] %vm1686_vm7, %v5171_v63  ;;  %10625 = vset.pattern.permute.xlu2 %v15206_v53  ;;  %v15216_v53 = vld [vmem:[#allocation134_spill] sm:$0xff]  ;;  %v10265_v12 = vld [vmem:[#allocation2 + $0x4] sm:$0xf]  ;;  %v5310_v0 = vadd.f32 %v13677_v41, %v5298_v55  ;;  %v13683_v63 = vld [vmem:[%s14958_s1 + $0x38] sm:$0xff] }
 0x46c   : > { %3837 = vperm.xlu2 %10625, %v13027_v47   ;;  %v6456_v36 = vmul.f32 %v15216_v53, %v6400_v51  ;;  %v4075_v51 = vpack.c.bf16 %v4067_v1, %v4067_v1  ;;  %v10298_v53 = vld [vmem:[%s14870_s5 + $0x88] sm:$0xff] }
 0x46d   : > { %10632 = vset.pattern.permute.xlu1 %v15215_v27  ;;  %6893 = vmatpush.bf16.msrb.mxu1 %v10298_v53 }
 0x46e   : > { %5584 = vperm.xlu1 %10632, %v13609_v22   ;;  %v6464_v21 = vpack.c.bf16 %v6456_v36, %v6456_v36  ;;  %v5318_v36 = vmax.f32 %v5310_v0, 0.0 }
 0x46f   : > { %3651 = vrot.lane.b32.xlu0 %v3630_v25, %s15101_s21  ;;  %v5743_v25 = vmul.f32 %v13444_v13, %v13481_v28  ;;  %v15224_v28 = vld [vmem:[#allocation9_spill] sm:$0xff] }
 0x470   : > { %v5374_v23 = vmul.f32 %v15225_v57, %v5318_v36  ;;  %v15232_v36 = vld [vmem:[#allocation139_spill] sm:$0xff] }
 0x471   : > { %v13619_v11 = vpop.permute.xlu1 %2940  ;;  %v13621_v34 = vpop.permute.xlu0 %4507 }
 0x472   : > { %v13623_v47 = vpop.permute.xlu2 %2945 }
 0x474   : > { %10627 = vset.pattern.permute.xlu2 %v15213_v4 }
 0x475   : > { %4055 = vperm.xlu2 %10627, %v13609_v22  }
 0x476   : > { %10634 = vset.pattern.permute.xlu1 %v15204_v2 }
 0x477   : > { %4258 = vperm.xlu1 %10634, %v15218_v46   ;;  %6484 = vrot.lane.b32.xlu0 %v6464_v21, %s15093_s0  ;;  %v2894_v21 = vmax.f32 %v15224_v28, 0.0 }
 0x479   : > { %v4090_v3 = vpop.permute.xlu1 %4089  ;;  %v13638_v5 = vpop.permute.xlu0 %4728  ;;  %v2950_v10 = vmul.f32 %v15226_v6, %v2894_v21 }
 0x47a   : > { %4112 = vst.msk [vmem:[#allocation2 + $0x14] sm:$0xf] %vm2358_vm10, %v4090_v3  ;;  %v5394_v26 = vpop.permute.xlu2 %5393 }
 0x47b   : > { %5417 = vst.msk [vmem:[#allocation2 + $0x8] sm:$0xf] %vm1910_vm8, %v5394_v26  ;;  %v10297_v26 = vld [vmem:[%s14870_s5 + $0x80] sm:$0xff]  ;;  %v2958_v17 = vpack.c.bf16 %v2950_v10, %v2950_v10 }
 0x47c   : > { %6894 = vmatpush.bf16.msrb.mxu1 %v10297_v26  ;;  %v15234_v26 = vld [vmem:[#allocation47_spill] sm:$0xff] }
 0x47d   : > { %10629 = vset.pattern.permute.xlu2 %v15220_v59  ;;  %v4647_v6 = vmax.f32 %v15234_v26, 0.0  ;;  %v15243_v26 = vld [vmem:[#allocation123_spill] sm:$0xff] }
 0x47e   : > { %5361 = vperm.xlu2 %10629, %v13609_v22  }
 0x47f   : > { %10636 = vset.pattern.permute.xlu1 %v15222_v56  ;;  %3874 = vrot.lane.b32.xlu0 %v3853_v44, %s15163_s24  ;;  %v5382_v44 = vpack.c.bf16 %v5374_v23, %v5374_v23 }
 0x480   : > { %5812 = vperm.xlu1 %10636, %v10727_v24   ;;  %v15228_v24 = vld [vmem:[#allocation107_spill] sm:$0xff] }
 0x481   : > { %v13665_v4 = vpop.permute.xlu1 %3163  ;;  %v13667_v18 = vpop.permute.xlu0 %6259  ;;  %v9390_v7 = vld [vmem:[#allocation2 + $0x10] sm:$0xf0] }
 0x482   : > { %v13669_v35 = vpop.permute.xlu2 %3168  ;;  %v9393_v8 = vor.u32 %v10265_v12, %v9390_v7  ;;  %v15229_v7 = vld [vmem:[#allocation52_spill] sm:$0xff] }
 0x484   : > { %6866 = vmatmul.bf16.vlgmr.msrb.gmra.mxu0 %v9393_v8  ;;  %v3340_v8 = vmax.f32 %v15229_v7, 0.0 }
 0x486   : > { %10633 = vset.pattern.permute.xlu2 %v15215_v27  ;;  %v5755_v27 = vadd.f32 %v13408_v14, %v5743_v25  ;;  %v15227_v14 = vld [vmem:[#allocation30_spill] sm:$0xff] }
 0x487   : > { %5589 = vperm.xlu2 %10633, %v13683_v63   ;;  %4095 = vrot.lane.b32.xlu0 %v4075_v51, %s15107_s3  ;;  %v3118_v59 = vmax.f32 %v15227_v14, 0.0 }
 0x488   : > { %10638 = vset.pattern.permute.xlu1 %v15223_v62  ;;  %v5763_v54 = vmax.f32 %v5755_v27, 0.0  ;;  %v15233_v27 = vld [vmem:[#allocation16_spill] sm:$0xff] }
 0x489   : > { %6015 = vperm.xlu1 %10638, %v5993_v31   ;;  %v13700_v20 = vpop.permute.xlu0 %4951  ;;  %v3174_v1 = vmul.f32 %v15228_v24, %v3118_v59  ;;  %v2898_v57 = vmax.f32 %v15233_v27, 0.0 }
 0x48a   : > { %v5617_v19 = vpop.permute.xlu2 %5616  ;;  %v13702_v3 = vpop.permute.xlu1 %4474  ;;  %v5819_v52 = vmul.f32 %v13388_v33, %v5763_v54  ;;  %v15230_v33 = vld [vmem:[#allocation6_spill] sm:$0xff] }
 0x48b   : > { %5640 = vst.msk [vmem:[#allocation2 + $0x8] sm:$0xf] %vm2134_vm9, %v5617_v19  ;;  %v3182_v48 = vpack.c.bf16 %v3174_v1, %v3174_v1  ;;  %v2671_v0 = vmax.f32 %v15230_v33, 0.0  ;;  %v2954_v54 = vmul.f32 %v13619_v11, %v2898_v57 }
 0x48c   : > { %v5827_v12 = vpack.c.bf16 %v5819_v52, %v5819_v52 }
 0x48d   : > { %v2727_v28 = vmul.f32 %v15232_v36, %v2671_v0  ;;  %v2962_v11 = vpack.c.bf16 %v2954_v54, %v2954_v54 }
 0x48f   : > { %10635 = vset.pattern.permute.xlu2 %v15204_v2  ;;  %5403 = vrot.lane.b32.xlu0 %v5382_v44, %s15101_s21  ;;  %v2735_v19 = vpack.c.bf16 %v2727_v28, %v2727_v28 }
 0x490   : > { %4263 = vperm.xlu2 %10635, %v5993_v31   ;;  %v15231_v31 = vld [vmem:[#allocation124_spill] sm:$0xff] }
 0x491   : > { %2976 = vrot.lane.b32.xlu1 %v2958_v17, %s15093_s0  ;;  %v13714_v15 = vpop.permute.xlu0 %6482  ;;  %v3396_v53 = vmul.f32 %v15231_v31, %v3340_v8  ;;  %v15236_v17 = vld [vmem:[#allocation121_spill] sm:$0xff]  ;;  %v15239_v8 = vld [vmem:[#allocation82_spill] sm:$0xff] }
 0x492   : > { %v13716_v55 = vpop.permute.xlu2 %3386  ;;  %v5619_v56 = vpop.permute.xlu1 %5618  ;;  %10639 = vset.pattern.permute.xlu1 %v15204_v2  ;;  %v15240_v31 = vld [vmem:[#allocation42_spill] sm:$0xff] }
 0x493   : > { %5641 = vst.msk [vmem:[#allocation2 + $0x18] sm:$0xf] %vm2134_vm9, %v5619_v56  ;;  %v3404_v23 = vpack.c.bf16 %v3396_v53, %v3396_v53  ;;  %v15237_v56 = vld [vmem:[#allocation126_spill] sm:$0xff]  ;;  %v3122_v53 = vmax.f32 %v15240_v31, 0.0 }
 0x494   : > { %v4703_v24 = vmul.f32 %v15237_v56, %v4647_v6  ;;  %v15244_v6 = vld [vmem:[#allocation128_spill] sm:$0xff] }
 0x495   : > { %v3178_v28 = vmul.f32 %v13669_v35, %v3122_v53  ;;  %v15248_v53 = vld [vmem:[#allocation125_spill] sm:$0xff] }
 0x496   : > { %v4711_v0 = vpack.c.bf16 %v4703_v24, %v4703_v24  ;;  %v13779_v24 = vld [vmem:[%s14961_s29] ss:$0 sm:$0xff] }
 0x497   : > { %5847 = vrot.lane.b32.xlu0 %v5827_v12, %s15107_s3  ;;  %v15238_v12 = vld [vmem:[#allocation39_spill] sm:$0xff] }
 0x498   : > { %10637 = vset.pattern.permute.xlu2 %v15223_v62  ;;  %v4423_v7 = vmax.f32 %v15238_v12, 0.0  ;;  %v15247_v12 = vld [vmem:[#allocation67_spill] sm:$0xff] }
 0x499   : > { %6010 = vperm.xlu2 %10637, %v15218_v46   ;;  %3201 = vrot.lane.b32.xlu1 %v3182_v48, %s15095_s2  ;;  %v13727_v25 = vpop.permute.xlu0 %5174  ;;  %v15235_v46 = vld [vmem:[#allocation11_spill] sm:$0xff]  ;;  %v4850_v48 = vmul.f32 %v13315_v32, %v15239_v8  ;;  %v3344_v8 = vmax.f32 %v15247_v12, 0.0 }
 0x49a   : > { %v13729_v51 = vpop.permute.xlu1 %4692  ;;  %v2895_v10 = vmax.f32 %v15235_v46, 0.0  ;;  %v4479_v35 = vmul.f32 %v15243_v26, %v4423_v7 }
 0x49b   : > { %v13733_v21 = vpop.permute.xlu2 %4697 }
 0x49c   : > { %v2951_v52 = vmul.f32 %v15236_v17, %v2895_v10  ;;  %v3186_v17 = vpack.c.bf16 %v3178_v28, %v3178_v28  ;;  %v4487_v7 = vpack.c.bf16 %v4479_v35, %v4479_v35 }
 0x49e   : > { %v2959_v33 = vpack.c.bf16 %v2951_v52, %v2951_v52  ;;  %v15245_v52 = vld [vmem:[#allocation56_spill] sm:$0xff] }
 0x49f   : > { %4283 = vperm.xlu0 %10643, %v13683_v63   ;;  %v13744_v59 = vpop.f32.mrf.mxu0  ;;  %v3341_v56 = vmax.f32 %v15245_v52, 0.0 }
 0x4a1   : > { %2753 = vrot.lane.b32.xlu2 %v2735_v19, %s15123_s20  ;;  %3422 = vrot.lane.b32.xlu1 %v3404_v23, %s15098_s28  ;;  %v13742_v44 = vpop.permute.xlu0 %4093  ;;  %v13770_v19 = vld [vmem:[%s14869_s4] ss:$0 sm:$0xff] }
 0x4a2   : > { %v5840_v14 = vpop.permute.xlu1 %5839  ;;  %10640 = vset.pattern.permute.xlu2 %v15204_v2  ;;  %v15241_v2 = vld [vmem:[#allocation19_spill] sm:$0xff] }
 0x4a3   : > { %5863 = vst.msk [vmem:[#allocation2 + $0x8] sm:$0xf] %vm2358_vm10, %v5840_v14  ;;  %v5842_v1 = vpop.permute.xlu2 %5841  ;;  %v3563_v36 = vmax.f32 %v15241_v2, 0.0  ;;  %v3397_v2 = vmul.f32 %v15248_v53, %v3341_v56 }
 0x4a4   : > { %5864 = vst.msk [vmem:[#allocation2 + $0x18] sm:$0xf] %vm2358_vm10, %v5842_v1  ;;  %v15246_v1 = vld [vmem:[#allocation99_spill] sm:$0xff] }
 0x4a5   : > { %v3619_v46 = vmul.f32 %v15244_v6, %v3563_v36  ;;  %v13794_v36 = vld [vmem:[%s14869_s4] ss:$0 sm:$0xff]  ;;  %v3405_v56 = vpack.c.bf16 %v3397_v2, %v3397_v2 }
 0x4a7   : > { %2984 = vrot.lane.b32.xlu0 %v2962_v11, %s15093_s0  ;;  %v13765_v23 = vpop.f32.mrf.mxu0  ;;  %v6155_v11 = vmul.f32 %v13779_v24, %v15246_v1 }
 0x4a8   : > { %10645 = vset.pattern.permute.xlu0 %v15037_v38  ;;  %v4862_v38 = vadd.f32 %v13770_v19, %v4850_v48  ;;  %v3627_v48 = vpack.c.bf16 %v3619_v46, %v3619_v46 }
 0x4a9   : > { %2978 = vrot.lane.b32.xlu2 %v2959_v33, %s15093_s0  ;;  %4730 = vrot.lane.b32.xlu1 %v4711_v0, %s15093_s0  ;;  %v13761_v27 = vpop.permute.xlu0 %5620  ;;  %v3400_v0 = vmul.f32 %v13716_v55, %v3344_v8  ;;  %v6167_v28 = vadd.f32 %v13794_v36, %v6155_v11  ;;  %v15250_v55 = vld [vmem:[#allocation108_spill] sm:$0xff] }
 0x4aa   : > { %v13763_v57 = vpop.permute.xlu1 %6226  ;;  %v9396_v32 = vld [vmem:[#allocation2 + $0x8] sm:$0xf]  ;;  %v4870_v33 = vmax.f32 %v4862_v38, 0.0  ;;  %v13808_v11 = vld [vmem:[%s14961_s29] ss:$0 sm:$0xff] }
 0x4ab   : > { %15242 = vst [vmem:[#allocation77_spill] sm:$0xff] %v13763_v57  ;;  %v3610_v10 = vpop.permute.xlu2 %3609  ;;  %v10268_v54 = vld [vmem:[#allocation2 + $0x14] sm:$0xf0]  ;;  %v15249_v38 = vld [vmem:[#allocation129_spill] sm:$0xff]  ;;  %v3408_v46 = vpack.c.bf16 %v3400_v0, %v3400_v0  ;;  %v6175_v1 = vmax.f32 %v6167_v28, 0.0  ;;  %v15253_v8 = vld [vmem:[#allocation92_spill] sm:$0xff] }
 0x4ac   : > { %v9397_v14 = vor.u32 %v10268_v54, %v9396_v32  ;;  %v4926_v26 = vmul.f32 %v15249_v38, %v4870_v33  ;;  %v15255_v28 = vld [vmem:[#allocation114_spill] sm:$0xff]  ;;  %v15256_v38 = vld [vmem:[#allocation127_spill] sm:$0xff] }
 0x4ae   : > { %6895 = vmatmul.bf16.vlgmr.msrb.gmra.mxu1 %v9397_v14  ;;  %v4934_v12 = vpack.c.bf16 %v4926_v26, %v4926_v26  ;;  %v6231_v26 = vmul.f32 %v15256_v38, %v6175_v1  ;;  %v15262_v38 = vld [vmem:[#allocation111_spill] sm:$0xff] }
 0x4af   : > { %3209 = vrot.lane.b32.xlu0 %v3186_v17, %s15095_s2  ;;  %v5948_v32 = vpop.f32.mrf.mxu0  ;;  %v15252_v17 = vld [vmem:[#allocation24_spill] sm:$0xff] }
 0x4b0   : > { %v5966_v6 = vmul.f32 %v15250_v55, %v5948_v32  ;;  %v3786_v52 = vmax.f32 %v15252_v17, 0.0  ;;  %v13822_v55 = vld [vmem:[%s14869_s4] ss:$0 sm:$0xff]  ;;  %v6239_v1 = vpack.c.bf16 %v6231_v26, %v6231_v26 }
 0x4b1   : > { %4505 = vrot.lane.b32.xlu2 %v4487_v7, %s15123_s20  ;;  %3645 = vrot.lane.b32.xlu1 %v3627_v48, %s15101_s21  ;;  %v13788_v31 = vpop.permute.xlu0 %5845  ;;  %v5073_v7 = vmul.f32 %v13808_v11, %v15253_v8  ;;  %v15254_v48 = vld [vmem:[#allocation61_spill] sm:$0xff] }
 0x4b2   : > { %v5978_v14 = vadd.f32 %v13379_v61, %v5966_v6  ;;  %v4651_v33 = vmax.f32 %v15254_v48, 0.0  ;;  %v3842_v32 = vmul.f32 %v15255_v28, %v3786_v52  ;;  %v15259_v8 = vld [vmem:[#allocation21_spill] sm:$0xff]  ;;  %v15261_v28 = vld [vmem:[#allocation64_spill] sm:$0xff] }
 0x4b3   : > { %v13798_v35 = vpop.permute.xlu1 %3614  ;;  %v5085_v6 = vadd.f32 %v13822_v55, %v5073_v7  ;;  %v3564_v48 = vmax.f32 %v15259_v8, 0.0  ;;  %v15260_v7 = vld [vmem:[#allocation104_spill] sm:$0xff] }
 0x4b4   : > { %v13801_v54 = vpop.permute.xlu2 %4915  ;;  %v5986_v0 = vmax.f32 %v5978_v14, 0.0  ;;  %v4707_v61 = vmul.f32 %v13733_v21, %v4651_v33  ;;  %v3850_v52 = vpack.c.bf16 %v3842_v32, %v3842_v32  ;;  %v13835_v33 = vld [vmem:[%s14961_s29] ss:$0 sm:$0xff]  ;;  %v5307_v32 = vadd.f32 %v13677_v41, %v15261_v28 }
 0x4b5   : > { %15251 = vst [vmem:[#allocation57_spill] sm:$0xff] %v13801_v54  ;;  %v3620_v26 = vmul.f32 %v15262_v38, %v3564_v48  ;;  %v15267_v38 = vld [vmem:[#allocation130_spill] sm:$0xff] }
 0x4b6   : > { %v4715_v14 = vpack.c.bf16 %v4707_v61, %v4707_v61  ;;  %v5315_v8 = vmax.f32 %v5307_v32, 0.0 }
 0x4b7   : > { %3430 = vrot.lane.b32.xlu0 %v3408_v46, %s15098_s28  ;;  %v3628_v28 = vpack.c.bf16 %v3620_v26, %v3620_v26  ;;  %v15269_v26 = vld [vmem:[#allocation45_spill] sm:$0xff] }
 0x4b9   : > { %3424 = vrot.lane.b32.xlu2 %v3405_v56, %s15098_s28  ;;  %4953 = vrot.lane.b32.xlu1 %v4934_v12, %s15095_s2  ;;  %v6021_v53 = vpop.permute.xlu0 %6020  ;;  %v15258_v56 = vld [vmem:[#allocation28_spill] sm:$0xff] }
 0x4ba   : > { %v6042_v2 = vmul.f32 %v6021_v53, %v5986_v0  ;;  %v3567_v12 = vmax.f32 %v15258_v56, 0.0  ;;  %v6378_v0 = vmul.f32 %v13835_v33, %v15260_v7  ;;  %v5093_v53 = vmax.f32 %v5085_v6, 0.0 }
 0x4bc   : > { %v13825_v46 = vpop.permute.xlu1 %6444  ;;  %v6050_v21 = vpack.c.bf16 %v6042_v2, %v6042_v2  ;;  %v3623_v61 = vmul.f32 %v3610_v10, %v3567_v12 }
 0x4bd   : > { %v13827_v17 = vpop.permute.xlu2 %6449 }
 0x4be   : > { %15257 = vst [vmem:[#allocation113_spill] sm:$0xff] %v13827_v17  ;;  %v3631_v56 = vpack.c.bf16 %v3623_v61, %v3623_v61 }
 0x4bf   : > { %6058 = vst.msk [vmem:[#allocation2 + $0x4c] sm:$0xf] %vm790_vm3, %v6050_v21  ;;  %4738 = vrot.lane.b32.xlu0 %v4715_v14, %s15093_s0  ;;  %v13850_v21 = vld [vmem:[%s14869_s4] ss:$0 sm:$0xff] }
 0x4c0   : > { %v6390_v6 = vadd.f32 %v13850_v21, %v6378_v0  ;;  %v15263_v14 = vld [vmem:[#allocation132_spill] sm:$0xff] }
 0x4c1   : > { %6257 = vrot.lane.b32.xlu2 %v6239_v1, %s15123_s20  ;;  %3868 = vrot.lane.b32.xlu1 %v3850_v52, %s15163_s24  ;;  %v13842_v2 = vpop.permute.xlu0 %2982  ;;  %v5149_v10 = vmul.f32 %v15263_v14, %v5093_v53  ;;  %v15265_v1 = vld [vmem:[#allocation76_spill] sm:$0xff]  ;;  %v15266_v53 = vld [vmem:[#allocation62_spill] sm:$0xff] }
 0x4c2   : > { %v5519_v7 = vmul.f32 %v13349_v58, %v15265_v1  ;;  %v6398_v29 = vmax.f32 %v6390_v6, 0.0  ;;  %v4005_v61 = vadd.f32 %v13647_v30, %v15266_v53  ;;  %v5371_v58 = vmul.f32 %v15268_v9, %v5315_v8  ;;  %v15270_v1 = vld [vmem:[#allocation66_spill] sm:$0xff] }
 0x4c3   : > { %v5157_v48 = vpack.c.bf16 %v5149_v10, %v5149_v10  ;;  %v5077_v6 = vmul.f32 %v13808_v11, %v15269_v26  ;;  %v4938_v10 = vpack.c.bf16 %v13426_v37, %v13426_v37  ;;  %v15273_v37 = vld [vmem:[#allocation26_spill] sm:$0xff] }
 0x4c4   : > { %v5531_v32 = vadd.f32 %v13344_v16, %v5519_v7  ;;  %v6454_v14 = vmul.f32 %v15267_v38, %v6398_v29  ;;  %v4013_v16 = vmax.f32 %v4005_v61, 0.0  ;;  %v15271_v7 = vld [vmem:[#allocation34_spill] sm:$0xff]  ;;  %v5379_v9 = vpack.c.bf16 %v5371_v58, %v5371_v58  ;;  %v15274_v58 = vld [vmem:[#allocation48_spill] sm:$0xff] }
 0x4c5   : > { %v3833_v12 = vpop.permute.xlu1 %3832  ;;  %v3790_v29 = vmax.f32 %v15271_v7, 0.0  ;;  %v3787_v60 = vmax.f32 %v15273_v37, 0.0  ;;  %v5089_v54 = vadd.f32 %v13822_v55, %v5077_v6  ;;  %v15277_v6 = vld [vmem:[#allocation68_spill] sm:$0xff] }
 0x4c6   : > { %v13854_v52 = vpop.permute.xlu2 %3837  ;;  %v6462_v53 = vpack.c.bf16 %v6454_v14, %v6454_v14  ;;  %v5539_v8 = vmax.f32 %v5531_v32, 0.0  ;;  %v4001_v32 = vadd.f32 %v13647_v30, %v15274_v58 }
 0x4c7   : > { %15264 = vst [vmem:[#allocation116_spill] sm:$0xff] %v13854_v52  ;;  %3653 = vrot.lane.b32.xlu0 %v3631_v56, %s15101_s21  ;;  %v13875_v56 = vld [vmem:[%s14961_s29] ss:$0 sm:$0xff]  ;;  %v3846_v17 = vmul.f32 %v3833_v12, %v3790_v29  ;;  %v5097_v37 = vmax.f32 %v5089_v54, 0.0 }
 0x4c8   : > { %v4009_v29 = vmax.f32 %v4001_v32, 0.0 }
 0x4c9   : > { %3647 = vrot.lane.b32.xlu2 %v3628_v28, %s15101_s21  ;;  %5176 = vrot.lane.b32.xlu1 %v5157_v48, %s15098_s28  ;;  %v13861_v0 = vpop.permute.xlu0 %4509  ;;  %v3994_v28 = vmul.f32 %v13875_v56, %v15270_v1  ;;  %v15275_v1 = vld [vmem:[#allocation131_spill] sm:$0xff] }
 0x4cb   : > { %v4006_v14 = vadd.f32 %v13647_v30, %v3994_v28 }
 0x4cd   : > { %v4014_v12 = vmax.f32 %v4006_v14, 0.0  ;;  %v15281_v14 = vld [vmem:[#allocation133_spill] sm:$0xff] }
 0x4ce   : > { %v5144_v48 = vpop.permute.xlu1 %5143 }
 0x4cf   : > { %v4056_v38 = vpop.permute.xlu2 %4055  ;;  %4961 = vrot.lane.b32.xlu0 %v4938_v10, %s15095_s2  ;;  %v3843_v10 = vmul.f32 %v15275_v1, %v3787_v60  ;;  %v5153_v58 = vmul.f32 %v5144_v48, %v5097_v37  ;;  %v13916_v1 = vld [vmem:[%s14961_s29] ss:$0 sm:$0xff] }
 0x4d0   : > { %v13881_v26 = vmul.f32 %v4056_v38, %v4013_v16  ;;  %v15276_v16 = vld [vmem:[#allocation138_spill] sm:$0xff]  ;;  %v3854_v38 = vpack.c.bf16 %v3846_v17, %v3846_v17  ;;  %v15279_v17 = vld [vmem:[#allocation79_spill] sm:$0xff] }
 0x4d1   : > { %6480 = vrot.lane.b32.xlu2 %v6462_v53, %s15093_s0  ;;  %5397 = vrot.lane.b32.xlu1 %v5379_v9, %s15101_s21  ;;  %v13887_v61 = vpop.permute.xlu0 %3428  ;;  %v5595_v7 = vmul.f32 %v15276_v16, %v5539_v8  ;;  %v5296_v53 = vmul.f32 %v13470_v39, %v15277_v6  ;;  %v5311_v39 = vadd.f32 %v13677_v41, %v15279_v17  ;;  %v13908_v8 = vld [vmem:[%s14869_s4] ss:$0 sm:$0xff] }
 0x4d2   : > { %15272 = vst [vmem:[#allocation51_spill] sm:$0xff] %v13881_v26  ;;  %v3851_v26 = vpack.c.bf16 %v3843_v10, %v3843_v10  ;;  %v5161_v32 = vpack.c.bf16 %v5153_v58, %v5153_v58  ;;  %v15282_v10 = vld [vmem:[#allocation149_spill] sm:$0xff] }
 0x4d3   : > { %v5603_v9 = vpack.c.bf16 %v5595_v7, %v5595_v7  ;;  %v5308_v54 = vadd.f32 %v13677_v41, %v5296_v53  ;;  %v5523_v16 = vmul.f32 %v13916_v1, %v15282_v10  ;;  %v4242_v7 = vld [vmem:[%s14958_s1 + $0x20] sm:$0xff] }
 0x4d4   : > { %v13927_v53 = vld [vmem:[%s14961_s29] ss:$0 sm:$0xff] }
 0x4d5   : > { %v5316_v37 = vmax.f32 %v5308_v54, 0.0 }
 0x4d7   : > { %v4061_v52 = vpop.permute.xlu1 %4060  ;;  %3876 = vrot.lane.b32.xlu0 %v3854_v38, %s15163_s24 }
 0x4d8   : > { %v13897_v28 = vmul.f32 %v4061_v52, %v4014_v12  ;;  %v5362_v57 = vpop.permute.xlu2 %5361  ;;  %v15280_v52 = vld [vmem:[#allocation86_spill] sm:$0xff]  ;;  %v5319_v12 = vmax.f32 %v5311_v39, 0.0  ;;  %v15285_v39 = vld [vmem:[#allocation136_spill] sm:$0xff] }
 0x4d9   : > { %3870 = vrot.lane.b32.xlu2 %v3851_v26, %s15163_s24  ;;  %5622 = vrot.lane.b32.xlu1 %v5603_v9, %s15163_s24  ;;  %v6262_v60 = vpop.permute.xlu0 %6261  ;;  %v5534_v48 = vadd.f32 %v13908_v8, %v15280_v52  ;;  %v4065_v26 = vmul.f32 %v15281_v14, %v4009_v29  ;;  %v15283_v9 = vld [vmem:[#allocation84_spill] sm:$0xff]  ;;  %v5535_v14 = vadd.f32 %v13908_v8, %v5523_v16  ;;  %v5995_v16 = vld [vmem:[%s14958_s1 + $0x28] sm:$0xff] }
 0x4da   : > { %15278 = vst [vmem:[#allocation65_spill] sm:$0xff] %v13897_v28  ;;  %v4213_v58 = vmul.f32 %v13927_v53, %v15283_v9  ;;  %v13956_v9 = vld [vmem:[%s14961_s29] ss:$0 sm:$0xff] }
 0x4db   : > { %6281 = vst.msk [vmem:[#allocation2 + $0x4c] sm:$0xf] %vm1014_vm4, %v6262_v60  ;;  %v4073_v38 = vpack.c.bf16 %v4065_v26, %v4065_v26  ;;  %v5542_v6 = vmax.f32 %v5534_v48, 0.0  ;;  %v5375_v60 = vmul.f32 %v5362_v57, %v5319_v12  ;;  %v5372_v48 = vmul.f32 %v15285_v39, %v5316_v37  ;;  %v13938_v26 = vpop.f32.mrf.mxu0  ;;  %v15286_v57 = vld [vmem:[#allocation81_spill] sm:$0xff] }
 0x4dc   : > { %v5543_v37 = vmax.f32 %v5535_v14, 0.0 }
 0x4dd   : > { %v5383_v12 = vpack.c.bf16 %v5375_v60, %v5375_v60  ;;  %v5964_v60 = vmul.f32 %v13956_v9, %v13744_v59  ;;  %v10742_v59 = vld [vmem:[%s14869_s4] ss:$0 sm:$0xff] }
 0x4df   : > { %5184 = vrot.lane.b32.xlu0 %v5161_v32, %s15098_s28  ;;  %v13943_v32 = vld [vmem:[%s14869_s4] ss:$0 sm:$0xff] }
 0x4e0   : > { %v5585_v29 = vpop.permute.xlu1 %5584  ;;  %v4224_v10 = vadd.f32 %v13943_v32, %v15286_v57  ;;  %v15287_v57 = vld [vmem:[#allocation10_spill] sm:$0xff] }
 0x4e1   : > { %v13931_v17 = vmul.f32 %v5585_v29, %v5542_v6  ;;  %v5590_v52 = vpop.permute.xlu2 %5589  ;;  %4091 = vrot.lane.b32.xlu2 %v4073_v38, %s15107_s3  ;;  %4268 = vperm.xlu1 %10639, %v4242_v7   ;;  %v13934_v54 = vpop.permute.xlu0 %3651  ;;  %v4225_v38 = vadd.f32 %v13943_v32, %v4213_v58  ;;  %v5380_v29 = vpack.c.bf16 %v5372_v48, %v5372_v48 }
 0x4e2   : > { %v5732_v7 = vpop.f32.mrf.mxu3  ;;  %v4232_v58 = vmax.f32 %v4224_v10, 0.0  ;;  %v5599_v39 = vmul.f32 %v5590_v52, %v5543_v37  ;;  %v15288_v10 = vld [vmem:[#allocation141_spill] sm:$0xff] }
 0x4e3   : > { %15284 = vst [vmem:[#allocation94_spill] sm:$0xff] %v13931_v17  ;;  %v5746_v6 = vmul.f32 %v13444_v13, %v5732_v7  ;;  %v4233_v48 = vmax.f32 %v4225_v38, 0.0  ;;  %v13971_v38 = vld [vmem:[%s14869_s4] ss:$0 sm:$0xff] }
 0x4e4   : > { %v5976_v37 = vadd.f32 %v13971_v38, %v5964_v60 }
 0x4e5   : > { %v5758_v52 = vadd.f32 %v10742_v59, %v5746_v6 }
 0x4e7   : > { %5405 = vrot.lane.b32.xlu0 %v5383_v12, %s15101_s21  ;;  %v2674_v12 = vmax.f32 %v15287_v57, 0.0  ;;  %v5766_v6 = vmax.f32 %v5758_v52, 0.0 }
 0x4e9   : > { %5399 = vrot.lane.b32.xlu2 %v5380_v29, %s15101_s21  ;;  %v4259_v13 = vpop.permute.xlu1 %4258  ;;  %10642 = vset.pattern.permute.xlu1 %v15223_v62  ;;  %v6485_v14 = vpop.permute.xlu0 %6484  ;;  %v2730_v29 = vmul.f32 %v15288_v10, %v2674_v12  ;;  %v5965_v12 = vmul.f32 %v13956_v9, %v13765_v23  ;;  %v15292_v10 = vld [vmem:[#allocation143_spill] sm:$0xff] }
 0x4ea   : > { %v4288_v7 = vmul.f32 %v4259_v13, %v4232_v58  ;;  %v4264_v17 = vpop.permute.xlu2 %4263  ;;  %6504 = vst.msk [vmem:[#allocation2 + $0x4c] sm:$0xf] %vm1238_vm5, %v6485_v14  ;;  %6025 = vperm.xlu1 %10642, %v5995_v16   ;;  %v5607_v13 = vpack.c.bf16 %v5599_v39, %v5599_v39  ;;  %v13974_v14 = vpop.f32.mrf.mxu0  ;;  %v15290_v39 = vld [vmem:[#allocation33_spill] sm:$0xff] }
 0x4eb   : > { %v4289_v28 = vmul.f32 %v4264_v17, %v4233_v48  ;;  %15289 = vst [vmem:[#allocation96_spill] sm:$0xff] %v13974_v14  ;;  %v5825_v17 = vpack.c.bf16 %v13530_v45, %v13530_v45  ;;  %v2738_v48 = vpack.c.bf16 %v2730_v29, %v2730_v29  ;;  %v5977_v23 = vadd.f32 %v13971_v38, %v5965_v12 }
 0x4ec   : > { %v4296_v58 = vpack.c.bf16 %v4288_v7, %v4288_v7  ;;  %v3119_v7 = vmax.f32 %v15290_v39, 0.0 }
 0x4ed   : > { %v4297_v57 = vpack.c.bf16 %v4289_v28, %v4289_v28  ;;  %v5984_v28 = vmax.f32 %v5976_v37, 0.0 }
 0x4ee   : > { %4304 = vst.msk [vmem:[#allocation2 + $0x28] sm:$0xf] %vm790_vm3, %v4296_v58  ;;  %v3175_v29 = vmul.f32 %v15292_v10, %v3119_v7  ;;  %v15295_v7 = vld [vmem:[#allocation140_spill] sm:$0xff] }
 0x4ef   : > { %4305 = vst.msk [vmem:[#allocation2 + $0x38] sm:$0xf] %vm790_vm3, %v4297_v57  ;;  %5630 = vrot.lane.b32.xlu0 %v5607_v13, %s15163_s24  ;;  %v5985_v57 = vmax.f32 %v5977_v23, 0.0 }
 0x4f0   : > { %4528 = vst.msk [vmem:[#allocation2 + $0x38] sm:$0xf] %vm1014_vm4, %v13621_v34  ;;  %v3183_v37 = vpack.c.bf16 %v3175_v29, %v3175_v29 }
 0x4f1   : > { %5843 = vrot.lane.b32.xlu2 %v5825_v17, %s15107_s3  ;;  %v13986_v60 = vpop.permute.xlu0 %3874  ;;  %v15293_v17 = vld [vmem:[#allocation8_spill] sm:$0xff] }
 0x4f2   : > { %v5813_v45 = vpop.permute.xlu1 %5812  ;;  %2759 = vrot.lane.b32.xlu1 %v2738_v48, %s15123_s20  ;;  %v13994_v34 = vpop.f32.mrf.mxu0  ;;  %v2673_v39 = vmax.f32 %v15293_v17, 0.0 }
 0x4f3   : > { %v13990_v59 = vmul.f32 %v5813_v45, %v5766_v6  ;;  %v6011_v52 = vpop.permute.xlu2 %6010  ;;  %v15294_v6 = vld [vmem:[#allocation46_spill] sm:$0xff]  ;;  %v6838_v17 = vpop.f32.mrf.mxu3 }
 0x4f4   : > { %v6040_v58 = vmul.f32 %v6011_v52, %v5984_v28  ;;  %v4426_v48 = vmax.f32 %v15294_v6, 0.0  ;;  %v2729_v45 = vmul.f32 %v15295_v7, %v2673_v39  ;;  %v15296_v52 = vld [vmem:[#allocation146_spill] sm:$0xff]  ;;  %v15297_v6 = vld [vmem:[#allocation13_spill] sm:$0xff] }
 0x4f5   : > { %15291 = vst [vmem:[#allocation100_spill] sm:$0xff] %v13990_v59 }
 0x4f6   : > { %v6048_v13 = vpack.c.bf16 %v6040_v58, %v6040_v58  ;;  %v4482_v10 = vmul.f32 %v15296_v52, %v4426_v48  ;;  %v2737_v23 = vpack.c.bf16 %v2729_v45, %v2729_v45 }
 0x4f8   : > { %6056 = vst.msk [vmem:[#allocation2 + $0x2c] sm:$0xf] %vm790_vm3, %v6048_v13  ;;  %v6141_v13 = vpop.f32.mrf.mxu1 }
 0x4f9   : > { %4273 = vperm.xlu2 %10640, %v5995_v16   ;;  %v13998_v14 = vpop.permute.xlu0 %4095  ;;  %v4490_v16 = vpack.c.bf16 %v4482_v10, %v4482_v10  ;;  %v6158_v59 = vmul.f32 %v13779_v24, %v6141_v13 }
 0x4fa   : > { %3203 = vrot.lane.b32.xlu1 %v3183_v37, %s15095_s2  ;;  %v2896_v37 = vmax.f32 %v15297_v6, 0.0  ;;  %v15302_v6 = vld [vmem:[#allocation36_spill] sm:$0xff] }
 0x4fb   : > { %v2754_v12 = vpop.permute.xlu2 %2753  ;;  %v6016_v28 = vpop.permute.xlu1 %6015 }
 0x4fc   : > { %2775 = vst.msk [vmem:[#allocation2 + $0x24] sm:$0xf] %vm1014_vm4, %v2754_v12  ;;  %v6041_v29 = vmul.f32 %v6016_v28, %v5985_v57  ;;  %v15298_v57 = vld [vmem:[#allocation50_spill] sm:$0xff] }
 0x4fd   : > { %v4648_v7 = vmax.f32 %v15298_v57, 0.0  ;;  %v15299_v12 = vld [vmem:[#allocation142_spill] sm:$0xff] }
 0x4fe   : > { %v6049_v58 = vpack.c.bf16 %v6041_v29, %v6041_v29  ;;  %v2952_v28 = vmul.f32 %v15299_v12, %v2896_v37  ;;  %v15300_v29 = vld [vmem:[#allocation148_spill] sm:$0xff]  ;;  %v3120_v37 = vmax.f32 %v15302_v6, 0.0 }
 0x4ff   : > { %v15306_v6 = vld [vmem:[#allocation60_spill] sm:$0xff] }
 0x500   : > { %6057 = vst.msk [vmem:[#allocation2 + $0x3c] sm:$0xf] %vm790_vm3, %v6049_v58  ;;  %v6170_v58 = vadd.f32 %v13794_v36, %v6158_v59  ;;  %v15303_v59 = vld [vmem:[#allocation144_spill] sm:$0xff] }
 0x501   : > { %6280 = vst.msk [vmem:[#allocation2 + $0x3c] sm:$0xf] %vm1014_vm4, %v13667_v18  ;;  %2757 = vrot.lane.b32.xlu2 %v2737_v23, %s15123_s20  ;;  %v6867_v39 = vpop.f32.mrf.mxu0  ;;  %v14011_v48 = vpop.permute.xlu0 %5403  ;;  %v4704_v18 = vmul.f32 %v15300_v29, %v4648_v7  ;;  %v15301_v23 = vld [vmem:[#allocation122_spill] sm:$0xff]  ;;  %v3176_v57 = vmul.f32 %v15303_v59, %v3120_v37 }
 0x502   : > { %6503 = vst.msk [vmem:[#allocation2 + $0x3c] sm:$0xf] %vm1238_vm5, %v13714_v15  ;;  %v14016_v45 = vadd.f32 %v6867_v39, %v6838_v17  ;;  %4511 = vrot.lane.b32.xlu1 %v4490_v16, %s15123_s20  ;;  %v2960_v15 = vpack.c.bf16 %v2952_v28, %v2952_v28  ;;  %v4217_v13 = vmul.f32 %v13927_v53, %v15301_v23  ;;  %v6178_v16 = vmax.f32 %v6170_v58, 0.0  ;;  %v15305_v28 = vld [vmem:[#allocation78_spill] sm:$0xff] }
 0x503   : > { %v2979_v52 = vpop.permute.xlu2 %2978  ;;  %v2977_v10 = vpop.permute.xlu1 %2976  ;;  %v4712_v17 = vpack.c.bf16 %v4704_v18, %v4704_v18  ;;  %v3184_v58 = vpack.c.bf16 %v3176_v57, %v3176_v57 }
 0x504   : > { %2999 = vst.msk [vmem:[#allocation2 + $0x34] sm:$0xf] %vm1238_vm5, %v2979_v52  ;;  %v15304_v52 = vld [vmem:[#allocation85_spill] sm:$0xff]  ;;  %v4229_v29 = vadd.f32 %v13943_v32, %v4217_v13  ;;  %v6364_v18 = vpop.f32.mrf.mxu2  ;;  %v3342_v13 = vmax.f32 %v15306_v6, 0.0 }
 0x505   : > { %2998 = vst.msk [vmem:[#allocation2 + $0x24] sm:$0xf] %vm1238_vm5, %v2977_v10  ;;  %v6234_v10 = vmul.f32 %v15305_v28, %v6178_v16  ;;  %v6381_v23 = vmul.f32 %v13835_v33, %v6364_v18  ;;  %v15309_v18 = vld [vmem:[#allocation105_spill] sm:$0xff] }
 0x506   : > { %3221 = vst.msk [vmem:[#allocation2 + $0x24] sm:$0xf] %vm1462_vm6, %v13601_v42  ;;  %v4863_v42 = vadd.f32 %v13770_v19, %v15304_v52  ;;  %v4237_v16 = vmax.f32 %v4229_v29, 0.0 }
 0x509   : > { %2980 = vrot.lane.b32.xlu2 %v2960_v15, %s15093_s0  ;;  %v14030_v39 = vpop.permute.xlu0 %5847  ;;  %v4871_v15 = vmax.f32 %v4863_v42, 0.0  ;;  %v6393_v42 = vadd.f32 %v13850_v21, %v6381_v23  ;;  %v15311_v23 = vld [vmem:[#allocation35_spill] sm:$0xff] }
 0x50a   : > { %4732 = vrot.lane.b32.xlu1 %v4712_v17, %s15093_s0  ;;  %v6242_v17 = vpack.c.bf16 %v6234_v10, %v6234_v10 }
 0x50b   : > { %v4506_v7 = vpop.permute.xlu2 %4505  ;;  %v3202_v12 = vpop.permute.xlu1 %3201  ;;  %v6401_v29 = vmax.f32 %v6393_v42, 0.0 }
 0x50c   : > { %4527 = vst.msk [vmem:[#allocation2 + $0x28] sm:$0xf] %vm1014_vm4, %v4506_v7 }
 0x50d   : > { %4750 = vst.msk [vmem:[#allocation2 + $0x28] sm:$0xf] %vm1238_vm5, %v13638_v5 }
 0x50e   : > { %4973 = vst.msk [vmem:[#allocation2 + $0x28] sm:$0xf] %vm1462_vm6, %v13700_v20  ;;  %v15307_v20 = vld [vmem:[#allocation20_spill] sm:$0xff] }
 0x50f   : > { %3222 = vst.msk [vmem:[#allocation2 + $0x34] sm:$0xf] %vm1462_vm6, %v3202_v12  ;;  %v3398_v59 = vmul.f32 %v15307_v20, %v3342_v13  ;;  %v15308_v12 = vld [vmem:[#allocation40_spill] sm:$0xff]  ;;  %v15312_v20 = vld [vmem:[#allocation97_spill] sm:$0xff] }
 0x510   : > { %5196 = vst.msk [vmem:[#allocation2 + $0x28] sm:$0xf] %vm1686_vm7, %v13727_v25  ;;  %v4927_v52 = vmul.f32 %v15308_v12, %v4871_v15  ;;  %v14062_v15 = vpop.f32.mrf.mxu2  ;;  %v15313_v12 = vld [vmem:[#allocation89_spill] sm:$0xff] }
 0x511   : > { %3205 = vrot.lane.b32.xlu2 %v3184_v58, %s15095_s2  ;;  %v4284_v37 = vpop.permute.xlu0 %4283  ;;  %v3406_v25 = vpack.c.bf16 %v3398_v59, %v3398_v59  ;;  %v5074_v58 = vmul.f32 %v13808_v11, %v15309_v18  ;;  %v6457_v59 = vmul.f32 %v15312_v20, %v6401_v29  ;;  %v15315_v29 = vld [vmem:[#allocation59_spill] sm:$0xff] }
 0x512   : > { %v4293_v5 = vmul.f32 %v4284_v37, %v4237_v16  ;;  %6263 = vrot.lane.b32.xlu1 %v6242_v17, %s15123_s20  ;;  %v4935_v10 = vpack.c.bf16 %v4927_v52, %v4927_v52  ;;  %v14058_v17 = vpop.f32.mrf.mxu1  ;;  %v15310_v16 = vld [vmem:[#allocation54_spill] sm:$0xff] }
 0x513   : > { %v3425_v57 = vpop.permute.xlu2 %3424  ;;  %v3423_v7 = vpop.permute.xlu1 %3422  ;;  %v4649_v6 = vmax.f32 %v15310_v16, 0.0 }
 0x514   : > { %v4301_v28 = vpack.c.bf16 %v4293_v5, %v4293_v5  ;;  %3445 = vst.msk [vmem:[#allocation2 + $0x34] sm:$0xf] %vm1686_vm7, %v3425_v57  ;;  %v5086_v57 = vadd.f32 %v13822_v55, %v5074_v58  ;;  %v3992_v58 = vmul.f32 %v13875_v56, %v15315_v29  ;;  %v15319_v29 = vld [vmem:[#allocation80_spill] sm:$0xff] }
 0x515   : > { %3444 = vst.msk [vmem:[#allocation2 + $0x24] sm:$0xf] %vm1686_vm7, %v3423_v7  ;;  %v4705_v13 = vmul.f32 %v15311_v23, %v4649_v6  ;;  %v10744_v7 = vld [vmem:[%s14961_s29] ss:$0 sm:$0xff]  ;;  %v15316_v23 = vld [vmem:[#allocation17_spill] sm:$0xff] }
 0x516   : > { %4309 = vst.msk [vmem:[#allocation2 + $0x78] sm:$0xf] %vm790_vm3, %v4301_v28  ;;  %v4852_v52 = vmul.f32 %v10744_v7, %v15313_v12  ;;  %v6465_v28 = vpack.c.bf16 %v6457_v59, %v6457_v59  ;;  %v4004_v56 = vadd.f32 %v13647_v30, %v3992_v58 }
 0x517   : > { %v4713_v42 = vpack.c.bf16 %v4705_v13, %v4705_v13  ;;  %v15317_v13 = vld [vmem:[#allocation27_spill] sm:$0xff] }
 0x518   : > { %v4864_v6 = vadd.f32 %v13770_v19, %v4852_v52  ;;  %v4012_v52 = vmax.f32 %v4004_v56, 0.0 }
 0x519   : > { %3426 = vrot.lane.b32.xlu2 %v3406_v25, %s15098_s28  ;;  %v5094_v25 = vmax.f32 %v5086_v57, 0.0  ;;  %v14085_v57 = vpop.f32.mrf.mxu2 }
 0x51a   : > { %4955 = vrot.lane.b32.xlu1 %v4935_v10, %s15095_s2  ;;  %v15314_v10 = vld [vmem:[#allocation23_spill] sm:$0xff]  ;;  %v14078_v16 = vpop.f32.mrf.mxu1  ;;  %v4872_v12 = vmax.f32 %v4864_v6, 0.0 }
 0x51b   : > { %v6258_v37 = vpop.permute.xlu2 %6257  ;;  %v4731_v5 = vpop.permute.xlu1 %4730  ;;  %v3565_v18 = vmax.f32 %v15314_v10, 0.0  ;;  %v5150_v59 = vmul.f32 %v15317_v13, %v5094_v25 }
 0x51c   : > { %6279 = vst.msk [vmem:[#allocation2 + $0x2c] sm:$0xf] %vm1014_vm4, %v6258_v37 }
 0x51d   : > { %4751 = vst.msk [vmem:[#allocation2 + $0x38] sm:$0xf] %vm1238_vm5, %v4731_v5  ;;  %v3621_v37 = vmul.f32 %v15316_v23, %v3565_v18  ;;  %v5532_v23 = vadd.f32 %v13908_v8, %v15319_v29 }
 0x51f   : > { %v3629_v7 = vpack.c.bf16 %v3621_v37, %v3621_v37 }
 0x521   : > { %4734 = vrot.lane.b32.xlu2 %v4713_v42, %s15093_s0  ;;  %v5158_v42 = vpack.c.bf16 %v5150_v59, %v5150_v59  ;;  %v6925_v6 = vpop.f32.mrf.mxu2  ;;  %v15321_v59 = vld [vmem:[#allocation22_spill] sm:$0xff] }
 0x522   : > { %6486 = vrot.lane.b32.xlu1 %v6465_v28, %s15093_s0  ;;  %v15318_v28 = vld [vmem:[#allocation7_spill] sm:$0xff]  ;;  %v5075_v56 = vmul.f32 %v13808_v11, %v15321_v59 }
 0x523   : > { %v3648_v5 = vpop.permute.xlu2 %3647  ;;  %v3646_v20 = vpop.permute.xlu1 %3645  ;;  %v4928_v10 = vmul.f32 %v15318_v28, %v4872_v12 }
 0x524   : > { %3668 = vst.msk [vmem:[#allocation2 + $0x34] sm:$0xf] %vm1910_vm8, %v3648_v5  ;;  %v15320_v5 = vld [vmem:[#allocation109_spill] sm:$0xff] }
 0x525   : > { %3667 = vst.msk [vmem:[#allocation2 + $0x24] sm:$0xf] %vm1910_vm8, %v3646_v20  ;;  %v4068_v13 = vmul.f32 %v15320_v5, %v4012_v52  ;;  %v4936_v20 = vpack.c.bf16 %v4928_v10, %v4928_v10  ;;  %v15323_v52 = vld [vmem:[#allocation70_spill] sm:$0xff]  ;;  %v9414_v5 = vld [vmem:[#allocation2 + $0x38] sm:$0xf0] }
 0x527   : > { %v4076_v12 = vpack.c.bf16 %v4068_v13, %v4068_v13 }
 0x529   : > { %3649 = vrot.lane.b32.xlu2 %v3629_v7, %s15101_s21  ;;  %v5540_v7 = vmax.f32 %v5532_v23, 0.0 }
 0x52a   : > { %5178 = vrot.lane.b32.xlu1 %v5158_v42, %s15098_s28  ;;  %v15322_v42 = vld [vmem:[#allocation29_spill] sm:$0xff] }
 0x52b   : > { %v6481_v18 = vpop.permute.xlu2 %6480  ;;  %v6896_v25 = vpop.f32.mrf.mxu1  ;;  %v3788_v28 = vmax.f32 %v15322_v42, 0.0 }
 0x52c   : > { %6502 = vst.msk [vmem:[#allocation2 + $0x2c] sm:$0xf] %vm1238_vm5, %v6481_v18  ;;  %v6897_v30 = vadd.f32 %v6896_v25, %v14016_v45  ;;  %v4954_v58 = vpop.permute.xlu1 %4953  ;;  %v5087_v18 = vadd.f32 %v13822_v55, %v5075_v56  ;;  %v15325_v56 = vld [vmem:[#allocation72_spill] sm:$0xff] }
 0x52d   : > { %4974 = vst.msk [vmem:[#allocation2 + $0x38] sm:$0xf] %vm1462_vm6, %v4954_v58  ;;  %v3844_v45 = vmul.f32 %v15323_v52, %v3788_v28  ;;  %v15326_v28 = vld [vmem:[#allocation83_spill] sm:$0xff] }
 0x52e   : > { %v14098_v37 = vadd.f32 %v6925_v6, %v6897_v30  ;;  %v15324_v30 = vld [vmem:[#allocation137_spill] sm:$0xff]  ;;  %v5095_v58 = vmax.f32 %v5087_v18, 0.0  ;;  %v5521_v52 = vmul.f32 %v13916_v1, %v15326_v28 }
 0x52f   : > { %v5596_v10 = vmul.f32 %v15324_v30, %v5540_v7  ;;  %v3852_v13 = vpack.c.bf16 %v3844_v45, %v3844_v45 }
 0x530   : > { %v5151_v55 = vmul.f32 %v13448_v49, %v5095_v58  ;;  %v15327_v49 = vld [vmem:[#allocation106_spill] sm:$0xff]  ;;  %v5533_v30 = vadd.f32 %v13908_v8, %v5521_v52  ;;  %v15330_v58 = vld [vmem:[#allocation112_spill] sm:$0xff] }
 0x531   : > { %4957 = vrot.lane.b32.xlu2 %v4936_v20, %s15095_s2  ;;  %v5604_v6 = vpack.c.bf16 %v5596_v10, %v5596_v10  ;;  %v15328_v10 = vld [vmem:[#allocation12_spill] sm:$0xff] }
 0x532   : > { %4097 = vrot.lane.b32.xlu1 %v4076_v12, %s15107_s3  ;;  %v5159_v7 = vpack.c.bf16 %v5151_v55, %v5151_v55  ;;  %v5828_v12 = vpack.c.bf16 %v13550_v40, %v13550_v40  ;;  %v5541_v1 = vmax.f32 %v5533_v30, 0.0  ;;  %v15331_v55 = vld [vmem:[#allocation103_spill] sm:$0xff] }
 0x533   : > { %v3871_v25 = vpop.permute.xlu2 %3870  ;;  %v10270_v29 = vld [vmem:[#allocation2 + $0x2c] sm:$0xf] }
 0x534   : > { %3891 = vst.msk [vmem:[#allocation2 + $0x34] sm:$0xf] %vm2134_vm9, %v3871_v25  ;;  %v3869_v11 = vpop.permute.xlu1 %3868  ;;  %v9417_v23 = vor.u32 %v10270_v29, %v9414_v5 }
 0x535   : > { %4114 = vst.msk [vmem:[#allocation2 + $0x34] sm:$0xf] %vm2358_vm10, %v13742_v44  ;;  %v5309_v44 = vadd.f32 %v13677_v41, %v15325_v56  ;;  %v15332_v56 = vld [vmem:[#allocation88_spill] sm:$0xff] }
 0x536   : > { %3890 = vst.msk [vmem:[#allocation2 + $0x24] sm:$0xf] %vm2134_vm9, %v3869_v11  ;;  %9559 = vmatmul.msk.bf16.gmra.mxu2 %vm6816_vm11, %v9417_v23  ;;  %v2675_v11 = vmax.f32 %v15328_v10, 0.0  ;;  %v15329_v23 = vld [vmem:[#allocation90_spill] sm:$0xff] }
 0x537   : > { %v5317_v42 = vmax.f32 %v5309_v44, 0.0 }
 0x539   : > { %3872 = vrot.lane.b32.xlu2 %v3852_v13, %s15163_s24  ;;  %v5373_v45 = vmul.f32 %v15327_v49, %v5317_v42  ;;  %v4215_v13 = vmul.f32 %v13927_v53, %v15329_v23  ;;  %v4226_v53 = vadd.f32 %v13943_v32, %v15332_v56  ;;  %v15336_v56 = vld [vmem:[#allocation71_spill] sm:$0xff] }
 0x53a   : > { %5624 = vrot.lane.b32.xlu1 %v5604_v6, %s15163_s24  ;;  %v5597_v6 = vmul.f32 %v15330_v58, %v5541_v1  ;;  %v15335_v58 = vld [vmem:[#allocation41_spill] sm:$0xff] }
 0x53b   : > { %v4092_v20 = vpop.permute.xlu2 %4091  ;;  %v5381_v40 = vpack.c.bf16 %v5373_v45, %v5373_v45  ;;  %v4234_v49 = vmax.f32 %v4226_v53, 0.0  ;;  %v15337_v53 = vld [vmem:[#allocation14_spill] sm:$0xff] }
 0x53c   : > { %4113 = vst.msk [vmem:[#allocation2 + $0x24] sm:$0xf] %vm2358_vm10, %v4092_v20  ;;  %v5177_v59 = vpop.permute.xlu1 %5176  ;;  %v9406_v29 = vld [vmem:[#allocation2 + $0x30] sm:$0xf0]  ;;  %v2731_v20 = vmul.f32 %v15331_v55, %v2675_v11  ;;  %v5605_v44 = vpack.c.bf16 %v5597_v6, %v5597_v6  ;;  %v15334_v11 = vld [vmem:[#allocation49_spill] sm:$0xff] }
 0x53d   : > { %5197 = vst.msk [vmem:[#allocation2 + $0x38] sm:$0xf] %vm1686_vm7, %v5177_v59  ;;  %v4227_v59 = vadd.f32 %v13943_v32, %v4215_v13  ;;  %v4427_v23 = vmax.f32 %v15334_v11, 0.0  ;;  %v15342_v11 = vld [vmem:[#allocation58_spill] sm:$0xff] }
 0x53f   : > { %v4235_v28 = vmax.f32 %v4227_v59, 0.0  ;;  %v4483_v6 = vmul.f32 %v15335_v58, %v4427_v23  ;;  %v6159_v59 = vmul.f32 %v13779_v24, %v14058_v17  ;;  %v4650_v23 = vmax.f32 %v15342_v11, 0.0 }
 0x541   : > { %5180 = vrot.lane.b32.xlu2 %v5159_v7, %s15098_s28  ;;  %v5967_v7 = vmul.f32 %v13956_v9, %v13938_v26 }
 0x542   : > { %5849 = vrot.lane.b32.xlu1 %v5828_v12, %s15107_s3  ;;  %v15333_v12 = vld [vmem:[#allocation18_spill] sm:$0xff] }
 0x543   : > { %v5400_v18 = vpop.permute.xlu2 %5399  ;;  %v10269_v25 = vld [vmem:[#allocation2 + $0x24] sm:$0xf]  ;;  %v2899_v42 = vmax.f32 %v15333_v12, 0.0 }
 0x544   : > { %5420 = vst.msk [vmem:[#allocation2 + $0x38] sm:$0xf] %vm1910_vm8, %v5400_v18  ;;  %v5398_v41 = vpop.permute.xlu1 %5397  ;;  %v9409_v5 = vor.u32 %v10269_v25, %v9406_v29  ;;  %v5979_v25 = vadd.f32 %v13971_v38, %v5967_v7  ;;  %v15338_v7 = vld [vmem:[#allocation110_spill] sm:$0xff] }
 0x545   : > { %5419 = vst.msk [vmem:[#allocation2 + $0x28] sm:$0xf] %vm1910_vm8, %v5398_v41 }
 0x546   : > { %5642 = vst.msk [vmem:[#allocation2 + $0x28] sm:$0xf] %vm2134_vm9, %v13761_v27  ;;  %6871 = vmatmul.bf16.gmra.mxu0 %v9409_v5  ;;  %v5987_v10 = vmax.f32 %v5979_v25, 0.0 }
 0x549   : > { %5401 = vrot.lane.b32.xlu2 %v5381_v40, %s15101_s21 }
 0x54a   : > { %6030 = vperm.xlu1 %10642, %v13609_v22   ;;  %v2739_v22 = vpack.c.bf16 %v2731_v20, %v2731_v20 }
 0x54b   : > { %v5844_v8 = vpop.permute.xlu2 %5843 }
 0x54c   : > { %5865 = vst.msk [vmem:[#allocation2 + $0x28] sm:$0xf] %vm2358_vm10, %v5844_v8  ;;  %v5623_v27 = vpop.permute.xlu1 %5622 }
 0x54d   : > { %5643 = vst.msk [vmem:[#allocation2 + $0x38] sm:$0xf] %vm2134_vm9, %v5623_v27  ;;  %v4491_v27 = vpack.c.bf16 %v4483_v6, %v4483_v6 }
 0x54e   : > { %5866 = vst.msk [vmem:[#allocation2 + $0x38] sm:$0xf] %vm2358_vm10, %v13788_v31  ;;  %v2955_v31 = vmul.f32 %v13623_v47, %v2899_v42  ;;  %v10745_v47 = vld [vmem:[%s14958_s1 + $0x30] sm:$0xff] }
 0x550   : > { %v2963_v1 = vpack.c.bf16 %v2955_v31, %v2955_v31 }
 0x551   : > { %5626 = vrot.lane.b32.xlu2 %v5605_v44, %s15163_s24  ;;  %v2676_v44 = vmax.f32 %v15337_v53, 0.0 }
 0x552   : > { %2761 = vrot.lane.b32.xlu1 %v2739_v22, %s15123_s20 }
 0x553   : > { %v4274_v52 = vpop.permute.xlu2 %4273  ;;  %v9412_v41 = vld [vmem:[#allocation2 + $0x28] sm:$0xf]  ;;  %v2732_v42 = vmul.f32 %v13585_v50, %v2676_v44 }
 0x554   : > { %v4291_v45 = vmul.f32 %v4274_v52, %v4235_v28  ;;  %v4269_v18 = vpop.permute.xlu1 %4268  ;;  %v6171_v28 = vadd.f32 %v13794_v36, %v6159_v59 }
 0x555   : > { %v4290_v29 = vmul.f32 %v4269_v18, %v4234_v49  ;;  %v10272_v5 = vld [vmem:[#allocation2 + $0x34] sm:$0xf0]  ;;  %v2740_v52 = vpack.c.bf16 %v2732_v42, %v2732_v42  ;;  %v15339_v49 = vld [vmem:[#allocation38_spill] sm:$0xff] }
 0x556   : > { %v4299_v30 = vpack.c.bf16 %v4291_v45, %v4291_v45  ;;  %v9413_v26 = vor.u32 %v10272_v5, %v9412_v41  ;;  %v3121_v31 = vmax.f32 %v15339_v49, 0.0  ;;  %v6382_v41 = vmul.f32 %v13835_v33, %v14062_v15  ;;  %v15341_v5 = vld [vmem:[#allocation31_spill] sm:$0xff] }
 0x557   : > { %v4298_v40 = vpack.c.bf16 %v4290_v29, %v4290_v29  ;;  %v15348_v49 = vld [vmem:[#allocation51_spill] sm:$0xff] }
 0x558   : > { %4307 = vst.msk [vmem:[#allocation2 + $0x58] sm:$0xf] %vm790_vm3, %v4299_v30  ;;  %6900 = vmatmul.bf16.gmra.mxu1 %v9413_v26  ;;  %v3177_v45 = vmul.f32 %v13665_v4, %v3121_v31  ;;  %v3568_v30 = vmax.f32 %v15341_v5, 0.0 }
 0x559   : > { %4306 = vst.msk [vmem:[#allocation2 + $0x48] sm:$0xf] %vm790_vm3, %v4298_v40  ;;  %4278 = vperm.xlu2 %10640, %v10745_v47  }
 0x55a   : > { %4529 = vst.msk [vmem:[#allocation2 + $0x48] sm:$0xf] %vm1014_vm4, %v13861_v0  ;;  %2986 = vrot.lane.b32.xlu1 %v2963_v1, %s15093_s0  ;;  %v3345_v0 = vmax.f32 %v15336_v56, 0.0  ;;  %v3624_v26 = vmul.f32 %v13798_v35, %v3568_v30  ;;  %v6160_v1 = vmul.f32 %v13779_v24, %v14078_v16  ;;  %v4706_v35 = vmul.f32 %v13729_v51, %v4650_v23  ;;  %v15344_v51 = vld [vmem:[#allocation77_spill] sm:$0xff]  ;;  %v15351_v30 = vld [vmem:[#allocation74_spill] sm:$0xff] }
 0x55b   : > { %v2758_v13 = vpop.permute.xlu2 %2757 }
 0x55c   : > { %2777 = vst.msk [vmem:[#allocation2 + $0x44] sm:$0xf] %vm1014_vm4, %v2758_v13  ;;  %v6026_v8 = vpop.permute.xlu1 %6025  ;;  %v3401_v12 = vmul.f32 %v15338_v7, %v3345_v0  ;;  %v6172_v13 = vadd.f32 %v13794_v36, %v6160_v1  ;;  %v4714_v24 = vpack.c.bf16 %v4706_v35, %v4706_v35  ;;  %v15345_v36 = vld [vmem:[#allocation116_spill] sm:$0xff]  ;;  %v15346_v0 = vld [vmem:[#allocation91_spill] sm:$0xff]  ;;  %v15354_v35 = vld [vmem:[#allocation93_spill] sm:$0xff] }
 0x55d   : > { %v6043_v55 = vmul.f32 %v6026_v8, %v5987_v10  ;;  %v3632_v10 = vpack.c.bf16 %v3624_v26, %v3624_v26  ;;  %v4865_v53 = vadd.f32 %v13770_v19, %v15346_v0 }
 0x55e   : > { %v6180_v16 = vmax.f32 %v6172_v13, 0.0  ;;  %v4228_v13 = vadd.f32 %v13943_v32, %v15354_v35 }
 0x55f   : > { %v6051_v20 = vpack.c.bf16 %v6043_v55, %v6043_v55  ;;  %v15343_v55 = vld [vmem:[#allocation37_spill] sm:$0xff] }
 0x560   : > { %v6236_v59 = vmul.f32 %v15344_v51, %v6180_v16  ;;  %v15356_v16 = vld [vmem:[#allocation96_spill] sm:$0xff] }
 0x561   : > { %6059 = vst.msk [vmem:[#allocation2 + $0x5c] sm:$0xf] %vm790_vm3, %v6051_v20  ;;  %10644 = vset.pattern.permute.xlu2 %v15223_v62  ;;  %v3409_v62 = vpack.c.bf16 %v3401_v12, %v3401_v12  ;;  %v3791_v20 = vmax.f32 %v15343_v55, 0.0  ;;  %v4873_v12 = vmax.f32 %v4865_v53, 0.0  ;;  %v5969_v55 = vmul.f32 %v13956_v9, %v13994_v34 }
 0x562   : > { %6035 = vperm.xlu2 %10644, %v13683_v63   ;;  %4513 = vrot.lane.b32.xlu1 %v4491_v27, %s15123_s20  ;;  %v6179_v63 = vmax.f32 %v6171_v28, 0.0  ;;  %v6244_v44 = vpack.c.bf16 %v6236_v59, %v6236_v59  ;;  %v15347_v28 = vld [vmem:[#allocation57_spill] sm:$0xff] }
 0x563   : > { %v2981_v22 = vpop.permute.xlu2 %2980  ;;  %v3847_v56 = vmul.f32 %v15345_v36, %v3791_v20  ;;  %v4236_v20 = vmax.f32 %v4228_v13, 0.0 }
 0x564   : > { %3000 = vst.msk [vmem:[#allocation2 + $0x44] sm:$0xf] %vm1238_vm5, %v2981_v22  ;;  %v2760_v17 = vpop.permute.xlu1 %2759  ;;  %v6235_v18 = vmul.f32 %v13401_v43, %v6179_v63  ;;  %v15340_v43 = vld [vmem:[#allocation53_spill] sm:$0xff]  ;;  %v6383_v22 = vmul.f32 %v13835_v33, %v14085_v57  ;;  %v4077_v33 = vpack.c.bf16 %v15348_v49, %v15348_v49  ;;  %v14232_v57 = vpop.permute.xlu0 %2984 }
 0x565   : > { %2778 = vst.msk [vmem:[#allocation2 + $0x54] sm:$0xf] %vm1014_vm4, %v2760_v17  ;;  %v4428_v4 = vmax.f32 %v15340_v43, 0.0  ;;  %v3855_v7 = vpack.c.bf16 %v3847_v56, %v3847_v56  ;;  %v4929_v17 = vmul.f32 %v15347_v28, %v4873_v12  ;;  %v15357_v56 = vld [vmem:[#allocation100_spill] sm:$0xff] }
 0x566   : > { %3001 = vst.msk [vmem:[#allocation2 + $0x54] sm:$0xf] %vm1238_vm5, %v13842_v2  ;;  %v3185_v2 = vpack.c.bf16 %v3177_v45, %v3177_v45  ;;  %v6243_v29 = vpack.c.bf16 %v6235_v18, %v6235_v18  ;;  %v15350_v18 = vld [vmem:[#allocation101_spill] sm:$0xff] }
 0x567   : > { %v4937_v19 = vpack.c.bf16 %v4929_v17, %v4929_v17 }
 0x56a   : > { %2763 = vrot.lane.b32.xlu2 %v2740_v52, %s15123_s20  ;;  %3432 = vrot.lane.b32.xlu1 %v3409_v62, %s15098_s28  ;;  %v6395_v62 = vadd.f32 %v13850_v21, %v6383_v22 }
 0x56b   : > { %v3206_v50 = vpop.permute.xlu2 %3205 }
 0x56c   : > { %3224 = vst.msk [vmem:[#allocation2 + $0x54] sm:$0xf] %vm1462_vm6, %v3206_v50  ;;  %v3204_v25 = vpop.permute.xlu1 %3203  ;;  %v6403_v63 = vmax.f32 %v6395_v62, 0.0  ;;  %v15349_v50 = vld [vmem:[#allocation113_spill] sm:$0xff] }
 0x56d   : > { %3447 = vst.msk [vmem:[#allocation2 + $0x54] sm:$0xf] %vm1686_vm7, %v13887_v61 }
 0x56e   : > { %3670 = vst.msk [vmem:[#allocation2 + $0x54] sm:$0xf] %vm1910_vm8, %v13934_v54  ;;  %v4484_v54 = vmul.f32 %v13702_v3, %v4428_v4  ;;  %v6459_v45 = vmul.f32 %v15349_v50, %v6403_v63 }
 0x56f   : > { %3893 = vst.msk [vmem:[#allocation2 + $0x54] sm:$0xf] %vm2134_vm9, %v13986_v60  ;;  %v6394_v60 = vadd.f32 %v13850_v21, %v6382_v41 }
 0x570   : > { %3223 = vst.msk [vmem:[#allocation2 + $0x44] sm:$0xf] %vm1462_vm6, %v3204_v25  ;;  %v4492_v40 = vpack.c.bf16 %v4484_v54, %v4484_v54  ;;  %v5384_v25 = vpack.c.bf16 %v15350_v18, %v15350_v18  ;;  %v15352_v54 = vld [vmem:[#allocation69_spill] sm:$0xff] }
 0x571   : > { %v6402_v47 = vmax.f32 %v6394_v60, 0.0  ;;  %v5829_v60 = vpack.c.bf16 %v15352_v54, %v15352_v54 }
 0x572   : > { %3207 = vrot.lane.b32.xlu2 %v3185_v2, %s15095_s2  ;;  %6265 = vrot.lane.b32.xlu1 %v6243_v29, %s15123_s20  ;;  %v6467_v2 = vpack.c.bf16 %v6459_v45, %v6459_v45  ;;  %v14245_v29 = vpop.permute.xlu0 %3209 }
 0x573   : > { %v3427_v61 = vpop.permute.xlu2 %3426  ;;  %v6458_v58 = vmul.f32 %v13825_v46, %v6402_v47 }
 0x574   : > { %3446 = vst.msk [vmem:[#allocation2 + $0x44] sm:$0xf] %vm1686_vm7, %v3427_v61  ;;  %v4512_v15 = vpop.permute.xlu1 %4511  ;;  %v5160_v61 = vpack.c.bf16 %v15351_v30, %v15351_v30 }
 0x575   : > { %4530 = vst.msk [vmem:[#allocation2 + $0x58] sm:$0xf] %vm1014_vm4, %v4512_v15  ;;  %v6466_v8 = vpack.c.bf16 %v6458_v58, %v6458_v58 }
 0x57a   : > { %4515 = vrot.lane.b32.xlu2 %v4492_v40, %s15123_s20  ;;  %3655 = vrot.lane.b32.xlu1 %v3632_v10, %s15101_s21  ;;  %v3431_v15 = vpop.permute.xlu0 %3430  ;;  %v15353_v40 = vld [vmem:[#allocation65_spill] sm:$0xff] }
 0x57b   : > { %v4735_v3 = vpop.permute.xlu2 %4734  ;;  %v4078_v1 = vpack.c.bf16 %v15353_v40, %v15353_v40 }
 0x57c   : > { %4753 = vst.msk [vmem:[#allocation2 + $0x58] sm:$0xf] %vm1238_vm5, %v4735_v3  ;;  %v4733_v6 = vpop.permute.xlu1 %4732 }
 0x57d   : > { %4752 = vst.msk [vmem:[#allocation2 + $0x48] sm:$0xf] %vm1238_vm5, %v4733_v6  ;;  %v15355_v6 = vld [vmem:[#allocation94_spill] sm:$0xff] }
 0x582   : > { %4736 = vrot.lane.b32.xlu2 %v4714_v24, %s15093_s0  ;;  %6488 = vrot.lane.b32.xlu1 %v6466_v8, %s15093_s0  ;;  %v4739_v58 = vpop.permute.xlu0 %4738  ;;  %v5606_v24 = vpack.c.bf16 %v15355_v6, %v15355_v6  ;;  %v5968_v8 = vmul.f32 %v13956_v9, %v15356_v16  ;;  %v6869_v6 = vpop.f32.mrf.mxu0 }
 0x583   : > { %v3650_v27 = vpop.permute.xlu2 %3649  ;;  %v6927_v16 = vpop.f32.mrf.mxu2 }
 0x584   : > { %3669 = vst.msk [vmem:[#allocation2 + $0x44] sm:$0xf] %vm1910_vm8, %v3650_v27  ;;  %v6264_v46 = vpop.permute.xlu1 %6263  ;;  %v5980_v59 = vadd.f32 %v13971_v38, %v5968_v8  ;;  %v6898_v8 = vpop.f32.mrf.mxu1 }
 0x585   : > { %6282 = vst.msk [vmem:[#allocation2 + $0x5c] sm:$0xf] %vm1014_vm4, %v6264_v46  ;;  %v5830_v46 = vpack.c.bf16 %v15357_v56, %v15357_v56 }
 0x586   : > { %v5988_v34 = vmax.f32 %v5980_v59, 0.0 }
 0x58a   : > { %6267 = vrot.lane.b32.xlu2 %v6244_v44, %s15123_s20  ;;  %3878 = vrot.lane.b32.xlu1 %v3855_v7, %s15163_s24  ;;  %v3654_v0 = vpop.permute.xlu0 %3653 }
 0x58b   : > { %v4958_v42 = vpop.permute.xlu2 %4957 }
 0x58c   : > { %4976 = vst.msk [vmem:[#allocation2 + $0x58] sm:$0xf] %vm1462_vm6, %v4958_v42  ;;  %v4956_v52 = vpop.permute.xlu1 %4955 }
 0x58d   : > { %4975 = vst.msk [vmem:[#allocation2 + $0x48] sm:$0xf] %vm1462_vm6, %v4956_v52 }
 0x592   : > { %4959 = vrot.lane.b32.xlu2 %v4937_v19, %s15095_s2  ;;  %4099 = vrot.lane.b32.xlu1 %v4077_v33, %s15107_s3  ;;  %v4962_v62 = vpop.permute.xlu0 %4961 }
 0x593   : > { %v3873_v31 = vpop.permute.xlu2 %3872 }
 0x594   : > { %3892 = vst.msk [vmem:[#allocation2 + $0x44] sm:$0xf] %vm2134_vm9, %v3873_v31  ;;  %v6487_v21 = vpop.permute.xlu1 %6486 }
 0x595   : > { %4115 = vst.msk [vmem:[#allocation2 + $0x44] sm:$0xf] %vm2358_vm10, %v13998_v14  ;;  %v10274_v14 = vld [vmem:[#allocation2 + $0x4c] sm:$0xf] }
 0x596   : > { %6505 = vst.msk [vmem:[#allocation2 + $0x5c] sm:$0xf] %vm1238_vm5, %v6487_v21 }
 0x59a   : > { %6490 = vrot.lane.b32.xlu2 %v6467_v2, %s15093_s0  ;;  %5407 = vrot.lane.b32.xlu1 %v5384_v25, %s15101_s21  ;;  %v3877_v33 = vpop.permute.xlu0 %3876 }
 0x59b   : > { %v5181_v41 = vpop.permute.xlu2 %5180 }
 0x59c   : > { %5199 = vst.msk [vmem:[#allocation2 + $0x58] sm:$0xf] %vm1686_vm7, %v5181_v41  ;;  %v5179_v43 = vpop.permute.xlu1 %5178  ;;  %v10273_v11 = vld [vmem:[#allocation2 + $0x44] sm:$0xf] }
 0x59d   : > { %5422 = vst.msk [vmem:[#allocation2 + $0x58] sm:$0xf] %vm1910_vm8, %v14011_v48  ;;  %v9430_v4 = vld [vmem:[#allocation2 + $0x58] sm:$0xf0] }
 0x59e   : > { %5198 = vst.msk [vmem:[#allocation2 + $0x48] sm:$0xf] %vm1686_vm7, %v5179_v43  ;;  %v9433_v5 = vor.u32 %v10274_v14, %v9430_v4 }
 0x5a0   : > { %9560 = vmatmul.msk.bf16.gmra.mxu2 %vm6816_vm11, %v9433_v5 }
 0x5a2   : > { %5182 = vrot.lane.b32.xlu2 %v5160_v61, %s15098_s28  ;;  %5851 = vrot.lane.b32.xlu1 %v5829_v60, %s15107_s3 }
 0x5a3   : > { %v5402_v26 = vpop.permute.xlu2 %5401 }
 0x5a4   : > { %5421 = vst.msk [vmem:[#allocation2 + $0x48] sm:$0xf] %vm1910_vm8, %v5402_v26  ;;  %v4098_v48 = vpop.permute.xlu1 %4097 }
 0x5a5   : > { %4116 = vst.msk [vmem:[#allocation2 + $0x54] sm:$0xf] %vm2358_vm10, %v4098_v48 }
 0x5aa   : > { %4101 = vrot.lane.b32.xlu2 %v4078_v1, %s15107_s3 }
 0x5ab   : > { %v5627_v47 = vpop.permute.xlu2 %5626 }
 0x5ac   : > { %5645 = vst.msk [vmem:[#allocation2 + $0x58] sm:$0xf] %vm2134_vm9, %v5627_v47  ;;  %v5625_v10 = vpop.permute.xlu1 %5624  ;;  %v9422_v23 = vld [vmem:[#allocation2 + $0x50] sm:$0xf0] }
 0x5ad   : > { %5644 = vst.msk [vmem:[#allocation2 + $0x48] sm:$0xf] %vm2134_vm9, %v5625_v10  ;;  %v9425_v3 = vor.u32 %v10273_v11, %v9422_v23 }
 0x5ae   : > { %5867 = vst.msk [vmem:[#allocation2 + $0x48] sm:$0xf] %vm2358_vm10, %v14030_v39  ;;  %v5981_v39 = vadd.f32 %v13971_v38, %v5969_v55 }
 0x5af   : > { %6876 = vmatmul.bf16.gmra.mxu0 %v9425_v3 }
 0x5b0   : > { %v5989_v9 = vmax.f32 %v5981_v39, 0.0 }
 0x5b2   : > { %5628 = vrot.lane.b32.xlu2 %v5606_v24, %s15163_s24 }
 0x5b3   : > { %v4279_v27 = vpop.permute.xlu2 %4278 }
 0x5b4   : > { %v4292_v51 = vmul.f32 %v4279_v27, %v4236_v20  ;;  %v5850_v32 = vpop.permute.xlu1 %5849 }
 0x5b5   : > { %5868 = vst.msk [vmem:[#allocation2 + $0x58] sm:$0xf] %vm2358_vm10, %v5850_v32  ;;  %v9428_v22 = vld [vmem:[#allocation2 + $0x48] sm:$0xf] }
 0x5b6   : > { %v4300_v36 = vpack.c.bf16 %v4292_v51, %v4292_v51 }
 0x5b8   : > { %4308 = vst.msk [vmem:[#allocation2 + $0x68] sm:$0xf] %vm790_vm3, %v4300_v36 }
 0x5b9   : > { %v6930_v20 = vpop.f32.mrf.mxu2 }
 0x5ba   : > { %5853 = vrot.lane.b32.xlu2 %v5830_v46, %s15107_s3 }
 0x5bc   : > { %v6036_v53 = vpop.permute.xlu2 %6035  ;;  %v6031_v44 = vpop.permute.xlu1 %6030  ;;  %v10276_v7 = vld [vmem:[#allocation2 + $0x54] sm:$0xf0] }
 0x5bd   : > { %v6045_v12 = vmul.f32 %v6036_v53, %v5989_v9  ;;  %v6044_v42 = vmul.f32 %v6031_v44, %v5988_v34  ;;  %v9429_v38 = vor.u32 %v10276_v7, %v9428_v22 }
 0x5bf   : > { %v6053_v28 = vpack.c.bf16 %v6045_v12, %v6045_v12  ;;  %v6052_v17 = vpack.c.bf16 %v6044_v42, %v6044_v42  ;;  %6905 = vmatmul.bf16.gmra.mxu1 %v9429_v38 }
 0x5c1   : > { %6061 = vst.msk [vmem:[#allocation2 + $0x7c] sm:$0xf] %vm790_vm3, %v6053_v28  ;;  %v6932_v59 = vpop.f32.mrf.mxu2 }
 0x5c2   : > { %6060 = vst.msk [vmem:[#allocation2 + $0x6c] sm:$0xf] %vm790_vm3, %v6052_v17  ;;  %vm7911_vm3 = vcmask 1043968  }
 0x5c3   : > { %v6872_v55 = vpop.f32.mrf.mxu0 }
 0x5c4   : > { %v2764_v52 = vpop.permute.xlu2 %2763  ;;  %v2762_v19 = vpop.permute.xlu1 %2761 }
 0x5c5   : > { %2780 = vst.msk [vmem:[#allocation2 + $0x74] sm:$0xf] %vm1014_vm4, %v2764_v52 }
 0x5c6   : > { %2779 = vst.msk [vmem:[#allocation2 + $0x64] sm:$0xf] %vm1014_vm4, %v2762_v19 }
 0x5c7   : > { %3002 = vst.msk [vmem:[#allocation2 + $0x64] sm:$0xf] %vm1238_vm5, %v14232_v57  ;;  %v5185_v57 = vpop.permute.xlu0 %5184 }
 0x5cb   : > { %v6874_v32 = vpop.f32.mrf.mxu0 }
 0x5cc   : > { %v3208_v63 = vpop.permute.xlu2 %3207  ;;  %v2987_v49 = vpop.permute.xlu1 %2986 }
 0x5cd   : > { %3225 = vst.msk [vmem:[#allocation2 + $0x64] sm:$0xf] %vm1462_vm6, %v3208_v63 }
 0x5ce   : > { %3448 = vst.msk [vmem:[#allocation2 + $0x64] sm:$0xf] %vm1686_vm7, %v3431_v15 }
 0x5cf   : > { %3671 = vst.msk [vmem:[#allocation2 + $0x64] sm:$0xf] %vm1910_vm8, %v3654_v0  ;;  %v5406_v30 = vpop.permute.xlu0 %5405 }
 0x5d0   : > { %3003 = vst.msk [vmem:[#allocation2 + $0x74] sm:$0xf] %vm1238_vm5, %v2987_v49 }
 0x5d1   : > { %3226 = vst.msk [vmem:[#allocation2 + $0x74] sm:$0xf] %vm1462_vm6, %v14245_v29 }
 0x5d2   : > { %3894 = vst.msk [vmem:[#allocation2 + $0x64] sm:$0xf] %vm2134_vm9, %v3877_v33 }
 0x5d4   : > { %v4516_v31 = vpop.permute.xlu2 %4515  ;;  %v4514_v50 = vpop.permute.xlu1 %4513 }
 0x5d5   : > { %4532 = vst.msk [vmem:[#allocation2 + $0x78] sm:$0xf] %vm1014_vm4, %v4516_v31  ;;  %v6901_v27 = vpop.f32.mrf.mxu1 }
 0x5d6   : > { %4755 = vst.msk [vmem:[#allocation2 + $0x78] sm:$0xf] %vm1238_vm5, %v4739_v58  ;;  %v6840_v58 = vpop.f32.mrf.mxu3 }
 0x5d7   : > { %4978 = vst.msk [vmem:[#allocation2 + $0x78] sm:$0xf] %vm1462_vm6, %v4962_v62  ;;  %v5631_v47 = vpop.permute.xlu0 %5630 }
 0x5d8   : > { %4531 = vst.msk [vmem:[#allocation2 + $0x68] sm:$0xf] %vm1014_vm4, %v4514_v50  ;;  %v10700_v50 = vld [vmem:[%s14871_s6] ss:$0 sm:$0xff] }
 0x5d9   : > { %5201 = vst.msk [vmem:[#allocation2 + $0x78] sm:$0xf] %vm1686_vm7, %v5185_v57 }
 0x5dc   : > { %v4737_v45 = vpop.permute.xlu2 %4736  ;;  %v3433_v21 = vpop.permute.xlu1 %3432 }
 0x5dd   : > { %4754 = vst.msk [vmem:[#allocation2 + $0x68] sm:$0xf] %vm1238_vm5, %v4737_v45  ;;  %v6903_v39 = vpop.f32.mrf.mxu1 }
 0x5de   : > { %3449 = vst.msk [vmem:[#allocation2 + $0x74] sm:$0xf] %vm1686_vm7, %v3433_v21  ;;  %v6843_v24 = vpop.f32.mrf.mxu3 }
 0x5df   : > { %v6873_v57 = vadd.f32 %v6872_v55, %v6843_v24  ;;  %v6949_v55 = vmul.f32 %v10700_v50, %v14098_v37  ;;  %v10309_v37 = vld [vmem:[%s14873_s8 + $0x8] sm:$0xff] }
 0x5e4   : > { %v6268_v18 = vpop.permute.xlu2 %6267  ;;  %v6266_v25 = vpop.permute.xlu1 %6265 }
 0x5e5   : > { %6284 = vst.msk [vmem:[#allocation2 + $0x7c] sm:$0xf] %vm1014_vm4, %v6268_v18 }
 0x5e6   : > { %6283 = vst.msk [vmem:[#allocation2 + $0x6c] sm:$0xf] %vm1014_vm4, %v6266_v25  ;;  %v6845_v51 = vpop.f32.mrf.mxu3  ;;  %v6870_v25 = vadd.f32 %v6869_v6, %v6840_v58 }
 0x5e7   : > { %v6875_v63 = vadd.f32 %v6874_v32, %v6845_v51 }
 0x5e9   : > { %v6904_v45 = vadd.f32 %v6903_v39, %v6875_v63 }
 0x5ec   : > { %v4960_v2 = vpop.permute.xlu2 %4959  ;;  %v3656_v29 = vpop.permute.xlu1 %3655 }
 0x5ed   : > { %4977 = vst.msk [vmem:[#allocation2 + $0x68] sm:$0xf] %vm1462_vm6, %v4960_v2 }
 0x5ee   : > { %3672 = vst.msk [vmem:[#allocation2 + $0x74] sm:$0xf] %vm1910_vm8, %v3656_v29  ;;  %v6848_v36 = vpop.f32.mrf.mxu3  ;;  %v6902_v29 = vadd.f32 %v6901_v27, %v6873_v57 }
 0x5f4   : > { %v6491_v41 = vpop.permute.xlu2 %6490  ;;  %v6489_v43 = vpop.permute.xlu1 %6488 }
 0x5f5   : > { %6507 = vst.msk [vmem:[#allocation2 + $0x7c] sm:$0xf] %vm1238_vm5, %v6491_v41 }
 0x5f6   : > { %6506 = vst.msk [vmem:[#allocation2 + $0x6c] sm:$0xf] %vm1238_vm5, %v6489_v43  ;;  %v6850_v9 = vpop.f32.mrf.mxu3 }
 0x5fc   : > { %v5183_v14 = vpop.permute.xlu2 %5182  ;;  %v3879_v4 = vpop.permute.xlu1 %3878  ;;  %v9446_v5 = vld [vmem:[#allocation2 + $0x78] sm:$0xf0] }
 0x5fd   : > { %5200 = vst.msk [vmem:[#allocation2 + $0x68] sm:$0xf] %vm1686_vm7, %v5183_v14  ;;  %v10278_v61 = vld [vmem:[#allocation2 + $0x6c] sm:$0xf] }
 0x5fe   : > { %5423 = vst.msk [vmem:[#allocation2 + $0x68] sm:$0xf] %vm1910_vm8, %v5406_v30  ;;  %v9449_v54 = vor.u32 %v10278_v61, %v9446_v5  ;;  %v6853_v7 = vpop.f32.mrf.mxu3  ;;  %v6899_v5 = vadd.f32 %v6898_v8, %v6870_v25  ;;  %v6933_v30 = vadd.f32 %v6932_v59, %v6904_v45 }
 0x5ff   : > { %3895 = vst.msk [vmem:[#allocation2 + $0x74] sm:$0xf] %vm2134_vm9, %v3879_v4 }
 0x600   : > { %9561 = vmatmul.msk.bf16.gmra.mxu2 %vm6816_vm11, %v9449_v54  ;;  %v10701_v54 = vld [vmem:[%s14872_s7] ss:$0 sm:$0xff] }
 0x601   : > { %v6961_v39 = vadd.f32 %v10701_v54, %v6949_v55 }
 0x604   : > { %v4102_v60 = vpop.permute.xlu2 %4101  ;;  %v4100_v26 = vpop.permute.xlu1 %4099 }
 0x605   : > { %4118 = vst.msk [vmem:[#allocation2 + $0x74] sm:$0xf] %vm2358_vm10, %v4102_v60 }
 0x606   : > { %4117 = vst.msk [vmem:[#allocation2 + $0x64] sm:$0xf] %vm2358_vm10, %v4100_v26  ;;  %v6855_v31 = vpop.f32.mrf.mxu3  ;;  %v6931_v26 = vadd.f32 %v6930_v20, %v6902_v29 }
 0x60c   : > { %v5629_v48 = vpop.permute.xlu2 %5628  ;;  %v5408_v15 = vpop.permute.xlu1 %5407  ;;  %v9438_v40 = vld [vmem:[#allocation2 + $0x70] sm:$0xf0] }
 0x60d   : > { %5646 = vst.msk [vmem:[#allocation2 + $0x68] sm:$0xf] %vm2134_vm9, %v5629_v48  ;;  %v10277_v1 = vld [vmem:[#allocation2 + $0x64] sm:$0xf] }
 0x60e   : > { %5424 = vst.msk [vmem:[#allocation2 + $0x78] sm:$0xf] %vm1910_vm8, %v5408_v15  ;;  %v9441_v10 = vor.u32 %v10277_v1, %v9438_v40  ;;  %v6928_v1 = vadd.f32 %v6927_v16, %v6899_v5  ;;  %v7007_v5 = vld [vmem:[%s14873_s8 + $0x68] sm:$0xf] }
 0x60f   : > { %5647 = vst.msk [vmem:[#allocation2 + $0x78] sm:$0xf] %vm2134_vm9, %v5631_v47  ;;  %v6952_v47 = vmul.f32 %v10700_v50, %v6933_v30  ;;  %v7061_v30 = vunpack.c.l.b16 %v7007_v5  ;;  %v10351_v5 = vld [vmem:[%s14874_s9 + $0xf0] sm:$0xff] }
 0x610   : > { %6881 = vmatmul.bf16.gmra.mxu0 %v9441_v10  ;;  %v6950_v58 = vmul.f32 %v10700_v50, %v6928_v1 }
 0x611   : > { %v6964_v8 = vadd.f32 %v10701_v54, %v6952_v47 }
 0x612   : > { %v6962_v59 = vadd.f32 %v10701_v54, %v6950_v58 }
 0x613   : > { %v6972_v32 = vmax.f32 %v6964_v8, 0.0  ;;  %v10335_v8 = vld [vmem:[%s14874_s9 + $0x70] sm:$0xff] }
 0x614   : > { %v5854_v11 = vpop.permute.xlu2 %5853  ;;  %v5852_v23 = vpop.permute.xlu1 %5851 }
 0x615   : > { %5870 = vst.msk [vmem:[#allocation2 + $0x78] sm:$0xf] %vm2358_vm10, %v5854_v11 }
 0x616   : > { %5869 = vst.msk [vmem:[#allocation2 + $0x68] sm:$0xf] %vm2358_vm10, %v5852_v23  ;;  %v6951_v23 = vmul.f32 %v10700_v50, %v6931_v26 }
 0x618   : > { %v6963_v20 = vadd.f32 %v10701_v54, %v6951_v23 }
 0x61a   : > { %v6971_v16 = vmax.f32 %v6963_v20, 0.0  ;;  %v10334_v20 = vld [vmem:[%s14874_s9 + $0x68] sm:$0xff] }
 0x61c   : > { %v10280_v3 = vld [vmem:[#allocation2 + $0x74] sm:$0xf0] }
 0x61d   : > { %v9444_v35 = vld [vmem:[#allocation2 + $0x68] sm:$0xf] }
 0x61e   : > { %v9445_v13 = vor.u32 %v10280_v3, %v9444_v35 }
 0x620   : > { %6910 = vmatmul.bf16.gmra.mxu1 %v9445_v13 }
 0x623   : > { %v6935_v46 = vpop.f32.mrf.mxu2 }
 0x62b   : > { %v6937_v53 = vpop.f32.mrf.mxu2 }
 0x62c   : > { %v6877_v56 = vpop.f32.mrf.mxu0 }
 0x62d   : > { %v6878_v62 = vadd.f32 %v6877_v56, %v6848_v36  ;;  %v6978_v36 = vpack.c.bf16 %v6972_v32, %v6971_v16  ;;  %v6970_v56 = vmax.f32 %v6962_v59, 0.0  ;;  %v10325_v16 = vld [vmem:[%s14874_s9 + $0x20] sm:$0xff] }
 0x634   : > { %v6879_v34 = vpop.f32.mrf.mxu0 }
 0x635   : > { %v6880_v28 = vadd.f32 %v6879_v34, %v6850_v9  ;;  %v10308_v9 = vld [vmem:[%s14873_s8] sm:$0xff]  ;;  %v10310_v34 = vld [vmem:[%s14873_s8 + $0x10] sm:$0xff] }
 0x63c   : > { %v6906_v0 = vpop.f32.mrf.mxu1 }
 0x63d   : > { %v6907_v49 = vadd.f32 %v6906_v0, %v6878_v62 }
 0x63f   : > { %v6936_v41 = vadd.f32 %v6935_v46, %v6907_v49  ;;  %v6969_v46 = vmax.f32 %v6961_v39, 0.0  ;;  %v10333_v39 = vld [vmem:[%s14874_s9 + $0x60] sm:$0xff] }
 0x641   : > { %v6953_v48 = vmul.f32 %v10700_v50, %v6936_v41  ;;  %v6977_v0 = vpack.c.bf16 %v6970_v56, %v6969_v46  ;;  %v10332_v56 = vld [vmem:[%s14874_s9 + $0x58] sm:$0xff] }
 0x643   : > { %v6965_v13 = vadd.f32 %v10701_v54, %v6953_v48 }
 0x644   : > { %v6908_v44 = vpop.f32.mrf.mxu1 }
 0x645   : > { %v6909_v52 = vadd.f32 %v6908_v44, %v6880_v28  ;;  %v6973_v27 = vmax.f32 %v6965_v13, 0.0  ;;  %v10312_v44 = vld [vmem:[%s14873_s8 + $0x20] sm:$0xff]  ;;  %v10336_v13 = vld [vmem:[%s14874_s9 + $0x78] sm:$0xff] }
 0x646   : > { %7812 = vmatpush.bf16.msra.mxu1 %v10336_v13  ;;  %v10337_v13 = vld [vmem:[%s14874_s9 + $0x80] sm:$0xff] }
 0x647   : > { %v6938_v21 = vadd.f32 %v6937_v53, %v6909_v52  ;;  %v10311_v53 = vld [vmem:[%s14873_s8 + $0x18] sm:$0xff]  ;;  %v10317_v52 = vld [vmem:[%s14873_s8 + $0x48] sm:$0xff] }
 0x649   : > { %v6954_v61 = vmul.f32 %v10700_v50, %v6938_v21  ;;  %v10319_v21 = vld [vmem:[%s14873_s8 + $0x58] sm:$0xff] }
 0x64a   : > { %7813 = vmatpush.bf16.msra.mxu1 %v10335_v8  ;;  %v10360_v8 = vld [vmem:[%s14874_s9 + $0x138] sm:$0xff] }
 0x64b   : > { %v6966_v11 = vadd.f32 %v10701_v54, %v6954_v61 }
 0x64d   : > { %v6974_v24 = vmax.f32 %v6966_v11, 0.0 }
 0x64e   : > { %7814 = vmatpush.bf16.msra.mxu1 %v10334_v20  ;;  %v10367_v20 = vld [vmem:[%s14874_s9 + $0x170] sm:$0xff] }
 0x64f   : > { %v6979_v51 = vpack.c.bf16 %v6974_v24, %v6973_v27  ;;  %v10327_v24 = vld [vmem:[%s14874_s9 + $0x30] sm:$0xff]  ;;  %v10326_v27 = vld [vmem:[%s14874_s9 + $0x28] sm:$0xff] }
 0x652   : > { %7815 = vmatpush.bf16.msra.mxu1 %v10333_v39 }
 0x656   : > { %7816 = vmatpush.bf16.msra.mxu1 %v10332_v56 }
 0x683   : > { %v6940_v42 = vpop.f32.mrf.mxu2 }
 0x68b   : > { %v6942_v4 = vpop.f32.mrf.mxu2 }
 0x68d   : > { %v6882_v22 = vpop.f32.mrf.mxu0 }
 0x68e   : > { %v6883_v12 = vadd.f32 %v6882_v22, %v6853_v7  ;;  %v10313_v22 = vld [vmem:[%s14873_s8 + $0x28] sm:$0xff]  ;;  %v10314_v7 = vld [vmem:[%s14873_s8 + $0x30] sm:$0xff] }
 0x695   : > { %v6884_v19 = vpop.f32.mrf.mxu0 }
 0x696   : > { %v6885_v18 = vadd.f32 %v6884_v19, %v6855_v31 }
 0x69d   : > { %v6911_v38 = vpop.f32.mrf.mxu1 }
 0x69e   : > { %v6912_v17 = vadd.f32 %v6911_v38, %v6883_v12  ;;  %v10315_v12 = vld [vmem:[%s14873_s8 + $0x38] sm:$0xff] }
 0x6a0   : > { %v6941_v33 = vadd.f32 %v6940_v42, %v6912_v17  ;;  %v10316_v42 = vld [vmem:[%s14873_s8 + $0x40] sm:$0xff] }
 0x6a2   : > { %v6955_v43 = vmul.f32 %v10700_v50, %v6941_v33  ;;  %v10318_v33 = vld [vmem:[%s14873_s8 + $0x50] sm:$0xff] }
 0x6a4   : > { %v6967_v15 = vadd.f32 %v10701_v54, %v6955_v43  ;;  %v10320_v43 = vld [vmem:[%s14873_s8 + $0x60] sm:$0xff] }
 0x6a5   : > { %v6913_v2 = vpop.f32.mrf.mxu1 }
 0x6a6   : > { %v6914_v14 = vadd.f32 %v6913_v2, %v6885_v18  ;;  %v6975_v3 = vmax.f32 %v6967_v15, 0.0 }
 0x6a8   : > { %v6943_v60 = vadd.f32 %v6942_v4, %v6914_v14 }
 0x6aa   : > { %v6956_v40 = vmul.f32 %v10700_v50, %v6943_v60  ;;  %v7075_v60 = vpack.c.b16 %v7061_v30, %v7061_v30 }
 0x6ac   : > { %v6968_v10 = vadd.f32 %v10701_v54, %v6956_v40 }
 0x6ae   : > { %v6976_v35 = vmax.f32 %v6968_v10, 0.0 }
 0x6b0   : > { %v6980_v6 = vpack.c.bf16 %v6976_v35, %v6975_v3  ;;  %v10328_v35 = vld [vmem:[%s14874_s9 + $0x38] sm:$0xff] }
 0x6b1   : > { %7799 = vmatpush.bf16.msra.mxu0 %v10328_v35  ;;  %v10346_v35 = vld [vmem:[%s14874_s9 + $0xc8] sm:$0xff] }
 0x6b2   : > { %7123 = vmatpush.bf16.msrb.mxu3 %v6980_v6 }
 0x6b5   : > { %7800 = vmatpush.bf16.msra.mxu0 %v10327_v24  ;;  %v10345_v24 = vld [vmem:[%s14874_s9 + $0xc0] sm:$0xff] }
 0x6b6   : > { %7124 = vmatpush.bf16.msrb.mxu3 %v6979_v51 }
 0x6b9   : > { %7801 = vmatpush.bf16.msra.mxu0 %v10326_v27  ;;  %v10359_v27 = vld [vmem:[%s14874_s9 + $0x130] sm:$0xff] }
 0x6ba   : > { %7125 = vmatpush.bf16.msrb.mxu3 %v6978_v36  ;;  %v10324_v36 = vld [vmem:[%s14874_s9 + $0x18] sm:$0xff] }
 0x6bd   : > { %7802 = vmatpush.bf16.msra.mxu0 %v10325_v16 }
 0x6be   : > { %7126 = vmatpush.bf16.msrb.mxu3 %v6977_v0 }
 0x6c1   : > { %9614 = vmatmul.msk.bf16.vlgmr.msrb.gmra.mxu3 %vm7076_vm12, %v10308_v9  ;;  %7803 = vmatpush.bf16.msra.mxu0 %v10324_v36  ;;  %v10323_v9 = vld [vmem:[%s14874_s9 + $0x10] sm:$0xff] }
 0x6c5   : > { %7804 = vmatpush.bf16.msra.mxu0 %v10323_v9 }
 0x6d1   : > { %9615 = vmatmul.msk.bf16.gmra.mxu3 %vm7076_vm12, %v10309_v37  ;;  %v10331_v37 = vld [vmem:[%s14874_s9 + $0x50] sm:$0xff] }
 0x6d2   : > { %7817 = vmatpush.bf16.msra.mxu1 %v10331_v37 }
 0x6e1   : > { %9616 = vmatmul.msk.bf16.gmra.mxu3 %vm7076_vm12, %v10310_v34  ;;  %v10322_v34 = vld [vmem:[%s14874_s9 + $0x8] sm:$0xff] }
 0x6e2   : > { %7805 = vmatpush.bf16.msra.mxu0 %v10322_v34 }
 0x6f1   : > { %9617 = vmatmul.msk.bf16.gmra.mxu3 %vm7076_vm12, %v10311_v53  ;;  %v10330_v53 = vld [vmem:[%s14874_s9 + $0x48] sm:$0xff] }
 0x6f2   : > { %7818 = vmatpush.bf16.msra.mxu1 %v10330_v53 }
 0x701   : > { %9618 = vmatmul.msk.bf16.gmra.mxu3 %vm7076_vm12, %v10312_v44 }
 0x711   : > { %9619 = vmatmul.msk.bf16.gmra.mxu3 %vm7076_vm12, %v10313_v22 }
 0x721   : > { %9620 = vmatmul.msk.bf16.gmra.mxu3 %vm7076_vm12, %v10314_v7  ;;  %v10321_v7 = vld [vmem:[%s14874_s9] sm:$0xff] }
 0x722   : > { %7806 = vmatpush.bf16.msra.mxu0 %v10321_v7  ;;  %v10365_v7 = vld [vmem:[%s14874_s9 + $0x160] sm:$0xff] }
 0x731   : > { %9621 = vmatmul.msk.bf16.gmra.mxu3 %vm7076_vm12, %v10315_v12  ;;  %v10329_v12 = vld [vmem:[%s14874_s9 + $0x40] sm:$0xff] }
 0x732   : > { %7819 = vmatpush.bf16.msra.mxu1 %v10329_v12  ;;  %v10356_v12 = vld [vmem:[%s14874_s9 + $0x118] sm:$0xff] }
 0x736   : > { %7851 = vmatpush.bf16.msrb.mxu1 %v10360_v8  ;;  %v10381_v8 = vld [vmem:[%s14877_s12 + $0x30] sm:$0xff] }
 0x73a   : > { %7852 = vmatpush.bf16.msrb.mxu1 %v10359_v27 }
 0x741   : > { %9622 = vmatmul.msk.bf16.gmra.mxu3 %vm7076_vm12, %v10316_v42 }
 0x744   : > { %v7128_v38 = vpop.f32.mrf.mxu3 }
 0x745   : > { %v7197_v28 = vpack.c.bf16 %v7128_v38, %v7128_v38 }
 0x747   : > { %7199 = vst.msk [vmem:[#allocation3] sm:$0xf] %vm7198_vm13, %v7197_v28 }
 0x74c   : > { %v7130_v17 = vpop.f32.mrf.mxu3 }
 0x74d   : > { %v7200_v62 = vpack.c.bf16 %v7130_v17, %v7130_v17 }
 0x74f   : > { %7202 = vrot.lane.b32.xlu0 %v7200_v62, %s15093_s0 }
 0x751   : > { %9623 = vmatmul.msk.bf16.gmra.mxu3 %vm7076_vm12, %v10317_v52 }
 0x754   : > { %v7133_v19 = vpop.f32.mrf.mxu3 }
 0x755   : > { %v7207_v63 = vpack.c.bf16 %v7133_v19, %v7133_v19 }
 0x757   : > { %7209 = vrot.lane.b32.xlu2 %v7207_v63, %s15098_s28 }
 0x75c   : > { %v7135_v49 = vpop.f32.mrf.mxu3 }
 0x75d   : > { %v7214_v25 = vpack.c.bf16 %v7135_v49, %v7135_v49 }
 0x761   : > { %9624 = vmatmul.msk.bf16.gmra.mxu3 %vm7076_vm12, %v10318_v33 }
 0x764   : > { %v7138_v31 = vpop.f32.mrf.mxu3 }
 0x765   : > { %v7221_v50 = vpack.c.bf16 %v7138_v31, %v7138_v31 }
 0x767   : > { %7222 = vst.msk [vmem:[#allocation3 + $0x4] sm:$0xf] %vm7198_vm13, %v7221_v50 }
 0x76c   : > { %v7140_v57 = vpop.f32.mrf.mxu3 }
 0x76d   : > { %v7223_v45 = vpack.c.bf16 %v7140_v57, %v7140_v57 }
 0x76f   : > { %7225 = vrot.lane.b32.xlu1 %v7223_v45, %s15093_s0 }
 0x771   : > { %9625 = vmatmul.msk.bf16.gmra.mxu3 %vm7076_vm12, %v10319_v21 }
 0x774   : > { %v7143_v18 = vpop.f32.mrf.mxu3 }
 0x775   : > { %v7229_v2 = vpack.c.bf16 %v7143_v18, %v7143_v18 }
 0x777   : > { %7231 = vrot.lane.b32.xlu0 %v7229_v2, %s15098_s28  ;;  %7216 = vrot.lane.b32.xlu1 %v7214_v25, %s15163_s24  ;;  %v10344_v2 = vld [vmem:[%s14874_s9 + $0xb8] sm:$0xff] }
 0x778   : > { %7825 = vmatpush.bf16.msra.mxu2 %v10344_v2 }
 0x77c   : > { %v7145_v29 = vpop.f32.mrf.mxu3 }
 0x77d   : > { %v7235_v41 = vpack.c.bf16 %v7145_v29, %v7145_v29  ;;  %v10352_v29 = vld [vmem:[%s14874_s9 + $0xf8] sm:$0xff] }
 0x77e   : > { %7838 = vmatpush.bf16.msrb.mxu0 %v10352_v29 }
 0x77f   : > { %7237 = vrot.lane.b32.xlu2 %v7235_v41, %s15163_s24  ;;  %v10343_v41 = vld [vmem:[%s14874_s9 + $0xb0] sm:$0xff] }
 0x780   : > { %7826 = vmatpush.bf16.msra.mxu2 %v10343_v41 }
 0x781   : > { %9626 = vmatmul.msk.bf16.gmra.mxu3 %vm7076_vm12, %v10320_v43 }
 0x782   : > { %7839 = vmatpush.bf16.msrb.mxu0 %v10351_v5 }
 0x784   : > { %v7148_v14 = vpop.f32.mrf.mxu3 }
 0x785   : > { %v7241_v4 = vpack.c.bf16 %v7148_v14, %v7148_v14 }
 0x787   : > { %7242 = vst.msk [vmem:[#allocation3 + $0x8] sm:$0xf] %vm7198_vm13, %v7241_v4  ;;  %v10342_v4 = vld [vmem:[%s14874_s9 + $0xa8] sm:$0xff] }
 0x788   : > { %7827 = vmatpush.bf16.msra.mxu2 %v10342_v4 }
 0x78c   : > { %v7150_v61 = vpop.f32.mrf.mxu3 }
 0x78d   : > { %v7243_v54 = vpack.c.bf16 %v7150_v61, %v7150_v61  ;;  %v10350_v61 = vld [vmem:[%s14874_s9 + $0xe8] sm:$0xff] }
 0x78e   : > { %7840 = vmatpush.bf16.msrb.mxu0 %v10350_v61 }
 0x78f   : > { %7245 = vrot.lane.b32.xlu0 %v7243_v54, %s15093_s0 }
 0x791   : > { %9627 = vmatmul.msk.bf16.gmra.mxu3 %vm7076_vm12, %v7075_v60  ;;  %v10341_v60 = vld [vmem:[%s14874_s9 + $0xa0] sm:$0xff] }
 0x792   : > { %7828 = vmatpush.bf16.msra.mxu2 %v10341_v60 }
 0x794   : > { %v7153_v26 = vpop.f32.mrf.mxu3 }
 0x795   : > { %v7249_v48 = vpack.c.bf16 %v7153_v26, %v7153_v26 }
 0x797   : > { %7251 = vrot.lane.b32.xlu2 %v7249_v48, %s15098_s28 }
 0x79c   : > { %v7155_v15 = vpop.f32.mrf.mxu3 }
 0x79d   : > { %v7255_v23 = vpack.c.bf16 %v7155_v15, %v7155_v15  ;;  %v10340_v15 = vld [vmem:[%s14874_s9 + $0x98] sm:$0xff] }
 0x79e   : > { %7829 = vmatpush.bf16.msra.mxu2 %v10340_v15 }
 0x7a4   : > { %v7158_v40 = vpop.f32.mrf.mxu3 }
 0x7a5   : > { %v7261_v1 = vpack.c.bf16 %v7158_v40, %v7158_v40  ;;  %v10349_v40 = vld [vmem:[%s14874_s9 + $0xe0] sm:$0xff] }
 0x7a6   : > { %7841 = vmatpush.bf16.msrb.mxu0 %v10349_v40 }
 0x7a7   : > { %7262 = vst.msk [vmem:[#allocation3 + $0xc] sm:$0xf] %vm7198_vm13, %v7261_v1  ;;  %v10348_v1 = vld [vmem:[%s14874_s9 + $0xd8] sm:$0xff] }
 0x7aa   : > { %7842 = vmatpush.bf16.msrb.mxu0 %v10348_v1 }
 0x7ac   : > { %v7160_v47 = vpop.f32.mrf.mxu3 }
 0x7ad   : > { %v7263_v10 = vpack.c.bf16 %v7160_v47, %v7160_v47 }
 0x7af   : > { %7265 = vrot.lane.b32.xlu1 %v7263_v10, %s15093_s0  ;;  %v10339_v10 = vld [vmem:[%s14874_s9 + $0x90] sm:$0xff] }
 0x7b0   : > { %7830 = vmatpush.bf16.msra.mxu2 %v10339_v10 }
 0x7b1   : > { %v7210_v51 = vpop.permute.xlu2 %7209 }
 0x7b4   : > { %v7163_v11 = vpop.f32.mrf.mxu3 }
 0x7b5   : > { %v7269_v3 = vpack.c.bf16 %v7163_v11, %v7163_v11 }
 0x7b7   : > { %7271 = vrot.lane.b32.xlu0 %v7269_v3, %s15098_s28  ;;  %7257 = vrot.lane.b32.xlu1 %v7255_v23, %s15163_s24  ;;  %v10347_v23 = vld [vmem:[%s14874_s9 + $0xd0] sm:$0xff]  ;;  %v10338_v3 = vld [vmem:[%s14874_s9 + $0x88] sm:$0xff] }
 0x7b8   : > { %7843 = vmatpush.bf16.msrb.mxu0 %v10347_v23  ;;  %7831 = vmatpush.bf16.msra.mxu2 %v10338_v3 }
 0x7bc   : > { %v7165_v58 = vpop.f32.mrf.mxu3  ;;  %7844 = vmatpush.bf16.msrb.mxu0 %v10346_v35  ;;  %7832 = vmatpush.bf16.msra.mxu2 %v10337_v13 }
 0x7bd   : > { %v7275_v6 = vpack.c.bf16 %v7165_v58, %v7165_v58 }
 0x7bf   : > { %7277 = vrot.lane.b32.xlu2 %v7275_v6, %s15163_s24 }
 0x7c0   : > { %7845 = vmatpush.bf16.msrb.mxu0 %v10345_v24  ;;  %v10382_v24 = vld [vmem:[%s14877_s12 + $0x38] sm:$0xff] }
 0x7c1   : > { %v7203_v55 = vpop.permute.xlu0 %7202 }
 0x7c2   : > { %7206 = vst.msk [vmem:[#allocation3] sm:$0xf] %vm7205_vm14, %v7203_v55  ;;  %v10368_v55 = vld [vmem:[%s14874_s9 + $0x178] sm:$0xff] }
 0x7c3   : > { %7213 = vst.msk [vmem:[#allocation3] sm:$0xf] %vm7212_vm15, %v7210_v51  ;;  %7864 = vmatpush.bf16.msrb.mxu2 %v10368_v55 }
 0x7c4   : > { %v7168_v32 = vpop.f32.mrf.mxu3 }
 0x7c5   : > { %v7281_v59 = vpack.c.bf16 %v7168_v32, %v7168_v32  ;;  %v10358_v32 = vld [vmem:[%s14874_s9 + $0x128] sm:$0xff] }
 0x7c6   : > { %7853 = vmatpush.bf16.msrb.mxu1 %v10358_v32 }
 0x7c7   : > { %7282 = vst.msk [vmem:[#allocation3 + $0x10] sm:$0xf] %vm7198_vm13, %v7281_v59  ;;  %7865 = vmatpush.bf16.msrb.mxu2 %v10367_v20  ;;  %v10366_v59 = vld [vmem:[%s14874_s9 + $0x168] sm:$0xff]  ;;  %v10702_v20 = vld [vmem:[%s14875_s10] ss:$0 sm:$0xff] }
 0x7cb   : > { %7866 = vmatpush.bf16.msrb.mxu2 %v10366_v59  ;;  %v10703_v59 = vld [vmem:[%s14876_s11] ss:$0 sm:$0xff] }
 0x7cc   : > { %v7170_v46 = vpop.f32.mrf.mxu3 }
 0x7cd   : > { %v7283_v0 = vpack.c.bf16 %v7170_v46, %v7170_v46 }
 0x7cf   : > { %7285 = vrot.lane.b32.xlu0 %v7283_v0, %s15093_s0  ;;  %7867 = vmatpush.bf16.msrb.mxu2 %v10365_v7 }
 0x7d4   : > { %v7173_v44 = vpop.f32.mrf.mxu3 }
 0x7d5   : > { %v7289_v22 = vpack.c.bf16 %v7173_v44, %v7173_v44 }
 0x7d7   : > { %7291 = vrot.lane.b32.xlu2 %v7289_v22, %s15098_s28  ;;  %v10357_v22 = vld [vmem:[%s14874_s9 + $0x120] sm:$0xff] }
 0x7d8   : > { %7854 = vmatpush.bf16.msrb.mxu1 %v10357_v22 }
 0x7d9   : > { %v7238_v19 = vpop.permute.xlu2 %7237 }
 0x7dc   : > { %v7175_v42 = vpop.f32.mrf.mxu3  ;;  %7855 = vmatpush.bf16.msrb.mxu1 %v10356_v12 }
 0x7dd   : > { %v7295_v45 = vpack.c.bf16 %v7175_v42, %v7175_v42  ;;  %v10364_v42 = vld [vmem:[%s14874_s9 + $0x158] sm:$0xff] }
 0x7de   : > { %7868 = vmatpush.bf16.msrb.mxu2 %v10364_v42 }
 0x7e1   : > { %v7226_v38 = vpop.permute.xlu1 %7225 }
 0x7e2   : > { %7228 = vst.msk [vmem:[#allocation3 + $0x4] sm:$0xf] %vm7205_vm14, %v7226_v38  ;;  %v10355_v38 = vld [vmem:[%s14874_s9 + $0x110] sm:$0xff] }
 0x7e3   : > { %7856 = vmatpush.bf16.msrb.mxu1 %v10355_v38 }
 0x7e4   : > { %v7178_v28 = vpop.f32.mrf.mxu3 }
 0x7e5   : > { %v7301_v17 = vpack.c.bf16 %v7178_v28, %v7178_v28  ;;  %v10363_v28 = vld [vmem:[%s14874_s9 + $0x150] sm:$0xff] }
 0x7e6   : > { %7869 = vmatpush.bf16.msrb.mxu2 %v10363_v28 }
 0x7e7   : > { %7302 = vst.msk [vmem:[#allocation3 + $0x14] sm:$0xf] %vm7198_vm13, %v7301_v17  ;;  %v10354_v17 = vld [vmem:[%s14874_s9 + $0x108] sm:$0xff] }
 0x7e8   : > { %7857 = vmatpush.bf16.msrb.mxu1 %v10354_v17 }
 0x7e9   : > { %v7232_v62 = vpop.permute.xlu0 %7231  ;;  %v7217_v52 = vpop.permute.xlu1 %7216 }
 0x7ea   : > { %7234 = vst.msk [vmem:[#allocation3 + $0x4] sm:$0xf] %vm7212_vm15, %v7232_v62  ;;  %v10362_v62 = vld [vmem:[%s14874_s9 + $0x148] sm:$0xff] }
 0x7eb   : > { %7220 = vst.msk [vmem:[#allocation3] sm:$0xf] %vm7219_vm0, %v7217_v52  ;;  %7870 = vmatpush.bf16.msrb.mxu2 %v10362_v62  ;;  %v10353_v52 = vld [vmem:[%s14874_s9 + $0x100] sm:$0xff] }
 0x7ec   : > { %v7180_v63 = vpop.f32.mrf.mxu3  ;;  %7240 = vst.msk [vmem:[#allocation3 + $0x4] sm:$0xf] %vm7219_vm0, %v7238_v19  ;;  %v10361_v19 = vld [vmem:[%s14874_s9 + $0x140] sm:$0xff]  ;;  %7858 = vmatpush.bf16.msrb.mxu1 %v10353_v52 }
 0x7ed   : > { %v7303_v49 = vpack.c.bf16 %v7180_v63, %v7180_v63  ;;  %v10374_v63 = vld [vmem:[%s14874_s9 + $0x1a8] sm:$0xff] }
 0x7ef   : > { %7305 = vrot.lane.b32.xlu1 %v7303_v49, %s15093_s0  ;;  %7871 = vmatpush.bf16.msrb.mxu2 %v10361_v19  ;;  %v10373_v49 = vld [vmem:[%s14874_s9 + $0x1a0] sm:$0xff]  ;;  %v10380_v19 = vld [vmem:[%s14877_s12 + $0x28] sm:$0xff] }
 0x7f1   : > { %v7252_v54 = vpop.permute.xlu2 %7251 }
 0x7f3   : > { %v7335_v33 = vld [vmem:[#allocation3] sm:$0xff] }
 0x7f4   : > { %v7183_v31 = vpop.f32.mrf.mxu3  ;;  %v7451_v50 = vunpack.c.l.b16 %v7335_v33  ;;  %v7452_v57 = vunpack.c.h.b16 %v7335_v33  ;;  %v10372_v33 = vld [vmem:[%s14874_s9 + $0x198] sm:$0xff] }
 0x7f5   : > { %v7309_v21 = vpack.c.bf16 %v7183_v31, %v7183_v31 }
 0x7f6   : > { %v7458_v18 = vpack.c.b16 %v7451_v50, %v7451_v50  ;;  %v7459_v25 = vpack.c.b16 %v7452_v57, %v7452_v57 }
 0x7f7   : > { %7311 = vrot.lane.b32.xlu0 %v7309_v21, %s15098_s28  ;;  %7297 = vrot.lane.b32.xlu1 %v7295_v45, %s15163_s24  ;;  %v10371_v45 = vld [vmem:[%s14874_s9 + $0x190] sm:$0xff] }
 0x7f8   : > { %7807 = vmatmul.bf16.vlgmr.msra.gmra.mxu0 %v7458_v18  ;;  %7820 = vmatmul.bf16.vlgmr.msra.gmra.mxu1 %v7459_v25  ;;  %v10370_v18 = vld [vmem:[%s14874_s9 + $0x188] sm:$0xff]  ;;  %v10369_v25 = vld [vmem:[%s14874_s9 + $0x180] sm:$0xff] }
 0x7f9   : > { %7879 = vmatpush.bf16.msra.mxu0 %v10374_v63  ;;  %8215 = vmatpush.bf16.msra.mxu1 %v10382_v24  ;;  %v10390_v63 = vld [vmem:[%s14877_s12 + $0x78] sm:$0xff] }
 0x7fa   : > { %v10033_v24 = vld [vmem:[%s14880_s15 + $0x78] sm:$0xf0] }
 0x7fc   : > { %v7185_v43 = vpop.f32.mrf.mxu3 }
 0x7fd   : > { %v7315_v14 = vpack.c.bf16 %v7185_v43, %v7185_v43  ;;  %7880 = vmatpush.bf16.msra.mxu0 %v10373_v49  ;;  %8216 = vmatpush.bf16.msra.mxu1 %v10381_v8  ;;  %v10398_v49 = vld [vmem:[%s14877_s12 + $0xb8] sm:$0xff] }
 0x7ff   : > { %7317 = vrot.lane.b32.xlu2 %v7315_v14, %s15163_s24 }
 0x801   : > { %v7246_v30 = vpop.permute.xlu0 %7245  ;;  %7881 = vmatpush.bf16.msra.mxu0 %v10372_v33  ;;  %8217 = vmatpush.bf16.msra.mxu1 %v10380_v19  ;;  %v10379_v33 = vld [vmem:[%s14877_s12 + $0x20] sm:$0xff] }
 0x802   : > { %7248 = vst.msk [vmem:[#allocation3 + $0x8] sm:$0xf] %vm7205_vm14, %v7246_v30  ;;  %v10415_v19 = vld [vmem:[%s14880_s15 + $0x44] sm:$0xf] }
 0x803   : > { %7254 = vst.msk [vmem:[#allocation3 + $0x8] sm:$0xf] %vm7212_vm15, %v7252_v54 }
 0x804   : > { %v7188_v26 = vpop.f32.mrf.mxu3 }
 0x805   : > { %v7321_v48 = vpack.c.bf16 %v7188_v26, %v7188_v26  ;;  %7882 = vmatpush.bf16.msra.mxu0 %v10371_v45  ;;  %8218 = vmatpush.bf16.msra.mxu1 %v10379_v33  ;;  %v10377_v45 = vld [vmem:[%s14877_s12 + $0x10] sm:$0xff] }
 0x806   : > { %v9999_v33 = vld [vmem:[%s14880_s15 + $0x30] sm:$0xf] }
 0x807   : > { %7322 = vst.msk [vmem:[#allocation3 + $0x18] sm:$0xf] %vm7198_vm13, %v7321_v48 }
 0x809   : > { %7883 = vmatpush.bf16.msra.mxu0 %v10370_v18  ;;  %v10396_v18 = vld [vmem:[%s14877_s12 + $0xa8] sm:$0xff] }
 0x80c   : > { %v7190_v47 = vpop.f32.mrf.mxu3 }
 0x80d   : > { %v7323_v11 = vpack.c.bf16 %v7190_v47, %v7190_v47  ;;  %7884 = vmatpush.bf16.msra.mxu0 %v10369_v25  ;;  %v10376_v25 = vld [vmem:[%s14877_s12 + $0x8] sm:$0xff] }
 0x80f   : > { %7325 = vrot.lane.b32.xlu0 %v7323_v11, %s15093_s0 }
 0x814   : > { %v7193_v58 = vpop.f32.mrf.mxu3 }
 0x815   : > { %v7329_v6 = vpack.c.bf16 %v7193_v58, %v7193_v58 }
 0x817   : > { %7331 = vrot.lane.b32.xlu1 %v7329_v6, %s15098_s28 }
 0x819   : > { %v7278_v56 = vpop.permute.xlu2 %7277 }
 0x81c   : > { %v7195_v51 = vpop.f32.mrf.mxu3 }
 0x821   : > { %v7266_v16 = vpop.permute.xlu1 %7265 }
 0x822   : > { %7268 = vst.msk [vmem:[#allocation3 + $0xc] sm:$0xf] %vm7205_vm14, %v7266_v16 }
 0x829   : > { %v7272_v39 = vpop.permute.xlu0 %7271  ;;  %v7258_v36 = vpop.permute.xlu1 %7257 }
 0x82a   : > { %7274 = vst.msk [vmem:[#allocation3 + $0xc] sm:$0xf] %vm7212_vm15, %v7272_v39 }
 0x82b   : > { %7260 = vst.msk [vmem:[#allocation3 + $0x8] sm:$0xf] %vm7219_vm0, %v7258_v36 }
 0x82c   : > { %7280 = vst.msk [vmem:[#allocation3 + $0xc] sm:$0xf] %vm7219_vm0, %v7278_v56 }
 0x831   : > { %v7292_v44 = vpop.permute.xlu2 %7291 }
 0x833   : > { %v7336_v46 = vld [vmem:[#allocation3 + $0x8] sm:$0xff] }
 0x834   : > { %v7453_v0 = vunpack.c.l.b16 %v7336_v46  ;;  %v7454_v9 = vunpack.c.h.b16 %v7336_v46 }
 0x836   : > { %v7460_v37 = vpack.c.b16 %v7453_v0, %v7453_v0  ;;  %v7461_v34 = vpack.c.b16 %v7454_v9, %v7454_v9 }
 0x838   : > { %7833 = vmatmul.bf16.vlgmr.msra.gmra.mxu2 %v7460_v37  ;;  %7846 = vmatmul.bf16.vlgmr.msrb.gmra.mxu0 %v7461_v34 }
 0x839   : > { %8228 = vmatpush.bf16.msra.mxu2 %v10390_v63  ;;  %8241 = vmatpush.bf16.msrb.mxu0 %v10398_v49  ;;  %v10009_v49 = vld [vmem:[%s14880_s15 + $0x48] sm:$0xf0] }
 0x841   : > { %v7286_v53 = vpop.permute.xlu0 %7285 }
 0x842   : > { %7288 = vst.msk [vmem:[#allocation3 + $0x10] sm:$0xf] %vm7205_vm14, %v7286_v53 }
 0x843   : > { %7294 = vst.msk [vmem:[#allocation3 + $0x10] sm:$0xf] %vm7212_vm15, %v7292_v44 }
 0x859   : > { %v7318_v21 = vpop.permute.xlu2 %7317 }
 0x861   : > { %v7306_v31 = vpop.permute.xlu1 %7305 }
 0x862   : > { %7308 = vst.msk [vmem:[#allocation3 + $0x14] sm:$0xf] %vm7205_vm14, %v7306_v31  ;;  %v10378_v31 = vld [vmem:[%s14877_s12 + $0x18] sm:$0xff] }
 0x863   : > { %8219 = vmatpush.bf16.msra.mxu1 %v10378_v31  ;;  %v10414_v31 = vld [vmem:[%s14880_s15 + $0x34] sm:$0xf0] }
 0x867   : > { %8220 = vmatpush.bf16.msra.mxu1 %v10377_v45  ;;  %v10001_v45 = vld [vmem:[%s14880_s15 + $0x38] sm:$0xf0] }
 0x869   : > { %v7312_v50 = vpop.permute.xlu0 %7311  ;;  %v7298_v57 = vpop.permute.xlu1 %7297 }
 0x86a   : > { %7314 = vst.msk [vmem:[#allocation3 + $0x14] sm:$0xf] %vm7212_vm15, %v7312_v50  ;;  %v10389_v50 = vld [vmem:[%s14877_s12 + $0x70] sm:$0xff] }
 0x86b   : > { %7300 = vst.msk [vmem:[#allocation3 + $0x10] sm:$0xf] %vm7219_vm0, %v7298_v57  ;;  %v10397_v57 = vld [vmem:[%s14877_s12 + $0xb0] sm:$0xff]  ;;  %8229 = vmatpush.bf16.msra.mxu2 %v10389_v50  ;;  %8221 = vmatpush.bf16.msra.mxu1 %v10376_v25  ;;  %v10012_v50 = vor.u32 %v10415_v19, %v10009_v49  ;;  %v9991_v25 = vld [vmem:[%s14880_s15 + $0x20] sm:$0xf] }
 0x86c   : > { %7320 = vst.msk [vmem:[#allocation3 + $0x14] sm:$0xf] %vm7219_vm0, %v7318_v21  ;;  %v10388_v21 = vld [vmem:[%s14877_s12 + $0x68] sm:$0xff]  ;;  %8242 = vmatpush.bf16.msrb.mxu0 %v10397_v57  ;;  %v10413_v57 = vld [vmem:[%s14880_s15 + $0x34] sm:$0xf] }
 0x86f   : > { %8230 = vmatpush.bf16.msra.mxu2 %v10388_v21  ;;  %v10000_v21 = vor.u32 %v10414_v31, %v9999_v33 }
 0x870   : > { %8243 = vmatpush.bf16.msrb.mxu0 %v10396_v18  ;;  %v10004_v18 = vor.u32 %v10413_v57, %v10001_v45 }
 0x873   : > { %v7337_v2 = vld [vmem:[#allocation3 + $0x10] sm:$0xff] }
 0x874   : > { %v7455_v29 = vunpack.c.l.b16 %v7337_v2  ;;  %v7456_v41 = vunpack.c.h.b16 %v7337_v2  ;;  %v10387_v2 = vld [vmem:[%s14877_s12 + $0x60] sm:$0xff] }
 0x875   : > { %v7808_v43 = vpop.f32.mrf.mxu0  ;;  %v7821_v14 = vpop.f32.mrf.mxu1  ;;  %8231 = vmatpush.bf16.msra.mxu2 %v10387_v2  ;;  %v10412_v2 = vld [vmem:[%s14880_s15 + $0x24] sm:$0xf0] }
 0x876   : > { %v7462_v4 = vpack.c.b16 %v7455_v29, %v7455_v29  ;;  %v7463_v5 = vpack.c.b16 %v7456_v41, %v7456_v41  ;;  %v7822_v30 = vadd.f32 %v7821_v14, %v7808_v43  ;;  %v10395_v29 = vld [vmem:[%s14877_s12 + $0xa0] sm:$0xff]  ;;  %v10386_v43 = vld [vmem:[%s14877_s12 + $0x58] sm:$0xff] }
 0x877   : > { %v10375_v41 = vld [vmem:[%s14877_s12] sm:$0xff]  ;;  %8244 = vmatpush.bf16.msrb.mxu0 %v10395_v29  ;;  %v10394_v14 = vld [vmem:[%s14877_s12 + $0x98] sm:$0xff] }
 0x878   : > { %7859 = vmatmul.bf16.vlgmr.msrb.gmra.mxu1 %v7462_v4  ;;  %7872 = vmatmul.bf16.vlgmr.msrb.gmra.mxu2 %v7463_v5  ;;  %v10406_v4 = vld [vmem:[%s14877_s12 + $0xf8] sm:$0xff]  ;;  %v10385_v5 = vld [vmem:[%s14877_s12 + $0x50] sm:$0xff]  ;;  %v10411_v29 = vld [vmem:[%s14880_s15 + $0x24] sm:$0xf] }
 0x879   : > { %8222 = vmatpush.bf16.msra.mxu1 %v10375_v41  ;;  %8232 = vmatpush.bf16.msra.mxu2 %v10386_v43  ;;  %v9992_v41 = vor.u32 %v10412_v2, %v9991_v25  ;;  %v9993_v43 = vld [vmem:[%s14880_s15 + $0x28] sm:$0xf0]  ;;  %v10706_v25 = vld [vmem:[%s14883_s18] ss:$0 sm:$0xff] }
 0x87b   : > { %8245 = vmatpush.bf16.msrb.mxu0 %v10394_v14  ;;  %v9996_v14 = vor.u32 %v10411_v29, %v9993_v43 }
 0x87d   : > { %v7810_v61 = vpop.f32.mrf.mxu0  ;;  %v7823_v54 = vpop.f32.mrf.mxu1  ;;  %8254 = vmatpush.bf16.msrb.mxu1 %v10406_v4  ;;  %8233 = vmatpush.bf16.msra.mxu2 %v10385_v5  ;;  %v9983_v4 = vld [vmem:[%s14880_s15 + $0x10] sm:$0xf]  ;;  %v10410_v5 = vld [vmem:[%s14880_s15 + $0x14] sm:$0xf0] }
 0x87e   : > { %v10405_v61 = vld [vmem:[%s14877_s12 + $0xf0] sm:$0xff]  ;;  %v10384_v54 = vld [vmem:[%s14877_s12 + $0x48] sm:$0xff] }
 0x881   : > { %v7326_v60 = vpop.permute.xlu0 %7325  ;;  %8255 = vmatpush.bf16.msrb.mxu1 %v10405_v61  ;;  %8234 = vmatpush.bf16.msra.mxu2 %v10384_v54  ;;  %v9984_v61 = vor.u32 %v10410_v5, %v9983_v4  ;;  %v9985_v54 = vld [vmem:[%s14880_s15 + $0x18] sm:$0xf0] }
 0x882   : > { %7328 = vst.msk [vmem:[#allocation3 + $0x18] sm:$0xf] %vm7205_vm14, %v7326_v60  ;;  %v10392_v60 = vld [vmem:[%s14877_s12 + $0x88] sm:$0xff] }
 0x889   : > { %v7332_v26 = vpop.permute.xlu1 %7331 }
 0x88a   : > { %7334 = vst.msk [vmem:[#allocation3 + $0x18] sm:$0xf] %vm7212_vm15, %v7332_v26  ;;  %v10404_v26 = vld [vmem:[%s14877_s12 + $0xe8] sm:$0xff] }
 0x88b   : > { %8256 = vmatpush.bf16.msrb.mxu1 %v10404_v26  ;;  %v9975_v26 = vld [vmem:[%s14880_s15] sm:$0xf] }
 0x891   : > { %v7338_v48 = vld [vmem:[#allocation3 + $0x18] sm:$0xf] }
 0x892   : > { %v7457_v15 = vunpack.c.l.b16 %v7338_v48  ;;  %v10383_v48 = vld [vmem:[%s14877_s12 + $0x40] sm:$0xff] }
 0x893   : > { %8235 = vmatpush.bf16.msra.mxu2 %v10383_v48  ;;  %v10408_v48 = vld [vmem:[%s14880_s15 + $0x4] sm:$0xf0] }
 0x894   : > { %v7464_v40 = vpack.c.b16 %v7457_v15, %v7457_v15 }
 0x896   : > { %9844 = vmatmul.msk.bf16.vlgmr.msra.gmra.mxu0 %vm7795_vm1, %v7464_v40  ;;  %v10391_v40 = vld [vmem:[%s14877_s12 + $0x80] sm:$0xff] }
 0x8b5   : > { %v7847_v1 = vpop.f32.mrf.mxu0 }
 0x8bb   : > { %v7834_v47 = vpop.f32.mrf.mxu2 }
 0x8bc   : > { %v7835_v10 = vadd.f32 %v7834_v47, %v7822_v30  ;;  %v10393_v30 = vld [vmem:[%s14877_s12 + $0x90] sm:$0xff]  ;;  %v10402_v47 = vld [vmem:[%s14877_s12 + $0xd8] sm:$0xff] }
 0x8bd   : > { %v7849_v11 = vpop.f32.mrf.mxu0  ;;  %8246 = vmatpush.bf16.msrb.mxu0 %v10393_v30  ;;  %v10409_v30 = vld [vmem:[%s14880_s15 + $0x14] sm:$0xf] }
 0x8be   : > { %v7848_v23 = vadd.f32 %v7847_v1, %v7835_v10  ;;  %v10403_v1 = vld [vmem:[%s14877_s12 + $0xe0] sm:$0xff]  ;;  %v10401_v11 = vld [vmem:[%s14877_s12 + $0xd0] sm:$0xff] }
 0x8bf   : > { %8257 = vmatpush.bf16.msrb.mxu1 %v10403_v1  ;;  %v9977_v1 = vld [vmem:[%s14880_s15 + $0x8] sm:$0xf0] }
 0x8c1   : > { %8247 = vmatpush.bf16.msrb.mxu0 %v10392_v60  ;;  %v9988_v60 = vor.u32 %v10409_v30, %v9985_v54 }
 0x8c3   : > { %v7836_v3 = vpop.f32.mrf.mxu2  ;;  %8258 = vmatpush.bf16.msrb.mxu1 %v10402_v47 }
 0x8c4   : > { %v10399_v3 = vld [vmem:[%s14877_s12 + $0xc0] sm:$0xff] }
 0x8c5   : > { %8248 = vmatpush.bf16.msrb.mxu0 %v10391_v40  ;;  %v9976_v40 = vor.u32 %v10408_v48, %v9975_v26 }
 0x8c7   : > { %8259 = vmatpush.bf16.msrb.mxu1 %v10401_v11  ;;  %v10430_v11 = vld [vmem:[%s14882_s17 + $0x38] sm:$0xff] }
 0x8f5   : > { %v7860_v35 = vpop.f32.mrf.mxu1 }
 0x8f6   : > { %v7861_v55 = vadd.f32 %v7860_v35, %v7848_v23  ;;  %v10400_v23 = vld [vmem:[%s14877_s12 + $0xc8] sm:$0xff]  ;;  %v10031_v35 = vld [vmem:[%s14880_s15 + $0x70] sm:$0xf] }
 0x8f7   : > { %8260 = vmatpush.bf16.msrb.mxu1 %v10400_v23  ;;  %v10437_v23 = vld [vmem:[%s14882_s17 + $0x70] sm:$0xff] }
 0x8fb   : > { %v7873_v13 = vpop.f32.mrf.mxu2  ;;  %8261 = vmatpush.bf16.msrb.mxu1 %v10399_v3  ;;  %v10429_v3 = vld [vmem:[%s14882_s17 + $0x30] sm:$0xff] }
 0x8fc   : > { %v7874_v27 = vadd.f32 %v7873_v13, %v7861_v55  ;;  %v10422_v13 = vld [vmem:[%s14880_s15 + $0x74] sm:$0xf0] }
 0x8fd   : > { %v7862_v58 = vpop.f32.mrf.mxu1 }
 0x8fe   : > { %v10421_v58 = vld [vmem:[%s14880_s15 + $0x74] sm:$0xf] }
 0x903   : > { %v7875_v6 = vpop.f32.mrf.mxu2 }
 0x904   : > { %v10032_v6 = vor.u32 %v10422_v13, %v10031_v35 }
 0x906   : > { %8381 = vmatpush.bf16.msrb.mxu2 %v10032_v6  ;;  %v10428_v6 = vld [vmem:[%s14882_s17 + $0x28] sm:$0xff] }
 0x913   : > { %v7886_v51 = vpop.f32.mrf.mxu0 }
 0x914   : > { %v7887_v32 = vadd.f32 %v7886_v51, %v7874_v27  ;;  %v10036_v27 = vor.u32 %v10421_v58, %v10033_v24  ;;  %v10436_v58 = vld [vmem:[%s14882_s17 + $0x68] sm:$0xff]  ;;  %v10435_v24 = vld [vmem:[%s14882_s17 + $0x60] sm:$0xff] }
 0x916   : > { %v7894_v16 = vmul.f32 %v10702_v20, %v7887_v32  ;;  %8394 = vmatpush.bf16.msra.mxu0 %v10036_v27 }
 0x918   : > { %v7899_v39 = vadd.f32 %v10703_v59, %v7894_v16 }
 0x91a   : > { %v7900_v36 = vmax.f32 %v7899_v39, 0.0 }
 0x91b   : > { %v7888_v56 = vpop.f32.mrf.mxu0 }
 0x91c   : > { %v7926_v46 = vperm.slane %v7900_v36, 5  ;;  %v7916_v0 = vperm.slane %v7900_v36, 3  ;;  %v7905_v9 = vperm.slane %v7900_v36, 1  ;;  %v7901_v37 = vperm.slane %v7900_v36, 0 }
 0x91d   : > { %v7933_v34 = vperm.slane %v7900_v36, 6  ;;  %v7923_v53 = vperm.slane %v7900_v36, 4  ;;  %v7913_v44 = vperm.slane %v7900_v36, 2  ;;  %v7936_v62 = vperm.slane %v7900_v36, 7 }
 0x91e   : > { %v7927_v22 = vpack.c.bf16 %v7926_v46, %v7926_v46  ;;  %v7917_v7 = vpack.c.bf16 %v7916_v0, %v7916_v0  ;;  %v7906_v12 = vpack.c.bf16 %v7905_v9, %v7905_v9  ;;  %v7902_v42 = vpack.c.bf16 %v7901_v37, %v7901_v37  ;;  %v10023_v9 = vld [vmem:[%s14880_s15 + $0x60] sm:$0xf]  ;;  %v10420_v37 = vld [vmem:[%s14880_s15 + $0x64] sm:$0xf0] }
 0x91f   : > { %v7934_v38 = vpack.c.bf16 %v7933_v34, %v7933_v34  ;;  %v7924_v28 = vpack.c.bf16 %v7923_v53, %v7923_v53  ;;  %v7914_v17 = vpack.c.bf16 %v7913_v44, %v7913_v44  ;;  %v7937_v52 = vpack.c.bf16 %v7936_v62, %v7936_v62  ;;  %v10419_v34 = vld [vmem:[%s14880_s15 + $0x64] sm:$0xf]  ;;  %v10025_v44 = vld [vmem:[%s14880_s15 + $0x68] sm:$0xf0]  ;;  %v10007_v62 = vld [vmem:[%s14880_s15 + $0x40] sm:$0xf] }
 0x920   : > { %7929 = vrot.lane.b32.xlu1 %v7927_v22, %s15098_s28  ;;  %7919 = vrot.lane.b32.xlu0 %v7917_v7, %s15098_s28  ;;  %7904 = vst.msk [vmem:[#allocation4] sm:$0xf] %vm7903_vm2, %v7902_v42  ;;  %v10024_v53 = vor.u32 %v10420_v37, %v10023_v9  ;;  %v10015_v22 = vld [vmem:[%s14880_s15 + $0x50] sm:$0xf]  ;;  %v10418_v7 = vld [vmem:[%s14880_s15 + $0x54] sm:$0xf0] }
 0x921   : > { %7908 = vrot.lane.b32.xlu2 %v7906_v12, %s15098_s28  ;;  %7935 = vst.msk [vmem:[#allocation4 + $0xc] sm:$0xf] %vm7903_vm2, %v7934_v38  ;;  %v10028_v12 = vor.u32 %v10419_v34, %v10025_v44  ;;  %v10417_v42 = vld [vmem:[%s14880_s15 + $0x54] sm:$0xf]  ;;  %v10017_v38 = vld [vmem:[%s14880_s15 + $0x58] sm:$0xf0] }
 0x922   : > { %7925 = vst.msk [vmem:[#allocation4 + $0x8] sm:$0xf] %vm7903_vm2, %v7924_v28  ;;  %8382 = vmatpush.bf16.msrb.mxu2 %v10024_v53  ;;  %v10016_v28 = vor.u32 %v10418_v7, %v10015_v22  ;;  %v10705_v9 = vld [vmem:[%s14879_s14] ss:$0 sm:$0xff]  ;;  %v10432_v7 = vld [vmem:[%s14882_s17 + $0x48] sm:$0xff] }
 0x923   : > { %7915 = vst.msk [vmem:[#allocation4 + $0x4] sm:$0xf] %vm7903_vm2, %v7914_v17  ;;  %8395 = vmatpush.bf16.msra.mxu0 %v10028_v12  ;;  %v10020_v17 = vor.u32 %v10417_v42, %v10017_v38  ;;  %v10425_v12 = vld [vmem:[%s14882_s17 + $0x10] sm:$0xff]  ;;  %v10431_v42 = vld [vmem:[%s14882_s17 + $0x40] sm:$0xff]  ;;  %v10424_v38 = vld [vmem:[%s14882_s17 + $0x8] sm:$0xff] }
 0x926   : > { %8383 = vmatpush.bf16.msrb.mxu2 %v10016_v28  ;;  %v10423_v28 = vld [vmem:[%s14882_s17] sm:$0xff] }
 0x927   : > { %8396 = vmatpush.bf16.msra.mxu0 %v10020_v17  ;;  %v8295_v17 = vld [vmem:[%s14881_s16] sm:$0x3] }
 0x928   : > { %v8297_v49 = vperm.slane %v8295_v17, 0 }
 0x929   : > { %7939 = vrot.lane.b32.xlu2 %v7937_v52, %s15098_s28  ;;  %v10416_v52 = vld [vmem:[%s14880_s15 + $0x44] sm:$0xf0]  ;;  %s8629_s28 = sshll.u32 %s15361_s30, 3 }
 0x92a   : > { %v10008_v63 = vor.u32 %v10416_v52, %v10007_v62  ;;  %v8298_v62 = vperm.slane %v8295_v17, 1  ;;  %s600_s27 = scalar_lea.vmem %s15358_s22, %s8629_s28 }
 0x92b   : > { %8397 = vmatpush.bf16.msra.mxu0 %v10012_v50 }
 0x92c   : > { %8384 = vmatpush.bf16.msrb.mxu2 %v10008_v63 }
 0x92f   : > { %8398 = vmatpush.bf16.msra.mxu0 %v10004_v18 }
 0x930   : > { %8385 = vmatpush.bf16.msrb.mxu2 %v10000_v21 }
 0x933   : > { %8399 = vmatpush.bf16.msra.mxu0 %v9996_v14 }
 0x934   : > { %8386 = vmatpush.bf16.msrb.mxu2 %v9992_v41 }
 0x937   : > { %8400 = vmatpush.bf16.msra.mxu0 %v9988_v60 }
 0x938   : > { %8387 = vmatpush.bf16.msrb.mxu2 %v9984_v61 }
 0x93c   : > { %8388 = vmatpush.bf16.msrb.mxu2 %v9976_v40 }
 0x97b   : > { %v7909_v15 = vpop.permute.xlu2 %7908 }
 0x97c   : > { %7912 = vst.msk [vmem:[#allocation4] sm:$0xf] %vm7911_vm3, %v7909_v15  ;;  %v10407_v15 = vld [vmem:[%s14880_s15 + $0x4] sm:$0xf] }
 0x97d   : > { %v9980_v47 = vor.u32 %v10407_v15, %v9977_v1 }
 0x97f   : > { %8401 = vmatpush.bf16.msra.mxu0 %v9980_v47 }
 0x983   : > { %v7940_v10 = vpop.permute.xlu2 %7939 }
 0x984   : > { %7942 = vst.msk [vmem:[#allocation4 + $0xc] sm:$0xf] %vm7911_vm3, %v7940_v10  ;;  %v10438_v10 = vld [vmem:[%s14882_s17 + $0x78] sm:$0xff] }
 0x992   : > { %v7930_v8 = vpop.permute.xlu1 %7929  ;;  %v7920_v55 = vpop.permute.xlu0 %7919 }
 0x993   : > { %7932 = vst.msk [vmem:[#allocation4 + $0x8] sm:$0xf] %vm7911_vm3, %v7930_v8  ;;  %v10427_v8 = vld [vmem:[%s14882_s17 + $0x20] sm:$0xff] }
 0x994   : > { %7922 = vst.msk [vmem:[#allocation4 + $0x4] sm:$0xf] %vm7911_vm3, %v7920_v55 }
 0x99a   : > { %v7944_v20 = vld [vmem:[#allocation4 + $0x8] sm:$0xff] }
 0x99b   : > { %v7943_v51 = vld [vmem:[#allocation4] sm:$0xff]  ;;  %v8013_v32 = vunpack.c.l.b16 %v7944_v20  ;;  %v8014_v46 = vunpack.c.h.b16 %v7944_v20 }
 0x99c   : > { %v8011_v59 = vunpack.c.l.b16 %v7943_v51  ;;  %v8012_v16 = vunpack.c.h.b16 %v7943_v51  ;;  %v10434_v51 = vld [vmem:[%s14882_s17 + $0x58] sm:$0xff] }
 0x99d   : > { %v8017_v39 = vpack.c.b16 %v8013_v32, %v8013_v32  ;;  %v8018_v0 = vpack.c.b16 %v8014_v46, %v8014_v46  ;;  %v10426_v32 = vld [vmem:[%s14882_s17 + $0x18] sm:$0xff] }
 0x99e   : > { %v8015_v36 = vpack.c.b16 %v8011_v59, %v8011_v59  ;;  %v8016_v56 = vpack.c.b16 %v8012_v16, %v8012_v16  ;;  %v10433_v16 = vld [vmem:[%s14882_s17 + $0x50] sm:$0xff] }
 0x99f   : > { %8249 = vmatmul.bf16.vlgmr.msrb.gmra.mxu0 %v8017_v39 }
 0x9a0   : > { %8223 = vmatmul.bf16.vlgmr.msra.gmra.mxu1 %v8015_v36  ;;  %8236 = vmatmul.bf16.vlgmr.msra.gmra.mxu2 %v8016_v56  ;;  %v10704_v56 = vld [vmem:[%s14878_s13] ss:$0 sm:$0xff] }
 0x9a1   : > { %8556 = vmatpush.bf16.msra.mxu2 %v10438_v10  ;;  %8543 = vmatpush.bf16.msra.mxu1 %v10430_v11 }
 0x9a5   : > { %8557 = vmatpush.bf16.msra.mxu2 %v10437_v23  ;;  %8544 = vmatpush.bf16.msra.mxu1 %v10429_v3 }
 0x9a9   : > { %8558 = vmatpush.bf16.msra.mxu2 %v10436_v58  ;;  %8545 = vmatpush.bf16.msra.mxu1 %v10428_v6 }
 0x9ad   : > { %8559 = vmatpush.bf16.msra.mxu2 %v10435_v24  ;;  %8546 = vmatpush.bf16.msra.mxu1 %v10427_v8 }
 0x9b0   : > { %8262 = vmatmul.bf16.vlgmr.msrb.gmra.mxu1 %v8018_v0 }
 0x9b1   : > { %8560 = vmatpush.bf16.msra.mxu2 %v10434_v51  ;;  %8547 = vmatpush.bf16.msra.mxu1 %v10426_v32 }
 0x9b5   : > { %8561 = vmatpush.bf16.msra.mxu2 %v10433_v16  ;;  %8548 = vmatpush.bf16.msra.mxu1 %v10425_v12 }
 0x9b9   : > { %8562 = vmatpush.bf16.msra.mxu2 %v10432_v7  ;;  %8549 = vmatpush.bf16.msra.mxu1 %v10424_v38 }
 0x9bd   : > { %8563 = vmatpush.bf16.msra.mxu2 %v10431_v42  ;;  %8550 = vmatpush.bf16.msra.mxu1 %v10423_v28 }
 0xa1c   : > { %v8250_v35 = vpop.f32.mrf.mxu0 }
 0xa1d   : > { %v8224_v13 = vpop.f32.mrf.mxu1 }
 0xa23   : > { %v8237_v55 = vpop.f32.mrf.mxu2 }
 0xa24   : > { %v8252_v27 = vpop.f32.mrf.mxu0  ;;  %v8238_v59 = vadd.f32 %v8237_v55, %v8224_v13 }
 0xa25   : > { %v8226_v20 = vpop.f32.mrf.mxu1 }
 0xa26   : > { %v8251_v36 = vadd.f32 %v8250_v35, %v8238_v59 }
 0xa2b   : > { %v8239_v39 = vpop.f32.mrf.mxu2 }
 0xa2d   : > { %v8263_v46 = vpop.f32.mrf.mxu1 }
 0xa2e   : > { %v8264_v0 = vadd.f32 %v8263_v46, %v8251_v36 }
 0xa30   : > { %v8271_v37 = vmul.f32 %v10704_v56, %v8264_v0 }
 0xa32   : > { %v8276_v34 = vadd.f32 %v10705_v9, %v8271_v37 }
 0xa34   : > { %v8277_v53 = vmax.f32 %v8276_v34, 0.0 }
 0xa35   : > { %v8265_v44 = vpop.f32.mrf.mxu1 }
 0xa36   : > { %v8278_v22 = vpack.c.bf16 %v8277_v53, %v8277_v53 }
 0xa38   : > { %8389 = vmatmul.bf16.vlgmr.msrb.gmra.mxu2 %v8278_v22  ;;  %8402 = vmatmul.bf16.vlgmr.msra.gmra.mxu0 %v8278_v22 }
 0xab5   : > { %v8403_v52 = vpop.f32.mrf.mxu0 }
 0xab6   : > { %v8404_v19 = vadd.f32 %v8403_v52, %v8298_v62 }
 0xab8   : > { %v8408_v63 = vmax.f32 %v8404_v19, 0.0 }
 0xaba   : > { %v8410_v33 = vpack.c.bf16 %v8408_v63, %v8408_v63 }
 0xabb   : > { %v8390_v31 = vpop.f32.mrf.mxu2 }
 0xabc   : > { %v8391_v50 = vadd.f32 %v8390_v31, %v8297_v49  ;;  %8564 = vmatmul.bf16.vlgmr.msra.gmra.mxu2 %v8410_v33 }
 0xabd   : > { %v8405_v57 = vpop.f32.mrf.mxu0 }
 0xabe   : > { %v8407_v45 = vmax.f32 %v8391_v50, 0.0 }
 0xac0   : > { %v8409_v21 = vpack.c.bf16 %v8407_v45, %v8407_v45 }
 0xac2   : > { %8551 = vmatmul.bf16.vlgmr.msra.gmra.mxu1 %v8409_v21 }
 0xac3   : > { %v8392_v18 = vpop.f32.mrf.mxu2 }
 0xb3f   : > { %v8552_v2 = vpop.f32.mrf.mxu1  ;;  %v8565_v29 = vpop.f32.mrf.mxu2 }
 0xb40   : > { %v8553_v41 = vadd.f32 %v10706_v25, %v8552_v2 }
 0xb42   : > { %v8566_v43 = vadd.f32 %v8565_v29, %v8553_v41 }
 0xb44   : > { %8569 = vst [vmem:[%s600_s27] sm:$0xff] %v8566_v43 }
 0xb47   : > { %v8554_v14 = vpop.f32.mrf.mxu1  ;;  %v8567_v4 = vpop.f32.mrf.mxu2 }
 0xb48 PF: > { %s15359_s25 = sld [smem:[#allocation5_spill]] }
 0xb4e   : > { %s29_s0 = sadd.s32 1, %s15359_s25  }
 0xb4f   : > { %p26_p4 = scmp.ge.s32.totalorder %s29_s0, 4  }
 0xb51   :  { %28 = sbr.rel (!%p26_p4) target bundleno = 6 (0x6), region = 126 }

</bundles_post_ra>
